<compile_context>
chip_gen: v6e
topology: v6e:2x2x1
jax: 0.10.0
libtpu: 0.0.40
codegen_flags: <defaults>
</compile_context>

<pallas_src>
import functools

import jax
import jax.numpy as jnp
from jax.experimental import pallas as pl
from jax.experimental.pallas import tpu as pltpu


def _disc_fused_kernel(x_ref, w1_ref, b1_ref, w2_ref, b2_ref, w3_ref, b3_ref,
                       wc_ref, bc_ref, o_ref, pad_ref, col_ref,
                       *, H, W, Cin, ndf, compute_dtype):
    """Fused Discriminator_large forward for one image (one grid step).

    x_ref : (1, H, W, Cin)        input image tile (NHWC)
    wK_ref: (9*CinK, ndf)         im2col-flattened conv weights (tap-major)
    bK_ref: (1, ndf)              conv biases
    wc_ref: (9, ndf)              classifier weights (tap, channel)
    bc_ref: (1, 1)                classifier bias
    o_ref : (1, H, W)             output map (single channel, squeezed)
    pad_ref: VMEM (H+2, W+2, ndf) zero-halo activation buffer (reused per layer)
    col_ref: VMEM (H*W, 9*ndf)    im2col patch matrix scratch
    """
    HW = H * W

    # ---- stage the input into the zero halo buffer (this IS padding=1) ----
    pad_ref[...] = jnp.zeros_like(pad_ref)            # borders stay 0 for all layers
    pad_ref[1:H + 1, 1:W + 1, :Cin] = x_ref[0]

    def conv3x3_lrelu(cin, w_ref, b_ref):
        # Build im2col matrix (H*W, 9*cin): 9 shifted windows of the halo buffer,
        # channels packed contiguously on the lane axis.
        for dy in range(3):
            for dx in range(3):
                k = dy * 3 + dx
                patch = pad_ref[dy:dy + H, dx:dx + W, :cin]        # (H, W, cin)
                col_ref[:, k * cin:(k + 1) * cin] = patch.reshape(HW, cin)
        col = col_ref[:, :9 * cin].astype(compute_dtype)
        # Single wide-K MXU matmul per layer, f32 accumulation.
        acc = jnp.dot(col, w_ref[...].astype(compute_dtype),
                      preferred_element_type=jnp.float32)
        acc = acc + b_ref[...]                                     # (1, ndf) broadcast
        return jnp.where(acc >= 0.0, acc, 0.2 * acc)               # LeakyReLU(0.2)

    # conv1 -> conv2 -> conv3 ; activations never leave VMEM.
    a = conv3x3_lrelu(Cin, w1_ref, b1_ref)
    pad_ref[1:H + 1, 1:W + 1, :] = a.reshape(H, W, ndf)
    a = conv3x3_lrelu(ndf, w2_ref, b2_ref)
    pad_ref[1:H + 1, 1:W + 1, :] = a.reshape(H, W, ndf)
    a = conv3x3_lrelu(ndf, w3_ref, b3_ref)
    pad_ref[1:H + 1, 1:W + 1, :] = a.reshape(H, W, ndf)

    # Classifier (3x3 conv, Cout=1): per-tap VPU multiply + channel reduction
    # instead of a (H*W, ndf) x (ndf, 1) matmul with 1/128 lane occupancy.
    s = jnp.zeros((H, W, ndf), jnp.float32)
    for dy in range(3):
        for dx in range(3):
            k = dy * 3 + dx
            w_tap = wc_ref[k:k + 1, :].reshape(1, 1, ndf)
            s = s + pad_ref[dy:dy + H, dx:dx + W, :] * w_tap
    out_hw = jnp.sum(s, axis=-1) + bc_ref[...]                     # (H, W) + (1, 1)
    o_ref[0] = out_hw.astype(o_ref.dtype)


def discriminator_large_forward(x_nchw, params, *, compute_dtype=jnp.float32):
    """Matches Discriminator_large.forward; input/output are NCHW like PyTorch.

    compute_dtype: jnp.float32 (default) or jnp.bfloat16 (recommended on
    v6e / v7x for 2x MXU throughput; accumulation stays f32 either way).
    """
    x = jnp.transpose(x_nchw, (0, 2, 3, 1)).astype(jnp.float32)    # NCHW -> NHWC
    N, H, W, Cin = x.shape

    w1, b1 = params["conv1"]
    w2, b2 = params["conv2"]
    w3, b3 = params["conv3"]
    wc, bc = params["classifier"]
    ndf = w1.shape[-1]

    # im2col-flattened weights: (3,3,cin,cout) -> (9*cin, cout), tap-major.
    w1f = w1.reshape(9 * Cin, ndf)
    w2f = w2.reshape(9 * ndf, ndf)
    w3f = w3.reshape(9 * ndf, ndf)
    wcf = wc.reshape(9, ndf)                                       # (3,3,ndf,1) -> (9, ndf)

    kernel = functools.partial(_disc_fused_kernel, H=H, W=W, Cin=Cin, ndf=ndf,
                               compute_dtype=compute_dtype)

    out = pl.pallas_call(
        kernel,
        out_shape=jax.ShapeDtypeStruct((N, H, W), jnp.float32),
        grid=(N,),
        in_specs=[
            pl.BlockSpec((1, H, W, Cin), lambda n: (n, 0, 0, 0)),  # image
            pl.BlockSpec((9 * Cin, ndf), lambda n: (0, 0)),        # w1
            pl.BlockSpec((1, ndf), lambda n: (0, 0)),              # b1
            pl.BlockSpec((9 * ndf, ndf), lambda n: (0, 0)),        # w2
            pl.BlockSpec((1, ndf), lambda n: (0, 0)),              # b2
            pl.BlockSpec((9 * ndf, ndf), lambda n: (0, 0)),        # w3
            pl.BlockSpec((1, ndf), lambda n: (0, 0)),              # b3
            pl.BlockSpec((9, ndf), lambda n: (0, 0)),              # classifier w
            pl.BlockSpec((1, 1), lambda n: (0, 0)),                # classifier b
        ],
        out_specs=pl.BlockSpec((1, H, W), lambda n: (n, 0, 0)),
        scratch_shapes=[
            pltpu.VMEM((H + 2, W + 2, ndf), jnp.float32),          # halo activation buffer
            pltpu.VMEM((H * W, 9 * ndf), jnp.float32),             # im2col patch matrix
        ],
        compiler_params=pltpu.CompilerParams(
            dimension_semantics=("parallel",)),                    # v7x: 1 image per TC
    )(x, w1f, b1.reshape(1, ndf), w2f, b2.reshape(1, ndf),
      w3f, b3.reshape(1, ndf), wcf, bc.reshape(1, 1))

    return out.reshape(N, 1, H, W)                                 # -> NCHW (C=1)


def init_params(key, input_nc, ndf):
    """Deterministic synthetic weights (PyTorch-like small uniform init), HWIO."""
    def conv_init(k, cin, cout):
        k1, k2 = jax.random.split(k)
        bound = 1.0 / jnp.sqrt(cin * 9.0)
        w = jax.random.uniform(k1, (3, 3, cin, cout), jnp.float32, -bound, bound)
        b = jax.random.uniform(k2, (cout,), jnp.float32, -bound, bound)
        return w, b

    k1, k2, k3, k4 = jax.random.split(key, 4)
    return {
        "conv1": conv_init(k1, input_nc, ndf),
        "conv2": conv_init(k2, ndf, ndf),
        "conv3": conv_init(k3, ndf, ndf),
        "classifier": conv_init(k4, ndf, 1),
    }


def _reference_forward(x_nchw, params):
    """Pure-JAX reference (lax.conv) for correctness sanity check."""
    x = x_nchw.astype(jnp.float32)

    def conv(x, w, b):
        y = jax.lax.conv_general_dilated(
            x, w, window_strides=(1, 1), padding="SAME",
            dimension_numbers=("NCHW", "HWIO", "NCHW"))
        return y + b.reshape(1, -1, 1, 1)

    def lrelu(x):
        return jnp.where(x >= 0.0, x, 0.2 * x)

    x = lrelu(conv(x, *params["conv1"]))
    x = lrelu(conv(x, *params["conv2"]))
    x = lrelu(conv(x, *params["conv3"]))
    x = conv(x, *params["classifier"])
    return x


if __name__ == "__main__":
    key = jax.random.PRNGKey(0)
    k_x, k_p = jax.random.split(key)

    batch, input_nc, H, W = 2, 4, 16, 16
    ndf = 32

    x = jax.random.normal(k_x, (batch, input_nc, H, W), jnp.float32)  # NCHW
    params = init_params(k_p, input_nc, ndf)

    fwd = jax.jit(discriminator_large_forward, static_argnames=("compute_dtype",))
    out = jax.block_until_ready(fwd(x, params))

    ref = _reference_forward(x, params)
    assert out.shape == (batch, 1, H, W), out.shape
    # Tolerance accounts for TPU MXU default matmul precision (bf16 passes) in
    # either the XLA reference conv or the in-kernel dots; real bugs show up as
    # O(0.1) errors, far above this.
    max_err = float(jnp.max(jnp.abs(out - ref)))
    assert jnp.allclose(out, ref, atol=2e-3, rtol=2e-3), f"mismatch vs reference: {max_err}"

    print("KERNEL_OK")
</pallas_src>

<mosaic_0001>
module attributes {stable_mosaic.version = 11 : i64} {
  func.func @_disc_fused_kernel(%arg0: i32, %arg1: memref<1x16x16x4xf32, #tpu.memory_space<vmem>>, %arg2: memref<36x32xf32, #tpu.memory_space<vmem>>, %arg3: memref<1x32xf32, #tpu.memory_space<vmem>>, %arg4: memref<288x32xf32, #tpu.memory_space<vmem>>, %arg5: memref<1x32xf32, #tpu.memory_space<vmem>>, %arg6: memref<288x32xf32, #tpu.memory_space<vmem>>, %arg7: memref<1x32xf32, #tpu.memory_space<vmem>>, %arg8: memref<9x32xf32, #tpu.memory_space<vmem>>, %arg9: memref<1x1xf32, #tpu.memory_space<vmem>>, %arg10: memref<1x16x16xf32, #tpu.memory_space<vmem>>, %arg11: memref<18x18x32xf32, #tpu.memory_space<vmem>>, %arg12: memref<256x288xf32, #tpu.memory_space<vmem>>) attributes {dimension_semantics = [#tpu.dimension_semantics<parallel>], iteration_bounds = array<i64: 2>, scalar_prefetch = 0 : i64, scratch_operands = 2 : i64, tpu.core_type = #tpu.core_type<tc>, window_params = [{transform_indices = @transform_0, window_bounds = array<i64: 1, 16, 16, 4>}, {pipeline_mode = #tpu.pipeline_mode<synchronous>, transform_indices = @transform_1, window_bounds = array<i64: 36, 32>}, {pipeline_mode = #tpu.pipeline_mode<synchronous>, transform_indices = @transform_2, window_bounds = array<i64: 1, 32>}, {pipeline_mode = #tpu.pipeline_mode<synchronous>, transform_indices = @transform_3, window_bounds = array<i64: 288, 32>}, {pipeline_mode = #tpu.pipeline_mode<synchronous>, transform_indices = @transform_4, window_bounds = array<i64: 1, 32>}, {pipeline_mode = #tpu.pipeline_mode<synchronous>, transform_indices = @transform_5, window_bounds = array<i64: 288, 32>}, {pipeline_mode = #tpu.pipeline_mode<synchronous>, transform_indices = @transform_6, window_bounds = array<i64: 1, 32>}, {pipeline_mode = #tpu.pipeline_mode<synchronous>, transform_indices = @transform_7, window_bounds = array<i64: 9, 32>}, {pipeline_mode = #tpu.pipeline_mode<synchronous>, transform_indices = @transform_8, window_bounds = array<i64: 1, 1>}, {transform_indices = @transform_9, window_bounds = array<i64: 1, 16, 16>}]} {
    %cst = arith.constant 0.000000e+00 : f32
    %0 = vector.broadcast %cst : f32 to vector<18x18x32xf32>
    %c0 = arith.constant 0 : index
    %c0_0 = arith.constant 0 : index
    %c0_1 = arith.constant 0 : index
    %1 = vector.load %arg11[%c0, %c0_0, %c0_1] : memref<18x18x32xf32, #tpu.memory_space<vmem>>, vector<18x18x32xf32>
    tpu.vector_store %arg11[%c0, %c0_0, %c0_1], %0 {strides = array<i32>} : memref<18x18x32xf32, #tpu.memory_space<vmem>>, vector<18x18x32xf32>,
    %c0_2 = arith.constant 0 : index
    %c0_3 = arith.constant 0 : index
    %c0_4 = arith.constant 0 : index
    %c0_5 = arith.constant 0 : index
    %2 = vector.load %arg1[%c0_2, %c0_3, %c0_4, %c0_5] : memref<1x16x16x4xf32, #tpu.memory_space<vmem>>, vector<1x16x16x4xf32>
    %3 = vector.shape_cast %2 : vector<1x16x16x4xf32> to vector<16x16x4xf32>
    %c1 = arith.constant 1 : index
    %c1_6 = arith.constant 1 : index
    %c0_7 = arith.constant 0 : index
    %4 = vector.load %arg11[%c1, %c1_6, %c0_7] : memref<18x18x32xf32, #tpu.memory_space<vmem>>, vector<16x16x4xf32>
    tpu.vector_store %arg11[%c1, %c1_6, %c0_7], %3 {strides = array<i32>} : memref<18x18x32xf32, #tpu.memory_space<vmem>>, vector<16x16x4xf32>,
    %c0_8 = arith.constant 0 : index
    %c0_9 = arith.constant 0 : index
    %c0_10 = arith.constant 0 : index
    %5 = vector.load %arg11[%c0_8, %c0_9, %c0_10] : memref<18x18x32xf32, #tpu.memory_space<vmem>>, vector<16x16x4xf32>
    %6 = vector.shape_cast %5 : vector<16x16x4xf32> to vector<256x4xf32>
    %c0_11 = arith.constant 0 : index
    %c0_12 = arith.constant 0 : index
    %7 = vector.load %arg12[%c0_11, %c0_12] : memref<256x288xf32, #tpu.memory_space<vmem>>, vector<256x4xf32>
    tpu.vector_store %arg12[%c0_11, %c0_12], %6 {strides = array<i32>} : memref<256x288xf32, #tpu.memory_space<vmem>>, vector<256x4xf32>,
    %c0_13 = arith.constant 0 : index
    %c1_14 = arith.constant 1 : index
    %c0_15 = arith.constant 0 : index
    %8 = vector.load %arg11[%c0_13, %c1_14, %c0_15] : memref<18x18x32xf32, #tpu.memory_space<vmem>>, vector<16x16x4xf32>
    %9 = vector.shape_cast %8 : vector<16x16x4xf32> to vector<256x4xf32>
    %c0_16 = arith.constant 0 : index
    %c4 = arith.constant 4 : index
    %10 = vector.load %arg12[%c0_16, %c4] : memref<256x288xf32, #tpu.memory_space<vmem>>, vector<256x4xf32>
    tpu.vector_store %arg12[%c0_16, %c4], %9 {strides = array<i32>} : memref<256x288xf32, #tpu.memory_space<vmem>>, vector<256x4xf32>,
    %c0_17 = arith.constant 0 : index
    %c2 = arith.constant 2 : index
    %c0_18 = arith.constant 0 : index
    %11 = vector.load %arg11[%c0_17, %c2, %c0_18] : memref<18x18x32xf32, #tpu.memory_space<vmem>>, vector<16x16x4xf32>
    %12 = vector.shape_cast %11 : vector<16x16x4xf32> to vector<256x4xf32>
    %c0_19 = arith.constant 0 : index
    %c8 = arith.constant 8 : index
    %13 = vector.load %arg12[%c0_19, %c8] : memref<256x288xf32, #tpu.memory_space<vmem>>, vector<256x4xf32>
    tpu.vector_store %arg12[%c0_19, %c8], %12 {strides = array<i32>} : memref<256x288xf32, #tpu.memory_space<vmem>>, vector<256x4xf32>,
    %c1_20 = arith.constant 1 : index
    %c0_21 = arith.constant 0 : index
    %c0_22 = arith.constant 0 : index
    %14 = vector.load %arg11[%c1_20, %c0_21, %c0_22] : memref<18x18x32xf32, #tpu.memory_space<vmem>>, vector<16x16x4xf32>
    %15 = vector.shape_cast %14 : vector<16x16x4xf32> to vector<256x4xf32>
    %c0_23 = arith.constant 0 : index
    %c12 = arith.constant 12 : index
    %16 = vector.load %arg12[%c0_23, %c12] : memref<256x288xf32, #tpu.memory_space<vmem>>, vector<256x4xf32>
    tpu.vector_store %arg12[%c0_23, %c12], %15 {strides = array<i32>} : memref<256x288xf32, #tpu.memory_space<vmem>>, vector<256x4xf32>,
    %c1_24 = arith.constant 1 : index
    %c1_25 = arith.constant 1 : index
    %c0_26 = arith.constant 0 : index
    %17 = vector.load %arg11[%c1_24, %c1_25, %c0_26] : memref<18x18x32xf32, #tpu.memory_space<vmem>>, vector<16x16x4xf32>
    %18 = vector.shape_cast %17 : vector<16x16x4xf32> to vector<256x4xf32>
    %c0_27 = arith.constant 0 : index
    %c16 = arith.constant 16 : index
    %19 = vector.load %arg12[%c0_27, %c16] : memref<256x288xf32, #tpu.memory_space<vmem>>, vector<256x4xf32>
    tpu.vector_store %arg12[%c0_27, %c16], %18 {strides = array<i32>} : memref<256x288xf32, #tpu.memory_space<vmem>>, vector<256x4xf32>,
    %c1_28 = arith.constant 1 : index
    %c2_29 = arith.constant 2 : index
    %c0_30 = arith.constant 0 : index
    %20 = vector.load %arg11[%c1_28, %c2_29, %c0_30] : memref<18x18x32xf32, #tpu.memory_space<vmem>>, vector<16x16x4xf32>
    %21 = vector.shape_cast %20 : vector<16x16x4xf32> to vector<256x4xf32>
    %c0_31 = arith.constant 0 : index
    %c20 = arith.constant 20 : index
    %22 = vector.load %arg12[%c0_31, %c20] : memref<256x288xf32, #tpu.memory_space<vmem>>, vector<256x4xf32>
    tpu.vector_store %arg12[%c0_31, %c20], %21 {strides = array<i32>} : memref<256x288xf32, #tpu.memory_space<vmem>>, vector<256x4xf32>,
    %c2_32 = arith.constant 2 : index
    %c0_33 = arith.constant 0 : index
    %c0_34 = arith.constant 0 : index
    %23 = vector.load %arg11[%c2_32, %c0_33, %c0_34] : memref<18x18x32xf32, #tpu.memory_space<vmem>>, vector<16x16x4xf32>
    %24 = vector.shape_cast %23 : vector<16x16x4xf32> to vector<256x4xf32>
    %c0_35 = arith.constant 0 : index
    %c24 = arith.constant 24 : index
    %25 = vector.load %arg12[%c0_35, %c24] : memref<256x288xf32, #tpu.memory_space<vmem>>, vector<256x4xf32>
    tpu.vector_store %arg12[%c0_35, %c24], %24 {strides = array<i32>} : memref<256x288xf32, #tpu.memory_space<vmem>>, vector<256x4xf32>,
    %c2_36 = arith.constant 2 : index
    %c1_37 = arith.constant 1 : index
    %c0_38 = arith.constant 0 : index
    %26 = vector.load %arg11[%c2_36, %c1_37, %c0_38] : memref<18x18x32xf32, #tpu.memory_space<vmem>>, vector<16x16x4xf32>
    %27 = vector.shape_cast %26 : vector<16x16x4xf32> to vector<256x4xf32>
    %c0_39 = arith.constant 0 : index
    %c28 = arith.constant 28 : index
    %28 = vector.load %arg12[%c0_39, %c28] : memref<256x288xf32, #tpu.memory_space<vmem>>, vector<256x4xf32>
    tpu.vector_store %arg12[%c0_39, %c28], %27 {strides = array<i32>} : memref<256x288xf32, #tpu.memory_space<vmem>>, vector<256x4xf32>,
    %c2_40 = arith.constant 2 : index
    %c2_41 = arith.constant 2 : index
    %c0_42 = arith.constant 0 : index
    %29 = vector.load %arg11[%c2_40, %c2_41, %c0_42] : memref<18x18x32xf32, #tpu.memory_space<vmem>>, vector<16x16x4xf32>
    %30 = vector.shape_cast %29 : vector<16x16x4xf32> to vector<256x4xf32>
    %c0_43 = arith.constant 0 : index
    %c32 = arith.constant 32 : index
    %31 = vector.load %arg12[%c0_43, %c32] : memref<256x288xf32, #tpu.memory_space<vmem>>, vector<256x4xf32>
    tpu.vector_store %arg12[%c0_43, %c32], %30 {strides = array<i32>} : memref<256x288xf32, #tpu.memory_space<vmem>>, vector<256x4xf32>,
    %c0_44 = arith.constant 0 : index
    %c0_45 = arith.constant 0 : index
    %32 = vector.load %arg12[%c0_44, %c0_45] : memref<256x288xf32, #tpu.memory_space<vmem>>, vector<256x36xf32>
    %c0_46 = arith.constant 0 : index
    %c0_47 = arith.constant 0 : index
    %33 = vector.load %arg2[%c0_46, %c0_47] : memref<36x32xf32, #tpu.memory_space<vmem>>, vector<36x32xf32>
    %cst_48 = arith.constant dense<0.000000e+00> : vector<256x32xf32>
    %34 = tpu.matmul %32, %33, %cst_48 {dimension_numbers = #tpu.dot_dimension_numbers<[1], [0], [0], [1], [0, 0, 1, 1], [], []>} : vector<256x36xf32>, vector<36x32xf32>, vector<256x32xf32> -> vector<256x32xf32>
    %c0_49 = arith.constant 0 : index
    %c0_50 = arith.constant 0 : index
    %35 = vector.load %arg3[%c0_49, %c0_50] : memref<1x32xf32, #tpu.memory_space<vmem>>, vector<1x32xf32>
    %36 = vector.broadcast %35 : vector<1x32xf32> to vector<256x32xf32>
    %37 = arith.addf %34, %36 : vector<256x32xf32>
    %cst_51 = arith.constant 0.000000e+00 : f32
    %38 = vector.broadcast %cst_51 : f32 to vector<256x32xf32>
    %39 = arith.cmpf oge, %37, %38 : vector<256x32xf32>
    %cst_52 = arith.constant 2.000000e-01 : f32
    %40 = vector.broadcast %cst_52 : f32 to vector<256x32xf32>
    %41 = arith.mulf %40, %37 : vector<256x32xf32>
    %42 = arith.select %39, %37, %41 : vector<256x32xi1>, vector<256x32xf32>
    %43 = vector.shape_cast %42 : vector<256x32xf32> to vector<16x16x32xf32>
    %c1_53 = arith.constant 1 : index
    %c1_54 = arith.constant 1 : index
    %c0_55 = arith.constant 0 : index
    %44 = vector.load %arg11[%c1_53, %c1_54, %c0_55] : memref<18x18x32xf32, #tpu.memory_space<vmem>>, vector<16x16x32xf32>
    tpu.vector_store %arg11[%c1_53, %c1_54, %c0_55], %43 {strides = array<i32>} : memref<18x18x32xf32, #tpu.memory_space<vmem>>, vector<16x16x32xf32>,
    %c0_56 = arith.constant 0 : index
    %c0_57 = arith.constant 0 : index
    %c0_58 = arith.constant 0 : index
    %45 = vector.load %arg11[%c0_56, %c0_57, %c0_58] : memref<18x18x32xf32, #tpu.memory_space<vmem>>, vector<16x16x32xf32>
    %46 = vector.shape_cast %45 : vector<16x16x32xf32> to vector<256x32xf32>
    %c0_59 = arith.constant 0 : index
    %c0_60 = arith.constant 0 : index
    %47 = vector.load %arg12[%c0_59, %c0_60] : memref<256x288xf32, #tpu.memory_space<vmem>>, vector<256x32xf32>
    tpu.vector_store %arg12[%c0_59, %c0_60], %46 {strides = array<i32>} : memref<256x288xf32, #tpu.memory_space<vmem>>, vector<256x32xf32>,
    %c0_61 = arith.constant 0 : index
    %c1_62 = arith.constant 1 : index
    %c0_63 = arith.constant 0 : index
    %48 = vector.load %arg11[%c0_61, %c1_62, %c0_63] : memref<18x18x32xf32, #tpu.memory_space<vmem>>, vector<16x16x32xf32>
    %49 = vector.shape_cast %48 : vector<16x16x32xf32> to vector<256x32xf32>
    %c0_64 = arith.constant 0 : index
    %c32_65 = arith.constant 32 : index
    %50 = vector.load %arg12[%c0_64, %c32_65] : memref<256x288xf32, #tpu.memory_space<vmem>>, vector<256x32xf32>
    tpu.vector_store %arg12[%c0_64, %c32_65], %49 {strides = array<i32>} : memref<256x288xf32, #tpu.memory_space<vmem>>, vector<256x32xf32>,
    %c0_66 = arith.constant 0 : index
    %c2_67 = arith.constant 2 : index
    %c0_68 = arith.constant 0 : index
    %51 = vector.load %arg11[%c0_66, %c2_67, %c0_68] : memref<18x18x32xf32, #tpu.memory_space<vmem>>, vector<16x16x32xf32>
    %52 = vector.shape_cast %51 : vector<16x16x32xf32> to vector<256x32xf32>
    %c0_69 = arith.constant 0 : index
    %c64 = arith.constant 64 : index
    %53 = vector.load %arg12[%c0_69, %c64] : memref<256x288xf32, #tpu.memory_space<vmem>>, vector<256x32xf32>
    tpu.vector_store %arg12[%c0_69, %c64], %52 {strides = array<i32>} : memref<256x288xf32, #tpu.memory_space<vmem>>, vector<256x32xf32>,
    %c1_70 = arith.constant 1 : index
    %c0_71 = arith.constant 0 : index
    %c0_72 = arith.constant 0 : index
    %54 = vector.load %arg11[%c1_70, %c0_71, %c0_72] : memref<18x18x32xf32, #tpu.memory_space<vmem>>, vector<16x16x32xf32>
    %55 = vector.shape_cast %54 : vector<16x16x32xf32> to vector<256x32xf32>
    %c0_73 = arith.constant 0 : index
    %c96 = arith.constant 96 : index
    %56 = vector.load %arg12[%c0_73, %c96] : memref<256x288xf32, #tpu.memory_space<vmem>>, vector<256x32xf32>
    tpu.vector_store %arg12[%c0_73, %c96], %55 {strides = array<i32>} : memref<256x288xf32, #tpu.memory_space<vmem>>, vector<256x32xf32>,
    %c1_74 = arith.constant 1 : index
    %c1_75 = arith.constant 1 : index
    %c0_76 = arith.constant 0 : index
    %57 = vector.load %arg11[%c1_74, %c1_75, %c0_76] : memref<18x18x32xf32, #tpu.memory_space<vmem>>, vector<16x16x32xf32>
    %58 = vector.shape_cast %57 : vector<16x16x32xf32> to vector<256x32xf32>
    %c0_77 = arith.constant 0 : index
    %c128 = arith.constant 128 : index
    %59 = vector.load %arg12[%c0_77, %c128] : memref<256x288xf32, #tpu.memory_space<vmem>>, vector<256x32xf32>
    tpu.vector_store %arg12[%c0_77, %c128], %58 {strides = array<i32>} : memref<256x288xf32, #tpu.memory_space<vmem>>, vector<256x32xf32>,
    %c1_78 = arith.constant 1 : index
    %c2_79 = arith.constant 2 : index
    %c0_80 = arith.constant 0 : index
    %60 = vector.load %arg11[%c1_78, %c2_79, %c0_80] : memref<18x18x32xf32, #tpu.memory_space<vmem>>, vector<16x16x32xf32>
    %61 = vector.shape_cast %60 : vector<16x16x32xf32> to vector<256x32xf32>
    %c0_81 = arith.constant 0 : index
    %c160 = arith.constant 160 : index
    %62 = vector.load %arg12[%c0_81, %c160] : memref<256x288xf32, #tpu.memory_space<vmem>>, vector<256x32xf32>
    tpu.vector_store %arg12[%c0_81, %c160], %61 {strides = array<i32>} : memref<256x288xf32, #tpu.memory_space<vmem>>, vector<256x32xf32>,
    %c2_82 = arith.constant 2 : index
    %c0_83 = arith.constant 0 : index
    %c0_84 = arith.constant 0 : index
    %63 = vector.load %arg11[%c2_82, %c0_83, %c0_84] : memref<18x18x32xf32, #tpu.memory_space<vmem>>, vector<16x16x32xf32>
    %64 = vector.shape_cast %63 : vector<16x16x32xf32> to vector<256x32xf32>
    %c0_85 = arith.constant 0 : index
    %c192 = arith.constant 192 : index
    %65 = vector.load %arg12[%c0_85, %c192] : memref<256x288xf32, #tpu.memory_space<vmem>>, vector<256x32xf32>
    tpu.vector_store %arg12[%c0_85, %c192], %64 {strides = array<i32>} : memref<256x288xf32, #tpu.memory_space<vmem>>, vector<256x32xf32>,
    %c2_86 = arith.constant 2 : index
    %c1_87 = arith.constant 1 : index
    %c0_88 = arith.constant 0 : index
    %66 = vector.load %arg11[%c2_86, %c1_87, %c0_88] : memref<18x18x32xf32, #tpu.memory_space<vmem>>, vector<16x16x32xf32>
    %67 = vector.shape_cast %66 : vector<16x16x32xf32> to vector<256x32xf32>
    %c0_89 = arith.constant 0 : index
    %c224 = arith.constant 224 : index
    %68 = vector.load %arg12[%c0_89, %c224] : memref<256x288xf32, #tpu.memory_space<vmem>>, vector<256x32xf32>
    tpu.vector_store %arg12[%c0_89, %c224], %67 {strides = array<i32>} : memref<256x288xf32, #tpu.memory_space<vmem>>, vector<256x32xf32>,
    %c2_90 = arith.constant 2 : index
    %c2_91 = arith.constant 2 : index
    %c0_92 = arith.constant 0 : index
    %69 = vector.load %arg11[%c2_90, %c2_91, %c0_92] : memref<18x18x32xf32, #tpu.memory_space<vmem>>, vector<16x16x32xf32>
    %70 = vector.shape_cast %69 : vector<16x16x32xf32> to vector<256x32xf32>
    %c0_93 = arith.constant 0 : index
    %c256 = arith.constant 256 : index
    %71 = vector.load %arg12[%c0_93, %c256] : memref<256x288xf32, #tpu.memory_space<vmem>>, vector<256x32xf32>
    tpu.vector_store %arg12[%c0_93, %c256], %70 {strides = array<i32>} : memref<256x288xf32, #tpu.memory_space<vmem>>, vector<256x32xf32>,
    %c0_94 = arith.constant 0 : index
    %c0_95 = arith.constant 0 : index
    %72 = vector.load %arg12[%c0_94, %c0_95] : memref<256x288xf32, #tpu.memory_space<vmem>>, vector<256x288xf32>
    %c0_96 = arith.constant 0 : index
    %c0_97 = arith.constant 0 : index
    %73 = vector.load %arg4[%c0_96, %c0_97] : memref<288x32xf32, #tpu.memory_space<vmem>>, vector<288x32xf32>
    %cst_98 = arith.constant dense<0.000000e+00> : vector<256x32xf32>
    %74 = tpu.matmul %72, %73, %cst_98 {dimension_numbers = #tpu.dot_dimension_numbers<[1], [0], [0], [1], [0, 0, 1, 1], [], []>} : vector<256x288xf32>, vector<288x32xf32>, vector<256x32xf32> -> vector<256x32xf32>
    %c0_99 = arith.constant 0 : index
    %c0_100 = arith.constant 0 : index
    %75 = vector.load %arg5[%c0_99, %c0_100] : memref<1x32xf32, #tpu.memory_space<vmem>>, vector<1x32xf32>
    %76 = vector.broadcast %75 : vector<1x32xf32> to vector<256x32xf32>
    %77 = arith.addf %74, %76 : vector<256x32xf32>
    %cst_101 = arith.constant 0.000000e+00 : f32
    %78 = vector.broadcast %cst_101 : f32 to vector<256x32xf32>
    %79 = arith.cmpf oge, %77, %78 : vector<256x32xf32>
    %cst_102 = arith.constant 2.000000e-01 : f32
    %80 = vector.broadcast %cst_102 : f32 to vector<256x32xf32>
    %81 = arith.mulf %80, %77 : vector<256x32xf32>
    %82 = arith.select %79, %77, %81 : vector<256x32xi1>, vector<256x32xf32>
    %83 = vector.shape_cast %82 : vector<256x32xf32> to vector<16x16x32xf32>
    %c1_103 = arith.constant 1 : index
    %c1_104 = arith.constant 1 : index
    %c0_105 = arith.constant 0 : index
    %84 = vector.load %arg11[%c1_103, %c1_104, %c0_105] : memref<18x18x32xf32, #tpu.memory_space<vmem>>, vector<16x16x32xf32>
    tpu.vector_store %arg11[%c1_103, %c1_104, %c0_105], %83 {strides = array<i32>} : memref<18x18x32xf32, #tpu.memory_space<vmem>>, vector<16x16x32xf32>,
    %c0_106 = arith.constant 0 : index
    %c0_107 = arith.constant 0 : index
    %c0_108 = arith.constant 0 : index
    %85 = vector.load %arg11[%c0_106, %c0_107, %c0_108] : memref<18x18x32xf32, #tpu.memory_space<vmem>>, vector<16x16x32xf32>
    %86 = vector.shape_cast %85 : vector<16x16x32xf32> to vector<256x32xf32>
    %c0_109 = arith.constant 0 : index
    %c0_110 = arith.constant 0 : index
    %87 = vector.load %arg12[%c0_109, %c0_110] : memref<256x288xf32, #tpu.memory_space<vmem>>, vector<256x32xf32>
    tpu.vector_store %arg12[%c0_109, %c0_110], %86 {strides = array<i32>} : memref<256x288xf32, #tpu.memory_space<vmem>>, vector<256x32xf32>,
    %c0_111 = arith.constant 0 : index
    %c1_112 = arith.constant 1 : index
    %c0_113 = arith.constant 0 : index
    %88 = vector.load %arg11[%c0_111, %c1_112, %c0_113] : memref<18x18x32xf32, #tpu.memory_space<vmem>>, vector<16x16x32xf32>
    %89 = vector.shape_cast %88 : vector<16x16x32xf32> to vector<256x32xf32>
    %c0_114 = arith.constant 0 : index
    %c32_115 = arith.constant 32 : index
    %90 = vector.load %arg12[%c0_114, %c32_115] : memref<256x288xf32, #tpu.memory_space<vmem>>, vector<256x32xf32>
    tpu.vector_store %arg12[%c0_114, %c32_115], %89 {strides = array<i32>} : memref<256x288xf32, #tpu.memory_space<vmem>>, vector<256x32xf32>,
    %c0_116 = arith.constant 0 : index
    %c2_117 = arith.constant 2 : index
    %c0_118 = arith.constant 0 : index
    %91 = vector.load %arg11[%c0_116, %c2_117, %c0_118] : memref<18x18x32xf32, #tpu.memory_space<vmem>>, vector<16x16x32xf32>
    %92 = vector.shape_cast %91 : vector<16x16x32xf32> to vector<256x32xf32>
    %c0_119 = arith.constant 0 : index
    %c64_120 = arith.constant 64 : index
    %93 = vector.load %arg12[%c0_119, %c64_120] : memref<256x288xf32, #tpu.memory_space<vmem>>, vector<256x32xf32>
    tpu.vector_store %arg12[%c0_119, %c64_120], %92 {strides = array<i32>} : memref<256x288xf32, #tpu.memory_space<vmem>>, vector<256x32xf32>,
    %c1_121 = arith.constant 1 : index
    %c0_122 = arith.constant 0 : index
    %c0_123 = arith.constant 0 : index
    %94 = vector.load %arg11[%c1_121, %c0_122, %c0_123] : memref<18x18x32xf32, #tpu.memory_space<vmem>>, vector<16x16x32xf32>
    %95 = vector.shape_cast %94 : vector<16x16x32xf32> to vector<256x32xf32>
    %c0_124 = arith.constant 0 : index
    %c96_125 = arith.constant 96 : index
    %96 = vector.load %arg12[%c0_124, %c96_125] : memref<256x288xf32, #tpu.memory_space<vmem>>, vector<256x32xf32>
    tpu.vector_store %arg12[%c0_124, %c96_125], %95 {strides = array<i32>} : memref<256x288xf32, #tpu.memory_space<vmem>>, vector<256x32xf32>,
    %c1_126 = arith.constant 1 : index
    %c1_127 = arith.constant 1 : index
    %c0_128 = arith.constant 0 : index
    %97 = vector.load %arg11[%c1_126, %c1_127, %c0_128] : memref<18x18x32xf32, #tpu.memory_space<vmem>>, vector<16x16x32xf32>
    %98 = vector.shape_cast %97 : vector<16x16x32xf32> to vector<256x32xf32>
    %c0_129 = arith.constant 0 : index
    %c128_130 = arith.constant 128 : index
    %99 = vector.load %arg12[%c0_129, %c128_130] : memref<256x288xf32, #tpu.memory_space<vmem>>, vector<256x32xf32>
    tpu.vector_store %arg12[%c0_129, %c128_130], %98 {strides = array<i32>} : memref<256x288xf32, #tpu.memory_space<vmem>>, vector<256x32xf32>,
    %c1_131 = arith.constant 1 : index
    %c2_132 = arith.constant 2 : index
    %c0_133 = arith.constant 0 : index
    %100 = vector.load %arg11[%c1_131, %c2_132, %c0_133] : memref<18x18x32xf32, #tpu.memory_space<vmem>>, vector<16x16x32xf32>
    %101 = vector.shape_cast %100 : vector<16x16x32xf32> to vector<256x32xf32>
    %c0_134 = arith.constant 0 : index
    %c160_135 = arith.constant 160 : index
    %102 = vector.load %arg12[%c0_134, %c160_135] : memref<256x288xf32, #tpu.memory_space<vmem>>, vector<256x32xf32>
    tpu.vector_store %arg12[%c0_134, %c160_135], %101 {strides = array<i32>} : memref<256x288xf32, #tpu.memory_space<vmem>>, vector<256x32xf32>,
    %c2_136 = arith.constant 2 : index
    %c0_137 = arith.constant 0 : index
    %c0_138 = arith.constant 0 : index
    %103 = vector.load %arg11[%c2_136, %c0_137, %c0_138] : memref<18x18x32xf32, #tpu.memory_space<vmem>>, vector<16x16x32xf32>
    %104 = vector.shape_cast %103 : vector<16x16x32xf32> to vector<256x32xf32>
    %c0_139 = arith.constant 0 : index
    %c192_140 = arith.constant 192 : index
    %105 = vector.load %arg12[%c0_139, %c192_140] : memref<256x288xf32, #tpu.memory_space<vmem>>, vector<256x32xf32>
    tpu.vector_store %arg12[%c0_139, %c192_140], %104 {strides = array<i32>} : memref<256x288xf32, #tpu.memory_space<vmem>>, vector<256x32xf32>,
    %c2_141 = arith.constant 2 : index
    %c1_142 = arith.constant 1 : index
    %c0_143 = arith.constant 0 : index
    %106 = vector.load %arg11[%c2_141, %c1_142, %c0_143] : memref<18x18x32xf32, #tpu.memory_space<vmem>>, vector<16x16x32xf32>
    %107 = vector.shape_cast %106 : vector<16x16x32xf32> to vector<256x32xf32>
    %c0_144 = arith.constant 0 : index
    %c224_145 = arith.constant 224 : index
    %108 = vector.load %arg12[%c0_144, %c224_145] : memref<256x288xf32, #tpu.memory_space<vmem>>, vector<256x32xf32>
    tpu.vector_store %arg12[%c0_144, %c224_145], %107 {strides = array<i32>} : memref<256x288xf32, #tpu.memory_space<vmem>>, vector<256x32xf32>,
    %c2_146 = arith.constant 2 : index
    %c2_147 = arith.constant 2 : index
    %c0_148 = arith.constant 0 : index
    %109 = vector.load %arg11[%c2_146, %c2_147, %c0_148] : memref<18x18x32xf32, #tpu.memory_space<vmem>>, vector<16x16x32xf32>
    %110 = vector.shape_cast %109 : vector<16x16x32xf32> to vector<256x32xf32>
    %c0_149 = arith.constant 0 : index
    %c256_150 = arith.constant 256 : index
    %111 = vector.load %arg12[%c0_149, %c256_150] : memref<256x288xf32, #tpu.memory_space<vmem>>, vector<256x32xf32>
    tpu.vector_store %arg12[%c0_149, %c256_150], %110 {strides = array<i32>} : memref<256x288xf32, #tpu.memory_space<vmem>>, vector<256x32xf32>,
    %c0_151 = arith.constant 0 : index
    %c0_152 = arith.constant 0 : index
    %112 = vector.load %arg12[%c0_151, %c0_152] : memref<256x288xf32, #tpu.memory_space<vmem>>, vector<256x288xf32>
    %c0_153 = arith.constant 0 : index
    %c0_154 = arith.constant 0 : index
    %113 = vector.load %arg6[%c0_153, %c0_154] : memref<288x32xf32, #tpu.memory_space<vmem>>, vector<288x32xf32>
    %cst_155 = arith.constant dense<0.000000e+00> : vector<256x32xf32>
    %114 = tpu.matmul %112, %113, %cst_155 {dimension_numbers = #tpu.dot_dimension_numbers<[1], [0], [0], [1], [0, 0, 1, 1], [], []>} : vector<256x288xf32>, vector<288x32xf32>, vector<256x32xf32> -> vector<256x32xf32>
    %c0_156 = arith.constant 0 : index
    %c0_157 = arith.constant 0 : index
    %115 = vector.load %arg7[%c0_156, %c0_157] : memref<1x32xf32, #tpu.memory_space<vmem>>, vector<1x32xf32>
    %116 = vector.broadcast %115 : vector<1x32xf32> to vector<256x32xf32>
    %117 = arith.addf %114, %116 : vector<256x32xf32>
    %cst_158 = arith.constant 0.000000e+00 : f32
    %118 = vector.broadcast %cst_158 : f32 to vector<256x32xf32>
    %119 = arith.cmpf oge, %117, %118 : vector<256x32xf32>
    %cst_159 = arith.constant 2.000000e-01 : f32
    %120 = vector.broadcast %cst_159 : f32 to vector<256x32xf32>
    %121 = arith.mulf %120, %117 : vector<256x32xf32>
    %122 = arith.select %119, %117, %121 : vector<256x32xi1>, vector<256x32xf32>
    %123 = vector.shape_cast %122 : vector<256x32xf32> to vector<16x16x32xf32>
    %c1_160 = arith.constant 1 : index
    %c1_161 = arith.constant 1 : index
    %c0_162 = arith.constant 0 : index
    %124 = vector.load %arg11[%c1_160, %c1_161, %c0_162] : memref<18x18x32xf32, #tpu.memory_space<vmem>>, vector<16x16x32xf32>
    tpu.vector_store %arg11[%c1_160, %c1_161, %c0_162], %123 {strides = array<i32>} : memref<18x18x32xf32, #tpu.memory_space<vmem>>, vector<16x16x32xf32>,
    %cst_163 = arith.constant 0.000000e+00 : f32
    %125 = vector.broadcast %cst_163 : f32 to vector<16x16x32xf32>
    %c0_164 = arith.constant 0 : index
    %c0_165 = arith.constant 0 : index
    %126 = vector.load %arg8[%c0_164, %c0_165] : memref<9x32xf32, #tpu.memory_space<vmem>>, vector<1x32xf32>
    %127 = vector.shape_cast %126 : vector<1x32xf32> to vector<1x1x32xf32>
    %c0_166 = arith.constant 0 : index
    %c0_167 = arith.constant 0 : index
    %c0_168 = arith.constant 0 : index
    %128 = vector.load %arg11[%c0_166, %c0_167, %c0_168] : memref<18x18x32xf32, #tpu.memory_space<vmem>>, vector<16x16x32xf32>
    %129 = vector.broadcast %127 : vector<1x1x32xf32> to vector<16x16x32xf32>
    %130 = arith.mulf %128, %129 : vector<16x16x32xf32>
    %131 = arith.addf %125, %130 : vector<16x16x32xf32>
    %c1_169 = arith.constant 1 : index
    %c0_170 = arith.constant 0 : index
    %132 = vector.load %arg8[%c1_169, %c0_170] : memref<9x32xf32, #tpu.memory_space<vmem>>, vector<1x32xf32>
    %133 = vector.shape_cast %132 : vector<1x32xf32> to vector<1x1x32xf32>
    %c0_171 = arith.constant 0 : index
    %c1_172 = arith.constant 1 : index
    %c0_173 = arith.constant 0 : index
    %134 = vector.load %arg11[%c0_171, %c1_172, %c0_173] : memref<18x18x32xf32, #tpu.memory_space<vmem>>, vector<16x16x32xf32>
    %135 = vector.broadcast %133 : vector<1x1x32xf32> to vector<16x16x32xf32>
    %136 = arith.mulf %134, %135 : vector<16x16x32xf32>
    %137 = arith.addf %131, %136 : vector<16x16x32xf32>
    %c2_174 = arith.constant 2 : index
    %c0_175 = arith.constant 0 : index
    %138 = vector.load %arg8[%c2_174, %c0_175] : memref<9x32xf32, #tpu.memory_space<vmem>>, vector<1x32xf32>
    %139 = vector.shape_cast %138 : vector<1x32xf32> to vector<1x1x32xf32>
    %c0_176 = arith.constant 0 : index
    %c2_177 = arith.constant 2 : index
    %c0_178 = arith.constant 0 : index
    %140 = vector.load %arg11[%c0_176, %c2_177, %c0_178] : memref<18x18x32xf32, #tpu.memory_space<vmem>>, vector<16x16x32xf32>
    %141 = vector.broadcast %139 : vector<1x1x32xf32> to vector<16x16x32xf32>
    %142 = arith.mulf %140, %141 : vector<16x16x32xf32>
    %143 = arith.addf %137, %142 : vector<16x16x32xf32>
    %c3 = arith.constant 3 : index
    %c0_179 = arith.constant 0 : index
    %144 = vector.load %arg8[%c3, %c0_179] : memref<9x32xf32, #tpu.memory_space<vmem>>, vector<1x32xf32>
    %145 = vector.shape_cast %144 : vector<1x32xf32> to vector<1x1x32xf32>
    %c1_180 = arith.constant 1 : index
    %c0_181 = arith.constant 0 : index
    %c0_182 = arith.constant 0 : index
    %146 = vector.load %arg11[%c1_180, %c0_181, %c0_182] : memref<18x18x32xf32, #tpu.memory_space<vmem>>, vector<16x16x32xf32>
    %147 = vector.broadcast %145 : vector<1x1x32xf32> to vector<16x16x32xf32>
    %148 = arith.mulf %146, %147 : vector<16x16x32xf32>
    %149 = arith.addf %143, %148 : vector<16x16x32xf32>
    %c4_183 = arith.constant 4 : index
    %c0_184 = arith.constant 0 : index
    %150 = vector.load %arg8[%c4_183, %c0_184] : memref<9x32xf32, #tpu.memory_space<vmem>>, vector<1x32xf32>
    %151 = vector.shape_cast %150 : vector<1x32xf32> to vector<1x1x32xf32>
    %c1_185 = arith.constant 1 : index
    %c1_186 = arith.constant 1 : index
    %c0_187 = arith.constant 0 : index
    %152 = vector.load %arg11[%c1_185, %c1_186, %c0_187] : memref<18x18x32xf32, #tpu.memory_space<vmem>>, vector<16x16x32xf32>
    %153 = vector.broadcast %151 : vector<1x1x32xf32> to vector<16x16x32xf32>
    %154 = arith.mulf %152, %153 : vector<16x16x32xf32>
    %155 = arith.addf %149, %154 : vector<16x16x32xf32>
    %c5 = arith.constant 5 : index
    %c0_188 = arith.constant 0 : index
    %156 = vector.load %arg8[%c5, %c0_188] : memref<9x32xf32, #tpu.memory_space<vmem>>, vector<1x32xf32>
    %157 = vector.shape_cast %156 : vector<1x32xf32> to vector<1x1x32xf32>
    %c1_189 = arith.constant 1 : index
    %c2_190 = arith.constant 2 : index
    %c0_191 = arith.constant 0 : index
    %158 = vector.load %arg11[%c1_189, %c2_190, %c0_191] : memref<18x18x32xf32, #tpu.memory_space<vmem>>, vector<16x16x32xf32>
    %159 = vector.broadcast %157 : vector<1x1x32xf32> to vector<16x16x32xf32>
    %160 = arith.mulf %158, %159 : vector<16x16x32xf32>
    %161 = arith.addf %155, %160 : vector<16x16x32xf32>
    %c6 = arith.constant 6 : index
    %c0_192 = arith.constant 0 : index
    %162 = vector.load %arg8[%c6, %c0_192] : memref<9x32xf32, #tpu.memory_space<vmem>>, vector<1x32xf32>
    %163 = vector.shape_cast %162 : vector<1x32xf32> to vector<1x1x32xf32>
    %c2_193 = arith.constant 2 : index
    %c0_194 = arith.constant 0 : index
    %c0_195 = arith.constant 0 : index
    %164 = vector.load %arg11[%c2_193, %c0_194, %c0_195] : memref<18x18x32xf32, #tpu.memory_space<vmem>>, vector<16x16x32xf32>
    %165 = vector.broadcast %163 : vector<1x1x32xf32> to vector<16x16x32xf32>
    %166 = arith.mulf %164, %165 : vector<16x16x32xf32>
    %167 = arith.addf %161, %166 : vector<16x16x32xf32>
    %c7 = arith.constant 7 : index
    %c0_196 = arith.constant 0 : index
    %168 = vector.load %arg8[%c7, %c0_196] : memref<9x32xf32, #tpu.memory_space<vmem>>, vector<1x32xf32>
    %169 = vector.shape_cast %168 : vector<1x32xf32> to vector<1x1x32xf32>
    %c2_197 = arith.constant 2 : index
    %c1_198 = arith.constant 1 : index
    %c0_199 = arith.constant 0 : index
    %170 = vector.load %arg11[%c2_197, %c1_198, %c0_199] : memref<18x18x32xf32, #tpu.memory_space<vmem>>, vector<16x16x32xf32>
    %171 = vector.broadcast %169 : vector<1x1x32xf32> to vector<16x16x32xf32>
    %172 = arith.mulf %170, %171 : vector<16x16x32xf32>
    %173 = arith.addf %167, %172 : vector<16x16x32xf32>
    %c8_200 = arith.constant 8 : index
    %c0_201 = arith.constant 0 : index
    %174 = vector.load %arg8[%c8_200, %c0_201] : memref<9x32xf32, #tpu.memory_space<vmem>>, vector<1x32xf32>
    %175 = vector.shape_cast %174 : vector<1x32xf32> to vector<1x1x32xf32>
    %c2_202 = arith.constant 2 : index
    %c2_203 = arith.constant 2 : index
    %c0_204 = arith.constant 0 : index
    %176 = vector.load %arg11[%c2_202, %c2_203, %c0_204] : memref<18x18x32xf32, #tpu.memory_space<vmem>>, vector<16x16x32xf32>
    %177 = vector.broadcast %175 : vector<1x1x32xf32> to vector<16x16x32xf32>
    %178 = arith.mulf %176, %177 : vector<16x16x32xf32>
    %179 = arith.addf %173, %178 : vector<16x16x32xf32>
    %cst_205 = arith.constant dense<0.000000e+00> : vector<16x16xf32>
    %180 = vector.multi_reduction <add>, %179, %cst_205 [2] : vector<16x16x32xf32> to vector<16x16xf32>
    %c0_206 = arith.constant 0 : index
    %c0_207 = arith.constant 0 : index
    %181 = vector.load %arg9[%c0_206, %c0_207] : memref<1x1xf32, #tpu.memory_space<vmem>>, vector<1x1xf32>
    %182 = vector.broadcast %181 : vector<1x1xf32> to vector<16x16xf32>
    %183 = arith.addf %180, %182 : vector<16x16xf32>
    %c0_208 = arith.constant 0 : index
    %c0_209 = arith.constant 0 : index
    %c0_210 = arith.constant 0 : index
    %184 = vector.load %arg10[%c0_208, %c0_209, %c0_210] : memref<1x16x16xf32, #tpu.memory_space<vmem>>, vector<1x16x16xf32>
    %185 = vector.shape_cast %184 : vector<1x16x16xf32> to vector<16x16xf32>
    %186 = vector.shape_cast %183 : vector<16x16xf32> to vector<1x16x16xf32>
    tpu.vector_store %arg10[%c0_208, %c0_209, %c0_210], %186 {strides = array<i32>} : memref<1x16x16xf32, #tpu.memory_space<vmem>>, vector<1x16x16xf32>,
    return
  }
  func.func @transform_0(%arg0: i32) -> (i32, i32, i32, i32) {
    %c0_i32 = arith.constant 0 : i32
    %c0_i32_0 = arith.constant 0 : i32
    %c0_i32_1 = arith.constant 0 : i32
    %c0_i32_2 = arith.constant 0 : i32
    return %arg0, %c0_i32, %c0_i32_0, %c0_i32_1 : i32, i32, i32, i32
  }
  func.func @transform_1(%arg0: i32) -> (i32, i32) {
    %c0_i32 = arith.constant 0 : i32
    %c0_i32_0 = arith.constant 0 : i32
    %c0_i32_1 = arith.constant 0 : i32
    return %c0_i32, %c0_i32_0 : i32, i32
  }
  func.func @transform_2(%arg0: i32) -> (i32, i32) {
    %c0_i32 = arith.constant 0 : i32
    %c0_i32_0 = arith.constant 0 : i32
    %c0_i32_1 = arith.constant 0 : i32
    return %c0_i32, %c0_i32_0 : i32, i32
  }
  func.func @transform_3(%arg0: i32) -> (i32, i32) {
    %c0_i32 = arith.constant 0 : i32
    %c0_i32_0 = arith.constant 0 : i32
    %c0_i32_1 = arith.constant 0 : i32
    return %c0_i32, %c0_i32_0 : i32, i32
  }
  func.func @transform_4(%arg0: i32) -> (i32, i32) {
    %c0_i32 = arith.constant 0 : i32
    %c0_i32_0 = arith.constant 0 : i32
    %c0_i32_1 = arith.constant 0 : i32
    return %c0_i32, %c0_i32_0 : i32, i32
  }
  func.func @transform_5(%arg0: i32) -> (i32, i32) {
    %c0_i32 = arith.constant 0 : i32
    %c0_i32_0 = arith.constant 0 : i32
    %c0_i32_1 = arith.constant 0 : i32
    return %c0_i32, %c0_i32_0 : i32, i32
  }
  func.func @transform_6(%arg0: i32) -> (i32, i32) {
    %c0_i32 = arith.constant 0 : i32
    %c0_i32_0 = arith.constant 0 : i32
    %c0_i32_1 = arith.constant 0 : i32
    return %c0_i32, %c0_i32_0 : i32, i32
  }
  func.func @transform_7(%arg0: i32) -> (i32, i32) {
    %c0_i32 = arith.constant 0 : i32
    %c0_i32_0 = arith.constant 0 : i32
    %c0_i32_1 = arith.constant 0 : i32
    return %c0_i32, %c0_i32_0 : i32, i32
  }
  func.func @transform_8(%arg0: i32) -> (i32, i32) {
    %c0_i32 = arith.constant 0 : i32
    %c0_i32_0 = arith.constant 0 : i32
    %c0_i32_1 = arith.constant 0 : i32
    return %c0_i32, %c0_i32_0 : i32, i32
  }
  func.func @transform_9(%arg0: i32) -> (i32, i32, i32) {
    %c0_i32 = arith.constant 0 : i32
    %c0_i32_0 = arith.constant 0 : i32
    %c0_i32_1 = arith.constant 0 : i32
    return %arg0, %c0_i32, %c0_i32_0 : i32, i32, i32
  }
}

</mosaic_0001>

<bundles_post_ra>
// kernel: discriminator_large_forward.1
= control target key start
LH: loop header
LB: loop body
LE: loop exit
PB: predicated region body
PF: predicated region fallthrough
CT: control target
= control target key end

     0   :  { %s13176_s0 = inlined_call_operand.vmem [shape: f32[2,16,16,4], index: 0, kind: input, shape index: {}]   ;;  %s13177_s1 = inlined_call_operand.vmem [shape: f32[36,32], index: 1, kind: input, shape index: {}]   ;;  %s13178_s2 = inlined_call_operand.vmem [shape: f32[1,32], index: 2, kind: input, shape index: {}]   ;;  %s13179_s3 = inlined_call_operand.vmem [shape: f32[288,32], index: 3, kind: input, shape index: {}]   ;;  %s13180_s4 = inlined_call_operand.vmem [shape: f32[1,32], index: 4, kind: input, shape index: {}]   ;;  %s13181_s5 = inlined_call_operand.vmem [shape: f32[288,32], index: 5, kind: input, shape index: {}]   ;;  %s13182_s6 = inlined_call_operand.vmem [shape: f32[1,32], index: 6, kind: input, shape index: {}]   ;;  %s13183_s7 = inlined_call_operand.vmem [shape: f32[9,32], index: 7, kind: input, shape index: {}]   ;;  %s13184_s8 = inlined_call_operand.<no memory space> [shape: f32[1,1], index: 8, kind: input, shape index: {}]   ;;  %s13185_s9 = inlined_call_operand.hbm [shape: f32[2,16,16], index: 9, kind: output, shape index: {}]  }
   0x1   :  { %v14_v0 = vstv %s13184_s8 }
   0x2   :  { %15 = vst [vmem:[#allocation4] sm:$0x1] %v14_v0 }
   0x3   :  { %16 = vsyncpa [#allocation6], 0 }
   0x4   :  { %18 = vsyncpa [#allocation6 + $0x1], 0  ;;  %s8824_s11 = smov 0   ;;  %s8826_s12 = smov 0  }
   0x5   :  { %s8828_s13 = smov 0   ;;  %s8830_s14 = smov 0  }
   0x6 LB: > { %s8845_s8 = sadd.s32 4294967295, %s8755_s14   ;;  %s8208_s15 = sadd.s32 4294967294, %s8755_s14   ;;  %s8755_s14 = sphi %s8830_s14, %s13299_s14   ;;  %s8751_s13 = sphi %s8828_s13, %s13298_s13   ;;  %s8747_s12 = sphi %s8826_s12, %s13297_s12   ;;  %s8743_s11 = sphi %s8824_s11, %s13296_s11  }
   0x7   : > { %s8849_s16 = sadd.s32 1, %s8755_s14   ;;  %s225_s17 = sadd.s32 1, %s8751_s13 }
   0x8   : > { %s222_s18 = ssub.s32 %s8755_s14, %s8849_s16  ;;  %p235_p0 = scmp.ne.s32.totalorder %s8751_s13, %s8747_s12 }
   0x9   : > { %p223_p1 = scmp.eq.s32.totalorder %s222_s18, 0  ;;  %p236_p2 = scmp.eq.s32.totalorder %s8845_s8, 1 }
   0xa   : > { %p241_p3 = scmp.ne.s32.totalorder %s8747_s12, %s8743_s11  ;;  %p242_p4 = scmp.eq.s32.totalorder %s8208_s15, 1 }
   0xb   : > { %s8860_s19 = scalar_select %p223_p1, %s8751_s13, %s225_s17  }
   0xc   : > { %p8862_p5 = por %p236_p2, %p235_p0  ;;  %p8866_p6 = por %p242_p4, %p241_p3 }
   0xd   : > { %p8211_p7 = scmp.ge.s32.totalorder %s8755_s14, 1  ;;  %p292_p8 = scmp.lt.s32.totalorder %s8755_s14, 3 }
   0xf   : > { %p293_p9 = pnand %p8211_p7, %p292_p8 }
  0x11   : > { %296 = sbr.rel (%p293_p9) target bundleno = 2173 (0x87d), region = 56 }
  0x16   : > { %vm333_vm0 = vcmask 261120   ;;  %p328_p10 = scmp.lt.s32.totalorder %s8845_s8, 1  ;;  %vm336_vm1 = vcmask 254976   ;;  %v13186_v1 = vmov 0.0   ;;  %vm422_vm2 = vcmask 31744   ;;  %s8758_s27 = smov 4  }
  0x17   : > { %334 = vst.msk [vmem:[#allocation2] sm:$0xff] %vm333_vm0, %v13186_v1  ;;  %335 = vst.msk [vmem:[#allocation2 + $0x8] sm:$0xff] %vm333_vm0, %v13186_v1  ;;  %4144 = vmatprep.subr.mxu1 %v13186_v1  ;;  %s8759_s28 = smov 8   ;;  %vm679_vm3 = vcmask 64544   ;;  %s8760_s29 = smov 12   ;;  %vm872_vm4 = vcmask 97344  }
  0x18   : > { %338 = vst.msk [vmem:[#allocation2 + $0x18] sm:$0xff] %vm333_vm0, %v13186_v1  ;;  %339 = vst.msk [vmem:[#allocation2 + $0x20] sm:$0xff] %vm333_vm0, %v13186_v1  ;;  %s329_s22 = scalar_select %p328_p10, %s8845_s8, 1  ;;  %vm1065_vm5 = vcmask 130144   ;;  %vm1258_vm6 = vcmask 162944   ;;  %vm2205_vm7 = vcmask 1043456  }
  0x19   : > { %341 = vst.msk [vmem:[#allocation2 + $0x30] sm:$0xff] %vm333_vm0, %v13186_v1  ;;  %342 = vst.msk [vmem:[#allocation2 + $0x38] sm:$0xff] %vm333_vm0, %v13186_v1  ;;  %s8761_s30 = smov 16   ;;  %s8762_s10 = smov 20   ;;  %vm1451_vm8 = vcmask 195744   ;;  %vm1645_vm9 = vcmask 228544  }
  0x1a   : > { %344 = vst.msk [vmem:[#allocation2 + $0x48] sm:$0xff] %vm333_vm0, %v13186_v1  ;;  %345 = vst.msk [vmem:[#allocation2 + $0x50] sm:$0xff] %vm333_vm0, %v13186_v1  ;;  %s8330_s23 = sshll.u32 %s329_s22, 8  ;;  %s8763_s18 = smov 24   ;;  %vm1838_vm10 = vcmask 261344   ;;  %vm2031_vm11 = vcmask 294144  }
  0x1b   : > { %347 = vst.msk [vmem:[#allocation2 + $0x60] sm:$0xff] %vm333_vm0, %v13186_v1  ;;  %348 = vst.msk [vmem:[#allocation2 + $0x68] sm:$0xff] %vm333_vm0, %v13186_v1  ;;  %s8988_s26 = scalar_lea.vmem %s13176_s0, %s8330_s23  ;;  %s8765_s15 = smov 32   ;;  %vm2108_vm12 = vcmask 293888   ;;  %vm2786_vm13 = vcmask 523520  }
  0x1c   : > { %350 = vst.msk [vmem:[#allocation2 + $0x78] sm:$0xff] %vm333_vm0, %v13186_v1  ;;  %351 = vst.msk [vmem:[#allocation2 + $0x80] sm:$0xff] %vm333_vm0, %v13186_v1  ;;  %v389_v2 = vld [vmem:[%s8988_s26] sm:$0xff]  ;;  %v390_v3 = vld [vmem:[%s8988_s26 + $0x8] sm:$0xff]  ;;  %s8766_s22 = smov 64   ;;  %s8767_s23 = smov 96  }
  0x1d   : > { %353 = vst.msk [vmem:[#allocation2 + $0x90] sm:$0xff] %vm333_vm0, %v13186_v1  ;;  %354 = vst.msk [vmem:[#allocation2 + $0x98] sm:$0xff] %vm333_vm0, %v13186_v1  ;;  %v391_v4 = vld [vmem:[%s8988_s26 + $0x10] sm:$0xff]  ;;  %v392_v5 = vld [vmem:[%s8988_s26 + $0x18] sm:$0xff]  ;;  %s8769_s25 = smov [#allocation5]  }
  0x1e   : > { %356 = vst.msk [vmem:[#allocation2 + $0xa8] sm:$0xff] %vm333_vm0, %v13186_v1  ;;  %357 = vst.msk [vmem:[#allocation2 + $0xb0] sm:$0xff] %vm333_vm0, %v13186_v1  ;;  %v393_v6 = vld [vmem:[%s8988_s26 + $0x20] sm:$0xff]  ;;  %v394_v7 = vld [vmem:[%s8988_s26 + $0x28] sm:$0xff] }
  0x1f   : > { %359 = vst.msk [vmem:[#allocation2 + $0xc0] sm:$0xff] %vm333_vm0, %v13186_v1  ;;  %360 = vst.msk [vmem:[#allocation2 + $0xc8] sm:$0xff] %vm333_vm0, %v13186_v1  ;;  %v519_v8 = vld [vmem:[#allocation2 + $0x1] sm:$0xff]  ;;  %v395_v10 = vld [vmem:[%s8988_s26 + $0x30] sm:$0xff] }
  0x20   : > { %362 = vst.msk [vmem:[#allocation2 + $0xd8] sm:$0xff] %vm333_vm0, %v13186_v1  ;;  %363 = vst.msk [vmem:[#allocation2 + $0xe0] sm:$0xff] %vm333_vm0, %v13186_v1  ;;  %583 = vrot.lane.b32.xlu0 %v519_v8, %s8758_s27  ;;  %v396_v11 = vld [vmem:[%s8988_s26 + $0x38] sm:$0xff]  ;;  %v397_v12 = vld [vmem:[%s8988_s26 + $0x40] sm:$0xff] }
  0x21   : > { %365 = vst.msk [vmem:[#allocation2 + $0xf0] sm:$0xff] %vm333_vm0, %v13186_v1  ;;  %366 = vst.msk [vmem:[#allocation2 + $0xf8] sm:$0xff] %vm333_vm0, %v13186_v1  ;;  %v398_v13 = vld [vmem:[%s8988_s26 + $0x48] sm:$0xff]  ;;  %v399_v14 = vld [vmem:[%s8988_s26 + $0x50] sm:$0xff] }
  0x22   : > { %368 = vst.msk [vmem:[#allocation2 + $0x108] sm:$0xff] %vm333_vm0, %v13186_v1  ;;  %369 = vst.msk [vmem:[#allocation2 + $0x110] sm:$0xff] %vm333_vm0, %v13186_v1  ;;  %v400_v15 = vld [vmem:[%s8988_s26 + $0x58] sm:$0xff]  ;;  %v401_v16 = vld [vmem:[%s8988_s26 + $0x60] sm:$0xff] }
  0x23   : > { %371 = vst.msk [vmem:[#allocation2 + $0x120] sm:$0xff] %vm333_vm0, %v13186_v1  ;;  %372 = vst.msk [vmem:[#allocation2 + $0x128] sm:$0xff] %vm333_vm0, %v13186_v1  ;;  %v402_v17 = vld [vmem:[%s8988_s26 + $0x68] sm:$0xff]  ;;  %v403_v18 = vld [vmem:[%s8988_s26 + $0x70] sm:$0xff] }
  0x24   : > { %374 = vst.msk [vmem:[#allocation2 + $0x138] sm:$0xff] %vm333_vm0, %v13186_v1  ;;  %375 = vst.msk [vmem:[#allocation2 + $0x140] sm:$0xff] %vm333_vm0, %v13186_v1  ;;  %v404_v19 = vld [vmem:[%s8988_s26 + $0x78] sm:$0xff]  ;;  %v405_v20 = vld [vmem:[%s8988_s26 + $0x80] sm:$0xff] }
  0x25   : > { %377 = vst.msk [vmem:[#allocation2 + $0x150] sm:$0xff] %vm333_vm0, %v13186_v1  ;;  %378 = vst.msk [vmem:[#allocation2 + $0x158] sm:$0xff] %vm333_vm0, %v13186_v1  ;;  %v406_v21 = vld [vmem:[%s8988_s26 + $0x88] sm:$0xff]  ;;  %v407_v22 = vld [vmem:[%s8988_s26 + $0x90] sm:$0xff] }
  0x26   : > { %380 = vst.msk [vmem:[#allocation2 + $0x168] sm:$0xff] %vm333_vm0, %v13186_v1  ;;  %381 = vst.msk [vmem:[#allocation2 + $0x170] sm:$0xff] %vm333_vm0, %v13186_v1  ;;  %v408_v23 = vld [vmem:[%s8988_s26 + $0x98] sm:$0xff]  ;;  %v409_v24 = vld [vmem:[%s8988_s26 + $0xa0] sm:$0xff] }
  0x27   : > { %383 = vst.msk [vmem:[#allocation2 + $0x180] sm:$0xff] %vm333_vm0, %v13186_v1  ;;  %384 = vst.msk [vmem:[#allocation2 + $0x188] sm:$0xff] %vm333_vm0, %v13186_v1  ;;  %v410_v25 = vld [vmem:[%s8988_s26 + $0xa8] sm:$0xff]  ;;  %v411_v29 = vld [vmem:[%s8988_s26 + $0xb0] sm:$0xff] }
  0x28   : > { %386 = vst.msk [vmem:[#allocation2 + $0x198] sm:$0xff] %vm333_vm0, %v13186_v1  ;;  %387 = vst.msk [vmem:[#allocation2 + $0x1a0] sm:$0xff] %vm333_vm0, %v13186_v1  ;;  %v412_v30 = vld [vmem:[%s8988_s26 + $0xb8] sm:$0xff]  ;;  %v413_v34 = vld [vmem:[%s8988_s26 + $0xc0] sm:$0xff] }
  0x29   : > { %337 = vst.msk [vmem:[#allocation2 + $0x10] sm:$0x3] %vm336_vm1, %v13186_v1  ;;  %340 = vst.msk [vmem:[#allocation2 + $0x28] sm:$0x3] %vm336_vm1, %v13186_v1  ;;  %v414_v35 = vld [vmem:[%s8988_s26 + $0xc8] sm:$0xff]  ;;  %v415_v36 = vld [vmem:[%s8988_s26 + $0xd0] sm:$0xff] }
  0x2a   : > { %343 = vst.msk [vmem:[#allocation2 + $0x40] sm:$0x3] %vm336_vm1, %v13186_v1  ;;  %346 = vst.msk [vmem:[#allocation2 + $0x58] sm:$0x3] %vm336_vm1, %v13186_v1  ;;  %v416_v37 = vld [vmem:[%s8988_s26 + $0xd8] sm:$0xff]  ;;  %v417_v38 = vld [vmem:[%s8988_s26 + $0xe0] sm:$0xff] }
  0x2b   : > { %349 = vst.msk [vmem:[#allocation2 + $0x70] sm:$0x3] %vm336_vm1, %v13186_v1  ;;  %352 = vst.msk [vmem:[#allocation2 + $0x88] sm:$0x3] %vm336_vm1, %v13186_v1  ;;  %v418_v39 = vld [vmem:[%s8988_s26 + $0xe8] sm:$0xff]  ;;  %v455_v46 = vld [vmem:[#allocation2] sm:$0xff] }
  0x2c   : > { %355 = vst.msk [vmem:[#allocation2 + $0xa0] sm:$0x3] %vm336_vm1, %v13186_v1  ;;  %358 = vst.msk [vmem:[#allocation2 + $0xb8] sm:$0x3] %vm336_vm1, %v13186_v1  ;;  %v456_v49 = vld [vmem:[#allocation2 + $0x8] sm:$0xff] }
  0x2d   : > { %361 = vst.msk [vmem:[#allocation2 + $0xd0] sm:$0x3] %vm336_vm1, %v13186_v1  ;;  %364 = vst.msk [vmem:[#allocation2 + $0xe8] sm:$0x3] %vm336_vm1, %v13186_v1 }
  0x2e   : > { %367 = vst.msk [vmem:[#allocation2 + $0x100] sm:$0x3] %vm336_vm1, %v13186_v1  ;;  %370 = vst.msk [vmem:[#allocation2 + $0x118] sm:$0x3] %vm336_vm1, %v13186_v1 }
  0x2f   : > { %373 = vst.msk [vmem:[#allocation2 + $0x130] sm:$0x3] %vm336_vm1, %v13186_v1  ;;  %376 = vst.msk [vmem:[#allocation2 + $0x148] sm:$0x3] %vm336_vm1, %v13186_v1 }
  0x30   : > { %379 = vst.msk [vmem:[#allocation2 + $0x160] sm:$0x3] %vm336_vm1, %v13186_v1  ;;  %382 = vst.msk [vmem:[#allocation2 + $0x178] sm:$0x3] %vm336_vm1, %v13186_v1  ;;  %v520_v9 = vld [vmem:[#allocation2 + $0x9] sm:$0xff] }
  0x31   : > { %385 = vst.msk [vmem:[#allocation2 + $0x190] sm:$0x3] %vm336_vm1, %v13186_v1  ;;  %388 = vst.msk [vmem:[#allocation2 + $0x1a8] sm:$0x3] %vm336_vm1, %v13186_v1  ;;  %585 = vrot.lane.b32.xlu0 %v520_v9, %s8758_s27 }
  0x32   : > { %423 = vst.msk [vmem:[#allocation2 + $0x19] sm:$0xff] %vm422_vm2, %v389_v2  ;;  %424 = vst.msk [vmem:[#allocation2 + $0x21] sm:$0xff] %vm422_vm2, %v390_v3 }
  0x33   : > { %425 = vst.msk [vmem:[#allocation2 + $0x31] sm:$0xff] %vm422_vm2, %v391_v4  ;;  %426 = vst.msk [vmem:[#allocation2 + $0x39] sm:$0xff] %vm422_vm2, %v392_v5 }
  0x34   : > { %427 = vst.msk [vmem:[#allocation2 + $0x49] sm:$0xff] %vm422_vm2, %v393_v6  ;;  %428 = vst.msk [vmem:[#allocation2 + $0x51] sm:$0xff] %vm422_vm2, %v394_v7 }
  0x35   : > { %429 = vst.msk [vmem:[#allocation2 + $0x61] sm:$0xff] %vm422_vm2, %v395_v10  ;;  %430 = vst.msk [vmem:[#allocation2 + $0x69] sm:$0xff] %vm422_vm2, %v396_v11 }
  0x36   : > { %431 = vst.msk [vmem:[#allocation2 + $0x79] sm:$0xff] %vm422_vm2, %v397_v12  ;;  %432 = vst.msk [vmem:[#allocation2 + $0x81] sm:$0xff] %vm422_vm2, %v398_v13 }
  0x37   : > { %433 = vst.msk [vmem:[#allocation2 + $0x91] sm:$0xff] %vm422_vm2, %v399_v14  ;;  %434 = vst.msk [vmem:[#allocation2 + $0x99] sm:$0xff] %vm422_vm2, %v400_v15 }
  0x38   : > { %435 = vst.msk [vmem:[#allocation2 + $0xa9] sm:$0xff] %vm422_vm2, %v401_v16  ;;  %436 = vst.msk [vmem:[#allocation2 + $0xb1] sm:$0xff] %vm422_vm2, %v402_v17 }
  0x39   : > { %437 = vst.msk [vmem:[#allocation2 + $0xc1] sm:$0xff] %vm422_vm2, %v403_v18  ;;  %438 = vst.msk [vmem:[#allocation2 + $0xc9] sm:$0xff] %vm422_vm2, %v404_v19  ;;  %v9033_v26 = vld [vmem:[#allocation2 + $0x19] sm:$0xff]  ;;  %v9042_v28 = vld [vmem:[#allocation2 + $0x21] sm:$0xff] }
  0x3a   : > { %439 = vst.msk [vmem:[#allocation2 + $0xd9] sm:$0xff] %vm422_vm2, %v405_v20  ;;  %440 = vst.msk [vmem:[#allocation2 + $0xe1] sm:$0xff] %vm422_vm2, %v406_v21  ;;  %v9035_v27 = vld [vmem:[#allocation2 + $0x31] sm:$0xff]  ;;  %587 = vrot.lane.b32.xlu1 %v9033_v26, %s8758_s27  ;;  %v9054_v32 = vld [vmem:[#allocation2 + $0x39] sm:$0xff] }
  0x3b   : > { %441 = vst.msk [vmem:[#allocation2 + $0xf1] sm:$0xff] %vm422_vm2, %v407_v22  ;;  %442 = vst.msk [vmem:[#allocation2 + $0xf9] sm:$0xff] %vm422_vm2, %v408_v23  ;;  %591 = vrot.lane.b32.xlu0 %v9035_v27, %s8758_s27  ;;  %v9050_v31 = vld [vmem:[#allocation2 + $0x49] sm:$0xff]  ;;  %v9071_v40 = vld [vmem:[#allocation2 + $0x51] sm:$0xff] }
  0x3c   : > { %443 = vst.msk [vmem:[#allocation2 + $0x109] sm:$0xff] %vm422_vm2, %v409_v24  ;;  %444 = vst.msk [vmem:[#allocation2 + $0x111] sm:$0xff] %vm422_vm2, %v410_v25  ;;  %v9058_v33 = vld [vmem:[#allocation2 + $0x61] sm:$0xff]  ;;  %v9082_v42 = vld [vmem:[#allocation2 + $0x69] sm:$0xff] }
  0x3d   : > { %445 = vst.msk [vmem:[#allocation2 + $0x121] sm:$0xff] %vm422_vm2, %v411_v29  ;;  %446 = vst.msk [vmem:[#allocation2 + $0x129] sm:$0xff] %vm422_vm2, %v412_v30  ;;  %v9078_v41 = vld [vmem:[#allocation2 + $0x79] sm:$0xff]  ;;  %v9090_v44 = vld [vmem:[#allocation2 + $0x81] sm:$0xff] }
  0x3e   : > { %589 = vrot.lane.b32.xlu1 %v9042_v28, %s8758_s27  ;;  %447 = vst.msk [vmem:[#allocation2 + $0x139] sm:$0xff] %vm422_vm2, %v413_v34  ;;  %448 = vst.msk [vmem:[#allocation2 + $0x141] sm:$0xff] %vm422_vm2, %v414_v35  ;;  %v9086_v43 = vld [vmem:[#allocation2 + $0x91] sm:$0xff]  ;;  %v9100_v48 = vld [vmem:[#allocation2 + $0x99] sm:$0xff] }
  0x3f   : > { %595 = vrot.lane.b32.xlu0 %v9050_v31, %s8758_s27  ;;  %449 = vst.msk [vmem:[#allocation2 + $0x151] sm:$0xff] %vm422_vm2, %v415_v36  ;;  %450 = vst.msk [vmem:[#allocation2 + $0x159] sm:$0xff] %vm422_vm2, %v416_v37  ;;  %v9094_v45 = vld [vmem:[#allocation2 + $0xa9] sm:$0xff]  ;;  %v9098_v47 = vld [vmem:[#allocation2 + $0x18] sm:$0xff] }
  0x40   : > { %451 = vst.msk [vmem:[#allocation2 + $0x169] sm:$0xff] %vm422_vm2, %v417_v38  ;;  %452 = vst.msk [vmem:[#allocation2 + $0x171] sm:$0xff] %vm422_vm2, %v418_v39  ;;  %v9108_v50 = vld [vmem:[#allocation2 + $0x20] sm:$0xff]  ;;  %v9114_v52 = vld [vmem:[#allocation2 + $0x30] sm:$0xff] }
  0x41   : > { %487 = vst.msk [vmem:[#allocation3] sm:$0xff] %vm422_vm2, %v455_v46  ;;  %489 = vst.msk [vmem:[#allocation3 + $0x30] sm:$0xff] %vm422_vm2, %v9098_v47  ;;  %v9110_v51 = vld [vmem:[#allocation2 + $0xc1] sm:$0xff]  ;;  %v9116_v53 = vld [vmem:[#allocation2 + $0x38] sm:$0xff] }
  0x42   : > { %593 = vrot.lane.b32.xlu1 %v9054_v32, %s8758_s27  ;;  %488 = vst.msk [vmem:[#allocation3 + $0x18] sm:$0xff] %vm422_vm2, %v456_v49  ;;  %490 = vst.msk [vmem:[#allocation3 + $0x48] sm:$0xff] %vm422_vm2, %v9108_v50  ;;  %v9120_v54 = vld [vmem:[#allocation2 + $0xb1] sm:$0xff]  ;;  %v9126_v55 = vld [vmem:[#allocation2 + $0x48] sm:$0xff] }
  0x43   : > { %599 = vrot.lane.b32.xlu0 %v9058_v33, %s8758_s27  ;;  %491 = vst.msk [vmem:[#allocation3 + $0x60] sm:$0xff] %vm422_vm2, %v9114_v52  ;;  %492 = vst.msk [vmem:[#allocation3 + $0x78] sm:$0xff] %vm422_vm2, %v9116_v53  ;;  %v9128_v56 = vld [vmem:[#allocation2 + $0x50] sm:$0xff]  ;;  %v9130_v57 = vld [vmem:[#allocation2 + $0xd9] sm:$0xff] }
  0x44   : > { %493 = vst.msk [vmem:[#allocation3 + $0x90] sm:$0xff] %vm422_vm2, %v9126_v55  ;;  %494 = vst.msk [vmem:[#allocation3 + $0xa8] sm:$0xff] %vm422_vm2, %v9128_v56  ;;  %v9136_v58 = vld [vmem:[#allocation2 + $0x60] sm:$0xff]  ;;  %v9138_v59 = vld [vmem:[#allocation2 + $0x68] sm:$0xff] }
  0x45   : > { %v9140_v60 = vld [vmem:[#allocation2 + $0x78] sm:$0xff]  ;;  %495 = vst.msk [vmem:[#allocation3 + $0xc0] sm:$0xff] %vm422_vm2, %v9136_v58  ;;  %496 = vst.msk [vmem:[#allocation3 + $0xd8] sm:$0xff] %vm422_vm2, %v9138_v59  ;;  %v9150_v61 = vld [vmem:[#allocation2 + $0x80] sm:$0xff] }
  0x46   : > { %597 = vrot.lane.b32.xlu1 %v9071_v40, %s8758_s27  ;;  %497 = vst.msk [vmem:[#allocation3 + $0xf0] sm:$0xff] %vm422_vm2, %v9140_v60  ;;  %v9152_v62 = vld [vmem:[#allocation2 + $0x90] sm:$0xff]  ;;  %v9154_v63 = vld [vmem:[#allocation2 + $0x98] sm:$0xff]  ;;  %498 = vst.msk [vmem:[#allocation3 + $0x108] sm:$0xff] %vm422_vm2, %v9150_v61 }
  0x47   : > { %603 = vrot.lane.b32.xlu0 %v9078_v41, %s8758_s27  ;;  %v9156_v0 = vld [vmem:[#allocation2 + $0xc9] sm:$0xff]  ;;  %499 = vst.msk [vmem:[#allocation3 + $0x120] sm:$0xff] %vm422_vm2, %v9152_v62  ;;  %500 = vst.msk [vmem:[#allocation3 + $0x138] sm:$0xff] %vm422_vm2, %v9154_v63  ;;  %v9168_v4 = vld [vmem:[#allocation2 + $0xc0] sm:$0xff] }
  0x48   : > { %v9164_v2 = vld [vmem:[#allocation2 + $0xa8] sm:$0xff]  ;;  %v9166_v3 = vld [vmem:[#allocation2 + $0xb0] sm:$0xff]  ;;  %503 = vst.msk [vmem:[#allocation3 + $0x180] sm:$0xff] %vm422_vm2, %v9168_v4  ;;  %v9180_v6 = vld [vmem:[#allocation2 + $0xd8] sm:$0xff] }
  0x49   : > { %501 = vst.msk [vmem:[#allocation3 + $0x150] sm:$0xff] %vm422_vm2, %v9164_v2  ;;  %502 = vst.msk [vmem:[#allocation3 + $0x168] sm:$0xff] %vm422_vm2, %v9166_v3  ;;  %v9178_v5 = vld [vmem:[#allocation2 + $0xc8] sm:$0xff]  ;;  %v9182_v7 = vld [vmem:[#allocation2 + $0xe0] sm:$0xff] }
  0x4a   : > { %601 = vrot.lane.b32.xlu1 %v9082_v42, %s8758_s27  ;;  %504 = vst.msk [vmem:[#allocation3 + $0x198] sm:$0xff] %vm422_vm2, %v9178_v5  ;;  %505 = vst.msk [vmem:[#allocation3 + $0x1b0] sm:$0xff] %vm422_vm2, %v9180_v6  ;;  %v9190_v8 = vld [vmem:[#allocation2 + $0xf0] sm:$0xff]  ;;  %v9192_v9 = vld [vmem:[#allocation2 + $0xf8] sm:$0xff] }
  0x4b   : > { %607 = vrot.lane.b32.xlu0 %v9086_v43, %s8758_s27  ;;  %506 = vst.msk [vmem:[#allocation3 + $0x1c8] sm:$0xff] %vm422_vm2, %v9182_v7  ;;  %v9194_v10 = vld [vmem:[#allocation2 + $0x108] sm:$0xff]  ;;  %507 = vst.msk [vmem:[#allocation3 + $0x1e0] sm:$0xff] %vm422_vm2, %v9190_v8  ;;  %v9204_v11 = vld [vmem:[#allocation2 + $0x110] sm:$0xff] }
  0x4c   : > { %508 = vst.msk [vmem:[#allocation3 + $0x1f8] sm:$0xff] %vm422_vm2, %v9192_v9  ;;  %509 = vst.msk [vmem:[#allocation3 + $0x210] sm:$0xff] %vm422_vm2, %v9194_v10  ;;  %v9206_v12 = vld [vmem:[#allocation2 + $0xf1] sm:$0xff]  ;;  %v9212_v13 = vld [vmem:[#allocation2 + $0x120] sm:$0xff] }
  0x4d   : > { %510 = vst.msk [vmem:[#allocation3 + $0x228] sm:$0xff] %vm422_vm2, %v9204_v11  ;;  %v9214_v14 = vld [vmem:[#allocation2 + $0x128] sm:$0xff]  ;;  %511 = vst.msk [vmem:[#allocation3 + $0x240] sm:$0xff] %vm422_vm2, %v9212_v13  ;;  %v9228_v17 = vld [vmem:[#allocation2 + $0x138] sm:$0xff] }
  0x4e   : > { %605 = vrot.lane.b32.xlu1 %v9090_v44, %s8758_s27  ;;  %v9216_v15 = vld [vmem:[#allocation2 + $0xe1] sm:$0xff]  ;;  %512 = vst.msk [vmem:[#allocation3 + $0x258] sm:$0xff] %vm422_vm2, %v9214_v14  ;;  %v9224_v16 = vld [vmem:[#allocation2 + $0x109] sm:$0xff]  ;;  %v9232_v19 = vld [vmem:[#allocation2 + $0xf9] sm:$0xff] }
  0x4f   : > { %611 = vrot.lane.b32.xlu0 %v9094_v45, %s8758_s27  ;;  %v9230_v18 = vld [vmem:[#allocation2 + $0x140] sm:$0xff]  ;;  %513 = vst.msk [vmem:[#allocation3 + $0x270] sm:$0xff] %vm422_vm2, %v9228_v17  ;;  %v9244_v21 = vld [vmem:[#allocation2 + $0x150] sm:$0xff]  ;;  %v9246_v22 = vld [vmem:[#allocation2 + $0x158] sm:$0xff] }
  0x50   : > { %514 = vst.msk [vmem:[#allocation3 + $0x288] sm:$0xff] %vm422_vm2, %v9230_v18  ;;  %v9240_v20 = vld [vmem:[#allocation2 + $0x121] sm:$0xff]  ;;  %v9248_v23 = vld [vmem:[#allocation2 + $0x111] sm:$0xff]  ;;  %515 = vst.msk [vmem:[#allocation3 + $0x2a0] sm:$0xff] %vm422_vm2, %v9244_v21 }
  0x51   : > { %516 = vst.msk [vmem:[#allocation3 + $0x2b8] sm:$0xff] %vm422_vm2, %v9246_v22  ;;  %v9256_v24 = vld [vmem:[#allocation2 + $0x139] sm:$0xff]  ;;  %v9260_v25 = vld [vmem:[#allocation2 + $0x168] sm:$0xff]  ;;  %v9262_v29 = vld [vmem:[#allocation2 + $0x170] sm:$0xff] }
  0x52   : > { %609 = vrot.lane.b32.xlu1 %v9100_v48, %s8758_s27  ;;  %v9264_v30 = vld [vmem:[#allocation2 + $0x129] sm:$0xff]  ;;  %517 = vst.msk [vmem:[#allocation3 + $0x2d0] sm:$0xff] %vm422_vm2, %v9260_v25  ;;  %518 = vst.msk [vmem:[#allocation3 + $0x2e8] sm:$0xff] %vm422_vm2, %v9262_v29  ;;  %v9272_v34 = vld [vmem:[#allocation2 + $0x151] sm:$0xff] }
  0x53   : > { %615 = vrot.lane.b32.xlu0 %v9110_v51, %s8758_s27  ;;  %v9276_v35 = vld [vmem:[#allocation2 + $0x141] sm:$0xff]  ;;  %v419_v36 = vld [vmem:[%s8988_s26 + $0xf0] sm:$0xff]  ;;  %v420_v38 = vld [vmem:[%s8988_s26 + $0xf8] sm:$0xff]  ;;  %s8764_s26 = smov 28  }
  0x54   : > { %13225 = vst [vmem:[#allocation8_spill] sm:$0xff] %v9276_v35  ;;  %v9281_v37 = vld [vmem:[#allocation2 + $0x169] sm:$0xff]  ;;  %453 = vst.msk [vmem:[#allocation2 + $0x181] sm:$0xff] %vm422_vm2, %v419_v36  ;;  %v9288_v39 = vld [vmem:[#allocation2 + $0x159] sm:$0xff] }
  0x55   : > { %13226 = vst [vmem:[#allocation9_spill] sm:$0xff] %v9281_v37  ;;  %454 = vst.msk [vmem:[#allocation2 + $0x189] sm:$0xff] %vm422_vm2, %v420_v38  ;;  %v712_v46 = vld [vmem:[#allocation2 + $0x2] sm:$0xff]  ;;  %v9294_v49 = vld [vmem:[#allocation2 + $0x171] sm:$0xff] }
  0x56   : > { %613 = vrot.lane.b32.xlu1 %v9120_v54, %s8758_s27  ;;  %13227 = vst [vmem:[#allocation10_spill] sm:$0xff] %v9288_v39  ;;  %13228 = vst [vmem:[#allocation11_spill] sm:$0xff] %v9294_v49  ;;  %v9297_v36 = vld [vmem:[#allocation2 + $0x1a] sm:$0xff]  ;;  %v713_v38 = vld [vmem:[#allocation2 + $0xa] sm:$0xff] }
  0x57   : > { %619 = vrot.lane.b32.xlu0 %v9130_v57, %s8758_s27  ;;  %13229 = vst [vmem:[#allocation12_spill] sm:$0xff] %v9297_v36  ;;  %v9303_v1 = vld [vmem:[#allocation2 + $0x32] sm:$0xff] }
  0x58   : > { %13230 = vst [vmem:[#allocation13_spill] sm:$0xff] %v9303_v1 }
  0x5a   : > { %617 = vrot.lane.b32.xlu1 %v9156_v0, %s8758_s27 }
  0x5b   : > { %623 = vrot.lane.b32.xlu0 %v9206_v12, %s8758_s27 }
  0x5e   : > { %621 = vrot.lane.b32.xlu1 %v9216_v15, %s8758_s27 }
  0x5f   : > { %627 = vrot.lane.b32.xlu0 %v9224_v16, %s8758_s27 }
  0x62   : > { %625 = vrot.lane.b32.xlu1 %v9232_v19, %s8758_s27 }
  0x63   : > { %631 = vrot.lane.b32.xlu0 %v9240_v20, %s8758_s27 }
  0x66   : > { %629 = vrot.lane.b32.xlu1 %v9248_v23, %s8758_s27 }
  0x67   : > { %635 = vrot.lane.b32.xlu0 %v9256_v24, %s8758_s27 }
  0x6a   : > { %633 = vrot.lane.b32.xlu1 %v9264_v30, %s8758_s27 }
  0x6b   : > { %639 = vrot.lane.b32.xlu0 %v9272_v34, %s8758_s27 }
  0x6e   : > { %637 = vrot.lane.b32.xlu1 %v9276_v35, %s8758_s27 }
  0x6f   : > { %643 = vrot.lane.b32.xlu0 %v9281_v37, %s8758_s27  ;;  %v9306_v37 = vld [vmem:[#allocation2 + $0x22] sm:$0xff] }
  0x70   : > { %13231 = vst [vmem:[#allocation14_spill] sm:$0xff] %v9306_v37 }
  0x72   : > { %641 = vrot.lane.b32.xlu1 %v9288_v39, %s8758_s27  ;;  %v9310_v39 = vld [vmem:[#allocation2 + $0x4a] sm:$0xff] }
  0x73   : > { %776 = vrot.lane.b32.xlu0 %v712_v46, %s8759_s28  ;;  %13232 = vst [vmem:[#allocation15_spill] sm:$0xff] %v9310_v39  ;;  %v9314_v46 = vld [vmem:[#allocation2 + $0x3a] sm:$0xff] }
  0x74   : > { %13233 = vst [vmem:[#allocation16_spill] sm:$0xff] %v9314_v46 }
  0x76   : > { %645 = vrot.lane.b32.xlu1 %v9294_v49, %s8758_s27  ;;  %v9394_v49 = vld [vmem:[#allocation2 + $0x12a] sm:$0xff]  ;;  %s325_s27 = sand.u32 1, %s8747_s12  }
  0x77   : > { %780 = vrot.lane.b32.xlu0 %v9297_v36, %s8759_s28  ;;  %v9318_v36 = vld [vmem:[#allocation2 + $0x62] sm:$0xff]  ;;  %13253 = vst [vmem:[#allocation36_spill] sm:$0xff] %v9394_v49  ;;  %s13135_s24 = scalar_lea.sflag [#allocation6], %s325_s27 }
  0x78   : > { %13234 = vst [vmem:[#allocation17_spill] sm:$0xff] %v9318_v36 }
  0x7a   : > { %778 = vrot.lane.b32.xlu1 %v713_v38, %s8759_s28  ;;  %v9322_v38 = vld [vmem:[#allocation2 + $0x52] sm:$0xff] }
  0x7b   : > { %784 = vrot.lane.b32.xlu0 %v9303_v1, %s8759_s28  ;;  %13235 = vst [vmem:[#allocation18_spill] sm:$0xff] %v9322_v38  ;;  %v9326_v1 = vld [vmem:[#allocation2 + $0x7a] sm:$0xff] }
  0x7c   : > { %13236 = vst [vmem:[#allocation19_spill] sm:$0xff] %v9326_v1 }
  0x7e   : > { %782 = vrot.lane.b32.xlu1 %v9306_v37, %s8759_s28  ;;  %v9330_v37 = vld [vmem:[#allocation2 + $0x6a] sm:$0xff] }
  0x7f   : > { %788 = vrot.lane.b32.xlu0 %v9310_v39, %s8759_s28  ;;  %13237 = vst [vmem:[#allocation20_spill] sm:$0xff] %v9330_v37  ;;  %v9334_v39 = vld [vmem:[#allocation2 + $0x92] sm:$0xff] }
  0x80   : > { %13238 = vst [vmem:[#allocation21_spill] sm:$0xff] %v9334_v39 }
  0x82   : > { %786 = vrot.lane.b32.xlu1 %v9314_v46, %s8759_s28  ;;  %v9338_v46 = vld [vmem:[#allocation2 + $0x82] sm:$0xff] }
  0x83   : > { %792 = vrot.lane.b32.xlu0 %v9318_v36, %s8759_s28  ;;  %13239 = vst [vmem:[#allocation22_spill] sm:$0xff] %v9338_v46  ;;  %v9342_v36 = vld [vmem:[#allocation2 + $0xaa] sm:$0xff] }
  0x84   : > { %13240 = vst [vmem:[#allocation23_spill] sm:$0xff] %v9342_v36 }
  0x86   : > { %790 = vrot.lane.b32.xlu1 %v9322_v38, %s8759_s28  ;;  %v9346_v38 = vld [vmem:[#allocation2 + $0x9a] sm:$0xff] }
  0x87   : > { %796 = vrot.lane.b32.xlu0 %v9326_v1, %s8759_s28  ;;  %13241 = vst [vmem:[#allocation24_spill] sm:$0xff] %v9346_v38  ;;  %v9350_v1 = vld [vmem:[#allocation2 + $0xc2] sm:$0xff] }
  0x88   : > { %13242 = vst [vmem:[#allocation25_spill] sm:$0xff] %v9350_v1 }
  0x8a   : > { %794 = vrot.lane.b32.xlu1 %v9330_v37, %s8759_s28  ;;  %v9354_v37 = vld [vmem:[#allocation2 + $0xb2] sm:$0xff] }
  0x8b   : > { %800 = vrot.lane.b32.xlu0 %v9334_v39, %s8759_s28  ;;  %13243 = vst [vmem:[#allocation26_spill] sm:$0xff] %v9354_v37  ;;  %v9358_v39 = vld [vmem:[#allocation2 + $0xda] sm:$0xff] }
  0x8c   : > { %13244 = vst [vmem:[#allocation27_spill] sm:$0xff] %v9358_v39 }
  0x8e   : > { %798 = vrot.lane.b32.xlu1 %v9338_v46, %s8759_s28  ;;  %v9362_v46 = vld [vmem:[#allocation2 + $0xca] sm:$0xff] }
  0x8f   : > { %804 = vrot.lane.b32.xlu0 %v9342_v36, %s8759_s28  ;;  %13245 = vst [vmem:[#allocation28_spill] sm:$0xff] %v9362_v46  ;;  %v9366_v36 = vld [vmem:[#allocation2 + $0xf2] sm:$0xff] }
  0x90   : > { %13246 = vst [vmem:[#allocation29_spill] sm:$0xff] %v9366_v36 }
  0x92   : > { %802 = vrot.lane.b32.xlu1 %v9346_v38, %s8759_s28  ;;  %v9370_v38 = vld [vmem:[#allocation2 + $0xe2] sm:$0xff] }
  0x93   : > { %808 = vrot.lane.b32.xlu0 %v9350_v1, %s8759_s28  ;;  %13247 = vst [vmem:[#allocation30_spill] sm:$0xff] %v9370_v38  ;;  %v9374_v1 = vld [vmem:[#allocation2 + $0x10a] sm:$0xff] }
  0x94   : > { %13248 = vst [vmem:[#allocation31_spill] sm:$0xff] %v9374_v1 }
  0x96   : > { %806 = vrot.lane.b32.xlu1 %v9354_v37, %s8759_s28  ;;  %v9378_v37 = vld [vmem:[#allocation2 + $0xfa] sm:$0xff] }
  0x97   : > { %812 = vrot.lane.b32.xlu0 %v9358_v39, %s8759_s28  ;;  %13249 = vst [vmem:[#allocation32_spill] sm:$0xff] %v9378_v37  ;;  %v9382_v39 = vld [vmem:[#allocation2 + $0x122] sm:$0xff] }
  0x98   : > { %13250 = vst [vmem:[#allocation33_spill] sm:$0xff] %v9382_v39 }
  0x9a   : > { %810 = vrot.lane.b32.xlu1 %v9362_v46, %s8759_s28  ;;  %v9386_v46 = vld [vmem:[#allocation2 + $0x112] sm:$0xff] }
  0x9b   : > { %816 = vrot.lane.b32.xlu0 %v9366_v36, %s8759_s28  ;;  %13251 = vst [vmem:[#allocation34_spill] sm:$0xff] %v9386_v46  ;;  %v9390_v36 = vld [vmem:[#allocation2 + $0x13a] sm:$0xff] }
  0x9c   : > { %13252 = vst [vmem:[#allocation35_spill] sm:$0xff] %v9390_v36 }
  0x9e   : > { %814 = vrot.lane.b32.xlu1 %v9370_v38, %s8759_s28  ;;  %v584_v38 = vpop.permute.xlu0 %583 }
  0x9f   : > { %820 = vrot.lane.b32.xlu0 %v9374_v1, %s8759_s28  ;;  %680 = vst.msk [vmem:[#allocation3] sm:$0xff] %vm679_vm3, %v584_v38  ;;  %v9403_v1 = vld [vmem:[#allocation2 + $0x142] sm:$0xff]  ;;  %v9409_v38 = vld [vmem:[#allocation2 + $0x16a] sm:$0xff] }
  0xa0   : > { %13254 = vst [vmem:[#allocation37_spill] sm:$0xff] %v9403_v1 }
  0xa2   : > { %818 = vrot.lane.b32.xlu1 %v9378_v37, %s8759_s28  ;;  %v9399_v37 = vld [vmem:[#allocation2 + $0x152] sm:$0xff] }
  0xa3   : > { %824 = vrot.lane.b32.xlu0 %v9382_v39, %s8759_s28  ;;  %v586_v39 = vpop.permute.xlu0 %585 }
  0xa4   : > { %681 = vst.msk [vmem:[#allocation3 + $0x18] sm:$0xff] %vm679_vm3, %v586_v39  ;;  %v9421_v39 = vld [vmem:[#allocation2 + $0x172] sm:$0xff] }
  0xa6   : > { %822 = vrot.lane.b32.xlu1 %v9386_v46, %s8759_s28  ;;  %v9413_v46 = vld [vmem:[#allocation2 + $0x15a] sm:$0xff] }
  0xa7   : > { %828 = vrot.lane.b32.xlu0 %v9390_v36, %s8759_s28 }
  0xaa   : > { %826 = vrot.lane.b32.xlu1 %v9394_v49, %s8759_s28 }
  0xab   : > { %832 = vrot.lane.b32.xlu0 %v9399_v37, %s8759_s28 }
  0xac   : > { %v588_v35 = vpop.permute.xlu1 %587 }
  0xad   : > { %682 = vst.msk [vmem:[#allocation3 + $0x30] sm:$0xff] %vm679_vm3, %v588_v35  ;;  %v592_v36 = vpop.permute.xlu0 %591 }
  0xae   : > { %830 = vrot.lane.b32.xlu1 %v9403_v1, %s8759_s28  ;;  %684 = vst.msk [vmem:[#allocation3 + $0x60] sm:$0xff] %vm679_vm3, %v592_v36 }
  0xaf   : > { %836 = vrot.lane.b32.xlu0 %v9409_v38, %s8759_s28 }
  0xb0   : > { %v590_v49 = vpop.permute.xlu1 %589 }
  0xb1   : > { %683 = vst.msk [vmem:[#allocation3 + $0x48] sm:$0xff] %vm679_vm3, %v590_v49  ;;  %v596_v35 = vpop.permute.xlu0 %595 }
  0xb2   : > { %834 = vrot.lane.b32.xlu1 %v9413_v46, %s8759_s28  ;;  %686 = vst.msk [vmem:[#allocation3 + $0x90] sm:$0xff] %vm679_vm3, %v596_v35 }
  0xb3   : > { %969 = vrot.lane.b32.xlu0 %v9098_v47, %s8760_s29 }
  0xb4   : > { %v594_v1 = vpop.permute.xlu1 %593 }
  0xb5   : > { %685 = vst.msk [vmem:[#allocation3 + $0x78] sm:$0xff] %vm679_vm3, %v594_v1  ;;  %v600_v36 = vpop.permute.xlu0 %599 }
  0xb6   : > { %838 = vrot.lane.b32.xlu1 %v9421_v39, %s8759_s28  ;;  %688 = vst.msk [vmem:[#allocation3 + $0xc0] sm:$0xff] %vm679_vm3, %v600_v36 }
  0xb7   : > { %973 = vrot.lane.b32.xlu0 %v9114_v52, %s8760_s29 }
  0xb8   : > { %v598_v49 = vpop.permute.xlu1 %597 }
  0xb9   : > { %687 = vst.msk [vmem:[#allocation3 + $0xa8] sm:$0xff] %vm679_vm3, %v598_v49  ;;  %v604_v35 = vpop.permute.xlu0 %603 }
  0xba   : > { %971 = vrot.lane.b32.xlu1 %v9108_v50, %s8760_s29  ;;  %690 = vst.msk [vmem:[#allocation3 + $0xf0] sm:$0xff] %vm679_vm3, %v604_v35 }
  0xbb   : > { %977 = vrot.lane.b32.xlu0 %v9126_v55, %s8760_s29 }
  0xbc   : > { %v602_v47 = vpop.permute.xlu1 %601 }
  0xbd   : > { %689 = vst.msk [vmem:[#allocation3 + $0xd8] sm:$0xff] %vm679_vm3, %v602_v47  ;;  %v608_v1 = vpop.permute.xlu0 %607 }
  0xbe   : > { %975 = vrot.lane.b32.xlu1 %v9116_v53, %s8760_s29  ;;  %692 = vst.msk [vmem:[#allocation3 + $0x120] sm:$0xff] %vm679_vm3, %v608_v1 }
  0xbf   : > { %981 = vrot.lane.b32.xlu0 %v9136_v58, %s8760_s29 }
  0xc0   : > { %v606_v36 = vpop.permute.xlu1 %605 }
  0xc1   : > { %691 = vst.msk [vmem:[#allocation3 + $0x108] sm:$0xff] %vm679_vm3, %v606_v36  ;;  %v612_v50 = vpop.permute.xlu0 %611 }
  0xc2   : > { %979 = vrot.lane.b32.xlu1 %v9128_v56, %s8760_s29  ;;  %694 = vst.msk [vmem:[#allocation3 + $0x150] sm:$0xff] %vm679_vm3, %v612_v50 }
  0xc3   : > { %985 = vrot.lane.b32.xlu0 %v9140_v60, %s8760_s29 }
  0xc4   : > { %v610_v49 = vpop.permute.xlu1 %609 }
  0xc5   : > { %693 = vst.msk [vmem:[#allocation3 + $0x138] sm:$0xff] %vm679_vm3, %v610_v49  ;;  %v616_v35 = vpop.permute.xlu0 %615 }
  0xc6   : > { %983 = vrot.lane.b32.xlu1 %v9138_v59, %s8760_s29  ;;  %696 = vst.msk [vmem:[#allocation3 + $0x180] sm:$0xff] %vm679_vm3, %v616_v35 }
  0xc7   : > { %989 = vrot.lane.b32.xlu0 %v9152_v62, %s8760_s29 }
  0xc8   : > { %v614_v47 = vpop.permute.xlu1 %613 }
  0xc9   : > { %695 = vst.msk [vmem:[#allocation3 + $0x168] sm:$0xff] %vm679_vm3, %v614_v47  ;;  %v620_v1 = vpop.permute.xlu0 %619 }
  0xca   : > { %987 = vrot.lane.b32.xlu1 %v9150_v61, %s8760_s29  ;;  %698 = vst.msk [vmem:[#allocation3 + $0x1b0] sm:$0xff] %vm679_vm3, %v620_v1 }
  0xcb   : > { %993 = vrot.lane.b32.xlu0 %v9164_v2, %s8760_s29 }
  0xcc   : > { %v618_v36 = vpop.permute.xlu1 %617 }
  0xcd   : > { %697 = vst.msk [vmem:[#allocation3 + $0x198] sm:$0xff] %vm679_vm3, %v618_v36  ;;  %v624_v50 = vpop.permute.xlu0 %623  ;;  %v936_v36 = vld [vmem:[#allocation2 + $0x188] sm:$0xff] }
  0xce   : > { %991 = vrot.lane.b32.xlu1 %v9154_v63, %s8760_s29  ;;  %700 = vst.msk [vmem:[#allocation3 + $0x1e0] sm:$0xff] %vm679_vm3, %v624_v50 }
  0xcf   : > { %997 = vrot.lane.b32.xlu0 %v9168_v4, %s8760_s29 }
  0xd0   : > { %v622_v49 = vpop.permute.xlu1 %621 }
  0xd1   : > { %699 = vst.msk [vmem:[#allocation3 + $0x1c8] sm:$0xff] %vm679_vm3, %v622_v49  ;;  %v628_v35 = vpop.permute.xlu0 %627 }
  0xd2   : > { %995 = vrot.lane.b32.xlu1 %v9166_v3, %s8760_s29  ;;  %702 = vst.msk [vmem:[#allocation3 + $0x210] sm:$0xff] %vm679_vm3, %v628_v35 }
  0xd3   : > { %1001 = vrot.lane.b32.xlu0 %v9180_v6, %s8760_s29 }
  0xd4   : > { %v626_v2 = vpop.permute.xlu1 %625 }
  0xd5   : > { %701 = vst.msk [vmem:[#allocation3 + $0x1f8] sm:$0xff] %vm679_vm3, %v626_v2  ;;  %v632_v47 = vpop.permute.xlu0 %631  ;;  %v13256_v2 = vld [vmem:[#allocation9_spill] sm:$0xff] }
  0xd6   : > { %999 = vrot.lane.b32.xlu1 %v9178_v5, %s8760_s29  ;;  %704 = vst.msk [vmem:[#allocation3 + $0x240] sm:$0xff] %vm679_vm3, %v632_v47  ;;  %v13257_v47 = vld [vmem:[#allocation10_spill] sm:$0xff] }
  0xd7   : > { %1005 = vrot.lane.b32.xlu0 %v9190_v8, %s8760_s29 }
  0xd8   : > { %v630_v4 = vpop.permute.xlu1 %629 }
  0xd9   : > { %703 = vst.msk [vmem:[#allocation3 + $0x228] sm:$0xff] %vm679_vm3, %v630_v4  ;;  %v636_v3 = vpop.permute.xlu0 %635 }
  0xda   : > { %1003 = vrot.lane.b32.xlu1 %v9182_v7, %s8760_s29  ;;  %706 = vst.msk [vmem:[#allocation3 + $0x270] sm:$0xff] %vm679_vm3, %v636_v3  ;;  %v13258_v3 = vld [vmem:[#allocation11_spill] sm:$0xff] }
  0xdb   : > { %1009 = vrot.lane.b32.xlu0 %v9194_v10, %s8760_s29 }
  0xdc   : > { %v634_v6 = vpop.permute.xlu1 %633 }
  0xdd   : > { %705 = vst.msk [vmem:[#allocation3 + $0x258] sm:$0xff] %vm679_vm3, %v634_v6  ;;  %v640_v5 = vpop.permute.xlu0 %639 }
  0xde   : > { %1007 = vrot.lane.b32.xlu1 %v9192_v9, %s8760_s29  ;;  %708 = vst.msk [vmem:[#allocation3 + $0x2a0] sm:$0xff] %vm679_vm3, %v640_v5  ;;  %v1129_v5 = vld [vmem:[#allocation2 + $0x189] sm:$0xff] }
  0xdf   : > { %1013 = vrot.lane.b32.xlu0 %v9212_v13, %s8760_s29 }
  0xe0   : > { %v638_v8 = vpop.permute.xlu1 %637 }
  0xe1   : > { %707 = vst.msk [vmem:[#allocation3 + $0x288] sm:$0xff] %vm679_vm3, %v638_v8  ;;  %v644_v7 = vpop.permute.xlu0 %643 }
  0xe2   : > { %1011 = vrot.lane.b32.xlu1 %v9204_v11, %s8760_s29  ;;  %710 = vst.msk [vmem:[#allocation3 + $0x2d0] sm:$0xff] %vm679_vm3, %v644_v7  ;;  %v13259_v7 = vld [vmem:[#allocation12_spill] sm:$0xff] }
  0xe3   : > { %1017 = vrot.lane.b32.xlu0 %v9228_v17, %s8760_s29 }
  0xe4   : > { %v642_v10 = vpop.permute.xlu1 %641 }
  0xe5   : > { %709 = vst.msk [vmem:[#allocation3 + $0x2b8] sm:$0xff] %vm679_vm3, %v642_v10  ;;  %v777_v9 = vpop.permute.xlu0 %776 }
  0xe6   : > { %1015 = vrot.lane.b32.xlu1 %v9214_v14, %s8760_s29  ;;  %873 = vst.msk [vmem:[#allocation3] sm:$0xff] %vm872_vm4, %v777_v9  ;;  %v935_v14 = vld [vmem:[#allocation2 + $0x180] sm:$0xff] }
  0xe7   : > { %1021 = vrot.lane.b32.xlu0 %v9244_v21, %s8760_s29 }
  0xe8   : > { %v646_v13 = vpop.permute.xlu1 %645 }
  0xe9   : > { %711 = vst.msk [vmem:[#allocation3 + $0x2e8] sm:$0xff] %vm679_vm3, %v646_v13  ;;  %v781_v11 = vpop.permute.xlu0 %780  ;;  %v13260_v13 = vld [vmem:[#allocation13_spill] sm:$0xff] }
  0xea   : > { %1019 = vrot.lane.b32.xlu1 %v9230_v18, %s8760_s29  ;;  %875 = vst.msk [vmem:[#allocation3 + $0x30] sm:$0xff] %vm872_vm4, %v781_v11  ;;  %v13261_v11 = vld [vmem:[#allocation14_spill] sm:$0xff] }
  0xeb   : > { %1025 = vrot.lane.b32.xlu0 %v9260_v25, %s8760_s29 }
  0xec   : > { %v779_v17 = vpop.permute.xlu1 %778 }
  0xed   : > { %874 = vst.msk [vmem:[#allocation3 + $0x18] sm:$0xff] %vm872_vm4, %v779_v17  ;;  %v785_v1 = vpop.permute.xlu0 %784 }
  0xee   : > { %1023 = vrot.lane.b32.xlu1 %v9246_v22, %s8760_s29  ;;  %877 = vst.msk [vmem:[#allocation3 + $0x60] sm:$0xff] %vm872_vm4, %v785_v1  ;;  %v13262_v1 = vld [vmem:[#allocation15_spill] sm:$0xff] }
  0xef   : > { %1029 = vrot.lane.b32.xlu0 %v935_v14, %s8760_s29 }
  0xf0   : > { %v783_v21 = vpop.permute.xlu1 %782 }
  0xf1   : > { %876 = vst.msk [vmem:[#allocation3 + $0x48] sm:$0xff] %vm872_vm4, %v783_v21  ;;  %v789_v18 = vpop.permute.xlu0 %788  ;;  %v13263_v21 = vld [vmem:[#allocation16_spill] sm:$0xff] }
  0xf2   : > { %1027 = vrot.lane.b32.xlu1 %v9262_v29, %s8760_s29  ;;  %879 = vst.msk [vmem:[#allocation3 + $0x90] sm:$0xff] %vm872_vm4, %v789_v18 }
  0xf3   : > { %1162 = vrot.lane.b32.xlu0 %v9033_v26, %s8761_s30 }
  0xf4   : > { %v787_v25 = vpop.permute.xlu1 %786 }
  0xf5   : > { %878 = vst.msk [vmem:[#allocation3 + $0x78] sm:$0xff] %vm872_vm4, %v787_v25  ;;  %v793_v22 = vpop.permute.xlu0 %792  ;;  %v13264_v25 = vld [vmem:[#allocation17_spill] sm:$0xff] }
  0xf6   : > { %1031 = vrot.lane.b32.xlu1 %v936_v36, %s8760_s29  ;;  %881 = vst.msk [vmem:[#allocation3 + $0xc0] sm:$0xff] %vm872_vm4, %v793_v22  ;;  %v13265_v22 = vld [vmem:[#allocation18_spill] sm:$0xff]  ;;  %s13071_s29 = sshll.u32 %s325_s27, 4 }
  0xf7   : > { %1166 = vrot.lane.b32.xlu0 %v9035_v27, %s8761_s30 }
  0xf8   : > { %v791_v50 = vpop.permute.xlu1 %790 }
  0xf9   : > { %880 = vst.msk [vmem:[#allocation3 + $0xa8] sm:$0xff] %vm872_vm4, %v791_v50  ;;  %v797_v29 = vpop.permute.xlu0 %796 }
  0xfa   : > { %1164 = vrot.lane.b32.xlu1 %v9042_v28, %s8761_s30  ;;  %883 = vst.msk [vmem:[#allocation3 + $0xf0] sm:$0xff] %vm872_vm4, %v797_v29 }
  0xfb   : > { %1170 = vrot.lane.b32.xlu0 %v9050_v31, %s8761_s30 }
  0xfc   : > { %v795_v26 = vpop.permute.xlu1 %794 }
  0xfd   : > { %882 = vst.msk [vmem:[#allocation3 + $0xd8] sm:$0xff] %vm872_vm4, %v795_v26  ;;  %v801_v49 = vpop.permute.xlu0 %800  ;;  %v13266_v26 = vld [vmem:[#allocation19_spill] sm:$0xff] }
  0xfe   : > { %1168 = vrot.lane.b32.xlu1 %v9054_v32, %s8761_s30  ;;  %885 = vst.msk [vmem:[#allocation3 + $0x120] sm:$0xff] %vm872_vm4, %v801_v49  ;;  %v13267_v49 = vld [vmem:[#allocation20_spill] sm:$0xff] }
  0xff   : > { %1174 = vrot.lane.b32.xlu0 %v9058_v33, %s8761_s30 }
 0x100   : > { %v799_v27 = vpop.permute.xlu1 %798 }
 0x101   : > { %884 = vst.msk [vmem:[#allocation3 + $0x108] sm:$0xff] %vm872_vm4, %v799_v27  ;;  %v805_v28 = vpop.permute.xlu0 %804 }
 0x102   : > { %1172 = vrot.lane.b32.xlu1 %v9071_v40, %s8761_s30  ;;  %887 = vst.msk [vmem:[#allocation3 + $0x150] sm:$0xff] %vm872_vm4, %v805_v28 }
 0x103   : > { %1178 = vrot.lane.b32.xlu0 %v9078_v41, %s8761_s30 }
 0x104   : > { %v803_v31 = vpop.permute.xlu1 %802 }
 0x105   : > { %886 = vst.msk [vmem:[#allocation3 + $0x138] sm:$0xff] %vm872_vm4, %v803_v31  ;;  %v809_v32 = vpop.permute.xlu0 %808  ;;  %v13268_v31 = vld [vmem:[#allocation21_spill] sm:$0xff] }
 0x106   : > { %1176 = vrot.lane.b32.xlu1 %v9082_v42, %s8761_s30  ;;  %889 = vst.msk [vmem:[#allocation3 + $0x180] sm:$0xff] %vm872_vm4, %v809_v32  ;;  %v13269_v32 = vld [vmem:[#allocation22_spill] sm:$0xff] }
 0x107   : > { %1182 = vrot.lane.b32.xlu0 %v9086_v43, %s8761_s30 }
 0x108   : > { %v807_v33 = vpop.permute.xlu1 %806 }
 0x109   : > { %888 = vst.msk [vmem:[#allocation3 + $0x168] sm:$0xff] %vm872_vm4, %v807_v33  ;;  %v813_v40 = vpop.permute.xlu0 %812 }
 0x10a   : > { %1180 = vrot.lane.b32.xlu1 %v9090_v44, %s8761_s30  ;;  %891 = vst.msk [vmem:[#allocation3 + $0x1b0] sm:$0xff] %vm872_vm4, %v813_v40 }
 0x10b   : > { %1186 = vrot.lane.b32.xlu0 %v9094_v45, %s8761_s30 }
 0x10c   : > { %v811_v41 = vpop.permute.xlu1 %810 }
 0x10d   : > { %890 = vst.msk [vmem:[#allocation3 + $0x198] sm:$0xff] %vm872_vm4, %v811_v41  ;;  %v817_v42 = vpop.permute.xlu0 %816  ;;  %v13270_v41 = vld [vmem:[#allocation23_spill] sm:$0xff] }
 0x10e   : > { %1184 = vrot.lane.b32.xlu1 %v9100_v48, %s8761_s30  ;;  %893 = vst.msk [vmem:[#allocation3 + $0x1e0] sm:$0xff] %vm872_vm4, %v817_v42  ;;  %v13271_v42 = vld [vmem:[#allocation24_spill] sm:$0xff] }
 0x10f   : > { %1190 = vrot.lane.b32.xlu0 %v9110_v51, %s8761_s30 }
 0x110   : > { %v815_v43 = vpop.permute.xlu1 %814 }
 0x111   : > { %892 = vst.msk [vmem:[#allocation3 + $0x1c8] sm:$0xff] %vm872_vm4, %v815_v43  ;;  %v821_v44 = vpop.permute.xlu0 %820 }
 0x112   : > { %1188 = vrot.lane.b32.xlu1 %v9120_v54, %s8761_s30  ;;  %895 = vst.msk [vmem:[#allocation3 + $0x210] sm:$0xff] %vm872_vm4, %v821_v44 }
 0x113   : > { %1194 = vrot.lane.b32.xlu0 %v9130_v57, %s8761_s30 }
 0x114   : > { %v819_v45 = vpop.permute.xlu1 %818 }
 0x115   : > { %894 = vst.msk [vmem:[#allocation3 + $0x1f8] sm:$0xff] %vm872_vm4, %v819_v45  ;;  %v825_v48 = vpop.permute.xlu0 %824  ;;  %v13272_v45 = vld [vmem:[#allocation25_spill] sm:$0xff] }
 0x116   : > { %1192 = vrot.lane.b32.xlu1 %v9156_v0, %s8761_s30  ;;  %897 = vst.msk [vmem:[#allocation3 + $0x240] sm:$0xff] %vm872_vm4, %v825_v48  ;;  %v13273_v48 = vld [vmem:[#allocation26_spill] sm:$0xff] }
 0x117   : > { %1198 = vrot.lane.b32.xlu0 %v9206_v12, %s8761_s30 }
 0x118   : > { %v823_v51 = vpop.permute.xlu1 %822 }
 0x119   : > { %896 = vst.msk [vmem:[#allocation3 + $0x228] sm:$0xff] %vm872_vm4, %v823_v51  ;;  %v829_v54 = vpop.permute.xlu0 %828 }
 0x11a   : > { %1196 = vrot.lane.b32.xlu1 %v9216_v15, %s8761_s30  ;;  %899 = vst.msk [vmem:[#allocation3 + $0x270] sm:$0xff] %vm872_vm4, %v829_v54 }
 0x11b   : > { %1202 = vrot.lane.b32.xlu0 %v9224_v16, %s8761_s30 }
 0x11c   : > { %v827_v57 = vpop.permute.xlu1 %826 }
 0x11d   : > { %898 = vst.msk [vmem:[#allocation3 + $0x258] sm:$0xff] %vm872_vm4, %v827_v57  ;;  %v833_v0 = vpop.permute.xlu0 %832  ;;  %v13274_v57 = vld [vmem:[#allocation27_spill] sm:$0xff] }
 0x11e   : > { %1200 = vrot.lane.b32.xlu1 %v9232_v19, %s8761_s30  ;;  %901 = vst.msk [vmem:[#allocation3 + $0x2a0] sm:$0xff] %vm872_vm4, %v833_v0  ;;  %v13275_v0 = vld [vmem:[#allocation28_spill] sm:$0xff] }
 0x11f   : > { %1206 = vrot.lane.b32.xlu0 %v9240_v20, %s8761_s30 }
 0x120   : > { %v831_v12 = vpop.permute.xlu1 %830 }
 0x121   : > { %900 = vst.msk [vmem:[#allocation3 + $0x288] sm:$0xff] %vm872_vm4, %v831_v12  ;;  %v837_v15 = vpop.permute.xlu0 %836 }
 0x122   : > { %1204 = vrot.lane.b32.xlu1 %v9248_v23, %s8761_s30  ;;  %903 = vst.msk [vmem:[#allocation3 + $0x2d0] sm:$0xff] %vm872_vm4, %v837_v15  ;;  %v13255_v23 = vld [vmem:[#allocation8_spill] sm:$0xff] }
 0x123   : > { %1210 = vrot.lane.b32.xlu0 %v9256_v24, %s8761_s30 }
 0x124   : > { %v835_v16 = vpop.permute.xlu1 %834 }
 0x125   : > { %902 = vst.msk [vmem:[#allocation3 + $0x2b8] sm:$0xff] %vm872_vm4, %v835_v16  ;;  %v970_v19 = vpop.permute.xlu0 %969  ;;  %v13276_v16 = vld [vmem:[#allocation29_spill] sm:$0xff] }
 0x126   : > { %1208 = vrot.lane.b32.xlu1 %v9264_v30, %s8761_s30  ;;  %1066 = vst.msk [vmem:[#allocation3] sm:$0xff] %vm1065_vm5, %v970_v19  ;;  %v1128_v30 = vld [vmem:[#allocation2 + $0x181] sm:$0xff] }
 0x127   : > { %1214 = vrot.lane.b32.xlu0 %v9272_v34, %s8761_s30  ;;  %v13277_v19 = vld [vmem:[#allocation30_spill] sm:$0xff] }
 0x128   : > { %v839_v20 = vpop.permute.xlu1 %838 }
 0x129   : > { %904 = vst.msk [vmem:[#allocation3 + $0x2e8] sm:$0xff] %vm872_vm4, %v839_v20  ;;  %v974_v35 = vpop.permute.xlu0 %973 }
 0x12a   : > { %1212 = vrot.lane.b32.xlu1 %v13255_v23, %s8761_s30  ;;  %1068 = vst.msk [vmem:[#allocation3 + $0x30] sm:$0xff] %vm1065_vm5, %v974_v35  ;;  %v13278_v35 = vld [vmem:[#allocation31_spill] sm:$0xff] }
 0x12b   : > { %1218 = vrot.lane.b32.xlu0 %v13256_v2, %s8761_s30 }
 0x12c   : > { %v972_v24 = vpop.permute.xlu1 %971 }
 0x12d   : > { %1067 = vst.msk [vmem:[#allocation3 + $0x18] sm:$0xff] %vm1065_vm5, %v972_v24  ;;  %v978_v4 = vpop.permute.xlu0 %977  ;;  %v13279_v24 = vld [vmem:[#allocation32_spill] sm:$0xff] }
 0x12e   : > { %1216 = vrot.lane.b32.xlu1 %v13257_v47, %s8761_s30  ;;  %1070 = vst.msk [vmem:[#allocation3 + $0x60] sm:$0xff] %vm1065_vm5, %v978_v4  ;;  %v13280_v47 = vld [vmem:[#allocation33_spill] sm:$0xff]  ;;  %v13281_v4 = vld [vmem:[#allocation34_spill] sm:$0xff] }
 0x12f   : > { %1222 = vrot.lane.b32.xlu0 %v1128_v30, %s8761_s30 }
 0x130   : > { %v976_v34 = vpop.permute.xlu1 %975 }
 0x131   : > { %1069 = vst.msk [vmem:[#allocation3 + $0x48] sm:$0xff] %vm1065_vm5, %v976_v34  ;;  %v982_v6 = vpop.permute.xlu0 %981 }
 0x132   : > { %1220 = vrot.lane.b32.xlu1 %v13258_v3, %s8761_s30  ;;  %1072 = vst.msk [vmem:[#allocation3 + $0x90] sm:$0xff] %vm1065_vm5, %v982_v6  ;;  %v13282_v6 = vld [vmem:[#allocation35_spill] sm:$0xff] }
 0x133   : > { %1355 = vrot.lane.b32.xlu0 %v13259_v7, %s8762_s10 }
 0x134   : > { %v980_v8 = vpop.permute.xlu1 %979 }
 0x135   : > { %1071 = vst.msk [vmem:[#allocation3 + $0x78] sm:$0xff] %vm1065_vm5, %v980_v8  ;;  %v986_v10 = vpop.permute.xlu0 %985 }
 0x136   : > { %1224 = vrot.lane.b32.xlu1 %v1129_v5, %s8761_s30  ;;  %1074 = vst.msk [vmem:[#allocation3 + $0xc0] sm:$0xff] %vm1065_vm5, %v986_v10  ;;  %v13283_v5 = vld [vmem:[#allocation36_spill] sm:$0xff]  ;;  %v13284_v10 = vld [vmem:[#allocation37_spill] sm:$0xff]  ;;  %s8331_s30 = sshll.u32 %s8845_s8, 8 }
 0x137   : > { %1359 = vrot.lane.b32.xlu0 %v13260_v13, %s8762_s10 }
 0x138   : > { %v984_v9 = vpop.permute.xlu1 %983 }
 0x139   : > { %1073 = vst.msk [vmem:[#allocation3 + $0xa8] sm:$0xff] %vm1065_vm5, %v984_v9  ;;  %v990_v17 = vpop.permute.xlu0 %989 }
 0x13a   : > { %1357 = vrot.lane.b32.xlu1 %v13261_v11, %s8762_s10  ;;  %1076 = vst.msk [vmem:[#allocation3 + $0xf0] sm:$0xff] %vm1065_vm5, %v990_v17  ;;  %v9699_v11 = vld [vmem:[#allocation2 + $0x182] sm:$0xff] }
 0x13b   : > { %1363 = vrot.lane.b32.xlu0 %v13262_v1, %s8762_s10  ;;  %v9712_v1 = vld [vmem:[#allocation2 + $0x18a] sm:$0xff] }
 0x13c   : > { %v988_v14 = vpop.permute.xlu1 %987 }
 0x13d   : > { %1075 = vst.msk [vmem:[#allocation3 + $0xd8] sm:$0xff] %vm1065_vm5, %v988_v14  ;;  %v994_v18 = vpop.permute.xlu0 %993  ;;  %v2100_v14 = vld [vmem:[%s13177_s1 + $0x20] sm:$0xf] }
 0x13e   : > { %1361 = vrot.lane.b32.xlu1 %v13263_v21, %s8762_s10  ;;  %1078 = vst.msk [vmem:[#allocation3 + $0x120] sm:$0xff] %vm1065_vm5, %v994_v18  ;;  %8441 = vmatprep.subr.msk.mxu0 %vm2205_vm7, %v2100_v14  ;;  %v1678_v21 = vld [vmem:[#allocation2 + $0x31] sm:$0xff] }
 0x13f   : > { %1367 = vrot.lane.b32.xlu0 %v13264_v25, %s8762_s10  ;;  %8442 = vmatpush3.msk.msra.mxu0 %vm2205_vm7, %v2100_v14  ;;  %v2097_v25 = vld [vmem:[%s13177_s1 + $0x8] sm:$0xff] }
 0x140   : > { %v992_v36 = vpop.permute.xlu1 %991 }
 0x141   : > { %1077 = vst.msk [vmem:[#allocation3 + $0x108] sm:$0xff] %vm1065_vm5, %v992_v36  ;;  %v998_v50 = vpop.permute.xlu0 %997  ;;  %v2098_v36 = vld [vmem:[%s13177_s1 + $0x10] sm:$0xff] }
 0x142   : > { %1365 = vrot.lane.b32.xlu1 %v13265_v22, %s8762_s10  ;;  %1080 = vst.msk [vmem:[#allocation3 + $0x150] sm:$0xff] %vm1065_vm5, %v998_v50  ;;  %v1871_v22 = vld [vmem:[#allocation2 + $0x32] sm:$0xff] }
 0x143   : > { %1371 = vrot.lane.b32.xlu0 %v13266_v26, %s8762_s10  ;;  %v1679_v26 = vld [vmem:[#allocation2 + $0x39] sm:$0xff] }
 0x144   : > { %v996_v29 = vpop.permute.xlu1 %995 }
 0x145   : > { %1079 = vst.msk [vmem:[#allocation3 + $0x138] sm:$0xff] %vm1065_vm5, %v996_v29  ;;  %v1002_v27 = vpop.permute.xlu0 %1001  ;;  %v2096_v29 = vld [vmem:[%s13177_s1] sm:$0xff] }
 0x146   : > { %1369 = vrot.lane.b32.xlu1 %v13267_v49, %s8762_s10  ;;  %1082 = vst.msk [vmem:[#allocation3 + $0x180] sm:$0xff] %vm1065_vm5, %v1002_v27  ;;  %v1872_v27 = vld [vmem:[#allocation2 + $0x3a] sm:$0xff] }
 0x147   : > { %1375 = vrot.lane.b32.xlu0 %v13268_v31, %s8762_s10  ;;  %v1680_v31 = vld [vmem:[#allocation2 + $0x49] sm:$0xff] }
 0x148   : > { %v1000_v28 = vpop.permute.xlu1 %999 }
 0x149   : > { %1081 = vst.msk [vmem:[#allocation3 + $0x168] sm:$0xff] %vm1065_vm5, %v1000_v28  ;;  %v1006_v33 = vpop.permute.xlu0 %1005 }
 0x14a   : > { %1373 = vrot.lane.b32.xlu1 %v13269_v32, %s8762_s10  ;;  %1084 = vst.msk [vmem:[#allocation3 + $0x1b0] sm:$0xff] %vm1065_vm5, %v1006_v33 }
 0x14b   : > { %1379 = vrot.lane.b32.xlu0 %v13270_v41, %s8762_s10 }
 0x14c   : > { %v1004_v40 = vpop.permute.xlu1 %1003 }
 0x14d   : > { %1083 = vst.msk [vmem:[#allocation3 + $0x198] sm:$0xff] %vm1065_vm5, %v1004_v40  ;;  %v1010_v43 = vpop.permute.xlu0 %1009  ;;  %v1873_v40 = vld [vmem:[#allocation2 + $0x4a] sm:$0xff] }
 0x14e   : > { %1377 = vrot.lane.b32.xlu1 %v13271_v42, %s8762_s10  ;;  %1086 = vst.msk [vmem:[#allocation3 + $0x1e0] sm:$0xff] %vm1065_vm5, %v1010_v43  ;;  %v1681_v42 = vld [vmem:[#allocation2 + $0x51] sm:$0xff] }
 0x14f   : > { %1383 = vrot.lane.b32.xlu0 %v13272_v45, %s8762_s10 }
 0x150   : > { %v1008_v44 = vpop.permute.xlu1 %1007 }
 0x151   : > { %1085 = vst.msk [vmem:[#allocation3 + $0x1c8] sm:$0xff] %vm1065_vm5, %v1008_v44  ;;  %v1014_v51 = vpop.permute.xlu0 %1013  ;;  %v1874_v44 = vld [vmem:[#allocation2 + $0x52] sm:$0xff] }
 0x152   : > { %1381 = vrot.lane.b32.xlu1 %v13273_v48, %s8762_s10  ;;  %1088 = vst.msk [vmem:[#allocation3 + $0x210] sm:$0xff] %vm1065_vm5, %v1014_v51 }
 0x153   : > { %1387 = vrot.lane.b32.xlu0 %v13274_v57, %s8762_s10 }
 0x154   : > { %v1012_v54 = vpop.permute.xlu1 %1011 }
 0x155   : > { %1087 = vst.msk [vmem:[#allocation3 + $0x1f8] sm:$0xff] %vm1065_vm5, %v1012_v54  ;;  %v1018_v12 = vpop.permute.xlu0 %1017  ;;  %v1875_v54 = vld [vmem:[#allocation2 + $0x62] sm:$0xff] }
 0x156   : > { %1385 = vrot.lane.b32.xlu1 %v13275_v0, %s8762_s10  ;;  %1090 = vst.msk [vmem:[#allocation3 + $0x240] sm:$0xff] %vm1065_vm5, %v1018_v12  ;;  %v1683_v0 = vld [vmem:[#allocation2 + $0x69] sm:$0xff] }
 0x157   : > { %1391 = vrot.lane.b32.xlu0 %v13276_v16, %s8762_s10 }
 0x158   : > { %v1016_v15 = vpop.permute.xlu1 %1015 }
 0x159   : > { %1089 = vst.msk [vmem:[#allocation3 + $0x228] sm:$0xff] %vm1065_vm5, %v1016_v15  ;;  %v1022_v20 = vpop.permute.xlu0 %1021  ;;  %v1876_v15 = vld [vmem:[#allocation2 + $0x6a] sm:$0xff] }
 0x15a   : > { %1389 = vrot.lane.b32.xlu1 %v13277_v19, %s8762_s10  ;;  %1092 = vst.msk [vmem:[#allocation3 + $0x270] sm:$0xff] %vm1065_vm5, %v1022_v20 }
 0x15b   : > { %1395 = vrot.lane.b32.xlu0 %v13278_v35, %s8762_s10 }
 0x15c   : > { %v1020_v23 = vpop.permute.xlu1 %1019 }
 0x15d   : > { %1091 = vst.msk [vmem:[#allocation3 + $0x258] sm:$0xff] %vm1065_vm5, %v1020_v23  ;;  %v1026_v2 = vpop.permute.xlu0 %1025  ;;  %v1877_v23 = vld [vmem:[#allocation2 + $0x7a] sm:$0xff] }
 0x15e   : > { %1393 = vrot.lane.b32.xlu1 %v13279_v24, %s8762_s10  ;;  %1094 = vst.msk [vmem:[#allocation3 + $0x2a0] sm:$0xff] %vm1065_vm5, %v1026_v2  ;;  %v1685_v24 = vld [vmem:[#allocation2 + $0x81] sm:$0xff] }
 0x15f   : > { %1399 = vrot.lane.b32.xlu0 %v13280_v47, %s8762_s10 }
 0x160   : > { %v1024_v30 = vpop.permute.xlu1 %1023 }
 0x161   : > { %1093 = vst.msk [vmem:[#allocation3 + $0x288] sm:$0xff] %vm1065_vm5, %v1024_v30  ;;  %v1030_v34 = vpop.permute.xlu0 %1029  ;;  %v1878_v30 = vld [vmem:[#allocation2 + $0x82] sm:$0xff] }
 0x162   : > { %1397 = vrot.lane.b32.xlu1 %v13281_v4, %s8762_s10  ;;  %1096 = vst.msk [vmem:[#allocation3 + $0x2d0] sm:$0xff] %vm1065_vm5, %v1030_v34 }
 0x163   : > { %1403 = vrot.lane.b32.xlu0 %v13282_v6, %s8762_s10 }
 0x164   : > { %v1028_v3 = vpop.permute.xlu1 %1027 }
 0x165   : > { %1095 = vst.msk [vmem:[#allocation3 + $0x2b8] sm:$0xff] %vm1065_vm5, %v1028_v3  ;;  %v1163_v8 = vpop.permute.xlu0 %1162  ;;  %v1879_v3 = vld [vmem:[#allocation2 + $0x92] sm:$0xff] }
 0x166   : > { %1401 = vrot.lane.b32.xlu1 %v13283_v5, %s8762_s10  ;;  %1259 = vst.msk [vmem:[#allocation3] sm:$0xff] %vm1258_vm6, %v1163_v8  ;;  %v1495_v8 = vld [vmem:[#allocation2 + $0xa8] sm:$0xff] }
 0x167   : > { %1407 = vrot.lane.b32.xlu0 %v9399_v37, %s8762_s10 }
 0x168   : > { %v1032_v7 = vpop.permute.xlu1 %1031 }
 0x169   : > { %1097 = vst.msk [vmem:[#allocation3 + $0x2e8] sm:$0xff] %vm1065_vm5, %v1032_v7  ;;  %v1167_v9 = vpop.permute.xlu0 %1166 }
 0x16a   : > { %1405 = vrot.lane.b32.xlu1 %v13284_v10, %s8762_s10  ;;  %1261 = vst.msk [vmem:[#allocation3 + $0x30] sm:$0xff] %vm1258_vm6, %v1167_v9  ;;  %v1880_v10 = vld [vmem:[#allocation2 + $0x9a] sm:$0xff] }
 0x16b   : > { %1411 = vrot.lane.b32.xlu0 %v9409_v38, %s8762_s10 }
 0x16c   : > { %v1165_v13 = vpop.permute.xlu1 %1164 }
 0x16d   : > { %1260 = vst.msk [vmem:[#allocation3 + $0x18] sm:$0xff] %vm1258_vm6, %v1165_v13  ;;  %v1171_v37 = vpop.permute.xlu0 %1170 }
 0x16e   : > { %1409 = vrot.lane.b32.xlu1 %v9413_v46, %s8762_s10  ;;  %1263 = vst.msk [vmem:[#allocation3 + $0x60] sm:$0xff] %vm1258_vm6, %v1171_v37  ;;  %v1496_v37 = vld [vmem:[#allocation2 + $0xb0] sm:$0xff] }
 0x16f   : > { %1415 = vrot.lane.b32.xlu0 %v9699_v11, %s8762_s10 }
 0x170   : > { %v1169_v17 = vpop.permute.xlu1 %1168 }
 0x171   : > { %1262 = vst.msk [vmem:[#allocation3 + $0x48] sm:$0xff] %vm1258_vm6, %v1169_v17  ;;  %v1175_v38 = vpop.permute.xlu0 %1174 }
 0x172   : > { %1413 = vrot.lane.b32.xlu1 %v9421_v39, %s8762_s10  ;;  %1265 = vst.msk [vmem:[#allocation3 + $0x90] sm:$0xff] %vm1258_vm6, %v1175_v38  ;;  %v2099_v39 = vld [vmem:[%s13177_s1 + $0x18] sm:$0xff]  ;;  %v1881_v38 = vld [vmem:[#allocation2 + $0xaa] sm:$0xff] }
 0x173   : > { %1549 = vrot.lane.b32.xlu0 %v9114_v52, %s8763_s18  ;;  %8443 = vmatprep.subr.mxu0 %v2099_v39 }
 0x174   : > { %v1173_v46 = vpop.permute.xlu1 %1172  ;;  %8444 = vmatpush3.msra.mxu0 %v2099_v39 }
 0x175   : > { %1264 = vst.msk [vmem:[#allocation3 + $0x78] sm:$0xff] %vm1258_vm6, %v1173_v46  ;;  %v1179_v18 = vpop.permute.xlu0 %1178  ;;  %8445 = vmatprep.subr.mxu0 %v2098_v36  ;;  %v1689_v46 = vld [vmem:[#allocation2 + $0xb1] sm:$0xff] }
 0x176   : > { %1417 = vrot.lane.b32.xlu1 %v9712_v1, %s8762_s10  ;;  %1267 = vst.msk [vmem:[#allocation3 + $0xc0] sm:$0xff] %vm1258_vm6, %v1179_v18  ;;  %8446 = vmatpush3.msra.mxu0 %v2098_v36  ;;  %v1882_v36 = vld [vmem:[#allocation2 + $0xb2] sm:$0xff]  ;;  %s327_s10 = scalar_lea.vmem [#allocation5], %s13071_s29 }
 0x177   : > { %1742 = vrot.lane.b32.xlu0 %v1678_v21, %s8764_s26  ;;  %8447 = vmatprep.subr.mxu0 %v2097_v25  ;;  %v1497_v21 = vld [vmem:[#allocation2 + $0xc0] sm:$0xff]  ;;  %s8146_s17 = sshll.u32 %s327_s10, 4  ;;  %s13127_s17 = int_to_ptr.vmem [resolvable:$true] %s8146_s17 }
 0x178   : > { %v1177_v52 = vpop.permute.xlu1 %1176  ;;  %8448 = vmatpush3.msra.mxu0 %v2097_v25  ;;  %v1690_v25 = vld [vmem:[#allocation2 + $0xc1] sm:$0xff] }
 0x179   : > { %1266 = vst.msk [vmem:[#allocation3 + $0xa8] sm:$0xff] %vm1258_vm6, %v1177_v52  ;;  %v1183_v50 = vpop.permute.xlu0 %1182  ;;  %8449 = vmatprep.subr.mxu0 %v2096_v29 }
 0x17a   : > { %1551 = vrot.lane.b32.xlu1 %v9116_v53, %s8763_s18  ;;  %1269 = vst.msk [vmem:[#allocation3 + $0xf0] sm:$0xff] %vm1258_vm6, %v1183_v50  ;;  %8450 = vmatpush3.msra.mxu0 %v2096_v29  ;;  %v1498_v50 = vld [vmem:[#allocation2 + $0xc8] sm:$0xff] }
 0x17b   : > { %1935 = vrot.lane.b32.xlu0 %v1871_v22, %s8765_s15 }
 0x17c   : > { %v1181_v49 = vpop.permute.xlu1 %1180 }
 0x17d   : > { %1268 = vst.msk [vmem:[#allocation3 + $0xd8] sm:$0xff] %vm1258_vm6, %v1181_v49  ;;  %v1187_v53 = vpop.permute.xlu0 %1186 }
 0x17e   : > { %1744 = vrot.lane.b32.xlu1 %v1679_v26, %s8764_s26  ;;  %1271 = vst.msk [vmem:[#allocation3 + $0x120] sm:$0xff] %vm1258_vm6, %v1187_v53  ;;  %v1883_v26 = vld [vmem:[#allocation2 + $0xc2] sm:$0xff] }
 0x17f   : > { %1553 = vrot.lane.b32.xlu0 %v9126_v55, %s8763_s18  ;;  %v1691_v53 = vld [vmem:[#allocation2 + $0xc9] sm:$0xff] }
 0x180   : > { %v1185_v28 = vpop.permute.xlu1 %1184 }
 0x181   : > { %1270 = vst.msk [vmem:[#allocation3 + $0x108] sm:$0xff] %vm1258_vm6, %v1185_v28  ;;  %v1191_v32 = vpop.permute.xlu0 %1190  ;;  %v1499_v28 = vld [vmem:[#allocation2 + $0xd8] sm:$0xff] }
 0x182   : > { %1937 = vrot.lane.b32.xlu1 %v1872_v27, %s8765_s15  ;;  %1273 = vst.msk [vmem:[#allocation3 + $0x150] sm:$0xff] %vm1258_vm6, %v1191_v32  ;;  %v1884_v32 = vld [vmem:[#allocation2 + $0xca] sm:$0xff] }
 0x183   : > { %1746 = vrot.lane.b32.xlu0 %v1680_v31, %s8764_s26 }
 0x184   : > { %v1189_v33 = vpop.permute.xlu1 %1188 }
 0x185   : > { %1272 = vst.msk [vmem:[#allocation3 + $0x138] sm:$0xff] %vm1258_vm6, %v1189_v33  ;;  %v1195_v41 = vpop.permute.xlu0 %1194 }
 0x186   : > { %1555 = vrot.lane.b32.xlu1 %v9128_v56, %s8763_s18  ;;  %1275 = vst.msk [vmem:[#allocation3 + $0x180] sm:$0xff] %vm1258_vm6, %v1195_v41  ;;  %v1682_v56 = vld [vmem:[#allocation2 + $0x61] sm:$0xff] }
 0x187   : > { %1939 = vrot.lane.b32.xlu0 %v1873_v40, %s8765_s15  ;;  %v1692_v40 = vld [vmem:[#allocation2 + $0xd9] sm:$0xff] }
 0x188   : > { %v1193_v55 = vpop.permute.xlu1 %1192 }
 0x189   : > { %1274 = vst.msk [vmem:[#allocation3 + $0x168] sm:$0xff] %vm1258_vm6, %v1193_v55  ;;  %v1199_v43 = vpop.permute.xlu0 %1198 }
 0x18a   : > { %1748 = vrot.lane.b32.xlu1 %v1681_v42, %s8764_s26  ;;  %1277 = vst.msk [vmem:[#allocation3 + $0x1b0] sm:$0xff] %vm1258_vm6, %v1199_v43  ;;  %v1500_v42 = vld [vmem:[#allocation2 + $0xe0] sm:$0xff] }
 0x18b   : > { %1557 = vrot.lane.b32.xlu0 %v9136_v58, %s8763_s18  ;;  %v1885_v43 = vld [vmem:[#allocation2 + $0xda] sm:$0xff] }
 0x18c   : > { %v1197_v45 = vpop.permute.xlu1 %1196 }
 0x18d   : > { %1276 = vst.msk [vmem:[#allocation3 + $0x198] sm:$0xff] %vm1258_vm6, %v1197_v45  ;;  %v1203_v48 = vpop.permute.xlu0 %1202  ;;  %v1693_v45 = vld [vmem:[#allocation2 + $0xe1] sm:$0xff] }
 0x18e   : > { %1941 = vrot.lane.b32.xlu1 %v1874_v44, %s8765_s15  ;;  %1279 = vst.msk [vmem:[#allocation3 + $0x1e0] sm:$0xff] %vm1258_vm6, %v1203_v48  ;;  %v1501_v48 = vld [vmem:[#allocation2 + $0xf0] sm:$0xff] }
 0x18f   : > { %1750 = vrot.lane.b32.xlu0 %v1682_v56, %s8764_s26 }
 0x190   : > { %v1201_v51 = vpop.permute.xlu1 %1200 }
 0x191   : > { %1278 = vst.msk [vmem:[#allocation3 + $0x1c8] sm:$0xff] %vm1258_vm6, %v1201_v51  ;;  %v1207_v57 = vpop.permute.xlu0 %1206 }
 0x192   : > { %1559 = vrot.lane.b32.xlu1 %v9138_v59, %s8763_s18  ;;  %1281 = vst.msk [vmem:[#allocation3 + $0x210] sm:$0xff] %vm1258_vm6, %v1207_v57  ;;  %v1684_v59 = vld [vmem:[#allocation2 + $0x79] sm:$0xff] }
 0x193   : > { %1943 = vrot.lane.b32.xlu0 %v1875_v54, %s8765_s15  ;;  %v1886_v54 = vld [vmem:[#allocation2 + $0xe2] sm:$0xff] }
 0x194   : > { %v1205_v58 = vpop.permute.xlu1 %1204 }
 0x195   : > { %1280 = vst.msk [vmem:[#allocation3 + $0x1f8] sm:$0xff] %vm1258_vm6, %v1205_v58  ;;  %v1211_v12 = vpop.permute.xlu0 %1210 }
 0x196   : > { %1752 = vrot.lane.b32.xlu1 %v1683_v0, %s8764_s26  ;;  %1283 = vst.msk [vmem:[#allocation3 + $0x240] sm:$0xff] %vm1258_vm6, %v1211_v12  ;;  %v1694_v0 = vld [vmem:[#allocation2 + $0xf1] sm:$0xff] }
 0x197   : > { %1561 = vrot.lane.b32.xlu0 %v9140_v60, %s8763_s18  ;;  %v1502_v12 = vld [vmem:[#allocation2 + $0xf8] sm:$0xff] }
 0x198   : > { %v1209_v16 = vpop.permute.xlu1 %1208 }
 0x199   : > { %1282 = vst.msk [vmem:[#allocation3 + $0x228] sm:$0xff] %vm1258_vm6, %v1209_v16  ;;  %v1215_v19 = vpop.permute.xlu0 %1214  ;;  %v1887_v16 = vld [vmem:[#allocation2 + $0xf2] sm:$0xff] }
 0x19a   : > { %1945 = vrot.lane.b32.xlu1 %v1876_v15, %s8765_s15  ;;  %1285 = vst.msk [vmem:[#allocation3 + $0x270] sm:$0xff] %vm1258_vm6, %v1215_v19  ;;  %v1695_v19 = vld [vmem:[#allocation2 + $0xf9] sm:$0xff] }
 0x19b   : > { %1754 = vrot.lane.b32.xlu0 %v1684_v59, %s8764_s26 }
 0x19c   : > { %v1213_v20 = vpop.permute.xlu1 %1212 }
 0x19d   : > { %1284 = vst.msk [vmem:[#allocation3 + $0x258] sm:$0xff] %vm1258_vm6, %v1213_v20  ;;  %v1219_v35 = vpop.permute.xlu0 %1218 }
 0x19e   : > { %1563 = vrot.lane.b32.xlu1 %v9150_v61, %s8763_s18  ;;  %1287 = vst.msk [vmem:[#allocation3 + $0x2a0] sm:$0xff] %vm1258_vm6, %v1219_v35  ;;  %v1686_v61 = vld [vmem:[#allocation2 + $0x91] sm:$0xff] }
 0x19f   : > { %1947 = vrot.lane.b32.xlu0 %v1877_v23, %s8765_s15  ;;  %v1503_v23 = vld [vmem:[#allocation2 + $0x108] sm:$0xff] }
 0x1a0   : > { %v1217_v60 = vpop.permute.xlu1 %1216 }
 0x1a1   : > { %1286 = vst.msk [vmem:[#allocation3 + $0x288] sm:$0xff] %vm1258_vm6, %v1217_v60  ;;  %v1223_v2 = vpop.permute.xlu0 %1222 }
 0x1a2   : > { %1756 = vrot.lane.b32.xlu1 %v1685_v24, %s8764_s26  ;;  %1289 = vst.msk [vmem:[#allocation3 + $0x2d0] sm:$0xff] %vm1258_vm6, %v1223_v2  ;;  %v1888_v24 = vld [vmem:[#allocation2 + $0xfa] sm:$0xff]  ;;  %v1696_v2 = vld [vmem:[#allocation2 + $0x109] sm:$0xff] }
 0x1a3   : > { %1565 = vrot.lane.b32.xlu0 %v9152_v62, %s8763_s18  ;;  %v1687_v62 = vld [vmem:[#allocation2 + $0x99] sm:$0xff] }
 0x1a4   : > { %v1221_v47 = vpop.permute.xlu1 %1220 }
 0x1a5   : > { %1288 = vst.msk [vmem:[#allocation3 + $0x2b8] sm:$0xff] %vm1258_vm6, %v1221_v47  ;;  %v1356_v4 = vpop.permute.xlu0 %1355  ;;  %v1504_v47 = vld [vmem:[#allocation2 + $0x110] sm:$0xff] }
 0x1a6   : > { %1949 = vrot.lane.b32.xlu1 %v1878_v30, %s8765_s15  ;;  %1452 = vst.msk [vmem:[#allocation3] sm:$0xff] %vm1451_vm8, %v1356_v4  ;;  %v1889_v4 = vld [vmem:[#allocation2 + $0x10a] sm:$0xff] }
 0x1a7   : > { %1758 = vrot.lane.b32.xlu0 %v1686_v61, %s8764_s26 }
 0x1a8   : > { %v1225_v34 = vpop.permute.xlu1 %1224 }
 0x1a9   : > { %1290 = vst.msk [vmem:[#allocation3 + $0x2e8] sm:$0xff] %vm1258_vm6, %v1225_v34  ;;  %v1360_v6 = vpop.permute.xlu0 %1359 }
 0x1aa   : > { %1567 = vrot.lane.b32.xlu1 %v9154_v63, %s8763_s18  ;;  %1454 = vst.msk [vmem:[#allocation3 + $0x30] sm:$0xff] %vm1451_vm8, %v1360_v6  ;;  %v1688_v63 = vld [vmem:[#allocation2 + $0xa9] sm:$0xff] }
 0x1ab   : > { %1951 = vrot.lane.b32.xlu0 %v1879_v3, %s8765_s15  ;;  %v1697_v3 = vld [vmem:[#allocation2 + $0x111] sm:$0xff] }
 0x1ac   : > { %v1358_v5 = vpop.permute.xlu1 %1357 }
 0x1ad   : > { %1453 = vst.msk [vmem:[#allocation3 + $0x18] sm:$0xff] %vm1451_vm8, %v1358_v5  ;;  %v1364_v7 = vpop.permute.xlu0 %1363 }
 0x1ae   : > { %1760 = vrot.lane.b32.xlu1 %v1687_v62, %s8764_s26  ;;  %1456 = vst.msk [vmem:[#allocation3 + $0x60] sm:$0xff] %vm1451_vm8, %v1364_v7  ;;  %v1505_v62 = vld [vmem:[#allocation2 + $0x120] sm:$0xff] }
 0x1af   : > { %1569 = vrot.lane.b32.xlu0 %v1495_v8, %s8763_s18  ;;  %v1890_v8 = vld [vmem:[#allocation2 + $0x112] sm:$0xff] }
 0x1b0   : > { %v1362_v9 = vpop.permute.xlu1 %1361 }
 0x1b1   : > { %1455 = vst.msk [vmem:[#allocation3 + $0x48] sm:$0xff] %vm1451_vm8, %v1362_v9  ;;  %v1368_v13 = vpop.permute.xlu0 %1367 }
 0x1b2   : > { %1953 = vrot.lane.b32.xlu1 %v1880_v10, %s8765_s15  ;;  %1458 = vst.msk [vmem:[#allocation3 + $0x90] sm:$0xff] %vm1451_vm8, %v1368_v13  ;;  %v1698_v10 = vld [vmem:[#allocation2 + $0x121] sm:$0xff] }
 0x1b3   : > { %1762 = vrot.lane.b32.xlu0 %v1688_v63, %s8764_s26  ;;  %v1506_v63 = vld [vmem:[#allocation2 + $0x128] sm:$0xff] }
 0x1b4   : > { %v1366_v17 = vpop.permute.xlu1 %1365 }
 0x1b5   : > { %1457 = vst.msk [vmem:[#allocation3 + $0x78] sm:$0xff] %vm1451_vm8, %v1366_v17  ;;  %v1372_v14 = vpop.permute.xlu0 %1371 }
 0x1b6   : > { %1571 = vrot.lane.b32.xlu1 %v1496_v37, %s8763_s18  ;;  %1460 = vst.msk [vmem:[#allocation3 + $0xc0] sm:$0xff] %vm1451_vm8, %v1372_v14  ;;  %v1891_v37 = vld [vmem:[#allocation2 + $0x122] sm:$0xff] }
 0x1b7   : > { %1955 = vrot.lane.b32.xlu0 %v1881_v38, %s8765_s15  ;;  %v1699_v38 = vld [vmem:[#allocation2 + $0x129] sm:$0xff] }
 0x1b8   : > { %v1370_v39 = vpop.permute.xlu1 %1369 }
 0x1b9   : > { %1459 = vst.msk [vmem:[#allocation3 + $0xa8] sm:$0xff] %vm1451_vm8, %v1370_v39  ;;  %v1376_v18 = vpop.permute.xlu0 %1375 }
 0x1ba   : > { %1764 = vrot.lane.b32.xlu1 %v1689_v46, %s8764_s26  ;;  %1462 = vst.msk [vmem:[#allocation3 + $0xf0] sm:$0xff] %vm1451_vm8, %v1376_v18  ;;  %v1507_v46 = vld [vmem:[#allocation2 + $0x138] sm:$0xff]  ;;  %v1892_v18 = vld [vmem:[#allocation2 + $0x12a] sm:$0xff] }
 0x1bb   : > { %1573 = vrot.lane.b32.xlu0 %v1497_v21, %s8763_s18 }
 0x1bc   : > { %v1374_v52 = vpop.permute.xlu1 %1373 }
 0x1bd   : > { %1461 = vst.msk [vmem:[#allocation3 + $0xd8] sm:$0xff] %vm1451_vm8, %v1374_v52  ;;  %v1380_v22 = vpop.permute.xlu0 %1379  ;;  %v1700_v52 = vld [vmem:[#allocation2 + $0x139] sm:$0xff] }
 0x1be   : > { %1957 = vrot.lane.b32.xlu1 %v1882_v36, %s8765_s15  ;;  %1464 = vst.msk [vmem:[#allocation3 + $0x120] sm:$0xff] %vm1451_vm8, %v1380_v22  ;;  %v1508_v22 = vld [vmem:[#allocation2 + $0x140] sm:$0xff] }
 0x1bf   : > { %1766 = vrot.lane.b32.xlu0 %v1690_v25, %s8764_s26 }
 0x1c0   : > { %v1378_v29 = vpop.permute.xlu1 %1377 }
 0x1c1   : > { %1463 = vst.msk [vmem:[#allocation3 + $0x108] sm:$0xff] %vm1451_vm8, %v1378_v29  ;;  %v1384_v49 = vpop.permute.xlu0 %1383 }
 0x1c2   : > { %1575 = vrot.lane.b32.xlu1 %v1498_v50, %s8763_s18  ;;  %1466 = vst.msk [vmem:[#allocation3 + $0x150] sm:$0xff] %vm1451_vm8, %v1384_v49 }
 0x1c3   : > { %1959 = vrot.lane.b32.xlu0 %v1883_v26, %s8765_s15  ;;  %v1893_v26 = vld [vmem:[#allocation2 + $0x13a] sm:$0xff] }
 0x1c4   : > { %v1382_v27 = vpop.permute.xlu1 %1381 }
 0x1c5   : > { %1465 = vst.msk [vmem:[#allocation3 + $0x138] sm:$0xff] %vm1451_vm8, %v1382_v27  ;;  %v1388_v31 = vpop.permute.xlu0 %1387 }
 0x1c6   : > { %1768 = vrot.lane.b32.xlu1 %v1691_v53, %s8764_s26  ;;  %1468 = vst.msk [vmem:[#allocation3 + $0x180] sm:$0xff] %vm1451_vm8, %v1388_v31  ;;  %v1701_v53 = vld [vmem:[#allocation2 + $0x141] sm:$0xff] }
 0x1c7   : > { %1577 = vrot.lane.b32.xlu0 %v1499_v28, %s8763_s18  ;;  %v1509_v28 = vld [vmem:[#allocation2 + $0x150] sm:$0xff] }
 0x1c8   : > { %v1386_v33 = vpop.permute.xlu1 %1385 }
 0x1c9   : > { %1467 = vst.msk [vmem:[#allocation3 + $0x168] sm:$0xff] %vm1451_vm8, %v1386_v33  ;;  %v1392_v41 = vpop.permute.xlu0 %1391  ;;  %v1894_v33 = vld [vmem:[#allocation2 + $0x142] sm:$0xff] }
 0x1ca   : > { %1961 = vrot.lane.b32.xlu1 %v1884_v32, %s8765_s15  ;;  %1470 = vst.msk [vmem:[#allocation3 + $0x1b0] sm:$0xff] %vm1451_vm8, %v1392_v41  ;;  %v1702_v41 = vld [vmem:[#allocation2 + $0x151] sm:$0xff] }
 0x1cb   : > { %1770 = vrot.lane.b32.xlu0 %v1692_v40, %s8764_s26 }
 0x1cc   : > { %v1390_v55 = vpop.permute.xlu1 %1389 }
 0x1cd   : > { %1469 = vst.msk [vmem:[#allocation3 + $0x198] sm:$0xff] %vm1451_vm8, %v1390_v55  ;;  %v1396_v44 = vpop.permute.xlu0 %1395  ;;  %v1510_v55 = vld [vmem:[#allocation2 + $0x158] sm:$0xff] }
 0x1ce   : > { %1579 = vrot.lane.b32.xlu1 %v1500_v42, %s8763_s18  ;;  %1472 = vst.msk [vmem:[#allocation3 + $0x1e0] sm:$0xff] %vm1451_vm8, %v1396_v44 }
 0x1cf   : > { %1963 = vrot.lane.b32.xlu0 %v1885_v43, %s8765_s15 }
 0x1d0   : > { %v1394_v56 = vpop.permute.xlu1 %1393 }
 0x1d1   : > { %1471 = vst.msk [vmem:[#allocation3 + $0x1c8] sm:$0xff] %vm1451_vm8, %v1394_v56  ;;  %v1400_v51 = vpop.permute.xlu0 %1399 }
 0x1d2   : > { %1772 = vrot.lane.b32.xlu1 %v1693_v45, %s8764_s26  ;;  %1474 = vst.msk [vmem:[#allocation3 + $0x210] sm:$0xff] %vm1451_vm8, %v1400_v51  ;;  %v1895_v45 = vld [vmem:[#allocation2 + $0x152] sm:$0xff] }
 0x1d3   : > { %1581 = vrot.lane.b32.xlu0 %v1501_v48, %s8763_s18  ;;  %v1703_v48 = vld [vmem:[#allocation2 + $0x159] sm:$0xff] }
 0x1d4   : > { %v1398_v57 = vpop.permute.xlu1 %1397 }
 0x1d5   : > { %1473 = vst.msk [vmem:[#allocation3 + $0x1f8] sm:$0xff] %vm1451_vm8, %v1398_v57  ;;  %v1404_v58 = vpop.permute.xlu0 %1403 }
 0x1d6   : > { %1965 = vrot.lane.b32.xlu1 %v1886_v54, %s8765_s15  ;;  %1476 = vst.msk [vmem:[#allocation3 + $0x240] sm:$0xff] %vm1451_vm8, %v1404_v58  ;;  %v1511_v54 = vld [vmem:[#allocation2 + $0x168] sm:$0xff]  ;;  %v1896_v58 = vld [vmem:[#allocation2 + $0x15a] sm:$0xff] }
 0x1d7   : > { %1774 = vrot.lane.b32.xlu0 %v1694_v0, %s8764_s26 }
 0x1d8   : > { %v1402_v15 = vpop.permute.xlu1 %1401 }
 0x1d9   : > { %1475 = vst.msk [vmem:[#allocation3 + $0x228] sm:$0xff] %vm1451_vm8, %v1402_v15  ;;  %v1408_v59 = vpop.permute.xlu0 %1407  ;;  %v1704_v15 = vld [vmem:[#allocation2 + $0x169] sm:$0xff] }
 0x1da   : > { %1583 = vrot.lane.b32.xlu1 %v1502_v12, %s8763_s18  ;;  %1478 = vst.msk [vmem:[#allocation3 + $0x270] sm:$0xff] %vm1451_vm8, %v1408_v59  ;;  %v1512_v59 = vld [vmem:[#allocation2 + $0x170] sm:$0xff] }
 0x1db   : > { %1967 = vrot.lane.b32.xlu0 %v1887_v16, %s8765_s15 }
 0x1dc   : > { %v1406_v20 = vpop.permute.xlu1 %1405 }
 0x1dd   : > { %1477 = vst.msk [vmem:[#allocation3 + $0x258] sm:$0xff] %vm1451_vm8, %v1406_v20  ;;  %v1412_v35 = vpop.permute.xlu0 %1411 }
 0x1de   : > { %1776 = vrot.lane.b32.xlu1 %v1695_v19, %s8764_s26  ;;  %1480 = vst.msk [vmem:[#allocation3 + $0x2a0] sm:$0xff] %vm1451_vm8, %v1412_v35 }
 0x1df   : > { %1585 = vrot.lane.b32.xlu0 %v1503_v23, %s8763_s18  ;;  %v1897_v23 = vld [vmem:[#allocation2 + $0x16a] sm:$0xff] }
 0x1e0   : > { %v1410_v60 = vpop.permute.xlu1 %1409 }
 0x1e1   : > { %1479 = vst.msk [vmem:[#allocation3 + $0x288] sm:$0xff] %vm1451_vm8, %v1410_v60  ;;  %v1416_v30 = vpop.permute.xlu0 %1415 }
 0x1e2   : > { %1969 = vrot.lane.b32.xlu1 %v1888_v24, %s8765_s15  ;;  %1482 = vst.msk [vmem:[#allocation3 + $0x2d0] sm:$0xff] %vm1451_vm8, %v1416_v30  ;;  %v1705_v24 = vld [vmem:[#allocation2 + $0x171] sm:$0xff] }
 0x1e3   : > { %1778 = vrot.lane.b32.xlu0 %v1696_v2, %s8764_s26  ;;  %v1513_v2 = vld [vmem:[#allocation2 + $0x180] sm:$0xff] }
 0x1e4   : > { %v1414_v61 = vpop.permute.xlu1 %1413 }
 0x1e5   : > { %1481 = vst.msk [vmem:[#allocation3 + $0x2b8] sm:$0xff] %vm1451_vm8, %v1414_v61  ;;  %v1550_v34 = vpop.permute.xlu0 %1549  ;;  %v1898_v61 = vld [vmem:[#allocation2 + $0x172] sm:$0xff] }
 0x1e6   : > { %1587 = vrot.lane.b32.xlu1 %v1504_v47, %s8763_s18  ;;  %1646 = vst.msk [vmem:[#allocation3] sm:$0xff] %vm1645_vm9, %v1550_v34  ;;  %v1706_v34 = vld [vmem:[#allocation2 + $0x181] sm:$0xff] }
 0x1e7   : > { %1971 = vrot.lane.b32.xlu0 %v1889_v4, %s8765_s15 }
 0x1e8   : > { %v1418_v6 = vpop.permute.xlu1 %1417 }
 0x1e9   : > { %1483 = vst.msk [vmem:[#allocation3 + $0x2e8] sm:$0xff] %vm1451_vm8, %v1418_v6  ;;  %v1743_v5 = vpop.permute.xlu0 %1742  ;;  %v1514_v6 = vld [vmem:[#allocation2 + $0x188] sm:$0xff] }
 0x1ea   : > { %1780 = vrot.lane.b32.xlu1 %v1697_v3, %s8764_s26  ;;  %1839 = vst.msk [vmem:[#allocation3] sm:$0xff] %vm1838_vm10, %v1743_v5 }
 0x1eb   : > { %1589 = vrot.lane.b32.xlu0 %v1505_v62, %s8763_s18 }
 0x1ec   : > { %v1552_v7 = vpop.permute.xlu1 %1551 }
 0x1ed   : > { %1647 = vst.msk [vmem:[#allocation3 + $0x18] sm:$0xff] %vm1645_vm9, %v1552_v7  ;;  %v1936_v9 = vpop.permute.xlu0 %1935  ;;  %v1707_v7 = vld [vmem:[#allocation2 + $0x189] sm:$0xff] }
 0x1ee   : > { %1973 = vrot.lane.b32.xlu1 %v1890_v8, %s8765_s15  ;;  %2032 = vst.msk [vmem:[#allocation3] sm:$0xff] %vm2031_vm11, %v1936_v9  ;;  %v1515_v9 = vld [vmem:[#allocation2 + $0x198] sm:$0xff] }
 0x1ef   : > { %1782 = vrot.lane.b32.xlu0 %v1698_v10, %s8764_s26 }
 0x1f0   : > { %v1745_v13 = vpop.permute.xlu1 %1744 }
 0x1f1   : > { %1840 = vst.msk [vmem:[#allocation3 + $0x18] sm:$0xff] %vm1838_vm10, %v1745_v13  ;;  %v1554_v17 = vpop.permute.xlu0 %1553 }
 0x1f2   : > { %1591 = vrot.lane.b32.xlu1 %v1506_v63, %s8763_s18  ;;  %1648 = vst.msk [vmem:[#allocation3 + $0x30] sm:$0xff] %vm1645_vm9, %v1554_v17  ;;  %v1708_v17 = vld [vmem:[#allocation2 + $0x199] sm:$0xff] }
 0x1f3   : > { %1975 = vrot.lane.b32.xlu0 %v1891_v37, %s8765_s15 }
 0x1f4   : > { %v1938_v14 = vpop.permute.xlu1 %1937 }
 0x1f5   : > { %2033 = vst.msk [vmem:[#allocation3 + $0x18] sm:$0xff] %vm2031_vm11, %v1938_v14  ;;  %v1747_v39 = vpop.permute.xlu0 %1746  ;;  %v2064_v21 = vld [vmem:[#allocation3] sm:$0xff] }
 0x1f6   : > { %1784 = vrot.lane.b32.xlu1 %v1699_v38, %s8764_s26  ;;  %1841 = vst.msk [vmem:[#allocation3 + $0x30] sm:$0xff] %vm1838_vm10, %v1747_v39  ;;  %8451 = vmatprep.mubr.msk.f32.mxu0 %vm2108_vm12, %v2064_v21  ;;  %v1516_v38 = vld [vmem:[#allocation2 + $0x1a0] sm:$0xff] }
 0x1f7   : > { %1593 = vrot.lane.b32.xlu0 %v1507_v46, %s8763_s18  ;;  %v1901_v39 = vld [vmem:[#allocation2 + $0x19a] sm:$0xff] }
 0x1f8   : > { %v1556_v36 = vpop.permute.xlu1 %1555 }
 0x1f9   : > { %1649 = vst.msk [vmem:[#allocation3 + $0x48] sm:$0xff] %vm1645_vm9, %v1556_v36  ;;  %v1940_v25 = vpop.permute.xlu0 %1939 }
 0x1fa   : > { %1977 = vrot.lane.b32.xlu1 %v1892_v18, %s8765_s15  ;;  %2034 = vst.msk [vmem:[#allocation3 + $0x30] sm:$0xff] %vm2031_vm11, %v1940_v25  ;;  %v1709_v18 = vld [vmem:[#allocation2 + $0x1a1] sm:$0xff] }
 0x1fb   : > { %1786 = vrot.lane.b32.xlu0 %v1700_v52, %s8764_s26  ;;  %v1902_v25 = vld [vmem:[#allocation2 + $0x1a2] sm:$0xff] }
 0x1fc   : > { %v1749_v50 = vpop.permute.xlu1 %1748  ;;  %v2065_v29 = vld [vmem:[#allocation3 + $0x18] sm:$0xff] }
 0x1fd   : > { %1842 = vst.msk [vmem:[#allocation3 + $0x48] sm:$0xff] %vm1838_vm10, %v1749_v50  ;;  %8452 = vmatmul.mubr.msk.f32.vlgmr.msra.gmra.mxu0 %vm2108_vm12, %v2065_v29  ;;  %v1558_v49 = vpop.permute.xlu0 %1557 }
 0x1fe   : > { %1595 = vrot.lane.b32.xlu1 %v1508_v22, %s8763_s18  ;;  %1650 = vst.msk [vmem:[#allocation3 + $0x60] sm:$0xff] %vm1645_vm9, %v1558_v49 }
 0x1ff   : > { %1979 = vrot.lane.b32.xlu0 %v1893_v26, %s8765_s15 }
 0x200   : > { %v1942_v27 = vpop.permute.xlu1 %1941 }
 0x201   : > { %2035 = vst.msk [vmem:[#allocation3 + $0x48] sm:$0xff] %vm2031_vm11, %v1942_v27  ;;  %v1751_v31 = vpop.permute.xlu0 %1750  ;;  %v2066_v32 = vld [vmem:[#allocation3 + $0x30] sm:$0xff] }
 0x202   : > { %1788 = vrot.lane.b32.xlu1 %v1701_v53, %s8764_s26  ;;  %1843 = vst.msk [vmem:[#allocation3 + $0x60] sm:$0xff] %vm1838_vm10, %v1751_v31  ;;  %8454 = vmatprep.mubr.msk.f32.mxu0 %vm2108_vm12, %v2066_v32 }
 0x203   : > { %1597 = vrot.lane.b32.xlu0 %v1509_v28, %s8763_s18 }
 0x204   : > { %v1560_v40 = vpop.permute.xlu1 %1559 }
 0x205   : > { %1651 = vst.msk [vmem:[#allocation3 + $0x78] sm:$0xff] %vm1645_vm9, %v1560_v40  ;;  %v1944_v42 = vpop.permute.xlu0 %1943 }
 0x206   : > { %1981 = vrot.lane.b32.xlu1 %v1894_v33, %s8765_s15  ;;  %2036 = vst.msk [vmem:[#allocation3 + $0x60] sm:$0xff] %vm2031_vm11, %v1944_v42  ;;  %v2626_v42 = vld [vmem:[#allocation2 + $0x1] sm:$0xff] }
 0x207   : > { %1790 = vrot.lane.b32.xlu0 %v1702_v41, %s8764_s26  ;;  %v2627_v41 = vld [vmem:[#allocation2 + $0x9] sm:$0xff] }
 0x208   : > { %v1753_v43 = vpop.permute.xlu1 %1752  ;;  %v2067_v44 = vld [vmem:[#allocation3 + $0x48] sm:$0xff] }
 0x209   : > { %1844 = vst.msk [vmem:[#allocation3 + $0x78] sm:$0xff] %vm1838_vm10, %v1753_v43  ;;  %8455 = vmatmul.mubr.msk.f32.gmra.mxu0 %vm2108_vm12, %v2067_v44  ;;  %v1562_v56 = vpop.permute.xlu0 %1561 }
 0x20a   : > { %1599 = vrot.lane.b32.xlu1 %v1510_v55, %s8763_s18  ;;  %1652 = vst.msk [vmem:[#allocation3 + $0x90] sm:$0xff] %vm1645_vm9, %v1562_v56 }
 0x20b   : > { %1983 = vrot.lane.b32.xlu0 %v1895_v45, %s8765_s15 }
 0x20c   : > { %v1946_v51 = vpop.permute.xlu1 %1945 }
 0x20d   : > { %2037 = vst.msk [vmem:[#allocation3 + $0x78] sm:$0xff] %vm2031_vm11, %v1946_v51  ;;  %v1755_v57 = vpop.permute.xlu0 %1754  ;;  %v2068_v0 = vld [vmem:[#allocation3 + $0x60] sm:$0xff] }
 0x20e   : > { %1792 = vrot.lane.b32.xlu1 %v1703_v48, %s8764_s26  ;;  %1845 = vst.msk [vmem:[#allocation3 + $0x90] sm:$0xff] %vm1838_vm10, %v1755_v57  ;;  %8457 = vmatprep.mubr.msk.f32.mxu0 %vm2108_vm12, %v2068_v0 }
 0x20f   : > { %1601 = vrot.lane.b32.xlu0 %v1511_v54, %s8763_s18 }
 0x210   : > { %v1564_v12 = vpop.permute.xlu1 %1563 }
 0x211   : > { %1653 = vst.msk [vmem:[#allocation3 + $0xa8] sm:$0xff] %vm1645_vm9, %v1564_v12  ;;  %v1948_v16 = vpop.permute.xlu0 %1947 }
 0x212   : > { %1985 = vrot.lane.b32.xlu1 %v1896_v58, %s8765_s15  ;;  %2038 = vst.msk [vmem:[#allocation3 + $0x90] sm:$0xff] %vm2031_vm11, %v1948_v16  ;;  %v4040_v16 = vld [vmem:[%s13179_s3 + $0x118] sm:$0xff] }
 0x213   : > { %1794 = vrot.lane.b32.xlu0 %v1704_v15, %s8764_s26  ;;  %8499 = vmatprep.subr.mxu0 %v4040_v16 }
 0x214   : > { %v1757_v19 = vpop.permute.xlu1 %1756  ;;  %v2069_v20 = vld [vmem:[#allocation3 + $0x78] sm:$0xff]  ;;  %8500 = vmatpush3.msra.mxu0 %v4040_v16 }
 0x215   : > { %1846 = vst.msk [vmem:[#allocation3 + $0xa8] sm:$0xff] %vm1838_vm10, %v1757_v19  ;;  %8458 = vmatmul.mubr.msk.f32.gmra.mxu0 %vm2108_vm12, %v2069_v20  ;;  %v1566_v35 = vpop.permute.xlu0 %1565  ;;  %v4039_v19 = vld [vmem:[%s13179_s3 + $0x110] sm:$0xff] }
 0x216   : > { %1603 = vrot.lane.b32.xlu1 %v1512_v59, %s8763_s18  ;;  %1654 = vst.msk [vmem:[#allocation3 + $0xc0] sm:$0xff] %vm1645_vm9, %v1566_v35  ;;  %8501 = vmatprep.subr.mxu0 %v4039_v19  ;;  %v4038_v35 = vld [vmem:[%s13179_s3 + $0x108] sm:$0xff] }
 0x217   : > { %1987 = vrot.lane.b32.xlu0 %v1897_v23, %s8765_s15  ;;  %8502 = vmatpush3.msra.mxu0 %v4039_v19 }
 0x218   : > { %v1950_v60 = vpop.permute.xlu1 %1949  ;;  %8503 = vmatprep.subr.mxu0 %v4038_v35 }
 0x219   : > { %2039 = vst.msk [vmem:[#allocation3 + $0xa8] sm:$0xff] %vm2031_vm11, %v1950_v60  ;;  %v1759_v30 = vpop.permute.xlu0 %1758  ;;  %v2070_v47 = vld [vmem:[#allocation3 + $0x90] sm:$0xff]  ;;  %8504 = vmatpush3.msra.mxu0 %v4038_v35 }
 0x21a   : > { %1796 = vrot.lane.b32.xlu1 %v1705_v24, %s8764_s26  ;;  %1847 = vst.msk [vmem:[#allocation3 + $0xc0] sm:$0xff] %vm1838_vm10, %v1759_v30  ;;  %8460 = vmatprep.mubr.msk.f32.mxu0 %vm2108_vm12, %v2070_v47  ;;  %v4037_v60 = vld [vmem:[%s13179_s3 + $0x100] sm:$0xff] }
 0x21b   : > { %1605 = vrot.lane.b32.xlu0 %v1513_v2, %s8763_s18  ;;  %8505 = vmatprep.subr.mxu0 %v4037_v60 }
 0x21c   : > { %v1568_v4 = vpop.permute.xlu1 %1567  ;;  %8506 = vmatpush3.msra.mxu0 %v4037_v60 }
 0x21d   : > { %1655 = vst.msk [vmem:[#allocation3 + $0xd8] sm:$0xff] %vm1645_vm9, %v1568_v4  ;;  %v1952_v3 = vpop.permute.xlu0 %1951 }
 0x21e   : > { %1989 = vrot.lane.b32.xlu1 %v1898_v61, %s8765_s15  ;;  %2040 = vst.msk [vmem:[#allocation3 + $0xc0] sm:$0xff] %vm2031_vm11, %v1952_v3  ;;  %v13285_v61 = vmov 0.0  }
 0x21f   : > { %1798 = vrot.lane.b32.xlu0 %v1706_v34, %s8764_s26  ;;  %6301 = vmatprep.subr.mxu0 %v13285_v61 }
 0x220   : > { %v1761_v62 = vpop.permute.xlu1 %1760  ;;  %v2071_v5 = vld [vmem:[#allocation3 + $0xa8] sm:$0xff] }
 0x221   : > { %1848 = vst.msk [vmem:[#allocation3 + $0xd8] sm:$0xff] %vm1838_vm10, %v1761_v62  ;;  %8461 = vmatmul.mubr.msk.f32.gmra.mxu0 %vm2108_vm12, %v2071_v5  ;;  %v1570_v8 = vpop.permute.xlu0 %1569 }
 0x222   : > { %1607 = vrot.lane.b32.xlu1 %v1514_v6, %s8763_s18  ;;  %1656 = vst.msk [vmem:[#allocation3 + $0xf0] sm:$0xff] %vm1645_vm9, %v1570_v8 }
 0x223   : > { %1991 = vrot.lane.b32.xlu0 %v9699_v11, %s8765_s15 }
 0x224   : > { %v1954_v10 = vpop.permute.xlu1 %1953 }
 0x225   : > { %2041 = vst.msk [vmem:[#allocation3 + $0xd8] sm:$0xff] %vm2031_vm11, %v1954_v10  ;;  %v1763_v63 = vpop.permute.xlu0 %1762  ;;  %v2072_v13 = vld [vmem:[#allocation3 + $0xc0] sm:$0xff] }
 0x226   : > { %1800 = vrot.lane.b32.xlu1 %v1707_v7, %s8764_s26  ;;  %1849 = vst.msk [vmem:[#allocation3 + $0xf0] sm:$0xff] %vm1838_vm10, %v1763_v63  ;;  %8463 = vmatprep.mubr.msk.f32.mxu0 %vm2108_vm12, %v2072_v13 }
 0x227   : > { %1609 = vrot.lane.b32.xlu0 %v1515_v9, %s8763_s18 }
 0x228   : > { %v1572_v37 = vpop.permute.xlu1 %1571 }
 0x229   : > { %1657 = vst.msk [vmem:[#allocation3 + $0x108] sm:$0xff] %vm1645_vm9, %v1572_v37  ;;  %v1956_v11 = vpop.permute.xlu0 %1955 }
 0x22a   : > { %1993 = vrot.lane.b32.xlu1 %v9712_v1, %s8765_s15  ;;  %2042 = vst.msk [vmem:[#allocation3 + $0xf0] sm:$0xff] %vm2031_vm11, %v1956_v11 }
 0x22b   : > { %1802 = vrot.lane.b32.xlu0 %v1708_v17, %s8764_s26 }
 0x22c   : > { %v1765_v14 = vpop.permute.xlu1 %1764  ;;  %v2073_v46 = vld [vmem:[#allocation3 + $0xd8] sm:$0xff] }
 0x22d   : > { %1850 = vst.msk [vmem:[#allocation3 + $0x108] sm:$0xff] %vm1838_vm10, %v1765_v14  ;;  %8464 = vmatmul.mubr.msk.f32.gmra.mxu0 %vm2108_vm12, %v2073_v46  ;;  %v1574_v21 = vpop.permute.xlu0 %1573 }
 0x22e   : > { %1611 = vrot.lane.b32.xlu1 %v1516_v38, %s8763_s18  ;;  %1658 = vst.msk [vmem:[#allocation3 + $0x120] sm:$0xff] %vm1645_vm9, %v1574_v21 }
 0x22f   : > { %1995 = vrot.lane.b32.xlu0 %v1901_v39, %s8765_s15 }
 0x230   : > { %v1958_v1 = vpop.permute.xlu1 %1957 }
 0x231   : > { %2043 = vst.msk [vmem:[#allocation3 + $0x108] sm:$0xff] %vm2031_vm11, %v1958_v1  ;;  %v1767_v36 = vpop.permute.xlu0 %1766  ;;  %v2074_v52 = vld [vmem:[#allocation3 + $0xf0] sm:$0xff] }
 0x232   : > { %1804 = vrot.lane.b32.xlu1 %v1709_v18, %s8764_s26  ;;  %1851 = vst.msk [vmem:[#allocation3 + $0x120] sm:$0xff] %vm1838_vm10, %v1767_v36  ;;  %8466 = vmatprep.mubr.msk.f32.mxu0 %vm2108_vm12, %v2074_v52 }
 0x233   : > { %2690 = vrot.lane.b32.xlu0 %v2626_v42, %s8765_s15 }
 0x234   : > { %v1576_v22 = vpop.permute.xlu1 %1575 }
 0x235   : > { %1659 = vst.msk [vmem:[#allocation3 + $0x138] sm:$0xff] %vm1645_vm9, %v1576_v22  ;;  %v1960_v50 = vpop.permute.xlu0 %1959 }
 0x236   : > { %1997 = vrot.lane.b32.xlu1 %v1902_v25, %s8765_s15  ;;  %2044 = vst.msk [vmem:[#allocation3 + $0x120] sm:$0xff] %vm2031_vm11, %v1960_v50 }
 0x238   : > { %v1769_v29 = vpop.permute.xlu1 %1768  ;;  %v2075_v26 = vld [vmem:[#allocation3 + $0x108] sm:$0xff] }
 0x239   : > { %1852 = vst.msk [vmem:[#allocation3 + $0x138] sm:$0xff] %vm1838_vm10, %v1769_v29  ;;  %8467 = vmatmul.mubr.msk.f32.gmra.mxu0 %vm2108_vm12, %v2075_v26  ;;  %v1578_v49 = vpop.permute.xlu0 %1577 }
 0x23a   : > { %1660 = vst.msk [vmem:[#allocation3 + $0x150] sm:$0xff] %vm1645_vm9, %v1578_v49  ;;  %2692 = vrot.lane.b32.xlu1 %v2627_v41, %s8765_s15 }
 0x23c   : > { %v1962_v53 = vpop.permute.xlu1 %1961 }
 0x23d   : > { %2045 = vst.msk [vmem:[#allocation3 + $0x138] sm:$0xff] %vm2031_vm11, %v1962_v53  ;;  %v1771_v27 = vpop.permute.xlu0 %1770  ;;  %v2076_v28 = vld [vmem:[#allocation3 + $0x120] sm:$0xff] }
 0x23e   : > { %1853 = vst.msk [vmem:[#allocation3 + $0x150] sm:$0xff] %vm1838_vm10, %v1771_v27  ;;  %8469 = vmatprep.mubr.msk.f32.mxu0 %vm2108_vm12, %v2076_v28 }
 0x240   : > { %v1580_v31 = vpop.permute.xlu1 %1579 }
 0x241   : > { %1661 = vst.msk [vmem:[#allocation3 + $0x168] sm:$0xff] %vm1645_vm9, %v1580_v31  ;;  %v1964_v32 = vpop.permute.xlu0 %1963 }
 0x242   : > { %2046 = vst.msk [vmem:[#allocation3 + $0x150] sm:$0xff] %vm2031_vm11, %v1964_v32 }
 0x244   : > { %v1773_v33 = vpop.permute.xlu1 %1772  ;;  %v2077_v40 = vld [vmem:[#allocation3 + $0x138] sm:$0xff] }
 0x245   : > { %1854 = vst.msk [vmem:[#allocation3 + $0x168] sm:$0xff] %vm1838_vm10, %v1773_v33  ;;  %8470 = vmatmul.mubr.msk.f32.gmra.mxu0 %vm2108_vm12, %v2077_v40  ;;  %v1582_v55 = vpop.permute.xlu0 %1581 }
 0x246   : > { %1662 = vst.msk [vmem:[#allocation3 + $0x180] sm:$0xff] %vm1645_vm9, %v1582_v55 }
 0x248   : > { %v1966_v43 = vpop.permute.xlu1 %1965 }
 0x249   : > { %2047 = vst.msk [vmem:[#allocation3 + $0x168] sm:$0xff] %vm2031_vm11, %v1966_v43  ;;  %v1775_v44 = vpop.permute.xlu0 %1774  ;;  %v2078_v45 = vld [vmem:[#allocation3 + $0x150] sm:$0xff] }
 0x24a   : > { %1855 = vst.msk [vmem:[#allocation3 + $0x180] sm:$0xff] %vm1838_vm10, %v1775_v44  ;;  %8472 = vmatprep.mubr.msk.f32.mxu0 %vm2108_vm12, %v2078_v45 }
 0x24c   : > { %v1584_v56 = vpop.permute.xlu1 %1583 }
 0x24d   : > { %1663 = vst.msk [vmem:[#allocation3 + $0x198] sm:$0xff] %vm1645_vm9, %v1584_v56  ;;  %v1968_v48 = vpop.permute.xlu0 %1967 }
 0x24e   : > { %2048 = vst.msk [vmem:[#allocation3 + $0x180] sm:$0xff] %vm2031_vm11, %v1968_v48 }
 0x250   : > { %v1777_v51 = vpop.permute.xlu1 %1776  ;;  %v2079_v54 = vld [vmem:[#allocation3 + $0x168] sm:$0xff] }
 0x251   : > { %1856 = vst.msk [vmem:[#allocation3 + $0x198] sm:$0xff] %vm1838_vm10, %v1777_v51  ;;  %8473 = vmatmul.mubr.msk.f32.gmra.mxu0 %vm2108_vm12, %v2079_v54  ;;  %v1586_v57 = vpop.permute.xlu0 %1585 }
 0x252   : > { %1664 = vst.msk [vmem:[#allocation3 + $0x1b0] sm:$0xff] %vm1645_vm9, %v1586_v57  ;;  %v10041_v57 = vld [vmem:[%s13178_s2] ss:$0 sm:$0xff] }
 0x254   : > { %v1970_v0 = vpop.permute.xlu1 %1969 }
 0x255   : > { %2049 = vst.msk [vmem:[#allocation3 + $0x198] sm:$0xff] %vm2031_vm11, %v1970_v0  ;;  %v1779_v58 = vpop.permute.xlu0 %1778  ;;  %v2080_v12 = vld [vmem:[#allocation3 + $0x180] sm:$0xff] }
 0x256   : > { %1857 = vst.msk [vmem:[#allocation3 + $0x1b0] sm:$0xff] %vm1838_vm10, %v1779_v58  ;;  %8475 = vmatprep.mubr.msk.f32.mxu0 %vm2108_vm12, %v2080_v12  ;;  %v2563_v58 = vld [vmem:[#allocation2 + $0x8] sm:$0xff]  ;;  %v2562_v12 = vld [vmem:[#allocation2] sm:$0xff] }
 0x257   : > { %2595 = vst.msk [vmem:[#allocation3 + $0x18] sm:$0xff] %vm333_vm0, %v2563_v58  ;;  %2594 = vst.msk [vmem:[#allocation3] sm:$0xff] %vm333_vm0, %v2562_v12 }
 0x258   : > { %v1588_v15 = vpop.permute.xlu1 %1587 }
 0x259   : > { %1665 = vst.msk [vmem:[#allocation3 + $0x1c8] sm:$0xff] %vm1645_vm9, %v1588_v15  ;;  %v1972_v59 = vpop.permute.xlu0 %1971 }
 0x25a   : > { %2050 = vst.msk [vmem:[#allocation3 + $0x1b0] sm:$0xff] %vm2031_vm11, %v1972_v59 }
 0x25c   : > { %v1781_v20 = vpop.permute.xlu1 %1780  ;;  %v2081_v23 = vld [vmem:[#allocation3 + $0x198] sm:$0xff] }
 0x25d   : > { %1858 = vst.msk [vmem:[#allocation3 + $0x1c8] sm:$0xff] %vm1838_vm10, %v1781_v20  ;;  %8476 = vmatmul.mubr.msk.f32.gmra.mxu0 %vm2108_vm12, %v2081_v23  ;;  %v1590_v24 = vpop.permute.xlu0 %1589 }
 0x25e   : > { %1666 = vst.msk [vmem:[#allocation3 + $0x1e0] sm:$0xff] %vm1645_vm9, %v1590_v24 }
 0x260   : > { %v1974_v2 = vpop.permute.xlu1 %1973 }
 0x261   : > { %2051 = vst.msk [vmem:[#allocation3 + $0x1c8] sm:$0xff] %vm2031_vm11, %v1974_v2  ;;  %v1783_v30 = vpop.permute.xlu0 %1782  ;;  %v2082_v47 = vld [vmem:[#allocation3 + $0x1b0] sm:$0xff] }
 0x262   : > { %1859 = vst.msk [vmem:[#allocation3 + $0x1e0] sm:$0xff] %vm1838_vm10, %v1783_v30  ;;  %8478 = vmatprep.mubr.msk.f32.mxu0 %vm2108_vm12, %v2082_v47 }
 0x264   : > { %v1592_v4 = vpop.permute.xlu1 %1591 }
 0x265   : > { %1667 = vst.msk [vmem:[#allocation3 + $0x1f8] sm:$0xff] %vm1645_vm9, %v1592_v4  ;;  %v1976_v34 = vpop.permute.xlu0 %1975 }
 0x266   : > { %2052 = vst.msk [vmem:[#allocation3 + $0x1e0] sm:$0xff] %vm2031_vm11, %v1976_v34 }
 0x268   : > { %v1785_v3 = vpop.permute.xlu1 %1784  ;;  %v2083_v6 = vld [vmem:[#allocation3 + $0x1c8] sm:$0xff] }
 0x269   : > { %1860 = vst.msk [vmem:[#allocation3 + $0x1f8] sm:$0xff] %vm1838_vm10, %v1785_v3  ;;  %8479 = vmatmul.mubr.msk.f32.gmra.mxu0 %vm2108_vm12, %v2083_v6  ;;  %v1594_v62 = vpop.permute.xlu0 %1593 }
 0x26a   : > { %1668 = vst.msk [vmem:[#allocation3 + $0x210] sm:$0xff] %vm1645_vm9, %v1594_v62 }
 0x26c   : > { %v1978_v5 = vpop.permute.xlu1 %1977 }
 0x26d   : > { %2053 = vst.msk [vmem:[#allocation3 + $0x1f8] sm:$0xff] %vm2031_vm11, %v1978_v5  ;;  %v1787_v8 = vpop.permute.xlu0 %1786  ;;  %v2084_v7 = vld [vmem:[#allocation3 + $0x1e0] sm:$0xff] }
 0x26e   : > { %1861 = vst.msk [vmem:[#allocation3 + $0x210] sm:$0xff] %vm1838_vm10, %v1787_v8  ;;  %8481 = vmatprep.mubr.msk.f32.mxu0 %vm2108_vm12, %v2084_v7 }
 0x270   : > { %v1596_v10 = vpop.permute.xlu1 %1595 }
 0x271   : > { %1669 = vst.msk [vmem:[#allocation3 + $0x228] sm:$0xff] %vm1645_vm9, %v1596_v10  ;;  %v1980_v9 = vpop.permute.xlu0 %1979 }
 0x272   : > { %2054 = vst.msk [vmem:[#allocation3 + $0x210] sm:$0xff] %vm2031_vm11, %v1980_v9 }
 0x274   : > { %v1789_v63 = vpop.permute.xlu1 %1788  ;;  %v2085_v13 = vld [vmem:[#allocation3 + $0x1f8] sm:$0xff] }
 0x275   : > { %1862 = vst.msk [vmem:[#allocation3 + $0x228] sm:$0xff] %vm1838_vm10, %v1789_v63  ;;  %8482 = vmatmul.mubr.msk.f32.gmra.mxu0 %vm2108_vm12, %v2085_v13  ;;  %v1598_v37 = vpop.permute.xlu0 %1597 }
 0x276   : > { %1670 = vst.msk [vmem:[#allocation3 + $0x240] sm:$0xff] %vm1645_vm9, %v1598_v37 }
 0x278   : > { %v1982_v17 = vpop.permute.xlu1 %1981 }
 0x279   : > { %2055 = vst.msk [vmem:[#allocation3 + $0x228] sm:$0xff] %vm2031_vm11, %v1982_v17  ;;  %v1791_v11 = vpop.permute.xlu0 %1790  ;;  %v2086_v38 = vld [vmem:[#allocation3 + $0x210] sm:$0xff] }
 0x27a   : > { %1863 = vst.msk [vmem:[#allocation3 + $0x240] sm:$0xff] %vm1838_vm10, %v1791_v11  ;;  %8484 = vmatprep.mubr.msk.f32.mxu0 %vm2108_vm12, %v2086_v38 }
 0x27c   : > { %v1600_v14 = vpop.permute.xlu1 %1599 }
 0x27d   : > { %1671 = vst.msk [vmem:[#allocation3 + $0x258] sm:$0xff] %vm1645_vm9, %v1600_v14  ;;  %v1984_v46 = vpop.permute.xlu0 %1983 }
 0x27e   : > { %2056 = vst.msk [vmem:[#allocation3 + $0x240] sm:$0xff] %vm2031_vm11, %v1984_v46 }
 0x280   : > { %v1793_v39 = vpop.permute.xlu1 %1792  ;;  %v2087_v21 = vld [vmem:[#allocation3 + $0x228] sm:$0xff] }
 0x281   : > { %1864 = vst.msk [vmem:[#allocation3 + $0x258] sm:$0xff] %vm1838_vm10, %v1793_v39  ;;  %8485 = vmatmul.mubr.msk.f32.gmra.mxu0 %vm2108_vm12, %v2087_v21  ;;  %v1602_v18 = vpop.permute.xlu0 %1601 }
 0x282   : > { %1672 = vst.msk [vmem:[#allocation3 + $0x270] sm:$0xff] %vm1645_vm9, %v1602_v18 }
 0x284   : > { %v1986_v1 = vpop.permute.xlu1 %1985 }
 0x285   : > { %2057 = vst.msk [vmem:[#allocation3 + $0x258] sm:$0xff] %vm2031_vm11, %v1986_v1  ;;  %v1795_v36 = vpop.permute.xlu0 %1794  ;;  %v2088_v52 = vld [vmem:[#allocation3 + $0x240] sm:$0xff] }
 0x286   : > { %1865 = vst.msk [vmem:[#allocation3 + $0x270] sm:$0xff] %vm1838_vm10, %v1795_v36  ;;  %8487 = vmatprep.mubr.msk.f32.mxu0 %vm2108_vm12, %v2088_v52 }
 0x288   : > { %v1604_v25 = vpop.permute.xlu1 %1603 }
 0x289   : > { %1673 = vst.msk [vmem:[#allocation3 + $0x288] sm:$0xff] %vm1645_vm9, %v1604_v25  ;;  %v1988_v22 = vpop.permute.xlu0 %1987 }
 0x28a   : > { %2058 = vst.msk [vmem:[#allocation3 + $0x270] sm:$0xff] %vm2031_vm11, %v1988_v22 }
 0x28c   : > { %v1797_v50 = vpop.permute.xlu1 %1796  ;;  %v2089_v29 = vld [vmem:[#allocation3 + $0x258] sm:$0xff] }
 0x28d   : > { %1866 = vst.msk [vmem:[#allocation3 + $0x288] sm:$0xff] %vm1838_vm10, %v1797_v50  ;;  %8488 = vmatmul.mubr.msk.f32.gmra.mxu0 %vm2108_vm12, %v2089_v29  ;;  %v1606_v26 = vpop.permute.xlu0 %1605 }
 0x28e   : > { %1674 = vst.msk [vmem:[#allocation3 + $0x2a0] sm:$0xff] %vm1645_vm9, %v1606_v26 }
 0x290   : > { %v1990_v49 = vpop.permute.xlu1 %1989 }
 0x291   : > { %2059 = vst.msk [vmem:[#allocation3 + $0x288] sm:$0xff] %vm2031_vm11, %v1990_v49  ;;  %v1799_v53 = vpop.permute.xlu0 %1798  ;;  %v2090_v27 = vld [vmem:[#allocation3 + $0x270] sm:$0xff] }
 0x292   : > { %1867 = vst.msk [vmem:[#allocation3 + $0x2a0] sm:$0xff] %vm1838_vm10, %v1799_v53  ;;  %8490 = vmatprep.mubr.msk.f32.mxu0 %vm2108_vm12, %v2090_v27 }
 0x294   : > { %v1608_v28 = vpop.permute.xlu1 %1607 }
 0x295   : > { %1675 = vst.msk [vmem:[#allocation3 + $0x2b8] sm:$0xff] %vm1645_vm9, %v1608_v28  ;;  %v1992_v31 = vpop.permute.xlu0 %1991 }
 0x296   : > { %2060 = vst.msk [vmem:[#allocation3 + $0x2a0] sm:$0xff] %vm2031_vm11, %v1992_v31 }
 0x298   : > { %v1801_v32 = vpop.permute.xlu1 %1800  ;;  %v2091_v33 = vld [vmem:[#allocation3 + $0x288] sm:$0xff] }
 0x299   : > { %1868 = vst.msk [vmem:[#allocation3 + $0x2b8] sm:$0xff] %vm1838_vm10, %v1801_v32  ;;  %8491 = vmatmul.mubr.msk.f32.gmra.mxu0 %vm2108_vm12, %v2091_v33  ;;  %v1610_v40 = vpop.permute.xlu0 %1609 }
 0x29a   : > { %1676 = vst.msk [vmem:[#allocation3 + $0x2d0] sm:$0xff] %vm1645_vm9, %v1610_v40 }
 0x29c   : > { %v1994_v41 = vpop.permute.xlu1 %1993 }
 0x29d   : > { %2061 = vst.msk [vmem:[#allocation3 + $0x2b8] sm:$0xff] %vm2031_vm11, %v1994_v41  ;;  %v2092_v42 = vld [vmem:[#allocation3 + $0x2a0] sm:$0xff]  ;;  %v1803_v55 = vpop.permute.xlu0 %1802 }
 0x29e   : > { %8493 = vmatprep.mubr.msk.f32.mxu0 %vm2108_vm12, %v2092_v42  ;;  %1869 = vst.msk [vmem:[#allocation3 + $0x2d0] sm:$0xff] %vm1838_vm10, %v1803_v55 }
 0x2a0   : > { %v1612_v43 = vpop.permute.xlu1 %1611 }
 0x2a1   : > { %1677 = vst.msk [vmem:[#allocation3 + $0x2e8] sm:$0xff] %vm1645_vm9, %v1612_v43  ;;  %v1996_v44 = vpop.permute.xlu0 %1995 }
 0x2a2   : > { %2062 = vst.msk [vmem:[#allocation3 + $0x2d0] sm:$0xff] %vm2031_vm11, %v1996_v44 }
 0x2a4   : > { %v2093_v45 = vld [vmem:[#allocation3 + $0x2b8] sm:$0xff]  ;;  %v1805_v56 = vpop.permute.xlu1 %1804 }
 0x2a5   : > { %8494 = vmatmul.mubr.msk.f32.gmra.mxu0 %vm2108_vm12, %v2093_v45  ;;  %1870 = vst.msk [vmem:[#allocation3 + $0x2e8] sm:$0xff] %vm1838_vm10, %v1805_v56  ;;  %v2691_v59 = vpop.permute.xlu0 %2690 }
 0x2a6   : > { %2787 = vst.msk [vmem:[#allocation3] sm:$0xff] %vm2786_vm13, %v2691_v59 }
 0x2a8   : > { %v1998_v48 = vpop.permute.xlu1 %1997 }
 0x2a9   : > { %2063 = vst.msk [vmem:[#allocation3 + $0x2e8] sm:$0xff] %vm2031_vm11, %v1998_v48  ;;  %v2094_v51 = vld [vmem:[#allocation3 + $0x2d0] sm:$0xff] }
 0x2aa   : > { %8496 = vmatprep.mubr.msk.f32.mxu0 %vm2108_vm12, %v2094_v51 }
 0x2ac   : > { %v2693_v16 = vpop.permute.xlu1 %2692 }
 0x2ad   : > { %2788 = vst.msk [vmem:[#allocation3 + $0x18] sm:$0xff] %vm2786_vm13, %v2693_v16 }
 0x2b0   : > { %v2095_v54 = vld [vmem:[#allocation3 + $0x2e8] sm:$0xff] }
 0x2b1   : > { %8497 = vmatmul.mubr.msk.f32.gmra.mxu0 %vm2108_vm12, %v2095_v54 }
 0x2bd   : > { %v8453_v0 = vpop.f32.mrf.mxu0 }
 0x2be   : > { %v2281_v15 = vadd.f32 %v8453_v0, %v10041_v57 }
 0x2bf   : > { %v2275_v19 = vpop.f32.mrf.mxu0 }
 0x2c0   : > { %vm2435_vm14 = vcmp.ge.f32.partialorder %v2281_v15, 0.0  ;;  %v2467_v20 = vmul.f32 0.2, %v2281_v15  ;;  %v2276_v23 = vadd.f32 %v10041_v57, %v2275_v19 }
 0x2c2   : > { %v2499_v35 = vsel %vm2435_vm14, %v2281_v15, %v2467_v20  ;;  %vm2434_vm15 = vcmp.ge.f32.partialorder %v2276_v23, 0.0  ;;  %v2466_v24 = vmul.f32 0.2, %v2276_v23 }
 0x2c3   : > { %2531 = vst.msk [vmem:[#allocation2 + $0x21] sm:$0xff] %vm333_vm0, %v2499_v35 }
 0x2c4   : > { %v2498_v60 = vsel %vm2434_vm15, %v2276_v23, %v2466_v24 }
 0x2c5   : > { %2530 = vst.msk [vmem:[#allocation2 + $0x19] sm:$0xff] %vm333_vm0, %v2498_v60 }
 0x2c9   : > { %v8456_v2 = vpop.f32.mrf.mxu0 }
 0x2ca   : > { %v2291_v30 = vadd.f32 %v8456_v2, %v10041_v57  ;;  %v2629_v47 = vld [vmem:[#allocation2 + $0x21] sm:$0xff] }
 0x2cb   : > { %v3206_v4 = vld [vmem:[#allocation2 + $0x21] sm:$0xff]  ;;  %2696 = vrot.lane.b32.xlu1 %v2629_v47, %s8765_s15  ;;  %v2285_v34 = vpop.f32.mrf.mxu0 }
 0x2cc   : > { %3238 = vst.msk [vmem:[#allocation3 + $0x20] sm:$0xff] %vm333_vm0, %v3206_v4  ;;  %vm2437_vm1 = vcmp.ge.f32.partialorder %v2291_v30, 0.0  ;;  %v2469_v3 = vmul.f32 0.2, %v2291_v30  ;;  %v2286_v6 = vadd.f32 %v10041_v57, %v2285_v34  ;;  %v2628_v62 = vld [vmem:[#allocation2 + $0x19] sm:$0xff] }
 0x2cd   : > { %v10055_v5 = vld [vmem:[#allocation2 + $0x20] sm:$0xff]  ;;  %v10057_v8 = vld [vmem:[#allocation2 + $0x18] sm:$0xff]  ;;  %2694 = vrot.lane.b32.xlu0 %v2628_v62, %s8765_s15 }
 0x2ce   : > { %2597 = vst.msk [vmem:[#allocation3 + $0x48] sm:$0xff] %vm333_vm0, %v10055_v5  ;;  %2596 = vst.msk [vmem:[#allocation3 + $0x30] sm:$0xff] %vm333_vm0, %v10057_v8  ;;  %v3205_v7 = vld [vmem:[#allocation2 + $0x19] sm:$0xff]  ;;  %v2501_v10 = vsel %vm2437_vm1, %v2291_v30, %v2469_v3  ;;  %vm2436_vm2 = vcmp.ge.f32.partialorder %v2286_v6, 0.0  ;;  %v2468_v9 = vmul.f32 0.2, %v2286_v6 }
 0x2cf   : > { %3237 = vst.msk [vmem:[#allocation3 + $0x8] sm:$0xff] %vm333_vm0, %v3205_v7  ;;  %2533 = vst.msk [vmem:[#allocation2 + $0x39] sm:$0xff] %vm333_vm0, %v2501_v10 }
 0x2d0   : > { %v2500_v63 = vsel %vm2436_vm2, %v2286_v6, %v2468_v9 }
 0x2d1   : > { %2532 = vst.msk [vmem:[#allocation2 + $0x31] sm:$0xff] %vm333_vm0, %v2500_v63 }
 0x2d5   : > { %v8459_v13 = vpop.f32.mrf.mxu0 }
 0x2d6   : > { %v2301_v37 = vadd.f32 %v8459_v13, %v10041_v57  ;;  %v2631_v17 = vld [vmem:[#allocation2 + $0x39] sm:$0xff] }
 0x2d7   : > { %v10068_v11 = vld [vmem:[#allocation2 + $0x3a] sm:$0xff]  ;;  %2700 = vrot.lane.b32.xlu1 %v2631_v17, %s8765_s15  ;;  %v2295_v14 = vpop.f32.mrf.mxu0 }
 0x2d8   : > { %v3208_v38 = vld [vmem:[#allocation2 + $0x39] sm:$0xff]  ;;  %3878 = vst.msk [vmem:[#allocation3 + $0x28] sm:$0xff] %vm333_vm0, %v10068_v11  ;;  %vm2439_vm3 = vcmp.ge.f32.partialorder %v2301_v37, 0.0  ;;  %v2471_v46 = vmul.f32 0.2, %v2301_v37  ;;  %v2296_v39 = vadd.f32 %v10041_v57, %v2295_v14  ;;  %v2630_v21 = vld [vmem:[#allocation2 + $0x31] sm:$0xff] }
 0x2d9   : > { %3240 = vst.msk [vmem:[#allocation3 + $0x50] sm:$0xff] %vm333_vm0, %v3208_v38  ;;  %v10075_v18 = vld [vmem:[#allocation2 + $0x32] sm:$0xff]  ;;  %2698 = vrot.lane.b32.xlu0 %v2630_v21, %s8765_s15 }
 0x2da   : > { %v10077_v1 = vld [vmem:[#allocation2 + $0x38] sm:$0xff]  ;;  %3877 = vst.msk [vmem:[#allocation3 + $0x10] sm:$0xff] %vm333_vm0, %v10075_v18  ;;  %v10084_v36 = vld [vmem:[#allocation2 + $0x30] sm:$0xff]  ;;  %v2503_v25 = vsel %vm2439_vm3, %v2301_v37, %v2471_v46  ;;  %vm2438_vm4 = vcmp.ge.f32.partialorder %v2296_v39, 0.0  ;;  %v2470_v22 = vmul.f32 0.2, %v2296_v39 }
 0x2db   : > { %2599 = vst.msk [vmem:[#allocation3 + $0x78] sm:$0xff] %vm333_vm0, %v10077_v1  ;;  %v3207_v52 = vld [vmem:[#allocation2 + $0x31] sm:$0xff]  ;;  %2598 = vst.msk [vmem:[#allocation3 + $0x60] sm:$0xff] %vm333_vm0, %v10084_v36 }
 0x2dc   : > { %3239 = vst.msk [vmem:[#allocation3 + $0x38] sm:$0xff] %vm333_vm0, %v3207_v52  ;;  %2535 = vst.msk [vmem:[#allocation2 + $0x51] sm:$0xff] %vm333_vm0, %v2503_v25  ;;  %v2502_v50 = vsel %vm2438_vm4, %v2296_v39, %v2470_v22 }
 0x2dd   : > { %2534 = vst.msk [vmem:[#allocation2 + $0x49] sm:$0xff] %vm333_vm0, %v2502_v50 }
 0x2df   : > { %v3914_v49 = vld [vmem:[#allocation3 + $0x28] sm:$0xff] }
 0x2e1   : > { %v3911_v29 = vld [vmem:[#allocation3 + $0x10] sm:$0xff]  ;;  %v8462_v26 = vpop.f32.mrf.mxu0 }
 0x2e2   : > { %8507 = vmatprep.mubr.msk.f32.mxu0 %vm333_vm0, %v3911_v29  ;;  %v2311_v53 = vadd.f32 %v8462_v26, %v10041_v57 }
 0x2e3   : > { %8508 = vmatmul.mubr.msk.f32.vlgmr.msra.gmra.mxu0 %vm333_vm0, %v3914_v49  ;;  %v2633_v27 = vld [vmem:[#allocation2 + $0x51] sm:$0xff]  ;;  %v2305_v32 = vpop.f32.mrf.mxu0 }
 0x2e4   : > { %v10094_v28 = vld [vmem:[#allocation2 + $0x52] sm:$0xff]  ;;  %2704 = vrot.lane.b32.xlu1 %v2633_v27, %s8765_s15  ;;  %vm2441_vm5 = vcmp.ge.f32.partialorder %v2311_v53, 0.0  ;;  %v2473_v33 = vmul.f32 0.2, %v2311_v53  ;;  %v2306_v40 = vadd.f32 %v10041_v57, %v2305_v32  ;;  %v2632_v41 = vld [vmem:[#allocation2 + $0x49] sm:$0xff] }
 0x2e5   : > { %v3210_v31 = vld [vmem:[#allocation2 + $0x51] sm:$0xff]  ;;  %3880 = vst.msk [vmem:[#allocation3 + $0x58] sm:$0xff] %vm333_vm0, %v10094_v28  ;;  %2702 = vrot.lane.b32.xlu0 %v2632_v41, %s8765_s15  ;;  %v10110_v43 = vld [vmem:[#allocation2 + $0x48] sm:$0xff] }
 0x2e6   : > { %3242 = vst.msk [vmem:[#allocation3 + $0x80] sm:$0xff] %vm333_vm0, %v3210_v31  ;;  %v10101_v42 = vld [vmem:[#allocation2 + $0x4a] sm:$0xff]  ;;  %v2505_v45 = vsel %vm2441_vm5, %v2311_v53, %v2473_v33  ;;  %vm2440_vm6 = vcmp.ge.f32.partialorder %v2306_v40, 0.0  ;;  %v2472_v56 = vmul.f32 0.2, %v2306_v40  ;;  %2600 = vst.msk [vmem:[#allocation3 + $0x90] sm:$0xff] %vm333_vm0, %v10110_v43 }
 0x2e7   : > { %v10103_v55 = vld [vmem:[#allocation2 + $0x50] sm:$0xff]  ;;  %3879 = vst.msk [vmem:[#allocation3 + $0x40] sm:$0xff] %vm333_vm0, %v10101_v42  ;;  %2537 = vst.msk [vmem:[#allocation2 + $0x69] sm:$0xff] %vm333_vm0, %v2505_v45 }
 0x2e8   : > { %2601 = vst.msk [vmem:[#allocation3 + $0xa8] sm:$0xff] %vm333_vm0, %v10103_v55  ;;  %v3209_v44 = vld [vmem:[#allocation2 + $0x49] sm:$0xff]  ;;  %v2504_v48 = vsel %vm2440_vm6, %v2306_v40, %v2472_v56 }
 0x2e9   : > { %3241 = vst.msk [vmem:[#allocation3 + $0x68] sm:$0xff] %vm333_vm0, %v3209_v44  ;;  %2536 = vst.msk [vmem:[#allocation2 + $0x61] sm:$0xff] %vm333_vm0, %v2504_v48 }
 0x2ec   : > { %v3920_v0 = vld [vmem:[#allocation3 + $0x58] sm:$0xff] }
 0x2ed   : > { %v8465_v54 = vpop.f32.mrf.mxu0 }
 0x2ee   : > { %v3917_v51 = vld [vmem:[#allocation3 + $0x40] sm:$0xff]  ;;  %v2321_v58 = vadd.f32 %v8465_v54, %v10041_v57 }
 0x2ef   : > { %8510 = vmatprep.mubr.msk.f32.mxu0 %vm333_vm0, %v3917_v51  ;;  %v2635_v12 = vld [vmem:[#allocation2 + $0x69] sm:$0xff]  ;;  %v2315_v59 = vpop.f32.mrf.mxu0 }
 0x2f0   : > { %8511 = vmatmul.mubr.msk.f32.gmra.mxu0 %vm333_vm0, %v3920_v0  ;;  %v10120_v15 = vld [vmem:[#allocation2 + $0x6a] sm:$0xff]  ;;  %2708 = vrot.lane.b32.xlu1 %v2635_v12, %s8765_s15  ;;  %vm2443_vm7 = vcmp.ge.f32.partialorder %v2321_v58, 0.0  ;;  %v2475_v19 = vmul.f32 0.2, %v2321_v58  ;;  %v2316_v20 = vadd.f32 %v10041_v57, %v2315_v59  ;;  %v2634_v23 = vld [vmem:[#allocation2 + $0x61] sm:$0xff] }
 0x2f1   : > { %v3212_v16 = vld [vmem:[#allocation2 + $0x69] sm:$0xff]  ;;  %3882 = vst.msk [vmem:[#allocation3 + $0x88] sm:$0xff] %vm333_vm0, %v10120_v15  ;;  %2706 = vrot.lane.b32.xlu0 %v2634_v23, %s8765_s15  ;;  %v10136_v60 = vld [vmem:[#allocation2 + $0x60] sm:$0xff] }
 0x2f2   : > { %3244 = vst.msk [vmem:[#allocation3 + $0xb0] sm:$0xff] %vm333_vm0, %v3212_v16  ;;  %v10127_v35 = vld [vmem:[#allocation2 + $0x62] sm:$0xff]  ;;  %v2507_v30 = vsel %vm2443_vm7, %v2321_v58, %v2475_v19  ;;  %vm2442_vm8 = vcmp.ge.f32.partialorder %v2316_v20, 0.0  ;;  %v2474_v47 = vmul.f32 0.2, %v2316_v20  ;;  %2602 = vst.msk [vmem:[#allocation3 + $0xc0] sm:$0xff] %vm333_vm0, %v10136_v60 }
 0x2f3   : > { %v10129_v24 = vld [vmem:[#allocation2 + $0x68] sm:$0xff]  ;;  %3881 = vst.msk [vmem:[#allocation3 + $0x70] sm:$0xff] %vm333_vm0, %v10127_v35  ;;  %2539 = vst.msk [vmem:[#allocation2 + $0x81] sm:$0xff] %vm333_vm0, %v2507_v30 }
 0x2f4   : > { %2603 = vst.msk [vmem:[#allocation3 + $0xd8] sm:$0xff] %vm333_vm0, %v10129_v24  ;;  %v3211_v2 = vld [vmem:[#allocation2 + $0x61] sm:$0xff]  ;;  %v2506_v4 = vsel %vm2442_vm8, %v2316_v20, %v2474_v47 }
 0x2f5   : > { %3243 = vst.msk [vmem:[#allocation3 + $0x98] sm:$0xff] %vm333_vm0, %v3211_v2  ;;  %2538 = vst.msk [vmem:[#allocation2 + $0x79] sm:$0xff] %vm333_vm0, %v2506_v4 }
 0x2f8   : > { %v3926_v6 = vld [vmem:[#allocation3 + $0x88] sm:$0xff] }
 0x2f9   : > { %v8468_v3 = vpop.f32.mrf.mxu0 }
 0x2fa   : > { %v3923_v34 = vld [vmem:[#allocation3 + $0x70] sm:$0xff]  ;;  %v2331_v62 = vadd.f32 %v8468_v3, %v10041_v57 }
 0x2fb   : > { %8513 = vmatprep.mubr.msk.f32.mxu0 %vm333_vm0, %v3923_v34  ;;  %v2637_v7 = vld [vmem:[#allocation2 + $0x81] sm:$0xff]  ;;  %v2325_v63 = vpop.f32.mrf.mxu0 }
 0x2fc   : > { %8514 = vmatmul.mubr.msk.f32.gmra.mxu0 %vm333_vm0, %v3926_v6  ;;  %v10146_v10 = vld [vmem:[#allocation2 + $0x82] sm:$0xff]  ;;  %2712 = vrot.lane.b32.xlu1 %v2637_v7, %s8765_s15  ;;  %vm2445_vm9 = vcmp.ge.f32.partialorder %v2331_v62, 0.0  ;;  %v2477_v13 = vmul.f32 0.2, %v2331_v62  ;;  %v2326_v37 = vadd.f32 %v10041_v57, %v2325_v63  ;;  %v2636_v17 = vld [vmem:[#allocation2 + $0x79] sm:$0xff] }
 0x2fd   : > { %v3214_v9 = vld [vmem:[#allocation2 + $0x81] sm:$0xff]  ;;  %3884 = vst.msk [vmem:[#allocation3 + $0xb8] sm:$0xff] %vm333_vm0, %v10146_v10  ;;  %2710 = vrot.lane.b32.xlu0 %v2636_v17, %s8765_s15  ;;  %v10162_v46 = vld [vmem:[#allocation2 + $0x78] sm:$0xff] }
 0x2fe   : > { %3246 = vst.msk [vmem:[#allocation3 + $0xe0] sm:$0xff] %vm333_vm0, %v3214_v9  ;;  %v10153_v38 = vld [vmem:[#allocation2 + $0x7a] sm:$0xff]  ;;  %v2509_v21 = vsel %vm2445_vm9, %v2331_v62, %v2477_v13  ;;  %vm2444_vm10 = vcmp.ge.f32.partialorder %v2326_v37, 0.0  ;;  %v2476_v52 = vmul.f32 0.2, %v2326_v37  ;;  %2604 = vst.msk [vmem:[#allocation3 + $0xf0] sm:$0xff] %vm333_vm0, %v10162_v46 }
 0x2ff   : > { %v10155_v14 = vld [vmem:[#allocation2 + $0x80] sm:$0xff]  ;;  %3883 = vst.msk [vmem:[#allocation3 + $0xa0] sm:$0xff] %vm333_vm0, %v10153_v38  ;;  %2541 = vst.msk [vmem:[#allocation2 + $0x99] sm:$0xff] %vm333_vm0, %v2509_v21 }
 0x300   : > { %2605 = vst.msk [vmem:[#allocation3 + $0x108] sm:$0xff] %vm333_vm0, %v10155_v14  ;;  %v3213_v39 = vld [vmem:[#allocation2 + $0x79] sm:$0xff]  ;;  %v2508_v25 = vsel %vm2444_vm10, %v2326_v37, %v2476_v52 }
 0x301   : > { %3245 = vst.msk [vmem:[#allocation3 + $0xc8] sm:$0xff] %vm333_vm0, %v3213_v39  ;;  %2540 = vst.msk [vmem:[#allocation2 + $0x91] sm:$0xff] %vm333_vm0, %v2508_v25 }
 0x304   : > { %v3932_v29 = vld [vmem:[#allocation3 + $0xb8] sm:$0xff] }
 0x305   : > { %v8471_v50 = vpop.f32.mrf.mxu0 }
 0x306   : > { %v3929_v22 = vld [vmem:[#allocation3 + $0xa0] sm:$0xff]  ;;  %v2341_v26 = vadd.f32 %v8471_v50, %v10041_v57  ;;  %v2639_v49 = vld [vmem:[#allocation2 + $0x99] sm:$0xff] }
 0x307   : > { %8516 = vmatprep.mubr.msk.f32.mxu0 %vm333_vm0, %v3929_v22  ;;  %v10172_v53 = vld [vmem:[#allocation2 + $0x9a] sm:$0xff]  ;;  %2716 = vrot.lane.b32.xlu1 %v2639_v49, %s8765_s15  ;;  %v2335_v27 = vpop.f32.mrf.mxu0 }
 0x308   : > { %8517 = vmatmul.mubr.msk.f32.gmra.mxu0 %vm333_vm0, %v3932_v29  ;;  %3886 = vst.msk [vmem:[#allocation3 + $0xe8] sm:$0xff] %vm333_vm0, %v10172_v53  ;;  %v3216_v31 = vld [vmem:[#allocation2 + $0x99] sm:$0xff]  ;;  %vm2447_vm11 = vcmp.ge.f32.partialorder %v2341_v26, 0.0  ;;  %v2479_v32 = vmul.f32 0.2, %v2341_v26  ;;  %v2336_v33 = vadd.f32 %v10041_v57, %v2335_v27  ;;  %v2638_v40 = vld [vmem:[#allocation2 + $0x91] sm:$0xff] }
 0x309   : > { %v10178_v41 = vld [vmem:[#allocation2 + $0x92] sm:$0xff]  ;;  %3248 = vst.msk [vmem:[#allocation3 + $0x110] sm:$0xff] %vm333_vm0, %v3216_v31  ;;  %2714 = vrot.lane.b32.xlu0 %v2638_v40, %s8765_s15 }
 0x30a   : > { %v10180_v44 = vld [vmem:[#allocation2 + $0x98] sm:$0xff]  ;;  %3885 = vst.msk [vmem:[#allocation3 + $0xd0] sm:$0xff] %vm333_vm0, %v10178_v41  ;;  %v10188_v45 = vld [vmem:[#allocation2 + $0x90] sm:$0xff]  ;;  %v2511_v48 = vsel %vm2447_vm11, %v2341_v26, %v2479_v32  ;;  %vm2446_vm12 = vcmp.ge.f32.partialorder %v2336_v33, 0.0  ;;  %v2478_v51 = vmul.f32 0.2, %v2336_v33 }
 0x30b   : > { %2607 = vst.msk [vmem:[#allocation3 + $0x138] sm:$0xff] %vm333_vm0, %v10180_v44  ;;  %v3215_v56 = vld [vmem:[#allocation2 + $0x91] sm:$0xff]  ;;  %2606 = vst.msk [vmem:[#allocation3 + $0x120] sm:$0xff] %vm333_vm0, %v10188_v45 }
 0x30c   : > { %3247 = vst.msk [vmem:[#allocation3 + $0xf8] sm:$0xff] %vm333_vm0, %v3215_v56  ;;  %2543 = vst.msk [vmem:[#allocation2 + $0xb1] sm:$0xff] %vm333_vm0, %v2511_v48  ;;  %v2510_v54 = vsel %vm2446_vm12, %v2336_v33, %v2478_v51 }
 0x30d   : > { %2542 = vst.msk [vmem:[#allocation2 + $0xa9] sm:$0xff] %vm333_vm0, %v2510_v54 }
 0x30f   : > { %v3938_v12 = vld [vmem:[#allocation3 + $0xe8] sm:$0xff] }
 0x311   : > { %v3935_v0 = vld [vmem:[#allocation3 + $0xd0] sm:$0xff]  ;;  %v8474_v58 = vpop.f32.mrf.mxu0 }
 0x312   : > { %8519 = vmatprep.mubr.msk.f32.mxu0 %vm333_vm0, %v3935_v0  ;;  %v2351_v16 = vadd.f32 %v8474_v58, %v10041_v57 }
 0x313   : > { %8520 = vmatmul.mubr.msk.f32.gmra.mxu0 %vm333_vm0, %v3938_v12  ;;  %v2641_v59 = vld [vmem:[#allocation2 + $0xb1] sm:$0xff]  ;;  %v2345_v23 = vpop.f32.mrf.mxu0 }
 0x314   : > { %v3856_v19 = vld [vmem:[#allocation2 + $0xb2] sm:$0xff]  ;;  %2720 = vrot.lane.b32.xlu1 %v2641_v59, %s8765_s15  ;;  %vm2449_vm14 = vcmp.ge.f32.partialorder %v2351_v16, 0.0  ;;  %v2481_v2 = vmul.f32 0.2, %v2351_v16  ;;  %v2346_v30 = vadd.f32 %v10041_v57, %v2345_v23  ;;  %v10205_v47 = vld [vmem:[#allocation2 + $0xa9] sm:$0xff] }
 0x315   : > { %v10198_v20 = vld [vmem:[#allocation2 + $0xb1] sm:$0xff]  ;;  %3888 = vst.msk [vmem:[#allocation3 + $0x118] sm:$0xff] %vm333_vm0, %v3856_v19  ;;  %2718 = vrot.lane.b32.xlu0 %v10205_v47, %s8765_s15  ;;  %v10214_v3 = vld [vmem:[#allocation2 + $0xa8] sm:$0xff] }
 0x316   : > { %3250 = vst.msk [vmem:[#allocation3 + $0x140] sm:$0xff] %vm333_vm0, %v10198_v20  ;;  %v3855_v4 = vld [vmem:[#allocation2 + $0xaa] sm:$0xff]  ;;  %v2513_v62 = vsel %vm2449_vm14, %v2351_v16, %v2481_v2  ;;  %vm2448_vm15 = vcmp.ge.f32.partialorder %v2346_v30, 0.0  ;;  %v2480_v7 = vmul.f32 0.2, %v2346_v30  ;;  %2608 = vst.msk [vmem:[#allocation3 + $0x150] sm:$0xff] %vm333_vm0, %v10214_v3 }
 0x317   : > { %v10207_v34 = vld [vmem:[#allocation2 + $0xb0] sm:$0xff]  ;;  %3887 = vst.msk [vmem:[#allocation3 + $0x100] sm:$0xff] %vm333_vm0, %v3855_v4  ;;  %2545 = vst.msk [vmem:[#allocation2 + $0xc9] sm:$0xff] %vm333_vm0, %v2513_v62 }
 0x318   : > { %2609 = vst.msk [vmem:[#allocation3 + $0x168] sm:$0xff] %vm333_vm0, %v10207_v34  ;;  %v3217_v6 = vld [vmem:[#allocation2 + $0xa9] sm:$0xff]  ;;  %v2512_v9 = vsel %vm2448_vm15, %v2346_v30, %v2480_v7 }
 0x319   : > { %3249 = vst.msk [vmem:[#allocation3 + $0x128] sm:$0xff] %vm333_vm0, %v3217_v6  ;;  %2544 = vst.msk [vmem:[#allocation2 + $0xc1] sm:$0xff] %vm333_vm0, %v2512_v9 }
 0x31c   : > { %v3944_v37 = vld [vmem:[#allocation3 + $0x118] sm:$0xff] }
 0x31d   : > { %v8477_v13 = vpop.f32.mrf.mxu0 }
 0x31e   : > { %v3941_v63 = vld [vmem:[#allocation3 + $0x100] sm:$0xff]  ;;  %v2361_v17 = vadd.f32 %v8477_v13, %v10041_v57 }
 0x31f   : > { %8522 = vmatprep.mubr.msk.f32.mxu0 %vm333_vm0, %v3941_v63  ;;  %v2643_v39 = vld [vmem:[#allocation2 + $0xc9] sm:$0xff]  ;;  %v2355_v25 = vpop.f32.mrf.mxu0 }
 0x320   : > { %8523 = vmatmul.mubr.msk.f32.gmra.mxu0 %vm333_vm0, %v3944_v37  ;;  %v3858_v21 = vld [vmem:[#allocation2 + $0xca] sm:$0xff]  ;;  %2724 = vrot.lane.b32.xlu1 %v2643_v39, %s8765_s15  ;;  %vm2451_vm1 = vcmp.ge.f32.partialorder %v2361_v17, 0.0  ;;  %v2483_v22 = vmul.f32 0.2, %v2361_v17  ;;  %v2356_v50 = vadd.f32 %v10041_v57, %v2355_v25  ;;  %v2642_v29 = vld [vmem:[#allocation2 + $0xc1] sm:$0xff] }
 0x321   : > { %v10224_v52 = vld [vmem:[#allocation2 + $0xc9] sm:$0xff]  ;;  %3890 = vst.msk [vmem:[#allocation3 + $0x148] sm:$0xff] %vm333_vm0, %v3858_v21  ;;  %2722 = vrot.lane.b32.xlu0 %v2642_v29, %s8765_s15  ;;  %v10237_v27 = vld [vmem:[#allocation2 + $0xc0] sm:$0xff] }
 0x322   : > { %3252 = vst.msk [vmem:[#allocation3 + $0x170] sm:$0xff] %vm333_vm0, %v10224_v52  ;;  %v3857_v26 = vld [vmem:[#allocation2 + $0xc2] sm:$0xff]  ;;  %v2515_v32 = vsel %vm2451_vm1, %v2361_v17, %v2483_v22  ;;  %vm2450_vm2 = vcmp.ge.f32.partialorder %v2356_v50, 0.0  ;;  %v2482_v33 = vmul.f32 0.2, %v2356_v50  ;;  %2610 = vst.msk [vmem:[#allocation3 + $0x180] sm:$0xff] %vm333_vm0, %v10237_v27 }
 0x323   : > { %v10231_v49 = vld [vmem:[#allocation2 + $0xc8] sm:$0xff]  ;;  %3889 = vst.msk [vmem:[#allocation3 + $0x130] sm:$0xff] %vm333_vm0, %v3857_v26  ;;  %2547 = vst.msk [vmem:[#allocation2 + $0xe1] sm:$0xff] %vm333_vm0, %v2515_v32 }
 0x324   : > { %2611 = vst.msk [vmem:[#allocation3 + $0x198] sm:$0xff] %vm333_vm0, %v10231_v49  ;;  %v10239_v31 = vld [vmem:[#allocation2 + $0xc1] sm:$0xff]  ;;  %v2514_v40 = vsel %vm2450_vm2, %v2356_v50, %v2482_v33 }
 0x325   : > { %3251 = vst.msk [vmem:[#allocation3 + $0x158] sm:$0xff] %vm333_vm0, %v10239_v31  ;;  %2546 = vst.msk [vmem:[#allocation2 + $0xd9] sm:$0xff] %vm333_vm0, %v2514_v40 }
 0x328   : > { %v3950_v51 = vld [vmem:[#allocation3 + $0x148] sm:$0xff] }
 0x329   : > { %v8480_v48 = vpop.f32.mrf.mxu0 }
 0x32a   : > { %v3947_v56 = vld [vmem:[#allocation3 + $0x130] sm:$0xff]  ;;  %v2371_v54 = vadd.f32 %v8480_v48, %v10041_v57 }
 0x32b   : > { %8525 = vmatprep.mubr.msk.f32.mxu0 %vm333_vm0, %v3947_v56  ;;  %v2645_v0 = vld [vmem:[#allocation2 + $0xe1] sm:$0xff]  ;;  %v2365_v16 = vpop.f32.mrf.mxu0 }
 0x32c   : > { %8526 = vmatmul.mubr.msk.f32.gmra.mxu0 %vm333_vm0, %v3950_v51  ;;  %v3860_v58 = vld [vmem:[#allocation2 + $0xe2] sm:$0xff]  ;;  %2728 = vrot.lane.b32.xlu1 %v2645_v0, %s8765_s15  ;;  %vm2453_vm3 = vcmp.ge.f32.partialorder %v2371_v54, 0.0  ;;  %v2485_v59 = vmul.f32 0.2, %v2371_v54  ;;  %v2366_v19 = vadd.f32 %v10041_v57, %v2365_v16  ;;  %v2644_v23 = vld [vmem:[#allocation2 + $0xd9] sm:$0xff] }
 0x32d   : > { %v10250_v12 = vld [vmem:[#allocation2 + $0xe1] sm:$0xff]  ;;  %3892 = vst.msk [vmem:[#allocation3 + $0x178] sm:$0xff] %vm333_vm0, %v3860_v58  ;;  %2726 = vrot.lane.b32.xlu0 %v2644_v23, %s8765_s15  ;;  %v10263_v4 = vld [vmem:[#allocation2 + $0xd8] sm:$0xff] }
 0x32e   : > { %3254 = vst.msk [vmem:[#allocation3 + $0x1a0] sm:$0xff] %vm333_vm0, %v10250_v12  ;;  %v3859_v2 = vld [vmem:[#allocation2 + $0xda] sm:$0xff]  ;;  %v2517_v62 = vsel %vm2453_vm3, %v2371_v54, %v2485_v59  ;;  %vm2452_vm4 = vcmp.ge.f32.partialorder %v2366_v19, 0.0  ;;  %v2484_v7 = vmul.f32 0.2, %v2366_v19  ;;  %2612 = vst.msk [vmem:[#allocation3 + $0x1b0] sm:$0xff] %vm333_vm0, %v10263_v4 }
 0x32f   : > { %v10257_v30 = vld [vmem:[#allocation2 + $0xe0] sm:$0xff]  ;;  %3891 = vst.msk [vmem:[#allocation3 + $0x160] sm:$0xff] %vm333_vm0, %v3859_v2  ;;  %2549 = vst.msk [vmem:[#allocation2 + $0xf9] sm:$0xff] %vm333_vm0, %v2517_v62  ;;  %vm2979_vm3 = vcmask 785920  }
 0x330   : > { %2613 = vst.msk [vmem:[#allocation3 + $0x1c8] sm:$0xff] %vm333_vm0, %v10257_v30  ;;  %v10265_v6 = vld [vmem:[#allocation2 + $0xd9] sm:$0xff]  ;;  %v2516_v9 = vsel %vm2452_vm4, %v2366_v19, %v2484_v7  ;;  %vm3172_vm4 = vcmask 1048320  }
 0x331   : > { %3253 = vst.msk [vmem:[#allocation3 + $0x188] sm:$0xff] %vm333_vm0, %v10265_v6  ;;  %2548 = vst.msk [vmem:[#allocation2 + $0xf1] sm:$0xff] %vm333_vm0, %v2516_v9 }
 0x334   : > { %v3956_v37 = vld [vmem:[#allocation3 + $0x178] sm:$0xff] }
 0x335   : > { %v8483_v13 = vpop.f32.mrf.mxu0 }
 0x336   : > { %v3953_v63 = vld [vmem:[#allocation3 + $0x160] sm:$0xff]  ;;  %v2381_v17 = vadd.f32 %v8483_v13, %v10041_v57  ;;  %v2647_v39 = vld [vmem:[#allocation2 + $0xf9] sm:$0xff] }
 0x337   : > { %8528 = vmatprep.mubr.msk.f32.mxu0 %vm333_vm0, %v3953_v63  ;;  %v3862_v21 = vld [vmem:[#allocation2 + $0xfa] sm:$0xff]  ;;  %2732 = vrot.lane.b32.xlu1 %v2647_v39, %s8765_s15  ;;  %v2375_v22 = vpop.f32.mrf.mxu0 }
 0x338   : > { %8529 = vmatmul.mubr.msk.f32.gmra.mxu0 %vm333_vm0, %v3956_v37  ;;  %v10276_v25 = vld [vmem:[#allocation2 + $0xf9] sm:$0xff]  ;;  %3894 = vst.msk [vmem:[#allocation3 + $0x1a8] sm:$0xff] %vm333_vm0, %v3862_v21  ;;  %vm2455_vm5 = vcmp.ge.f32.partialorder %v2381_v17, 0.0  ;;  %v2487_v50 = vmul.f32 0.2, %v2381_v17  ;;  %v2376_v29 = vadd.f32 %v10041_v57, %v2375_v22  ;;  %v2646_v26 = vld [vmem:[#allocation2 + $0xf1] sm:$0xff] }
 0x339   : > { %3256 = vst.msk [vmem:[#allocation3 + $0x1d0] sm:$0xff] %vm333_vm0, %v10276_v25  ;;  %v3861_v32 = vld [vmem:[#allocation2 + $0xf2] sm:$0xff]  ;;  %2730 = vrot.lane.b32.xlu0 %v2646_v26, %s8765_s15 }
 0x33a   : > { %v10283_v33 = vld [vmem:[#allocation2 + $0xf8] sm:$0xff]  ;;  %3893 = vst.msk [vmem:[#allocation3 + $0x190] sm:$0xff] %vm333_vm0, %v3861_v32  ;;  %v10289_v40 = vld [vmem:[#allocation2 + $0xf0] sm:$0xff]  ;;  %v2519_v48 = vsel %vm2455_vm5, %v2381_v17, %v2487_v50  ;;  %vm2454_vm6 = vcmp.ge.f32.partialorder %v2376_v29, 0.0  ;;  %v2486_v51 = vmul.f32 0.2, %v2376_v29 }
 0x33b   : > { %2615 = vst.msk [vmem:[#allocation3 + $0x1f8] sm:$0xff] %vm333_vm0, %v10283_v33  ;;  %v10291_v56 = vld [vmem:[#allocation2 + $0xf1] sm:$0xff]  ;;  %2614 = vst.msk [vmem:[#allocation3 + $0x1e0] sm:$0xff] %vm333_vm0, %v10289_v40 }
 0x33c   : > { %3255 = vst.msk [vmem:[#allocation3 + $0x1b8] sm:$0xff] %vm333_vm0, %v10291_v56  ;;  %2551 = vst.msk [vmem:[#allocation2 + $0x111] sm:$0xff] %vm333_vm0, %v2519_v48  ;;  %v2518_v54 = vsel %vm2454_vm6, %v2376_v29, %v2486_v51 }
 0x33d   : > { %2550 = vst.msk [vmem:[#allocation2 + $0x109] sm:$0xff] %vm333_vm0, %v2518_v54  ;;  %v2697_v0 = vpop.permute.xlu1 %2696 }
 0x33e   : > { %2790 = vst.msk [vmem:[#allocation3 + $0x48] sm:$0xff] %vm2786_vm13, %v2697_v0 }
 0x33f   : > { %v2695_v58 = vpop.permute.xlu0 %2694  ;;  %v3962_v19 = vld [vmem:[#allocation3 + $0x1a8] sm:$0xff] }
 0x340   : > { %2789 = vst.msk [vmem:[#allocation3 + $0x30] sm:$0xff] %vm2786_vm13, %v2695_v58 }
 0x341   : > { %v3959_v16 = vld [vmem:[#allocation3 + $0x190] sm:$0xff]  ;;  %v8486_v59 = vpop.f32.mrf.mxu0 }
 0x342   : > { %8531 = vmatprep.mubr.msk.f32.mxu0 %vm333_vm0, %v3959_v16  ;;  %v2391_v23 = vadd.f32 %v8486_v59, %v10041_v57 }
 0x343   : > { %8532 = vmatmul.mubr.msk.f32.gmra.mxu0 %vm333_vm0, %v3962_v19  ;;  %v2649_v2 = vld [vmem:[#allocation2 + $0x111] sm:$0xff]  ;;  %v2385_v9 = vpop.f32.mrf.mxu0 }
 0x344   : > { %v3864_v62 = vld [vmem:[#allocation2 + $0x112] sm:$0xff]  ;;  %2736 = vrot.lane.b32.xlu1 %v2649_v2, %s8765_s15  ;;  %vm2457_vm7 = vcmp.ge.f32.partialorder %v2391_v23, 0.0  ;;  %v2489_v63 = vmul.f32 0.2, %v2391_v23  ;;  %v2386_v13 = vadd.f32 %v10041_v57, %v2385_v9  ;;  %v2648_v37 = vld [vmem:[#allocation2 + $0x109] sm:$0xff] }
 0x345   : > { %v10304_v7 = vld [vmem:[#allocation2 + $0x111] sm:$0xff]  ;;  %3896 = vst.msk [vmem:[#allocation3 + $0x1d8] sm:$0xff] %vm333_vm0, %v3864_v62  ;;  %2734 = vrot.lane.b32.xlu0 %v2648_v37, %s8765_s15  ;;  %v10317_v21 = vld [vmem:[#allocation2 + $0x108] sm:$0xff] }
 0x346   : > { %3258 = vst.msk [vmem:[#allocation3 + $0x200] sm:$0xff] %vm333_vm0, %v10304_v7  ;;  %v3863_v17 = vld [vmem:[#allocation2 + $0x10a] sm:$0xff]  ;;  %v2521_v50 = vsel %vm2457_vm7, %v2391_v23, %v2489_v63  ;;  %vm2456_vm8 = vcmp.ge.f32.partialorder %v2386_v13, 0.0  ;;  %v2488_v29 = vmul.f32 0.2, %v2386_v13  ;;  %2616 = vst.msk [vmem:[#allocation3 + $0x210] sm:$0xff] %vm333_vm0, %v10317_v21 }
 0x347   : > { %v10311_v39 = vld [vmem:[#allocation2 + $0x110] sm:$0xff]  ;;  %3895 = vst.msk [vmem:[#allocation3 + $0x1c0] sm:$0xff] %vm333_vm0, %v3863_v17  ;;  %2553 = vst.msk [vmem:[#allocation2 + $0x129] sm:$0xff] %vm333_vm0, %v2521_v50 }
 0x348   : > { %2617 = vst.msk [vmem:[#allocation3 + $0x228] sm:$0xff] %vm333_vm0, %v10311_v39  ;;  %v10319_v22 = vld [vmem:[#allocation2 + $0x109] sm:$0xff]  ;;  %v2520_v26 = vsel %vm2456_vm8, %v2386_v13, %v2488_v29 }
 0x349   : > { %3257 = vst.msk [vmem:[#allocation3 + $0x1e8] sm:$0xff] %vm333_vm0, %v10319_v22  ;;  %2552 = vst.msk [vmem:[#allocation2 + $0x121] sm:$0xff] %vm333_vm0, %v2520_v26  ;;  %v2701_v32 = vpop.permute.xlu1 %2700 }
 0x34a   : > { %2792 = vst.msk [vmem:[#allocation3 + $0x78] sm:$0xff] %vm2786_vm13, %v2701_v32 }
 0x34b   : > { %v2699_v48 = vpop.permute.xlu0 %2698 }
 0x34c   : > { %2791 = vst.msk [vmem:[#allocation3 + $0x60] sm:$0xff] %vm2786_vm13, %v2699_v48  ;;  %v3968_v0 = vld [vmem:[#allocation3 + $0x1d8] sm:$0xff]  ;;  %v4020_v48 = vld [vmem:[%s13179_s3 + $0x78] sm:$0xff] }
 0x34d   : > { %v8489_v54 = vpop.f32.mrf.mxu0  ;;  %4145 = vmatpush1.msra.mxu1 %v4020_v48 }
 0x34e   : > { %v3965_v51 = vld [vmem:[#allocation3 + $0x1c0] sm:$0xff]  ;;  %v2401_v58 = vadd.f32 %v8489_v54, %v10041_v57  ;;  %4146 = vmatprep.subr.mxu1 %v13285_v61 }
 0x34f   : > { %8534 = vmatprep.mubr.msk.f32.mxu0 %vm333_vm0, %v3965_v51  ;;  %v2651_v16 = vld [vmem:[#allocation2 + $0x129] sm:$0xff]  ;;  %v2395_v23 = vpop.f32.mrf.mxu0 }
 0x350   : > { %8535 = vmatmul.mubr.msk.f32.gmra.mxu0 %vm333_vm0, %v3968_v0  ;;  %v3866_v59 = vld [vmem:[#allocation2 + $0x12a] sm:$0xff]  ;;  %2740 = vrot.lane.b32.xlu1 %v2651_v16, %s8765_s15  ;;  %vm2459_vm9 = vcmp.ge.f32.partialorder %v2401_v58, 0.0  ;;  %v2491_v2 = vmul.f32 0.2, %v2401_v58  ;;  %v2396_v62 = vadd.f32 %v10041_v57, %v2395_v23  ;;  %v2650_v9 = vld [vmem:[#allocation2 + $0x121] sm:$0xff] }
 0x351   : > { %v10332_v19 = vld [vmem:[#allocation2 + $0x129] sm:$0xff]  ;;  %3898 = vst.msk [vmem:[#allocation3 + $0x208] sm:$0xff] %vm333_vm0, %v3866_v59  ;;  %2738 = vrot.lane.b32.xlu0 %v2650_v9, %s8765_s15  ;;  %v10345_v37 = vld [vmem:[#allocation2 + $0x120] sm:$0xff] }
 0x352   : > { %3260 = vst.msk [vmem:[#allocation3 + $0x230] sm:$0xff] %vm333_vm0, %v10332_v19  ;;  %v3865_v63 = vld [vmem:[#allocation2 + $0x122] sm:$0xff]  ;;  %v2523_v50 = vsel %vm2459_vm9, %v2401_v58, %v2491_v2  ;;  %vm2458_vm10 = vcmp.ge.f32.partialorder %v2396_v62, 0.0  ;;  %v2490_v29 = vmul.f32 0.2, %v2396_v62  ;;  %2618 = vst.msk [vmem:[#allocation3 + $0x240] sm:$0xff] %vm333_vm0, %v10345_v37 }
 0x353   : > { %v10339_v13 = vld [vmem:[#allocation2 + $0x128] sm:$0xff]  ;;  %3897 = vst.msk [vmem:[#allocation3 + $0x1f0] sm:$0xff] %vm333_vm0, %v3865_v63  ;;  %2555 = vst.msk [vmem:[#allocation2 + $0x141] sm:$0xff] %vm333_vm0, %v2523_v50  ;;  %v4019_v54 = vld [vmem:[%s13179_s3 + $0x70] sm:$0xff] }
 0x354   : > { %2619 = vst.msk [vmem:[#allocation3 + $0x258] sm:$0xff] %vm333_vm0, %v10339_v13  ;;  %v10347_v17 = vld [vmem:[#allocation2 + $0x121] sm:$0xff]  ;;  %v2522_v26 = vsel %vm2458_vm10, %v2396_v62, %v2490_v29  ;;  %4147 = vmatpush1.msra.mxu1 %v4019_v54 }
 0x355   : > { %3259 = vst.msk [vmem:[#allocation3 + $0x218] sm:$0xff] %vm333_vm0, %v10347_v17  ;;  %2554 = vst.msk [vmem:[#allocation2 + $0x139] sm:$0xff] %vm333_vm0, %v2522_v26  ;;  %4148 = vmatprep.subr.mxu1 %v13285_v61  ;;  %v4018_v62 = vld [vmem:[%s13179_s3 + $0x68] sm:$0xff]  ;;  %v4017_v54 = vld [vmem:[%s13179_s3 + $0x60] sm:$0xff] }
 0x356   : > { %v2705_v32 = vpop.permute.xlu1 %2704  ;;  %4149 = vmatpush1.msra.mxu1 %v4018_v62 }
 0x357   : > { %2794 = vst.msk [vmem:[#allocation3 + $0xa8] sm:$0xff] %vm2786_vm13, %v2705_v32  ;;  %v2703_v51 = vpop.permute.xlu0 %2702  ;;  %4150 = vmatprep.subr.mxu1 %v13285_v61 }
 0x358   : > { %2793 = vst.msk [vmem:[#allocation3 + $0x90] sm:$0xff] %vm2786_vm13, %v2703_v51  ;;  %v3974_v16 = vld [vmem:[#allocation3 + $0x208] sm:$0xff]  ;;  %4151 = vmatpush1.msra.mxu1 %v4017_v54 }
 0x359   : > { %v8492_v58 = vpop.f32.mrf.mxu0  ;;  %4152 = vmatprep.subr.mxu1 %v13285_v61 }
 0x35a   : > { %v3971_v0 = vld [vmem:[#allocation3 + $0x1f0] sm:$0xff]  ;;  %v2411_v59 = vadd.f32 %v8492_v58, %v10041_v57 }
 0x35b   : > { %8537 = vmatprep.mubr.msk.f32.mxu0 %vm333_vm0, %v3971_v0  ;;  %v2653_v23 = vld [vmem:[#allocation2 + $0x141] sm:$0xff]  ;;  %v2405_v9 = vpop.f32.mrf.mxu0  ;;  %v4016_v0 = vld [vmem:[%s13179_s3 + $0x58] sm:$0xff] }
 0x35c   : > { %8538 = vmatmul.mubr.msk.f32.gmra.mxu0 %vm333_vm0, %v3974_v16  ;;  %v3868_v2 = vld [vmem:[#allocation2 + $0x142] sm:$0xff]  ;;  %2744 = vrot.lane.b32.xlu1 %v2653_v23, %s8765_s15  ;;  %vm2461_vm11 = vcmp.ge.f32.partialorder %v2411_v59, 0.0  ;;  %v2493_v50 = vmul.f32 0.2, %v2411_v59  ;;  %v2406_v29 = vadd.f32 %v10041_v57, %v2405_v9  ;;  %v2652_v26 = vld [vmem:[#allocation2 + $0x139] sm:$0xff] }
 0x35d   : > { %3900 = vst.msk [vmem:[#allocation3 + $0x238] sm:$0xff] %vm333_vm0, %v3868_v2  ;;  %v10373_v63 = vld [vmem:[#allocation2 + $0x141] sm:$0xff]  ;;  %2742 = vrot.lane.b32.xlu0 %v2652_v26, %s8765_s15  ;;  %v10385_v51 = vld [vmem:[#allocation2 + $0x138] sm:$0xff]  ;;  %v4015_v2 = vld [vmem:[%s13179_s3 + $0x50] sm:$0xff]  ;;  %4153 = vmatpush1.msra.mxu1 %v4016_v0 }
 0x35e   : > { %v3867_v32 = vld [vmem:[#allocation2 + $0x13a] sm:$0xff]  ;;  %3262 = vst.msk [vmem:[#allocation3 + $0x260] sm:$0xff] %vm333_vm0, %v10373_v63  ;;  %v2525_v58 = vsel %vm2461_vm11, %v2411_v59, %v2493_v50  ;;  %vm2460_vm12 = vcmp.ge.f32.partialorder %v2406_v29, 0.0  ;;  %v2492_v16 = vmul.f32 0.2, %v2406_v29  ;;  %2620 = vst.msk [vmem:[#allocation3 + $0x270] sm:$0xff] %vm333_vm0, %v10385_v51  ;;  %4154 = vmatprep.subr.mxu1 %v13285_v61 }
 0x35f   : > { %v10376_v48 = vld [vmem:[#allocation2 + $0x140] sm:$0xff]  ;;  %3899 = vst.msk [vmem:[#allocation3 + $0x220] sm:$0xff] %vm333_vm0, %v3867_v32  ;;  %2557 = vst.msk [vmem:[#allocation2 + $0x159] sm:$0xff] %vm333_vm0, %v2525_v58  ;;  %v4014_v9 = vld [vmem:[%s13179_s3 + $0x48] sm:$0xff]  ;;  %4155 = vmatpush1.msra.mxu1 %v4015_v2 }
 0x360   : > { %2621 = vst.msk [vmem:[#allocation3 + $0x288] sm:$0xff] %vm333_vm0, %v10376_v48  ;;  %v10395_v23 = vld [vmem:[#allocation2 + $0x139] sm:$0xff]  ;;  %v2524_v59 = vsel %vm2460_vm12, %v2406_v29, %v2492_v16  ;;  %4156 = vmatprep.subr.mxu1 %v13285_v61 }
 0x361   : > { %3261 = vst.msk [vmem:[#allocation3 + $0x248] sm:$0xff] %vm333_vm0, %v10395_v23  ;;  %2556 = vst.msk [vmem:[#allocation2 + $0x151] sm:$0xff] %vm333_vm0, %v2524_v59  ;;  %v4013_v29 = vld [vmem:[%s13179_s3 + $0x40] sm:$0xff]  ;;  %4157 = vmatpush1.msra.mxu1 %v4014_v9  ;;  %v4012_v2 = vld [vmem:[%s13179_s3 + $0x38] sm:$0xff] }
 0x362   : > { %v2709_v62 = vpop.permute.xlu1 %2708  ;;  %4158 = vmatprep.subr.mxu1 %v13285_v61 }
 0x363   : > { %2796 = vst.msk [vmem:[#allocation3 + $0xd8] sm:$0xff] %vm2786_vm13, %v2709_v62  ;;  %v2707_v50 = vpop.permute.xlu0 %2706  ;;  %4159 = vmatpush1.msra.mxu1 %v4013_v29 }
 0x364   : > { %2795 = vst.msk [vmem:[#allocation3 + $0xc0] sm:$0xff] %vm2786_vm13, %v2707_v50  ;;  %v3980_v54 = vld [vmem:[#allocation3 + $0x238] sm:$0xff]  ;;  %4160 = vmatprep.subr.mxu1 %v13285_v61 }
 0x365   : > { %v8495_v32 = vpop.f32.mrf.mxu0  ;;  %4161 = vmatpush1.msra.mxu1 %v4012_v2 }
 0x366   : > { %v3977_v26 = vld [vmem:[#allocation3 + $0x220] sm:$0xff]  ;;  %v2421_v0 = vadd.f32 %v8495_v32, %v10041_v57  ;;  %v2655_v58 = vld [vmem:[#allocation2 + $0x159] sm:$0xff]  ;;  %4162 = vmatprep.subr.mxu1 %v13285_v61 }
 0x367   : > { %8540 = vmatprep.mubr.msk.f32.mxu0 %vm333_vm0, %v3977_v26  ;;  %v3870_v16 = vld [vmem:[#allocation2 + $0x15a] sm:$0xff]  ;;  %2748 = vrot.lane.b32.xlu1 %v2655_v58, %s8765_s15  ;;  %v2415_v59 = vpop.f32.mrf.mxu0 }
 0x368   : > { %8541 = vmatmul.mubr.msk.f32.gmra.mxu0 %vm333_vm0, %v3980_v54  ;;  %3902 = vst.msk [vmem:[#allocation3 + $0x268] sm:$0xff] %vm333_vm0, %v3870_v16  ;;  %v10425_v62 = vld [vmem:[#allocation2 + $0x159] sm:$0xff]  ;;  %vm2463_vm14 = vcmp.ge.f32.partialorder %v2421_v0, 0.0  ;;  %v2495_v9 = vmul.f32 0.2, %v2421_v0  ;;  %v2416_v50 = vadd.f32 %v10041_v57, %v2415_v59  ;;  %v2654_v26 = vld [vmem:[#allocation2 + $0x151] sm:$0xff] }
 0x369   : > { %13286 = vst [vmem:[#allocation8_spill] sm:$0xff] %v10425_v62  ;;  %v3869_v32 = vld [vmem:[#allocation2 + $0x152] sm:$0xff]  ;;  %3264 = vst.msk [vmem:[#allocation3 + $0x290] sm:$0xff] %vm333_vm0, %v10425_v62  ;;  %2746 = vrot.lane.b32.xlu0 %v2654_v26, %s8765_s15  ;;  %v4010_v59 = vld [vmem:[%s13179_s3 + $0x28] sm:$0xff] }
 0x36a   : > { %v10428_v29 = vld [vmem:[#allocation2 + $0x158] sm:$0xff]  ;;  %3901 = vst.msk [vmem:[#allocation3 + $0x250] sm:$0xff] %vm333_vm0, %v3869_v32  ;;  %v10436_v54 = vld [vmem:[#allocation2 + $0x150] sm:$0xff]  ;;  %v2527_v16 = vsel %vm2463_vm14, %v2421_v0, %v2495_v9  ;;  %vm2462_vm15 = vcmp.ge.f32.partialorder %v2416_v50, 0.0  ;;  %v2494_v2 = vmul.f32 0.2, %v2416_v50 }
 0x36b   : > { %13287 = vst [vmem:[#allocation9_spill] sm:$0xff] %v10428_v29  ;;  %2623 = vst.msk [vmem:[#allocation3 + $0x2b8] sm:$0xff] %vm333_vm0, %v10428_v29  ;;  %v4011_v57 = vld [vmem:[%s13179_s3 + $0x30] sm:$0xff]  ;;  %v4009_v0 = vld [vmem:[%s13179_s3 + $0x20] sm:$0xff] }
 0x36c   : > { %13288 = vst [vmem:[#allocation10_spill] sm:$0xff] %v10436_v54  ;;  %v10442_v58 = vld [vmem:[#allocation2 + $0x151] sm:$0xff]  ;;  %2622 = vst.msk [vmem:[#allocation3 + $0x2a0] sm:$0xff] %vm333_vm0, %v10436_v54  ;;  %4163 = vmatpush1.msra.mxu1 %v4011_v57  ;;  %v2526_v26 = vsel %vm2462_vm15, %v2416_v50, %v2494_v2 }
 0x36d   : > { %13289 = vst [vmem:[#allocation11_spill] sm:$0xff] %v10442_v58  ;;  %3263 = vst.msk [vmem:[#allocation3 + $0x278] sm:$0xff] %vm333_vm0, %v10442_v58  ;;  %4164 = vmatprep.subr.mxu1 %v13285_v61  ;;  %v4008_v32 = vld [vmem:[%s13179_s3 + $0x18] sm:$0xff] }
 0x36e   : > { %2559 = vst.msk [vmem:[#allocation2 + $0x171] sm:$0xff] %vm333_vm0, %v2527_v16  ;;  %4165 = vmatpush1.msra.mxu1 %v4010_v59  ;;  %2558 = vst.msk [vmem:[#allocation2 + $0x169] sm:$0xff] %vm333_vm0, %v2526_v26  ;;  %v2713_v9 = vpop.permute.xlu1 %2712  ;;  %v4007_v16 = vld [vmem:[%s13179_s3 + $0x10] sm:$0xff] }
 0x36f   : > { %4166 = vmatprep.subr.mxu1 %v13285_v61  ;;  %2798 = vst.msk [vmem:[#allocation3 + $0x108] sm:$0xff] %vm2786_vm13, %v2713_v9  ;;  %v2711_v57 = vpop.permute.xlu0 %2710  ;;  %v3986_v2 = vld [vmem:[#allocation3 + $0x268] sm:$0xff]  ;;  %v8665_v9 = vld [vmem:[%s13178_s2] ss:$0 sm:$0xff] }
 0x370   : > { %4167 = vmatpush1.msra.mxu1 %v4009_v0  ;;  %2797 = vst.msk [vmem:[#allocation3 + $0xf0] sm:$0xff] %vm2786_vm13, %v2711_v57 }
 0x371   : > { %4168 = vmatprep.subr.mxu1 %v13285_v61  ;;  %v3983_v50 = vld [vmem:[#allocation3 + $0x250] sm:$0xff]  ;;  %v8498_v59 = vpop.f32.mrf.mxu0 }
 0x372   : > { %4169 = vmatpush1.msra.mxu1 %v4008_v32  ;;  %8543 = vmatprep.mubr.msk.f32.mxu0 %vm333_vm0, %v3983_v50  ;;  %v2431_v57 = vadd.f32 %v8665_v9, %v8498_v59  ;;  %v4006_v32 = vld [vmem:[%s13179_s3 + $0x8] sm:$0xff] }
 0x373   : > { %4170 = vmatprep.subr.mxu1 %v13285_v61  ;;  %8544 = vmatmul.mubr.msk.f32.gmra.mxu0 %vm333_vm0, %v3986_v2  ;;  %v2820_v50 = vld [vmem:[#allocation2 + $0xa] sm:$0xff]  ;;  %v2425_v62 = vpop.f32.mrf.mxu0 }
 0x374   : > { %4171 = vmatpush1.msra.mxu1 %v4007_v16  ;;  %vm2465_vm1 = vcmp.ge.f32.partialorder %v2431_v57, 0.0  ;;  %v2497_v54 = vmul.f32 0.2, %v2431_v57  ;;  %v2426_v59 = vadd.f32 %v8665_v9, %v2425_v62  ;;  %v2819_v9 = vld [vmem:[#allocation2 + $0x2] sm:$0xff] }
 0x375   : > { %v2657_v26 = vld [vmem:[#allocation2 + $0x171] sm:$0xff]  ;;  %4172 = vmatprep.subr.mxu1 %v13285_v61  ;;  %v2656_v29 = vld [vmem:[#allocation2 + $0x169] sm:$0xff] }
 0x376   : > { %v3872_v0 = vld [vmem:[#allocation2 + $0x172] sm:$0xff]  ;;  %2752 = vrot.lane.b32.xlu1 %v2657_v26, %s8765_s15  ;;  %v3871_v58 = vld [vmem:[#allocation2 + $0x16a] sm:$0xff]  ;;  %4173 = vmatpush1.msra.mxu1 %v4006_v32  ;;  %v2529_v32 = vsel %vm2465_vm1, %v2431_v57, %v2497_v54  ;;  %vm2464_vm2 = vcmp.ge.f32.partialorder %v2426_v59, 0.0 }
 0x377   : > { %3904 = vst.msk [vmem:[#allocation3 + $0x298] sm:$0xff] %vm333_vm0, %v3872_v0  ;;  %v10479_v2 = vld [vmem:[#allocation2 + $0x171] sm:$0xff]  ;;  %2750 = vrot.lane.b32.xlu0 %v2656_v29, %s8765_s15  ;;  %3903 = vst.msk [vmem:[#allocation3 + $0x280] sm:$0xff] %vm333_vm0, %v3871_v58  ;;  %v10486_v26 = vld [vmem:[#allocation2 + $0x168] sm:$0xff]  ;;  %4174 = vmatprep.subr.mxu1 %v13285_v61 }
 0x378   : > { %13290 = vst [vmem:[#allocation12_spill] sm:$0xff] %v10479_v2  ;;  %v2593_v16 = vld [vmem:[#allocation2 + $0x170] sm:$0xff]  ;;  %3266 = vst.msk [vmem:[#allocation3 + $0x2c0] sm:$0xff] %vm333_vm0, %v10479_v2  ;;  %v4005_v0 = vld [vmem:[%s13179_s3] sm:$0xff]  ;;  %v2496_v2 = vmul.f32 0.2, %v2426_v59 }
 0x379   : > { %2625 = vst.msk [vmem:[#allocation3 + $0x2e8] sm:$0xff] %vm333_vm0, %v2593_v16  ;;  %v10492_v62 = vld [vmem:[#allocation2 + $0x169] sm:$0xff]  ;;  %2624 = vst.msk [vmem:[#allocation3 + $0x2d0] sm:$0xff] %vm333_vm0, %v10486_v26  ;;  %4175 = vmatpush1.msra.mxu1 %v4005_v0  ;;  %v4036_v29 = vld [vmem:[%s13179_s3 + $0xf8] sm:$0xff]  ;;  %v2717_v57 = vpop.permute.xlu1 %2716 }
 0x37a   : > { %3265 = vst.msk [vmem:[#allocation3 + $0x2a8] sm:$0xff] %vm333_vm0, %v10492_v62  ;;  %2885 = vrot.lane.b32.xlu1 %v2820_v50, %s8766_s22  ;;  %2561 = vst.msk [vmem:[#allocation2 + $0x189] sm:$0xff] %vm333_vm0, %v2529_v32  ;;  %4176 = vmatprep.subr.mxu1 %v13285_v61  ;;  %v2528_v54 = vsel %vm2464_vm2, %v2426_v59, %v2496_v2  ;;  %v4035_v58 = vld [vmem:[%s13179_s3 + $0xf0] sm:$0xff]  ;;  %v10511_v50 = vld [vmem:[#allocation2 + $0x22] sm:$0xff] }
 0x37b   : > { %4177 = vmatpush2.msra.mxu1 %v4036_v29  ;;  %2883 = vrot.lane.b32.xlu0 %v2819_v9, %s8766_s22  ;;  %2560 = vst.msk [vmem:[#allocation2 + $0x181] sm:$0xff] %vm333_vm0, %v2528_v54  ;;  %v4034_v2 = vld [vmem:[%s13179_s3 + $0xe8] sm:$0xff]  ;;  %v2715_v59 = vpop.permute.xlu0 %2714  ;;  %v2821_v0 = vld [vmem:[#allocation2 + $0x1a] sm:$0xff]  ;;  %v4031_v54 = vld [vmem:[%s13179_s3 + $0xd0] sm:$0xff] }
 0x37c   : > { %4178 = vmatprep.subr.mxu1 %v13285_v61  ;;  %2800 = vst.msk [vmem:[#allocation3 + $0x138] sm:$0xff] %vm2786_vm13, %v2717_v57  ;;  %2799 = vst.msk [vmem:[#allocation3 + $0x120] sm:$0xff] %vm2786_vm13, %v2715_v59  ;;  %v4033_v9 = vld [vmem:[%s13179_s3 + $0xe0] sm:$0xff]  ;;  %v4032_v29 = vld [vmem:[%s13179_s3 + $0xd8] sm:$0xff] }
 0x37d   : > { %4179 = vmatpush2.msra.mxu1 %v4035_v58  ;;  %v4030_v58 = vld [vmem:[%s13179_s3 + $0xc8] sm:$0xff]  ;;  %v4029_v57 = vld [vmem:[%s13179_s3 + $0xc0] sm:$0xff]  ;;  %v4028_v59 = vld [vmem:[%s13179_s3 + $0xb8] sm:$0xff] }
 0x37e   : > { %2889 = vrot.lane.b32.xlu1 %v10511_v50, %s8766_s22  ;;  %4180 = vmatprep.subr.mxu1 %v13285_v61  ;;  %v3989_v16 = vld [vmem:[#allocation3 + $0x280] sm:$0xff]  ;;  %v3992_v32 = vld [vmem:[#allocation3 + $0x298] sm:$0xff] }
 0x37f   : > { %4181 = vmatpush2.msra.mxu1 %v4034_v2  ;;  %8546 = vmatprep.mubr.msk.f32.mxu0 %vm333_vm0, %v3989_v16 }
 0x380   : > { %2887 = vrot.lane.b32.xlu0 %v2821_v0, %s8766_s22  ;;  %8547 = vmatmul.mubr.msk.f32.gmra.mxu0 %vm333_vm0, %v3992_v32  ;;  %v4026_v32 = vld [vmem:[%s13179_s3 + $0xa8] sm:$0xff] }
 0x381   : > { %4182 = vmatprep.subr.mxu1 %v13285_v61 }
 0x382   : > { %2893 = vrot.lane.b32.xlu1 %v10068_v11, %s8766_s22  ;;  %4183 = vmatpush2.msra.mxu1 %v4033_v9  ;;  %v4027_v9 = vld [vmem:[%s13179_s3 + $0xb0] sm:$0xff] }
 0x383   : > { %4184 = vmatprep.subr.mxu1 %v13285_v61 }
 0x384   : > { %2891 = vrot.lane.b32.xlu0 %v10075_v18, %s8766_s22  ;;  %4185 = vmatpush2.msra.mxu1 %v4032_v29  ;;  %v4025_v29 = vld [vmem:[%s13179_s3 + $0xa0] sm:$0xff] }
 0x385   : > { %4186 = vmatprep.subr.mxu1 %v13285_v61 }
 0x386   : > { %2897 = vrot.lane.b32.xlu1 %v10094_v28, %s8766_s22  ;;  %4187 = vmatpush2.msra.mxu1 %v4031_v54  ;;  %v2721_v2 = vpop.permute.xlu1 %2720  ;;  %v4024_v54 = vld [vmem:[%s13179_s3 + $0x98] sm:$0xff] }
 0x387   : > { %4188 = vmatprep.subr.mxu1 %v13285_v61  ;;  %2802 = vst.msk [vmem:[#allocation3 + $0x168] sm:$0xff] %vm2786_vm13, %v2721_v2  ;;  %v2719_v16 = vpop.permute.xlu0 %2718 }
 0x388   : > { %2895 = vrot.lane.b32.xlu0 %v10101_v42, %s8766_s22  ;;  %4189 = vmatpush2.msra.mxu1 %v4030_v58  ;;  %2801 = vst.msk [vmem:[#allocation3 + $0x150] sm:$0xff] %vm2786_vm13, %v2719_v16  ;;  %v4023_v58 = vld [vmem:[%s13179_s3 + $0x90] sm:$0xff] }
 0x389   : > { %4190 = vmatprep.subr.mxu1 %v13285_v61  ;;  %v8666_v16 = vld [vmem:[#allocation2 + $0x31] sm:$0xff] }
 0x38a   : > { %2901 = vrot.lane.b32.xlu1 %v10120_v15, %s8766_s22  ;;  %4191 = vmatpush2.msra.mxu1 %v4029_v57 }
 0x38b   : > { %4192 = vmatprep.subr.mxu1 %v13285_v61 }
 0x38c   : > { %2899 = vrot.lane.b32.xlu0 %v10127_v35, %s8766_s22  ;;  %4193 = vmatpush2.msra.mxu1 %v4028_v59  ;;  %v4021_v59 = vld [vmem:[%s13179_s3 + $0x80] sm:$0xff] }
 0x38d   : > { %4194 = vmatprep.subr.mxu1 %v13285_v61 }
 0x38e   : > { %2905 = vrot.lane.b32.xlu1 %v10146_v10, %s8766_s22  ;;  %4195 = vmatpush2.msra.mxu1 %v4027_v9 }
 0x38f   : > { %4196 = vmatprep.subr.mxu1 %v13285_v61 }
 0x390   : > { %2903 = vrot.lane.b32.xlu0 %v10153_v38, %s8766_s22  ;;  %4197 = vmatpush2.msra.mxu1 %v4026_v32  ;;  %v8668_v32 = vld [vmem:[#allocation2 + $0x49] sm:$0xff] }
 0x391   : > { %4198 = vmatprep.subr.mxu1 %v13285_v61 }
 0x392   : > { %2909 = vrot.lane.b32.xlu1 %v10172_v53, %s8766_s22  ;;  %4199 = vmatpush2.msra.mxu1 %v4025_v29  ;;  %v2725_v57 = vpop.permute.xlu1 %2724  ;;  %v4022_v53 = vld [vmem:[%s13179_s3 + $0x88] sm:$0xff] }
 0x393   : > { %4200 = vmatprep.subr.mxu1 %v13285_v61  ;;  %2804 = vst.msk [vmem:[#allocation3 + $0x198] sm:$0xff] %vm2786_vm13, %v2725_v57  ;;  %v2723_v2 = vpop.permute.xlu0 %2722 }
 0x394   : > { %2907 = vrot.lane.b32.xlu0 %v10178_v41, %s8766_s22  ;;  %4201 = vmatpush2.msra.mxu1 %v4024_v54  ;;  %2803 = vst.msk [vmem:[#allocation3 + $0x180] sm:$0xff] %vm2786_vm13, %v2723_v2  ;;  %v3281_v2 = vld [vmem:[#allocation2 + $0xaa] sm:$0xff] }
 0x395   : > { %4202 = vmatprep.subr.mxu1 %v13285_v61 }
 0x396   : > { %3525 = vrot.lane.b32.xlu1 %v10084_v36, %s8766_s22  ;;  %4203 = vmatpush2.msra.mxu1 %v4023_v58 }
 0x397   : > { %4204 = vmatprep.subr.mxu1 %v13285_v61 }
 0x398   : > { %3333 = vrot.lane.b32.xlu0 %v2821_v0, %s8765_s15  ;;  %4205 = vmatpush2.msra.mxu1 %v4022_v53 }
 0x399   : > { %4206 = vmatprep.subr.mxu1 %v13285_v61 }
 0x39a   : > { %3076 = vrot.lane.b32.xlu1 %v10057_v8, %s8767_s23  ;;  %4207 = vmatpush2.msra.mxu1 %v4021_v59  ;;  %v8667_v8 = vld [vmem:[#allocation2 + $0x39] sm:$0xff] }
 0x39c   : > { %3717 = vrot.lane.b32.xlu0 %v8666_v16, %s8767_s23 }
 0x39e   : > { %3527 = vrot.lane.b32.xlu1 %v10077_v1, %s8766_s22  ;;  %v2729_v9 = vpop.permute.xlu1 %2728 }
 0x39f   : > { %2806 = vst.msk [vmem:[#allocation3 + $0x1c8] sm:$0xff] %vm2786_vm13, %v2729_v9  ;;  %v2727_v0 = vpop.permute.xlu0 %2726  ;;  %v10715_v9 = vld [vmem:[#allocation2 + $0x182] sm:$0xff] }
 0x3a0   : > { %3335 = vrot.lane.b32.xlu0 %v10511_v50, %s8765_s15  ;;  %2805 = vst.msk [vmem:[#allocation3 + $0x1b0] sm:$0xff] %vm2786_vm13, %v2727_v0  ;;  %v3282_v0 = vld [vmem:[#allocation2 + $0xb2] sm:$0xff] }
 0x3a1   : > { %3905 = vst.msk [vmem:[#allocation3 + $0x2b0] sm:$0xff] %vm333_vm0, %v10715_v9 }
 0x3a2   : > { %3078 = vrot.lane.b32.xlu1 %v10055_v5, %s8767_s23 }
 0x3a4   : > { %3719 = vrot.lane.b32.xlu0 %v8667_v8, %s8767_s23 }
 0x3a6   : > { %3529 = vrot.lane.b32.xlu1 %v10110_v43, %s8766_s22 }
 0x3a8   : > { %3337 = vrot.lane.b32.xlu0 %v10075_v18, %s8765_s15  ;;  %v8669_v18 = vld [vmem:[#allocation2 + $0x51] sm:$0xff] }
 0x3a9   : > { %v2733_v50 = vpop.permute.xlu1 %2732 }
 0x3aa   : > { %3080 = vrot.lane.b32.xlu1 %v10084_v36, %s8767_s23  ;;  %2808 = vst.msk [vmem:[#allocation3 + $0x1f8] sm:$0xff] %vm2786_vm13, %v2733_v50  ;;  %v10728_v50 = vld [vmem:[#allocation2 + $0x181] sm:$0xff] }
 0x3ab   : > { %v2731_v5 = vpop.permute.xlu0 %2730  ;;  %3267 = vst.msk [vmem:[#allocation3 + $0x2d8] sm:$0xff] %vm333_vm0, %v10728_v50 }
 0x3ac   : > { %3721 = vrot.lane.b32.xlu0 %v8668_v32, %s8767_s23  ;;  %2807 = vst.msk [vmem:[#allocation3 + $0x1e0] sm:$0xff] %vm2786_vm13, %v2731_v5  ;;  %v10731_v32 = vld [vmem:[#allocation2 + $0x189] sm:$0xff] }
 0x3ad   : > { %3268 = vst.msk [vmem:[#allocation3 + $0x2f0] sm:$0xff] %vm333_vm0, %v10731_v32 }
 0x3ae   : > { %3531 = vrot.lane.b32.xlu1 %v10103_v55, %s8766_s22 }
 0x3b0   : > { %3339 = vrot.lane.b32.xlu0 %v10068_v11, %s8765_s15  ;;  %v8670_v11 = vld [vmem:[#allocation2 + $0x61] sm:$0xff] }
 0x3b2   : > { %3082 = vrot.lane.b32.xlu1 %v10077_v1, %s8767_s23 }
 0x3b4   : > { %3723 = vrot.lane.b32.xlu0 %v8669_v18, %s8767_s23  ;;  %v3995_v18 = vld [vmem:[#allocation3 + $0x2b0] sm:$0xff] }
 0x3b5   : > { %8549 = vmatprep.mubr.msk.f32.mxu0 %vm333_vm0, %v3995_v18 }
 0x3b6   : > { %3533 = vrot.lane.b32.xlu1 %v10136_v60, %s8766_s22  ;;  %v2737_v36 = vpop.permute.xlu1 %2736 }
 0x3b7   : > { %2810 = vst.msk [vmem:[#allocation3 + $0x228] sm:$0xff] %vm2786_vm13, %v2737_v36  ;;  %v2735_v29 = vpop.permute.xlu0 %2734  ;;  %v3283_v36 = vld [vmem:[#allocation2 + $0xc2] sm:$0xff] }
 0x3b8   : > { %3341 = vrot.lane.b32.xlu0 %v10101_v42, %s8765_s15  ;;  %2809 = vst.msk [vmem:[#allocation3 + $0x210] sm:$0xff] %vm2786_vm13, %v2735_v29  ;;  %v8671_v42 = vld [vmem:[#allocation2 + $0x69] sm:$0xff] }
 0x3ba   : > { %3084 = vrot.lane.b32.xlu1 %v10110_v43, %s8767_s23 }
 0x3bc   : > { %3725 = vrot.lane.b32.xlu0 %v8670_v11, %s8767_s23 }
 0x3be   : > { %3535 = vrot.lane.b32.xlu1 %v10129_v24, %s8766_s22 }
 0x3c0   : > { %3343 = vrot.lane.b32.xlu0 %v10094_v28, %s8765_s15  ;;  %v8672_v28 = vld [vmem:[#allocation2 + $0x79] sm:$0xff] }
 0x3c2   : > { %3086 = vrot.lane.b32.xlu1 %v10103_v55, %s8767_s23  ;;  %v2741_v1 = vpop.permute.xlu1 %2740 }
 0x3c3   : > { %2812 = vst.msk [vmem:[#allocation3 + $0x258] sm:$0xff] %vm2786_vm13, %v2741_v1  ;;  %v2739_v43 = vpop.permute.xlu0 %2738 }
 0x3c4   : > { %3727 = vrot.lane.b32.xlu0 %v8671_v42, %s8767_s23  ;;  %2811 = vst.msk [vmem:[#allocation3 + $0x240] sm:$0xff] %vm2786_vm13, %v2739_v43  ;;  %v3284_v42 = vld [vmem:[#allocation2 + $0xca] sm:$0xff] }
 0x3c6   : > { %3537 = vrot.lane.b32.xlu1 %v10162_v46, %s8766_s22 }
 0x3c8   : > { %3345 = vrot.lane.b32.xlu0 %v10127_v35, %s8765_s15  ;;  %v8673_v35 = vld [vmem:[#allocation2 + $0x81] sm:$0xff] }
 0x3ca   : > { %3088 = vrot.lane.b32.xlu1 %v10136_v60, %s8767_s23  ;;  %v8674_v60 = vld [vmem:[#allocation2 + $0x91] sm:$0xff] }
 0x3cc   : > { %3729 = vrot.lane.b32.xlu0 %v8672_v28, %s8767_s23 }
 0x3ce   : > { %3539 = vrot.lane.b32.xlu1 %v10155_v14, %s8766_s22  ;;  %v2745_v55 = vpop.permute.xlu1 %2744 }
 0x3cf   : > { %2814 = vst.msk [vmem:[#allocation3 + $0x288] sm:$0xff] %vm2786_vm13, %v2745_v55  ;;  %v2743_v54 = vpop.permute.xlu0 %2742 }
 0x3d0   : > { %3347 = vrot.lane.b32.xlu0 %v10120_v15, %s8765_s15  ;;  %2813 = vst.msk [vmem:[#allocation3 + $0x270] sm:$0xff] %vm2786_vm13, %v2743_v54 }
 0x3d2   : > { %3090 = vrot.lane.b32.xlu1 %v10129_v24, %s8767_s23 }
 0x3d4   : > { %3731 = vrot.lane.b32.xlu0 %v8673_v35, %s8767_s23 }
 0x3d6   : > { %3541 = vrot.lane.b32.xlu1 %v10188_v45, %s8766_s22 }
 0x3d8   : > { %3349 = vrot.lane.b32.xlu0 %v10153_v38, %s8765_s15  ;;  %v8675_v38 = vld [vmem:[#allocation2 + $0x99] sm:$0xff] }
 0x3d9   : > { %v2749_v15 = vpop.permute.xlu1 %2748 }
 0x3da   : > { %3092 = vrot.lane.b32.xlu1 %v10162_v46, %s8767_s23  ;;  %2816 = vst.msk [vmem:[#allocation3 + $0x2b8] sm:$0xff] %vm2786_vm13, %v2749_v15 }
 0x3db   : > { %v2747_v24 = vpop.permute.xlu0 %2746 }
 0x3dc   : > { %3733 = vrot.lane.b32.xlu0 %v8674_v60, %s8767_s23  ;;  %2815 = vst.msk [vmem:[#allocation3 + $0x2a0] sm:$0xff] %vm2786_vm13, %v2747_v24  ;;  %v3285_v24 = vld [vmem:[#allocation2 + $0xda] sm:$0xff] }
 0x3de   : > { %3543 = vrot.lane.b32.xlu1 %v10180_v44, %s8766_s22 }
 0x3e0   : > { %3351 = vrot.lane.b32.xlu0 %v10146_v10, %s8765_s15 }
 0x3e2   : > { %3094 = vrot.lane.b32.xlu1 %v10155_v14, %s8767_s23 }
 0x3e4   : > { %3735 = vrot.lane.b32.xlu0 %v8675_v38, %s8767_s23 }
 0x3e6   : > { %3545 = vrot.lane.b32.xlu1 %v10214_v3, %s8766_s22 }
 0x3e8   : > { %v2753_v46 = vpop.permute.xlu1 %2752  ;;  %3353 = vrot.lane.b32.xlu0 %v10178_v41, %s8765_s15  ;;  %v3280_v41 = vld [vmem:[#allocation2 + $0x9a] sm:$0xff] }
 0x3e9   : > { %2818 = vst.msk [vmem:[#allocation3 + $0x2e8] sm:$0xff] %vm2786_vm13, %v2753_v46  ;;  %v2751_v58 = vpop.permute.xlu0 %2750 }
 0x3ea   : > { %3096 = vrot.lane.b32.xlu1 %v10188_v45, %s8767_s23  ;;  %2817 = vst.msk [vmem:[#allocation3 + $0x2d0] sm:$0xff] %vm2786_vm13, %v2751_v58 }
 0x3ec   : > { %v2886_v10 = vpop.permute.xlu1 %2885  ;;  %3737 = vrot.lane.b32.xlu0 %v10205_v47, %s8767_s23 }
 0x3ed   : > { %2981 = vst.msk [vmem:[#allocation3 + $0x18] sm:$0xff] %vm2979_vm3, %v2886_v10  ;;  %v2884_v14 = vpop.permute.xlu0 %2883  ;;  %v3286_v10 = vld [vmem:[#allocation2 + $0xe2] sm:$0xff] }
 0x3ee   : > { %3547 = vrot.lane.b32.xlu1 %v10207_v34, %s8766_s22  ;;  %2980 = vst.msk [vmem:[#allocation3] sm:$0xff] %vm2979_vm3, %v2884_v14 }
 0x3f0   : > { %v2890_v57 = vpop.permute.xlu1 %2889  ;;  %3355 = vrot.lane.b32.xlu0 %v3280_v41, %s8765_s15 }
 0x3f1   : > { %2983 = vst.msk [vmem:[#allocation3 + $0x48] sm:$0xff] %vm2979_vm3, %v2890_v57 }
 0x3f2   : > { %3098 = vrot.lane.b32.xlu1 %v10180_v44, %s8767_s23  ;;  %v2888_v45 = vpop.permute.xlu0 %2887 }
 0x3f3   : > { %2982 = vst.msk [vmem:[#allocation3 + $0x30] sm:$0xff] %vm2979_vm3, %v2888_v45 }
 0x3f4   : > { %v2894_v47 = vpop.permute.xlu1 %2893  ;;  %3739 = vrot.lane.b32.xlu0 %v10198_v20, %s8767_s23 }
 0x3f5   : > { %2985 = vst.msk [vmem:[#allocation3 + $0x78] sm:$0xff] %vm2979_vm3, %v2894_v47 }
 0x3f6   : > { %3549 = vrot.lane.b32.xlu1 %v10237_v27, %s8766_s22  ;;  %v2892_v53 = vpop.permute.xlu0 %2891 }
 0x3f7   : > { %2984 = vst.msk [vmem:[#allocation3 + $0x60] sm:$0xff] %vm2979_vm3, %v2892_v53 }
 0x3f8   : > { %v2898_v59 = vpop.permute.xlu1 %2897  ;;  %3357 = vrot.lane.b32.xlu0 %v3281_v2, %s8765_s15 }
 0x3f9   : > { %2987 = vst.msk [vmem:[#allocation3 + $0xa8] sm:$0xff] %vm2979_vm3, %v2898_v59 }
 0x3fa   : > { %3100 = vrot.lane.b32.xlu1 %v10214_v3, %s8767_s23  ;;  %v2896_v44 = vpop.permute.xlu0 %2895  ;;  %v10720_v3 = vld [vmem:[#allocation2 + $0x18a] sm:$0xff] }
 0x3fb   : > { %2986 = vst.msk [vmem:[#allocation3 + $0x90] sm:$0xff] %vm2979_vm3, %v2896_v44 }
 0x3fc   : > { %v2902_v20 = vpop.permute.xlu1 %2901  ;;  %3741 = vrot.lane.b32.xlu0 %v10239_v31, %s8767_s23  ;;  %3906 = vst.msk [vmem:[#allocation3 + $0x2c8] sm:$0xff] %vm333_vm0, %v10720_v3 }
 0x3fd   : > { %2989 = vst.msk [vmem:[#allocation3 + $0xd8] sm:$0xff] %vm2979_vm3, %v2902_v20 }
 0x3fe   : > { %3551 = vrot.lane.b32.xlu1 %v10231_v49, %s8766_s22  ;;  %v2900_v16 = vpop.permute.xlu0 %2899 }
 0x3ff   : > { %2988 = vst.msk [vmem:[#allocation3 + $0xc0] sm:$0xff] %vm2979_vm3, %v2900_v16 }
 0x400   : > { %v2906_v8 = vpop.permute.xlu1 %2905  ;;  %3359 = vrot.lane.b32.xlu0 %v3282_v0, %s8765_s15 }
 0x401   : > { %2991 = vst.msk [vmem:[#allocation3 + $0x108] sm:$0xff] %vm2979_vm3, %v2906_v8 }
 0x402   : > { %3102 = vrot.lane.b32.xlu1 %v10207_v34, %s8767_s23  ;;  %v2904_v31 = vpop.permute.xlu0 %2903 }
 0x403   : > { %2990 = vst.msk [vmem:[#allocation3 + $0xf0] sm:$0xff] %vm2979_vm3, %v2904_v31  ;;  %v3998_v29 = vld [vmem:[#allocation3 + $0x2c8] sm:$0xff] }
 0x404   : > { %v2910_v5 = vpop.permute.xlu1 %2909  ;;  %3743 = vrot.lane.b32.xlu0 %v10224_v52, %s8767_s23  ;;  %8550 = vmatmul.mubr.msk.f32.gmra.mxu0 %vm333_vm0, %v3998_v29 }
 0x405   : > { %2993 = vst.msk [vmem:[#allocation3 + $0x138] sm:$0xff] %vm2979_vm3, %v2910_v5 }
 0x406   : > { %3553 = vrot.lane.b32.xlu1 %v10263_v4, %s8766_s22  ;;  %v2908_v34 = vpop.permute.xlu0 %2907 }
 0x407   : > { %2992 = vst.msk [vmem:[#allocation3 + $0x120] sm:$0xff] %vm2979_vm3, %v2908_v34 }
 0x408   : > { %v3526_v11 = vpop.permute.xlu1 %3525  ;;  %3361 = vrot.lane.b32.xlu0 %v3283_v36, %s8765_s15 }
 0x40a   : > { %3745 = vrot.lane.b32.xlu1 %v10265_v6, %s8767_s23  ;;  %v3334_v52 = vpop.permute.xlu0 %3333 }
 0x40b   : > { %3429 = vst.msk [vmem:[#allocation3 + $0x8] sm:$0xff] %vm2786_vm13, %v3334_v52 }
 0x40c   : > { %3621 = vst.msk [vmem:[#allocation3 + $0x8] sm:$0xff] %vm2979_vm3, %v3526_v11  ;;  %v3077_v1 = vpop.permute.xlu1 %3076  ;;  %2911 = vrot.lane.b32.xlu0 %v3281_v2, %s8766_s22 }
 0x40d   : > { %3173 = vst.msk [vmem:[#allocation3] sm:$0xff] %vm3172_vm4, %v3077_v1  ;;  %v3289_v1 = vld [vmem:[#allocation2 + $0x10a] sm:$0xff] }
 0x40e   : > { %3363 = vrot.lane.b32.xlu1 %v3284_v42, %s8765_s15  ;;  %v3718_v43 = vpop.permute.xlu0 %3717 }
 0x40f   : > { %3813 = vst.msk [vmem:[#allocation3 + $0x8] sm:$0xff] %vm3172_vm4, %v3718_v43 }
 0x410   : > { %v3528_v28 = vpop.permute.xlu1 %3527  ;;  %3104 = vrot.lane.b32.xlu0 %v10237_v27, %s8767_s23 }
 0x412   : > { %2913 = vrot.lane.b32.xlu1 %v3282_v0, %s8766_s22  ;;  %v3336_v6 = vpop.permute.xlu0 %3335  ;;  %v3288_v0 = vld [vmem:[#allocation2 + $0xfa] sm:$0xff] }
 0x413   : > { %3430 = vst.msk [vmem:[#allocation3 + $0x20] sm:$0xff] %vm2786_vm13, %v3336_v6  ;;  %v3290_v6 = vld [vmem:[#allocation2 + $0x112] sm:$0xff] }
 0x414   : > { %3622 = vst.msk [vmem:[#allocation3 + $0x20] sm:$0xff] %vm2979_vm3, %v3528_v28  ;;  %v3079_v55 = vpop.permute.xlu1 %3078  ;;  %3555 = vrot.lane.b32.xlu0 %v10257_v30, %s8766_s22  ;;  %v3909_v27 = vld [vmem:[#allocation3] sm:$0xff] }
 0x415   : > { %3174 = vst.msk [vmem:[#allocation3 + $0x18] sm:$0xff] %vm3172_vm4, %v3079_v55 }
 0x416   : > { %3106 = vrot.lane.b32.xlu1 %v10231_v49, %s8767_s23  ;;  %v3720_v54 = vpop.permute.xlu0 %3719  ;;  %v3910_v35 = vld [vmem:[#allocation3 + $0x8] sm:$0xff] }
 0x417   : > { %3814 = vst.msk [vmem:[#allocation3 + $0x20] sm:$0xff] %vm3172_vm4, %v3720_v54  ;;  %4208 = vmatprep.mubr.f32.mxu1 %v3910_v35 }
 0x418   : > { %v3530_v15 = vpop.permute.xlu1 %3529  ;;  %3747 = vrot.lane.b32.xlu0 %v10250_v12, %s8767_s23  ;;  %4209 = vmatmul.mubr.f32.vlgmr.msra.gmra.mxu1 %v3909_v27 }
 0x41a   : > { %3557 = vrot.lane.b32.xlu1 %v10289_v40, %s8766_s22  ;;  %v3338_v60 = vpop.permute.xlu0 %3337 }
 0x41b   : > { %3431 = vst.msk [vmem:[#allocation3 + $0x38] sm:$0xff] %vm2786_vm13, %v3338_v60 }
 0x41c   : > { %3623 = vst.msk [vmem:[#allocation3 + $0x38] sm:$0xff] %vm2979_vm3, %v3530_v15  ;;  %v3081_v49 = vpop.permute.xlu1 %3080  ;;  %3365 = vrot.lane.b32.xlu0 %v3285_v24, %s8765_s15  ;;  %v3912_v46 = vld [vmem:[#allocation3 + $0x18] sm:$0xff] }
 0x41d   : > { %3175 = vst.msk [vmem:[#allocation3 + $0x30] sm:$0xff] %vm3172_vm4, %v3081_v49 }
 0x41e   : > { %3749 = vrot.lane.b32.xlu1 %v10291_v56, %s8767_s23  ;;  %v3722_v38 = vpop.permute.xlu0 %3721  ;;  %v3913_v12 = vld [vmem:[#allocation3 + $0x20] sm:$0xff] }
 0x41f   : > { %3815 = vst.msk [vmem:[#allocation3 + $0x38] sm:$0xff] %vm3172_vm4, %v3722_v38  ;;  %4213 = vmatprep.mubr.f32.mxu1 %v3913_v12 }
 0x420   : > { %v3532_v58 = vpop.permute.xlu1 %3531  ;;  %2915 = vrot.lane.b32.xlu0 %v3283_v36, %s8766_s22  ;;  %4214 = vmatmul.mubr.f32.gmra.mxu1 %v3912_v46 }
 0x422   : > { %3367 = vrot.lane.b32.xlu1 %v3286_v10, %s8765_s15  ;;  %v3340_v14 = vpop.permute.xlu0 %3339 }
 0x423   : > { %3432 = vst.msk [vmem:[#allocation3 + $0x50] sm:$0xff] %vm2786_vm13, %v3340_v14 }
 0x424   : > { %3624 = vst.msk [vmem:[#allocation3 + $0x50] sm:$0xff] %vm2979_vm3, %v3532_v58  ;;  %v3083_v41 = vpop.permute.xlu1 %3082  ;;  %3108 = vrot.lane.b32.xlu0 %v10263_v4, %s8767_s23  ;;  %v3915_v45 = vld [vmem:[#allocation3 + $0x30] sm:$0xff]  ;;  %v3292_v58 = vld [vmem:[#allocation2 + $0x12a] sm:$0xff] }
 0x425   : > { %3176 = vst.msk [vmem:[#allocation3 + $0x48] sm:$0xff] %vm3172_vm4, %v3083_v41 }
 0x426   : > { %2917 = vrot.lane.b32.xlu1 %v3284_v42, %s8766_s22  ;;  %v3724_v56 = vpop.permute.xlu0 %3723  ;;  %v3916_v57 = vld [vmem:[#allocation3 + $0x38] sm:$0xff] }
 0x427   : > { %3816 = vst.msk [vmem:[#allocation3 + $0x50] sm:$0xff] %vm3172_vm4, %v3724_v56  ;;  %4218 = vmatprep.mubr.f32.mxu1 %v3916_v57 }
 0x428   : > { %v3534_v47 = vpop.permute.xlu1 %3533  ;;  %3559 = vrot.lane.b32.xlu0 %v10283_v33, %s8766_s22  ;;  %4219 = vmatmul.mubr.f32.gmra.mxu1 %v3915_v45 }
 0x42a   : > { %3110 = vrot.lane.b32.xlu1 %v10257_v30, %s8767_s23  ;;  %v3342_v53 = vpop.permute.xlu0 %3341  ;;  %v3287_v30 = vld [vmem:[#allocation2 + $0xf2] sm:$0xff] }
 0x42b   : > { %3433 = vst.msk [vmem:[#allocation3 + $0x68] sm:$0xff] %vm2786_vm13, %v3342_v53 }
 0x42c   : > { %3625 = vst.msk [vmem:[#allocation3 + $0x68] sm:$0xff] %vm2979_vm3, %v3534_v47  ;;  %v3085_v4 = vpop.permute.xlu1 %3084  ;;  %3751 = vrot.lane.b32.xlu0 %v10276_v25, %s8767_s23  ;;  %v3918_v44 = vld [vmem:[#allocation3 + $0x48] sm:$0xff] }
 0x42d   : > { %3177 = vst.msk [vmem:[#allocation3 + $0x60] sm:$0xff] %vm3172_vm4, %v3085_v4  ;;  %v13291_v4 = vld [vmem:[#allocation10_spill] sm:$0xff] }
 0x42e   : > { %3561 = vrot.lane.b32.xlu1 %v10317_v21, %s8766_s22  ;;  %v3726_v2 = vpop.permute.xlu0 %3725  ;;  %v3919_v59 = vld [vmem:[#allocation3 + $0x50] sm:$0xff] }
 0x42f   : > { %3817 = vst.msk [vmem:[#allocation3 + $0x68] sm:$0xff] %vm3172_vm4, %v3726_v2  ;;  %4223 = vmatprep.mubr.f32.mxu1 %v3919_v59  ;;  %v3293_v2 = vld [vmem:[#allocation2 + $0x13a] sm:$0xff]  ;;  %v13292_v59 = vld [vmem:[#allocation11_spill] sm:$0xff] }
 0x430   : > { %v3536_v20 = vpop.permute.xlu1 %3535  ;;  %3369 = vrot.lane.b32.xlu0 %v3287_v30, %s8765_s15  ;;  %4224 = vmatmul.mubr.f32.gmra.mxu1 %v3918_v44 }
 0x432   : > { %3753 = vrot.lane.b32.xlu1 %v10319_v22, %s8767_s23  ;;  %v3344_v25 = vpop.permute.xlu0 %3343 }
 0x433   : > { %3434 = vst.msk [vmem:[#allocation3 + $0x80] sm:$0xff] %vm2786_vm13, %v3344_v25  ;;  %v3294_v25 = vld [vmem:[#allocation2 + $0x142] sm:$0xff] }
 0x434   : > { %3626 = vst.msk [vmem:[#allocation3 + $0x80] sm:$0xff] %vm2979_vm3, %v3536_v20  ;;  %v3087_v16 = vpop.permute.xlu1 %3086  ;;  %2919 = vrot.lane.b32.xlu0 %v3285_v24, %s8766_s22  ;;  %v3921_v5 = vld [vmem:[#allocation3 + $0x60] sm:$0xff] }
 0x435   : > { %3178 = vst.msk [vmem:[#allocation3 + $0x78] sm:$0xff] %vm3172_vm4, %v3087_v16 }
 0x436   : > { %3371 = vrot.lane.b32.xlu1 %v3288_v0, %s8765_s15  ;;  %v3728_v8 = vpop.permute.xlu0 %3727  ;;  %v3922_v31 = vld [vmem:[#allocation3 + $0x68] sm:$0xff] }
 0x437   : > { %3818 = vst.msk [vmem:[#allocation3 + $0x80] sm:$0xff] %vm3172_vm4, %v3728_v8  ;;  %4228 = vmatprep.mubr.f32.mxu1 %v3922_v31 }
 0x438   : > { %v3538_v22 = vpop.permute.xlu1 %3537  ;;  %3112 = vrot.lane.b32.xlu0 %v10289_v40, %s8767_s23  ;;  %4229 = vmatmul.mubr.f32.gmra.mxu1 %v3921_v5 }
 0x43a   : > { %2921 = vrot.lane.b32.xlu1 %v3286_v10, %s8766_s22  ;;  %v3346_v34 = vpop.permute.xlu0 %3345 }
 0x43b   : > { %3435 = vst.msk [vmem:[#allocation3 + $0x98] sm:$0xff] %vm2786_vm13, %v3346_v34  ;;  %v13293_v34 = vld [vmem:[#allocation9_spill] sm:$0xff] }
 0x43c   : > { %3627 = vst.msk [vmem:[#allocation3 + $0x98] sm:$0xff] %vm2979_vm3, %v3538_v22  ;;  %v3089_v18 = vpop.permute.xlu1 %3088  ;;  %3563 = vrot.lane.b32.xlu0 %v10311_v39, %s8766_s22  ;;  %v3924_v40 = vld [vmem:[#allocation3 + $0x78] sm:$0xff] }
 0x43d   : > { %3179 = vst.msk [vmem:[#allocation3 + $0x90] sm:$0xff] %vm3172_vm4, %v3089_v18  ;;  %v3037_v18 = vld [vmem:[#allocation2 + $0x140] sm:$0xff] }
 0x43e   : > { %3114 = vrot.lane.b32.xlu1 %v10283_v33, %s8767_s23  ;;  %v3730_v36 = vpop.permute.xlu0 %3729  ;;  %v3925_v29 = vld [vmem:[#allocation3 + $0x80] sm:$0xff] }
 0x43f   : > { %3819 = vst.msk [vmem:[#allocation3 + $0x98] sm:$0xff] %vm3172_vm4, %v3730_v36  ;;  %4233 = vmatprep.mubr.f32.mxu1 %v3925_v29  ;;  %v13294_v29 = vld [vmem:[#allocation8_spill] sm:$0xff] }
 0x440   : > { %v3540_v11 = vpop.permute.xlu1 %3539  ;;  %3755 = vrot.lane.b32.xlu0 %v10304_v7, %s8767_s23  ;;  %4234 = vmatmul.mubr.f32.gmra.mxu1 %v3924_v40 }
 0x442   : > { %3565 = vrot.lane.b32.xlu1 %v10345_v37, %s8766_s22  ;;  %v3348_v52 = vpop.permute.xlu0 %3347 }
 0x443   : > { %3436 = vst.msk [vmem:[#allocation3 + $0xb0] sm:$0xff] %vm2786_vm13, %v3348_v52  ;;  %v3295_v52 = vld [vmem:[#allocation2 + $0x152] sm:$0xff] }
 0x444   : > { %3628 = vst.msk [vmem:[#allocation3 + $0xb0] sm:$0xff] %vm2979_vm3, %v3540_v11  ;;  %v3091_v33 = vpop.permute.xlu1 %3090  ;;  %3373 = vrot.lane.b32.xlu0 %v3289_v1, %s8765_s15  ;;  %v3927_v43 = vld [vmem:[#allocation3 + $0x90] sm:$0xff] }
 0x445   : > { %3180 = vst.msk [vmem:[#allocation3 + $0xa8] sm:$0xff] %vm3172_vm4, %v3091_v33 }
 0x446   : > { %3757 = vrot.lane.b32.xlu1 %v10347_v17, %s8767_s23  ;;  %v3732_v42 = vpop.permute.xlu0 %3731  ;;  %v3928_v7 = vld [vmem:[#allocation3 + $0x98] sm:$0xff] }
 0x447   : > { %3820 = vst.msk [vmem:[#allocation3 + $0xb0] sm:$0xff] %vm3172_vm4, %v3732_v42  ;;  %4238 = vmatprep.mubr.f32.mxu1 %v3928_v7 }
 0x448   : > { %v3542_v28 = vpop.permute.xlu1 %3541  ;;  %2923 = vrot.lane.b32.xlu0 %v3287_v30, %s8766_s22  ;;  %4239 = vmatmul.mubr.f32.gmra.mxu1 %v3927_v43  ;;  %v3296_v43 = vld [vmem:[#allocation2 + $0x15a] sm:$0xff] }
 0x44a   : > { %3375 = vrot.lane.b32.xlu1 %v3290_v6, %s8765_s15  ;;  %v3350_v55 = vpop.permute.xlu0 %3349 }
 0x44b   : > { %3437 = vst.msk [vmem:[#allocation3 + $0xc8] sm:$0xff] %vm2786_vm13, %v3350_v55 }
 0x44c   : > { %3629 = vst.msk [vmem:[#allocation3 + $0xc8] sm:$0xff] %vm2979_vm3, %v3542_v28  ;;  %v3093_v54 = vpop.permute.xlu1 %3092  ;;  %3116 = vrot.lane.b32.xlu0 %v10317_v21, %s8767_s23  ;;  %v3930_v27 = vld [vmem:[#allocation3 + $0xa8] sm:$0xff] }
 0x44d   : > { %3181 = vst.msk [vmem:[#allocation3 + $0xc0] sm:$0xff] %vm3172_vm4, %v3093_v54 }
 0x44e   : > { %2925 = vrot.lane.b32.xlu1 %v3288_v0, %s8766_s22  ;;  %v3734_v17 = vpop.permute.xlu0 %3733  ;;  %v3931_v35 = vld [vmem:[#allocation3 + $0xb0] sm:$0xff] }
 0x44f   : > { %3821 = vst.msk [vmem:[#allocation3 + $0xc8] sm:$0xff] %vm3172_vm4, %v3734_v17  ;;  %4243 = vmatprep.mubr.f32.mxu1 %v3931_v35  ;;  %v3488_v17 = vld [vmem:[#allocation2 + $0x170] sm:$0xff] }
 0x450   : > { %v3544_v15 = vpop.permute.xlu1 %3543  ;;  %3567 = vrot.lane.b32.xlu0 %v10339_v13, %s8766_s22  ;;  %4244 = vmatmul.mubr.f32.gmra.mxu1 %v3930_v27  ;;  %v3039_v27 = vld [vmem:[#allocation2 + $0x158] sm:$0xff] }
 0x452   : > { %3118 = vrot.lane.b32.xlu1 %v10311_v39, %s8767_s23  ;;  %v3352_v60 = vpop.permute.xlu0 %3351  ;;  %v3291_v39 = vld [vmem:[#allocation2 + $0x122] sm:$0xff] }
 0x453   : > { %3438 = vst.msk [vmem:[#allocation3 + $0xe0] sm:$0xff] %vm2786_vm13, %v3352_v60 }
 0x454   : > { %3630 = vst.msk [vmem:[#allocation3 + $0xe0] sm:$0xff] %vm2979_vm3, %v3544_v15  ;;  %v3095_v21 = vpop.permute.xlu1 %3094  ;;  %3759 = vrot.lane.b32.xlu0 %v10332_v19, %s8767_s23  ;;  %v3933_v38 = vld [vmem:[#allocation3 + $0xc0] sm:$0xff] }
 0x455   : > { %3182 = vst.msk [vmem:[#allocation3 + $0xd8] sm:$0xff] %vm3172_vm4, %v3095_v21  ;;  %v13295_v21 = vld [vmem:[#allocation12_spill] sm:$0xff] }
 0x456   : > { %3569 = vrot.lane.b32.xlu1 %v10385_v51, %s8766_s22  ;;  %v3736_v24 = vpop.permute.xlu0 %3735  ;;  %v3934_v49 = vld [vmem:[#allocation3 + $0xc8] sm:$0xff] }
 0x457   : > { %3822 = vst.msk [vmem:[#allocation3 + $0xe0] sm:$0xff] %vm3172_vm4, %v3736_v24  ;;  %4248 = vmatprep.mubr.f32.mxu1 %v3934_v49  ;;  %v10920_v24 = vld [vmem:[#allocation2 + $0x180] sm:$0xff] }
 0x458   : > { %v3546_v12 = vpop.permute.xlu1 %3545  ;;  %3377 = vrot.lane.b32.xlu0 %v3291_v39, %s8765_s15  ;;  %4249 = vmatmul.mubr.f32.gmra.mxu1 %v3933_v38  ;;  %v3297_v38 = vld [vmem:[#allocation2 + $0x16a] sm:$0xff] }
 0x45a   : > { %3761 = vrot.lane.b32.xlu1 %v10395_v23, %s8767_s23  ;;  %v3354_v19 = vpop.permute.xlu0 %3353 }
 0x45b   : > { %3439 = vst.msk [vmem:[#allocation3 + $0xf8] sm:$0xff] %vm2786_vm13, %v3354_v19 }
 0x45c   : > { %3631 = vst.msk [vmem:[#allocation3 + $0xf8] sm:$0xff] %vm2979_vm3, %v3546_v12  ;;  %v3097_v46 = vpop.permute.xlu1 %3096  ;;  %2927 = vrot.lane.b32.xlu0 %v3289_v1, %s8766_s22  ;;  %v3936_v41 = vld [vmem:[#allocation3 + $0xd8] sm:$0xff] }
 0x45d   : > { %3183 = vst.msk [vmem:[#allocation3 + $0xf0] sm:$0xff] %vm3172_vm4, %v3097_v46 }
 0x45e   : > { %3379 = vrot.lane.b32.xlu1 %v3292_v58, %s8765_s15  ;;  %v3738_v10 = vpop.permute.xlu0 %3737  ;;  %v3937_v14 = vld [vmem:[#allocation3 + $0xe0] sm:$0xff] }
 0x45f   : > { %3823 = vst.msk [vmem:[#allocation3 + $0xf8] sm:$0xff] %vm3172_vm4, %v3738_v10  ;;  %4253 = vmatprep.mubr.f32.mxu1 %v3937_v14  ;;  %v3298_v14 = vld [vmem:[#allocation2 + $0x172] sm:$0xff] }
 0x460   : > { %v3548_v23 = vpop.permute.xlu1 %3547  ;;  %3120 = vrot.lane.b32.xlu0 %v10345_v37, %s8767_s23  ;;  %4254 = vmatmul.mubr.f32.gmra.mxu1 %v3936_v41 }
 0x462   : > { %2929 = vrot.lane.b32.xlu1 %v3290_v6, %s8766_s22  ;;  %v3356_v56 = vpop.permute.xlu0 %3355  ;;  %v3038_v6 = vld [vmem:[#allocation2 + $0x150] sm:$0xff] }
 0x463   : > { %3440 = vst.msk [vmem:[#allocation3 + $0x110] sm:$0xff] %vm2786_vm13, %v3356_v56 }
 0x464   : > { %3632 = vst.msk [vmem:[#allocation3 + $0x110] sm:$0xff] %vm2979_vm3, %v3548_v23  ;;  %v3099_v57 = vpop.permute.xlu1 %3098  ;;  %3571 = vrot.lane.b32.xlu0 %v10376_v48, %s8766_s22  ;;  %v3939_v37 = vld [vmem:[#allocation3 + $0xf0] sm:$0xff]  ;;  %v3040_v23 = vld [vmem:[#allocation2 + $0x168] sm:$0xff] }
 0x465   : > { %3184 = vst.msk [vmem:[#allocation3 + $0x108] sm:$0xff] %vm3172_vm4, %v3099_v57 }
 0x466   : > { %3122 = vrot.lane.b32.xlu1 %v10339_v13, %s8767_s23  ;;  %v3740_v45 = vpop.permute.xlu0 %3739  ;;  %v3940_v47 = vld [vmem:[#allocation3 + $0xf8] sm:$0xff] }
 0x467   : > { %3824 = vst.msk [vmem:[#allocation3 + $0x110] sm:$0xff] %vm3172_vm4, %v3740_v45  ;;  %4258 = vmatprep.mubr.f32.mxu1 %v3940_v47  ;;  %v3490_v45 = vld [vmem:[#allocation2 + $0x188] sm:$0xff] }
 0x468   : > { %v3550_v53 = vpop.permute.xlu1 %3549  ;;  %3763 = vrot.lane.b32.xlu0 %v10373_v63, %s8767_s23  ;;  %4259 = vmatmul.mubr.f32.gmra.mxu1 %v3939_v37 }
 0x46a   : > { %3573 = vrot.lane.b32.xlu1 %v13291_v4, %s8766_s22  ;;  %v3358_v48 = vpop.permute.xlu0 %3357 }
 0x46b   : > { %3441 = vst.msk [vmem:[#allocation3 + $0x128] sm:$0xff] %vm2786_vm13, %v3358_v48  ;;  %v3875_v48 = vld [vmem:[#allocation2 + $0x19a] sm:$0xff] }
 0x46c   : > { %3633 = vst.msk [vmem:[#allocation3 + $0x128] sm:$0xff] %vm2979_vm3, %v3550_v53  ;;  %v3101_v13 = vpop.permute.xlu1 %3100  ;;  %3381 = vrot.lane.b32.xlu0 %v3293_v2, %s8765_s15  ;;  %v3942_v44 = vld [vmem:[#allocation3 + $0x108] sm:$0xff] }
 0x46d   : > { %3185 = vst.msk [vmem:[#allocation3 + $0x120] sm:$0xff] %vm3172_vm4, %v3101_v13  ;;  %v3491_v53 = vld [vmem:[#allocation2 + $0x198] sm:$0xff] }
 0x46e   : > { %3765 = vrot.lane.b32.xlu1 %v13292_v59, %s8767_s23  ;;  %v3742_v30 = vpop.permute.xlu0 %3741  ;;  %v3943_v63 = vld [vmem:[#allocation3 + $0x110] sm:$0xff]  ;;  %3907 = vst.msk [vmem:[#allocation3 + $0x2e0] sm:$0xff] %vm333_vm0, %v3875_v48 }
 0x46f   : > { %3825 = vst.msk [vmem:[#allocation3 + $0x128] sm:$0xff] %vm3172_vm4, %v3742_v30  ;;  %4263 = vmatprep.mubr.f32.mxu1 %v3943_v63  ;;  %v3683_v63 = vld [vmem:[#allocation2 + $0x199] sm:$0xff] }
 0x470   : > { %v3552_v20 = vpop.permute.xlu1 %3551  ;;  %2931 = vrot.lane.b32.xlu0 %v3291_v39, %s8766_s22  ;;  %4264 = vmatmul.mubr.f32.gmra.mxu1 %v3942_v44 }
 0x472   : > { %3383 = vrot.lane.b32.xlu1 %v3294_v25, %s8765_s15  ;;  %v3360_v16 = vpop.permute.xlu0 %3359 }
 0x473   : > { %3442 = vst.msk [vmem:[#allocation3 + $0x140] sm:$0xff] %vm2786_vm13, %v3360_v16 }
 0x474   : > { %3634 = vst.msk [vmem:[#allocation3 + $0x140] sm:$0xff] %vm2979_vm3, %v3552_v20  ;;  %v3103_v0 = vpop.permute.xlu1 %3102  ;;  %3124 = vrot.lane.b32.xlu0 %v10385_v51, %s8767_s23  ;;  %v3945_v5 = vld [vmem:[#allocation3 + $0x120] sm:$0xff] }
 0x475   : > { %3186 = vst.msk [vmem:[#allocation3 + $0x138] sm:$0xff] %vm3172_vm4, %v3103_v0  ;;  %v4001_v16 = vld [vmem:[#allocation3 + $0x2e0] sm:$0xff] }
 0x476   : > { %2933 = vrot.lane.b32.xlu1 %v3292_v58, %s8766_s22  ;;  %v3744_v8 = vpop.permute.xlu0 %3743  ;;  %v3946_v31 = vld [vmem:[#allocation3 + $0x128] sm:$0xff]  ;;  %8552 = vmatprep.mubr.msk.f32.mxu0 %vm333_vm0, %v4001_v16  ;;  %6064 = vst.msk [vmem:[#allocation3 + $0x2e0] sm:$0xff] %vm333_vm0, %v3875_v48  ;;  %v8509_v48 = vpop.f32.mrf.mxu0 }
 0x477   : > { %3826 = vst.msk [vmem:[#allocation3 + $0x140] sm:$0xff] %vm3172_vm4, %v3744_v8  ;;  %4268 = vmatprep.mubr.f32.mxu1 %v3946_v31  ;;  %v3492_v31 = vld [vmem:[#allocation2 + $0x1a0] sm:$0xff] }
 0x478   : > { %v3554_v22 = vpop.permute.xlu1 %3553  ;;  %3575 = vrot.lane.b32.xlu0 %v13293_v34, %s8766_s22  ;;  %4269 = vmatmul.mubr.f32.gmra.mxu1 %v3945_v5 }
 0x47a   : > { %3126 = vrot.lane.b32.xlu1 %v3037_v18, %s8767_s23  ;;  %v3362_v36 = vpop.permute.xlu0 %3361  ;;  %v6196_v18 = vld [vmem:[%s13181_s5 + $0x110] sm:$0xff] }
 0x47b   : > { %3443 = vst.msk [vmem:[#allocation3 + $0x158] sm:$0xff] %vm2786_vm13, %v3362_v36  ;;  %v3684_v36 = vld [vmem:[#allocation2 + $0x1a1] sm:$0xff] }
 0x47c   : > { %3635 = vst.msk [vmem:[#allocation3 + $0x158] sm:$0xff] %vm2979_vm3, %v3554_v22  ;;  %v3746_v51 = vpop.permute.xlu1 %3745  ;;  %3767 = vrot.lane.b32.xlu0 %v13294_v29, %s8767_s23  ;;  %v3948_v1 = vld [vmem:[#allocation3 + $0x138] sm:$0xff] }
 0x47d   : > { %3827 = vst.msk [vmem:[#allocation3 + $0x158] sm:$0xff] %vm3172_vm4, %v3746_v51  ;;  %v6195_v29 = vld [vmem:[%s13181_s5 + $0x108] sm:$0xff] }
 0x47e   : > { %3577 = vrot.lane.b32.xlu1 %v10486_v26, %s8766_s22  ;;  %v2912_v40 = vpop.permute.xlu0 %2911  ;;  %v3949_v11 = vld [vmem:[#allocation3 + $0x140] sm:$0xff] }
 0x47f   : > { %2994 = vst.msk [vmem:[#allocation3 + $0x150] sm:$0xff] %vm2979_vm3, %v2912_v40  ;;  %4273 = vmatprep.mubr.f32.mxu1 %v3949_v11  ;;  %v4786_v40 = vld [vmem:[#allocation2 + $0x1] sm:$0xff] }
 0x480   : > { %v3364_v33 = vpop.permute.xlu1 %3363  ;;  %3385 = vrot.lane.b32.xlu0 %v3295_v52, %s8765_s15  ;;  %4274 = vmatmul.mubr.f32.gmra.mxu1 %v3948_v1 }
 0x481   : > { %3444 = vst.msk [vmem:[#allocation3 + $0x170] sm:$0xff] %vm2786_vm13, %v3364_v33 }
 0x482   : > { %3769 = vrot.lane.b32.xlu1 %v10492_v62, %s8767_s23  ;;  %v3105_v42 = vpop.permute.xlu0 %3104 }
 0x483   : > { %3187 = vst.msk [vmem:[#allocation3 + $0x150] sm:$0xff] %vm3172_vm4, %v3105_v42 }
 0x484   : > { %v2914_v26 = vpop.permute.xlu1 %2913  ;;  %2935 = vrot.lane.b32.xlu0 %v3293_v2, %s8766_s22  ;;  %v3952_v7 = vld [vmem:[#allocation3 + $0x158] sm:$0xff] }
 0x485   : > { %2995 = vst.msk [vmem:[#allocation3 + $0x168] sm:$0xff] %vm2979_vm3, %v2914_v26  ;;  %4278 = vmatprep.mubr.f32.mxu1 %v3952_v7  ;;  %v3876_v2 = vld [vmem:[#allocation2 + $0x1a2] sm:$0xff]  ;;  %v6177_v7 = vld [vmem:[%s13181_s5 + $0x78] sm:$0xff] }
 0x486   : > { %3387 = vrot.lane.b32.xlu1 %v3296_v43, %s8765_s15  ;;  %v3556_v28 = vpop.permute.xlu0 %3555  ;;  %3908 = vst.msk [vmem:[#allocation3 + $0x2f8] sm:$0xff] %vm333_vm0, %v3876_v2  ;;  %v4978_v26 = vld [vmem:[#allocation2 + $0x2] sm:$0xff]  ;;  %6302 = vmatpush1.msra.mxu0 %v6177_v7  ;;  %v6189_v7 = vld [vmem:[%s13181_s5 + $0xd8] sm:$0xff] }
 0x487   : > { %3636 = vst.msk [vmem:[#allocation3 + $0x170] sm:$0xff] %vm2979_vm3, %v3556_v28  ;;  %6303 = vmatprep.subr.mxu0 %v13285_v61  ;;  %v6176_v28 = vld [vmem:[%s13181_s5 + $0x70] sm:$0xff] }
 0x488   : > { %v3107_v55 = vpop.permute.xlu1 %3106  ;;  %3128 = vrot.lane.b32.xlu0 %v3038_v6, %s8767_s23  ;;  %6304 = vmatpush1.msra.mxu0 %v6176_v28 }
 0x489   : > { %3188 = vst.msk [vmem:[#allocation3 + $0x168] sm:$0xff] %vm3172_vm4, %v3107_v55  ;;  %6305 = vmatprep.subr.mxu0 %v13285_v61  ;;  %v6175_v55 = vld [vmem:[%s13181_s5 + $0x68] sm:$0xff] }
 0x48a   : > { %2937 = vrot.lane.b32.xlu1 %v3294_v25, %s8766_s22  ;;  %v3748_v62 = vpop.permute.xlu0 %3747  ;;  %v3951_v54 = vld [vmem:[#allocation3 + $0x150] sm:$0xff]  ;;  %6306 = vmatpush1.msra.mxu0 %v6175_v55  ;;  %v6188_v55 = vld [vmem:[%s13181_s5 + $0xd0] sm:$0xff] }
 0x48b   : > { %3828 = vst.msk [vmem:[#allocation3 + $0x170] sm:$0xff] %vm3172_vm4, %v3748_v62  ;;  %4279 = vmatmul.mubr.f32.gmra.mxu1 %v3951_v54  ;;  %6307 = vmatprep.subr.mxu0 %v13285_v61 }
 0x48c   : > { %v3558_v35 = vpop.permute.xlu1 %3557  ;;  %3579 = vrot.lane.b32.xlu0 %v3488_v17, %s8766_s22 }
 0x48e   : > { %3130 = vrot.lane.b32.xlu1 %v3039_v27, %s8767_s23  ;;  %v3366_v15 = vpop.permute.xlu0 %3365  ;;  %v6173_v27 = vld [vmem:[%s13181_s5 + $0x58] sm:$0xff] }
 0x48f   : > { %3445 = vst.msk [vmem:[#allocation3 + $0x188] sm:$0xff] %vm2786_vm13, %v3366_v15 }
 0x490   : > { %3637 = vst.msk [vmem:[#allocation3 + $0x188] sm:$0xff] %vm2979_vm3, %v3558_v35  ;;  %v3750_v60 = vpop.permute.xlu1 %3749  ;;  %3771 = vrot.lane.b32.xlu0 %v13295_v21, %s8767_s23  ;;  %v3954_v12 = vld [vmem:[#allocation3 + $0x168] sm:$0xff] }
 0x491   : > { %3829 = vst.msk [vmem:[#allocation3 + $0x188] sm:$0xff] %vm3172_vm4, %v3750_v60  ;;  %v6172_v60 = vld [vmem:[%s13181_s5 + $0x50] sm:$0xff] }
 0x492   : > { %3581 = vrot.lane.b32.xlu1 %v10920_v24, %s8766_s22  ;;  %v2916_v49 = vpop.permute.xlu0 %2915  ;;  %v3955_v39 = vld [vmem:[#allocation3 + $0x170] sm:$0xff] }
 0x493   : > { %2996 = vst.msk [vmem:[#allocation3 + $0x180] sm:$0xff] %vm2979_vm3, %v2916_v49  ;;  %4283 = vmatprep.mubr.f32.mxu1 %v3955_v39  ;;  %v6171_v49 = vld [vmem:[%s13181_s5 + $0x48] sm:$0xff] }
 0x494   : > { %v3368_v19 = vpop.permute.xlu1 %3367  ;;  %3389 = vrot.lane.b32.xlu0 %v3297_v38, %s8765_s15  ;;  %4284 = vmatmul.mubr.f32.gmra.mxu1 %v3954_v12  ;;  %v6169_v12 = vld [vmem:[%s13181_s5 + $0x38] sm:$0xff] }
 0x495   : > { %3446 = vst.msk [vmem:[#allocation3 + $0x1a0] sm:$0xff] %vm2786_vm13, %v3368_v19 }
 0x496   : > { %3773 = vrot.lane.b32.xlu1 %v10728_v50, %s8767_s23  ;;  %v3109_v46 = vpop.permute.xlu0 %3108 }
 0x497   : > { %3189 = vst.msk [vmem:[#allocation3 + $0x180] sm:$0xff] %vm3172_vm4, %v3109_v46 }
 0x498   : > { %v2918_v58 = vpop.permute.xlu1 %2917  ;;  %2939 = vrot.lane.b32.xlu0 %v3295_v52, %s8766_s22  ;;  %v3958_v10 = vld [vmem:[#allocation3 + $0x188] sm:$0xff]  ;;  %v6194_v52 = vld [vmem:[%s13181_s5 + $0x100] sm:$0xff] }
 0x499   : > { %2997 = vst.msk [vmem:[#allocation3 + $0x198] sm:$0xff] %vm2979_vm3, %v2918_v58  ;;  %4288 = vmatprep.mubr.f32.mxu1 %v3958_v10  ;;  %v6168_v58 = vld [vmem:[%s13181_s5 + $0x30] sm:$0xff] }
 0x49a   : > { %3391 = vrot.lane.b32.xlu1 %v3298_v14, %s8765_s15  ;;  %v3560_v41 = vpop.permute.xlu0 %3559 }
 0x49b   : > { %3638 = vst.msk [vmem:[#allocation3 + $0x1a0] sm:$0xff] %vm2979_vm3, %v3560_v41 }
 0x49c   : > { %v3111_v56 = vpop.permute.xlu1 %3110  ;;  %3132 = vrot.lane.b32.xlu0 %v3040_v23, %s8767_s23  ;;  %v6167_v23 = vld [vmem:[%s13181_s5 + $0x28] sm:$0xff] }
 0x49d   : > { %3190 = vst.msk [vmem:[#allocation3 + $0x198] sm:$0xff] %vm3172_vm4, %v3111_v56 }
 0x49e   : > { %2941 = vrot.lane.b32.xlu1 %v3296_v43, %s8766_s22  ;;  %v3752_v50 = vpop.permute.xlu0 %3751  ;;  %v3957_v57 = vld [vmem:[#allocation3 + $0x180] sm:$0xff] }
 0x49f   : > { %3830 = vst.msk [vmem:[#allocation3 + $0x1a0] sm:$0xff] %vm3172_vm4, %v3752_v50  ;;  %4289 = vmatmul.mubr.f32.gmra.mxu1 %v3957_v57  ;;  %v6166_v50 = vld [vmem:[%s13181_s5 + $0x20] sm:$0xff] }
 0x4a0   : > { %v3562_v47 = vpop.permute.xlu1 %3561  ;;  %3583 = vrot.lane.b32.xlu0 %v3490_v45, %s8766_s22 }
 0x4a2   : > { %3134 = vrot.lane.b32.xlu1 %v3488_v17, %s8767_s23  ;;  %v3370_v37 = vpop.permute.xlu0 %3369  ;;  %v6174_v17 = vld [vmem:[%s13181_s5 + $0x60] sm:$0xff] }
 0x4a3   : > { %3447 = vst.msk [vmem:[#allocation3 + $0x1b8] sm:$0xff] %vm2786_vm13, %v3370_v37  ;;  %6308 = vmatpush1.msra.mxu0 %v6174_v17  ;;  %v6164_v37 = vld [vmem:[%s13181_s5 + $0x10] sm:$0xff] }
 0x4a4   : > { %3639 = vst.msk [vmem:[#allocation3 + $0x1b8] sm:$0xff] %vm2979_vm3, %v3562_v47  ;;  %v3754_v4 = vpop.permute.xlu1 %3753  ;;  %3775 = vrot.lane.b32.xlu0 %v10731_v32, %s8767_s23  ;;  %v3960_v30 = vld [vmem:[#allocation3 + $0x198] sm:$0xff]  ;;  %6309 = vmatprep.subr.mxu0 %v13285_v61  ;;  %v4722_v47 = vld [vmem:[#allocation2] sm:$0xff] }
 0x4a5   : > { %3831 = vst.msk [vmem:[#allocation3 + $0x1b8] sm:$0xff] %vm3172_vm4, %v3754_v4  ;;  %6310 = vmatpush1.msra.mxu0 %v6173_v27  ;;  %v6187_v27 = vld [vmem:[%s13181_s5 + $0xc8] sm:$0xff] }
 0x4a6   : > { %3585 = vrot.lane.b32.xlu1 %v3491_v53, %s8766_s22  ;;  %v2920_v13 = vpop.permute.xlu0 %2919  ;;  %v3961_v59 = vld [vmem:[#allocation3 + $0x1a0] sm:$0xff]  ;;  %6311 = vmatprep.subr.mxu0 %v13285_v61  ;;  %4754 = vst.msk [vmem:[#allocation3] sm:$0xff] %vm333_vm0, %v4722_v47 }
 0x4a7   : > { %2998 = vst.msk [vmem:[#allocation3 + $0x1b0] sm:$0xff] %vm2979_vm3, %v2920_v13  ;;  %4293 = vmatprep.mubr.f32.mxu1 %v3961_v59  ;;  %6312 = vmatpush1.msra.mxu0 %v6172_v60  ;;  %v11061_v13 = vld [vmem:[%s13180_s4] ss:$0 sm:$0xff]  ;;  %v6163_v59 = vld [vmem:[%s13181_s5 + $0x8] sm:$0xff] }
 0x4a8   : > { %v3372_v44 = vpop.permute.xlu1 %3371  ;;  %3393 = vrot.lane.b32.xlu0 %v10715_v9, %s8765_s15  ;;  %4294 = vmatmul.mubr.f32.gmra.mxu1 %v3960_v30  ;;  %v4004_v9 = vld [vmem:[#allocation3 + $0x2f8] sm:$0xff] }
 0x4a9   : > { %3448 = vst.msk [vmem:[#allocation3 + $0x1d0] sm:$0xff] %vm2786_vm13, %v3372_v44  ;;  %8553 = vmatmul.mubr.msk.f32.gmra.mxu0 %vm333_vm0, %v4004_v9  ;;  %6313 = vmatprep.subr.mxu0 %v13285_v61  ;;  %v4435_v44 = vpop.f32.mrf.mxu0 }
 0x4aa   : > { %3777 = vrot.lane.b32.xlu1 %v3683_v63, %s8767_s23  ;;  %v3113_v32 = vpop.permute.xlu0 %3112  ;;  %6065 = vst.msk [vmem:[#allocation3 + $0x2f8] sm:$0xff] %vm333_vm0, %v3876_v2  ;;  %6314 = vmatpush1.msra.mxu0 %v6171_v49 }
 0x4ab   : > { %3191 = vst.msk [vmem:[#allocation3 + $0x1b0] sm:$0xff] %vm3172_vm4, %v3113_v32  ;;  %6315 = vmatprep.subr.mxu0 %v13285_v61  ;;  %v11102_v28 = vpop.f32.mrf.mxu0 }
 0x4ac   : > { %v2922_v20 = vpop.permute.xlu1 %2921  ;;  %2943 = vrot.lane.b32.xlu0 %v3297_v38, %s8766_s22  ;;  %v3964_v25 = vld [vmem:[#allocation3 + $0x1b8] sm:$0xff]  ;;  %v6170_v38 = vld [vmem:[%s13181_s5 + $0x40] sm:$0xff] }
 0x4ad   : > { %2999 = vst.msk [vmem:[#allocation3 + $0x1c8] sm:$0xff] %vm2979_vm3, %v2922_v20  ;;  %4298 = vmatprep.mubr.f32.mxu1 %v3964_v25  ;;  %6316 = vmatpush1.msra.mxu0 %v6170_v38  ;;  %v6162_v20 = vld [vmem:[%s13181_s5] sm:$0xff] }
 0x4ae   : > { %3395 = vrot.lane.b32.xlu1 %v10720_v3, %s8765_s15  ;;  %v3564_v0 = vpop.permute.xlu0 %3563  ;;  %v6197_v3 = vld [vmem:[%s13181_s5 + $0x118] sm:$0xff]  ;;  %6317 = vmatprep.subr.mxu0 %v13285_v61 }
 0x4af   : > { %3640 = vst.msk [vmem:[#allocation3 + $0x1d0] sm:$0xff] %vm2979_vm3, %v3564_v0  ;;  %8555 = vmatprep.subr.mxu1 %v6197_v3  ;;  %6318 = vmatpush1.msra.mxu0 %v6169_v12  ;;  %v4787_v12 = vld [vmem:[#allocation2 + $0x9] sm:$0xff] }
 0x4b0   : > { %v3115_v8 = vpop.permute.xlu1 %3114  ;;  %3136 = vrot.lane.b32.xlu0 %v10920_v24, %s8767_s23  ;;  %8556 = vmatpush3.msra.mxu1 %v6197_v3  ;;  %v6191_v3 = vld [vmem:[%s13181_s5 + $0xe8] sm:$0xff] }
 0x4b1   : > { %3192 = vst.msk [vmem:[#allocation3 + $0x1c8] sm:$0xff] %vm3172_vm4, %v3115_v8  ;;  %8557 = vmatprep.subr.mxu1 %v6196_v18  ;;  %6319 = vmatprep.subr.mxu0 %v13285_v61  ;;  %v6193_v8 = vld [vmem:[%s13181_s5 + $0xf8] sm:$0xff] }
 0x4b2   : > { %2945 = vrot.lane.b32.xlu1 %v3298_v14, %s8766_s22  ;;  %v3756_v5 = vpop.permute.xlu0 %3755  ;;  %v3963_v22 = vld [vmem:[#allocation3 + $0x1b0] sm:$0xff]  ;;  %8558 = vmatpush3.msra.mxu1 %v6196_v18 }
 0x4b3   : > { %3832 = vst.msk [vmem:[#allocation3 + $0x1d0] sm:$0xff] %vm3172_vm4, %v3756_v5  ;;  %4299 = vmatmul.mubr.f32.gmra.mxu1 %v3963_v22  ;;  %8559 = vmatprep.subr.mxu1 %v6195_v29  ;;  %v6192_v5 = vld [vmem:[%s13181_s5 + $0xf0] sm:$0xff] }
 0x4b4   : > { %v3566_v34 = vpop.permute.xlu1 %3565  ;;  %3587 = vrot.lane.b32.xlu0 %v3492_v31, %s8766_s22  ;;  %8560 = vmatpush3.msra.mxu1 %v6195_v29 }
 0x4b5   : > { %8561 = vmatprep.subr.mxu1 %v6194_v52  ;;  %6320 = vmatpush1.msra.mxu0 %v6168_v58 }
 0x4b6   : > { %3138 = vrot.lane.b32.xlu1 %v3490_v45, %s8767_s23  ;;  %v3374_v51 = vpop.permute.xlu0 %3373  ;;  %8562 = vmatpush3.msra.mxu1 %v6194_v52  ;;  %v6165_v45 = vld [vmem:[%s13181_s5 + $0x18] sm:$0xff] }
 0x4b7   : > { %3449 = vst.msk [vmem:[#allocation3 + $0x1e8] sm:$0xff] %vm2786_vm13, %v3374_v51  ;;  %6321 = vmatprep.subr.mxu0 %v13285_v61 }
 0x4b8   : > { %3641 = vst.msk [vmem:[#allocation3 + $0x1e8] sm:$0xff] %vm2979_vm3, %v3566_v34  ;;  %v3758_v11 = vpop.permute.xlu1 %3757  ;;  %3779 = vrot.lane.b32.xlu0 %v3684_v36, %s8767_s23  ;;  %v3966_v42 = vld [vmem:[#allocation3 + $0x1c8] sm:$0xff]  ;;  %6322 = vmatpush1.msra.mxu0 %v6167_v23  ;;  %v4723_v34 = vld [vmem:[#allocation2 + $0x8] sm:$0xff] }
 0x4b9   : > { %3833 = vst.msk [vmem:[#allocation3 + $0x1e8] sm:$0xff] %vm3172_vm4, %v3758_v11  ;;  %6323 = vmatprep.subr.mxu0 %v13285_v61  ;;  %v6190_v11 = vld [vmem:[%s13181_s5 + $0xe0] sm:$0xff]  ;;  %v4979_v23 = vld [vmem:[#allocation2 + $0xa] sm:$0xff] }
 0x4ba   : > { %v2924_v1 = vpop.permute.xlu0 %2923  ;;  %v3967_v33 = vld [vmem:[#allocation3 + $0x1d0] sm:$0xff]  ;;  %4850 = vrot.lane.b32.xlu1 %v4786_v40, %s8765_s15  ;;  %6324 = vmatpush1.msra.mxu0 %v6166_v50  ;;  %4755 = vst.msk [vmem:[#allocation3 + $0x18] sm:$0xff] %vm333_vm0, %v4723_v34  ;;  %v6179_v34 = vld [vmem:[%s13181_s5 + $0x88] sm:$0xff] }
 0x4bb   : > { %3000 = vst.msk [vmem:[#allocation3 + $0x1e0] sm:$0xff] %vm2979_vm3, %v2924_v1  ;;  %4303 = vmatprep.mubr.f32.mxu1 %v3967_v33  ;;  %6325 = vmatprep.subr.mxu0 %v13285_v61 }
 0x4bc   : > { %v3376_v43 = vpop.permute.xlu1 %3375  ;;  %4304 = vmatmul.mubr.f32.gmra.mxu1 %v3966_v42  ;;  %6326 = vmatpush1.msra.mxu0 %v6165_v45 }
 0x4bd   : > { %3450 = vst.msk [vmem:[#allocation3 + $0x200] sm:$0xff] %vm2786_vm13, %v3376_v43  ;;  %6327 = vmatprep.subr.mxu0 %v13285_v61 }
 0x4be   : > { %v3117_v6 = vpop.permute.xlu0 %3116  ;;  %5042 = vrot.lane.b32.xlu1 %v4978_v26, %s8766_s22  ;;  %6328 = vmatpush1.msra.mxu0 %v6164_v37 }
 0x4bf   : > { %3193 = vst.msk [vmem:[#allocation3 + $0x1e0] sm:$0xff] %vm3172_vm4, %v3117_v6  ;;  %6329 = vmatprep.subr.mxu0 %v13285_v61 }
 0x4c0   : > { %v2926_v62 = vpop.permute.xlu1 %2925  ;;  %v3970_v54 = vld [vmem:[#allocation3 + $0x1e8] sm:$0xff]  ;;  %6330 = vmatpush1.msra.mxu0 %v6163_v59 }
 0x4c1   : > { %3001 = vst.msk [vmem:[#allocation3 + $0x1f8] sm:$0xff] %vm2979_vm3, %v2926_v62  ;;  %4308 = vmatprep.mubr.f32.mxu1 %v3970_v54  ;;  %6331 = vmatprep.subr.mxu0 %v13285_v61 }
 0x4c2   : > { %v3568_v35 = vpop.permute.xlu0 %3567  ;;  %6332 = vmatpush1.msra.mxu0 %v6162_v20 }
 0x4c3   : > { %3642 = vst.msk [vmem:[#allocation3 + $0x200] sm:$0xff] %vm2979_vm3, %v3568_v35  ;;  %6333 = vmatprep.subr.mxu0 %v13285_v61 }
 0x4c4   : > { %v3119_v15 = vpop.permute.xlu1 %3118  ;;  %6334 = vmatpush2.msra.mxu0 %v6193_v8  ;;  %v6180_v8 = vld [vmem:[%s13181_s5 + $0x90] sm:$0xff] }
 0x4c5   : > { %3194 = vst.msk [vmem:[#allocation3 + $0x1f8] sm:$0xff] %vm3172_vm4, %v3119_v15  ;;  %6335 = vmatprep.subr.mxu0 %v13285_v61 }
 0x4c6   : > { %v3760_v21 = vpop.permute.xlu0 %3759  ;;  %v3969_v24 = vld [vmem:[#allocation3 + $0x1e0] sm:$0xff]  ;;  %6336 = vmatpush2.msra.mxu0 %v6192_v5 }
 0x4c7   : > { %3834 = vst.msk [vmem:[#allocation3 + $0x200] sm:$0xff] %vm3172_vm4, %v3760_v21  ;;  %4309 = vmatmul.mubr.f32.gmra.mxu1 %v3969_v24  ;;  %6337 = vmatprep.subr.mxu0 %v13285_v61  ;;  %v6186_v24 = vld [vmem:[%s13181_s5 + $0xc0] sm:$0xff] }
 0x4c8   : > { %v3570_v39 = vpop.permute.xlu1 %3569  ;;  %6338 = vmatpush2.msra.mxu0 %v6191_v3 }
 0x4c9   : > { %6339 = vmatprep.subr.mxu0 %v13285_v61 }
 0x4ca   : > { %v3378_v19 = vpop.permute.xlu0 %3377  ;;  %6340 = vmatpush2.msra.mxu0 %v6190_v11 }
 0x4cb   : > { %3451 = vst.msk [vmem:[#allocation3 + $0x218] sm:$0xff] %vm2786_vm13, %v3378_v19  ;;  %6341 = vmatprep.subr.mxu0 %v13285_v61 }
 0x4cc   : > { %3643 = vst.msk [vmem:[#allocation3 + $0x218] sm:$0xff] %vm2979_vm3, %v3570_v39  ;;  %v3762_v46 = vpop.permute.xlu1 %3761  ;;  %v3972_v41 = vld [vmem:[#allocation3 + $0x1f8] sm:$0xff]  ;;  %6342 = vmatpush2.msra.mxu0 %v6189_v7  ;;  %v4445_v39 = vpop.f32.mrf.mxu0 }
 0x4cd   : > { %3835 = vst.msk [vmem:[#allocation3 + $0x218] sm:$0xff] %vm3172_vm4, %v3762_v46  ;;  %6343 = vmatprep.subr.mxu0 %v13285_v61 }
 0x4ce   : > { %v2928_v10 = vpop.permute.xlu0 %2927  ;;  %v3973_v14 = vld [vmem:[#allocation3 + $0x200] sm:$0xff]  ;;  %6344 = vmatpush2.msra.mxu0 %v6188_v55 }
 0x4cf   : > { %3002 = vst.msk [vmem:[#allocation3 + $0x210] sm:$0xff] %vm2979_vm3, %v2928_v10  ;;  %4313 = vmatprep.mubr.f32.mxu1 %v3973_v14  ;;  %6345 = vmatprep.subr.mxu0 %v13285_v61  ;;  %v6185_v10 = vld [vmem:[%s13181_s5 + $0xb8] sm:$0xff] }
 0x4d0   : > { %v3380_v56 = vpop.permute.xlu1 %3379  ;;  %4314 = vmatmul.mubr.f32.gmra.mxu1 %v3972_v41  ;;  %6346 = vmatpush2.msra.mxu0 %v6187_v27 }
 0x4d1   : > { %3452 = vst.msk [vmem:[#allocation3 + $0x230] sm:$0xff] %vm2786_vm13, %v3380_v56  ;;  %6347 = vmatprep.subr.mxu0 %v13285_v61  ;;  %v6184_v56 = vld [vmem:[%s13181_s5 + $0xb0] sm:$0xff] }
 0x4d2   : > { %v3121_v57 = vpop.permute.xlu0 %3120  ;;  %6348 = vmatpush2.msra.mxu0 %v6186_v24 }
 0x4d3   : > { %3195 = vst.msk [vmem:[#allocation3 + $0x210] sm:$0xff] %vm3172_vm4, %v3121_v57  ;;  %6349 = vmatprep.subr.mxu0 %v13285_v61 }
 0x4d4   : > { %v2930_v53 = vpop.permute.xlu1 %2929  ;;  %v3976_v4 = vld [vmem:[#allocation3 + $0x218] sm:$0xff]  ;;  %6350 = vmatpush2.msra.mxu0 %v6185_v10 }
 0x4d5   : > { %3003 = vst.msk [vmem:[#allocation3 + $0x228] sm:$0xff] %vm2979_vm3, %v2930_v53  ;;  %4318 = vmatprep.mubr.f32.mxu1 %v3976_v4  ;;  %6351 = vmatprep.subr.mxu0 %v13285_v61 }
 0x4d6   : > { %v3572_v2 = vpop.permute.xlu0 %3571  ;;  %6352 = vmatpush2.msra.mxu0 %v6184_v56 }
 0x4d7   : > { %3644 = vst.msk [vmem:[#allocation3 + $0x230] sm:$0xff] %vm2979_vm3, %v3572_v2  ;;  %6353 = vmatprep.subr.mxu0 %v13285_v61  ;;  %v6182_v2 = vld [vmem:[%s13181_s5 + $0xa0] sm:$0xff] }
 0x4d8   : > { %v3123_v30 = vpop.permute.xlu1 %3122  ;;  %v4210_v63 = vpop.f32.mrf.mxu1 }
 0x4d9   : > { %3196 = vst.msk [vmem:[#allocation3 + $0x228] sm:$0xff] %vm3172_vm4, %v3123_v30  ;;  %v4211_v32 = vadd.f32 %v11061_v13, %v4210_v63 }
 0x4da   : > { %v4212_v25 = vpop.f32.mrf.mxu1  ;;  %v3764_v16 = vpop.permute.xlu0 %3763  ;;  %v3975_v9 = vld [vmem:[#allocation3 + $0x210] sm:$0xff] }
 0x4db   : > { %v4436_v0 = vadd.f32 %v4435_v44, %v4211_v32  ;;  %3836 = vst.msk [vmem:[#allocation3 + $0x230] sm:$0xff] %vm3172_vm4, %v3764_v16  ;;  %4319 = vmatmul.mubr.f32.gmra.mxu1 %v3975_v9  ;;  %v6181_v32 = vld [vmem:[%s13181_s5 + $0x98] sm:$0xff]  ;;  %v11167_v9 = vpop.f32.mrf.mxu0 }
 0x4dc   : > { %v3574_v31 = vpop.permute.xlu1 %3573 }
 0x4dd   : > { %vm4594_vm5 = vcmp.ge.f32.partialorder %v4436_v0, 0.0  ;;  %v4626_v22 = vmul.f32 0.2, %v4436_v0  ;;  %v4455_v11 = vpop.f32.mrf.mxu0 }
 0x4de   : > { %v3382_v18 = vpop.permute.xlu0 %3381 }
 0x4df   : > { %v4658_v36 = vsel %vm4594_vm5, %v4436_v0, %v4626_v22  ;;  %3453 = vst.msk [vmem:[#allocation3 + $0x248] sm:$0xff] %vm2786_vm13, %v3382_v18 }
 0x4e0   : > { %4690 = vst.msk [vmem:[#allocation2 + $0x19] sm:$0xff] %vm333_vm0, %v4658_v36  ;;  %v3766_v51 = vpop.permute.xlu1 %3765  ;;  %v4215_v29 = vpop.f32.mrf.mxu1  ;;  %v3978_v26 = vld [vmem:[#allocation3 + $0x228] sm:$0xff] }
 0x4e1   : > { %3645 = vst.msk [vmem:[#allocation3 + $0x248] sm:$0xff] %vm2979_vm3, %v3574_v31  ;;  %v4216_v40 = vadd.f32 %v11061_v13, %v4215_v29 }
 0x4e2   : > { %3837 = vst.msk [vmem:[#allocation3 + $0x248] sm:$0xff] %vm3172_vm4, %v3766_v51  ;;  %v4217_v52 = vpop.f32.mrf.mxu1  ;;  %v2932_v1 = vpop.permute.xlu0 %2931  ;;  %v3979_v33 = vld [vmem:[#allocation3 + $0x230] sm:$0xff] }
 0x4e3   : > { %v4441_v42 = vadd.f32 %v8509_v48, %v4216_v40  ;;  %3004 = vst.msk [vmem:[#allocation3 + $0x240] sm:$0xff] %vm2979_vm3, %v2932_v1  ;;  %4323 = vmatprep.mubr.f32.mxu1 %v3979_v33  ;;  %v6183_v48 = vld [vmem:[%s13181_s5 + $0xa8] sm:$0xff] }
 0x4e4   : > { %v3384_v43 = vpop.permute.xlu1 %3383  ;;  %4324 = vmatmul.mubr.f32.gmra.mxu1 %v3978_v26  ;;  %6354 = vmatpush2.msra.mxu0 %v6183_v48 }
 0x4e5   : > { %vm4595_vm6 = vcmp.ge.f32.partialorder %v4441_v42, 0.0  ;;  %v4627_v6 = vmul.f32 0.2, %v4441_v42  ;;  %3454 = vst.msk [vmem:[#allocation3 + $0x260] sm:$0xff] %vm2786_vm13, %v3384_v43  ;;  %6355 = vmatprep.subr.mxu0 %v13285_v61 }
 0x4e6   : > { %v3125_v62 = vpop.permute.xlu0 %3124  ;;  %6356 = vmatpush2.msra.mxu0 %v6182_v2 }
 0x4e7   : > { %v4659_v54 = vsel %vm4595_vm6, %v4441_v42, %v4627_v6  ;;  %3197 = vst.msk [vmem:[#allocation3 + $0x240] sm:$0xff] %vm3172_vm4, %v3125_v62  ;;  %v5170_v17 = vld [vmem:[#allocation2 + $0x18] sm:$0xff]  ;;  %6357 = vmatprep.subr.mxu0 %v13285_v61  ;;  %v6178_v42 = vld [vmem:[%s13181_s5 + $0x80] sm:$0xff] }
 0x4e8   : > { %v11110_v35 = vld [vmem:[#allocation2 + $0x19] sm:$0xff]  ;;  %4691 = vst.msk [vmem:[#allocation2 + $0x21] sm:$0xff] %vm333_vm0, %v4659_v54  ;;  %v2934_v15 = vpop.permute.xlu1 %2933  ;;  %5234 = vrot.lane.b32.xlu1 %v5170_v17, %s8767_s23  ;;  %v4220_v60 = vpop.f32.mrf.mxu1  ;;  %6358 = vmatpush2.msra.mxu0 %v6181_v32 }
 0x4e9   : > { %v3982_v21 = vld [vmem:[#allocation3 + $0x248] sm:$0xff]  ;;  %5394 = vst.msk [vmem:[#allocation3 + $0x8] sm:$0xff] %vm333_vm0, %v11110_v35  ;;  %v4221_v38 = vadd.f32 %v11061_v13, %v4220_v60  ;;  %6359 = vmatprep.subr.mxu0 %v13285_v61 }
 0x4ea   : > { %v4724_v49 = vld [vmem:[#allocation2 + $0x18] sm:$0xff]  ;;  %3005 = vst.msk [vmem:[#allocation3 + $0x258] sm:$0xff] %vm2979_vm3, %v2934_v15  ;;  %4328 = vmatprep.mubr.f32.mxu1 %v3982_v21  ;;  %v4222_v19 = vpop.f32.mrf.mxu1  ;;  %v3576_v46 = vpop.permute.xlu0 %3575  ;;  %6360 = vmatpush2.msra.mxu0 %v6180_v8 }
 0x4eb   : > { %4756 = vst.msk [vmem:[#allocation3 + $0x30] sm:$0xff] %vm333_vm0, %v4724_v49  ;;  %v4446_v58 = vadd.f32 %v4445_v39, %v4221_v38  ;;  %6361 = vmatprep.subr.mxu0 %v13285_v61 }
 0x4ec   : > { %3646 = vst.msk [vmem:[#allocation3 + $0x260] sm:$0xff] %vm2979_vm3, %v3576_v46  ;;  %v3127_v14 = vpop.permute.xlu1 %3126  ;;  %4852 = vrot.lane.b32.xlu1 %v4787_v12, %s8765_s15  ;;  %6362 = vmatpush2.msra.mxu0 %v6179_v34  ;;  %v8518_v46 = vpop.f32.mrf.mxu0 }
 0x4ed   : > { %vm4596_vm7 = vcmp.ge.f32.partialorder %v4446_v58, 0.0  ;;  %v4628_v41 = vmul.f32 0.2, %v4446_v58  ;;  %3198 = vst.msk [vmem:[#allocation3 + $0x258] sm:$0xff] %vm3172_vm4, %v3127_v14  ;;  %6363 = vmatprep.subr.mxu0 %v13285_v61 }
 0x4ee   : > { %v3768_v50 = vpop.permute.xlu0 %3767  ;;  %v3981_v57 = vld [vmem:[#allocation3 + $0x240] sm:$0xff]  ;;  %6364 = vmatpush2.msra.mxu0 %v6178_v42 }
 0x4ef   : > { %v4660_v45 = vsel %vm4596_vm7, %v4446_v58, %v4628_v41  ;;  %3838 = vst.msk [vmem:[#allocation3 + $0x260] sm:$0xff] %vm3172_vm4, %v3768_v50  ;;  %4329 = vmatmul.mubr.f32.gmra.mxu1 %v3981_v57  ;;  %v11139_v47 = vld [vmem:[#allocation2 + $0x1a] sm:$0xff]  ;;  %v5427_v54 = vld [vmem:[#allocation2 + $0x22] sm:$0xff]  ;;  %v4465_v57 = vpop.f32.mrf.mxu0 }
 0x4f0   : > { %4692 = vst.msk [vmem:[#allocation2 + $0x31] sm:$0xff] %vm333_vm0, %v4660_v45  ;;  %v3578_v37 = vpop.permute.xlu1 %3577  ;;  %5044 = vrot.lane.b32.xlu1 %v4979_v23, %s8766_s22  ;;  %v4225_v53 = vpop.f32.mrf.mxu1  ;;  %5490 = vrot.lane.b32.xlu0 %v11139_v47, %s8765_s15  ;;  %v11146_v4 = vld [vmem:[#allocation2 + $0x21] sm:$0xff] }
 0x4f1   : > { %v4226_v59 = vadd.f32 %v11061_v13, %v4225_v53  ;;  %5395 = vst.msk [vmem:[#allocation3 + $0x20] sm:$0xff] %vm333_vm0, %v11146_v4  ;;  %v4725_v30 = vld [vmem:[#allocation2 + $0x20] sm:$0xff] }
 0x4f2   : > { %v4227_v63 = vpop.f32.mrf.mxu1  ;;  %v3386_v44 = vpop.permute.xlu0 %3385  ;;  %4757 = vst.msk [vmem:[#allocation3 + $0x48] sm:$0xff] %vm333_vm0, %v4725_v30  ;;  %v5171_v25 = vld [vmem:[#allocation2 + $0x20] sm:$0xff] }
 0x4f3   : > { %v4451_v20 = vadd.f32 %v11102_v28, %v4226_v59  ;;  %3455 = vst.msk [vmem:[#allocation3 + $0x278] sm:$0xff] %vm2786_vm13, %v3386_v44 }
 0x4f4   : > { %3647 = vst.msk [vmem:[#allocation3 + $0x278] sm:$0xff] %vm2979_vm3, %v3578_v37  ;;  %v3770_v16 = vpop.permute.xlu1 %3769  ;;  %5236 = vrot.lane.b32.xlu1 %v5171_v25, %s8767_s23  ;;  %v3984_v51 = vld [vmem:[#allocation3 + $0x258] sm:$0xff] }
 0x4f5   : > { %vm4597_vm8 = vcmp.ge.f32.partialorder %v4451_v20, 0.0  ;;  %v4629_v0 = vmul.f32 0.2, %v4451_v20  ;;  %3839 = vst.msk [vmem:[#allocation3 + $0x278] sm:$0xff] %vm3172_vm4, %v3770_v16 }
 0x4f6   : > { %v2936_v31 = vpop.permute.xlu0 %2935  ;;  %v3985_v5 = vld [vmem:[#allocation3 + $0x260] sm:$0xff] }
 0x4f7   : > { %v4661_v22 = vsel %vm4597_vm8, %v4451_v20, %v4629_v0  ;;  %3006 = vst.msk [vmem:[#allocation3 + $0x270] sm:$0xff] %vm2979_vm3, %v2936_v31  ;;  %4333 = vmatprep.mubr.f32.mxu1 %v3985_v5  ;;  %v5618_v3 = vld [vmem:[#allocation2 + $0x30] sm:$0xff] }
 0x4f8   : > { %4693 = vst.msk [vmem:[#allocation2 + $0x39] sm:$0xff] %vm333_vm0, %v4661_v22  ;;  %v3388_v18 = vpop.permute.xlu1 %3387  ;;  %4854 = vrot.lane.b32.xlu1 %v11110_v35, %s8765_s15  ;;  %5682 = vrot.lane.b32.xlu0 %v5618_v3, %s8766_s22  ;;  %v4230_v36 = vpop.f32.mrf.mxu1  ;;  %v5364_v29 = vld [vmem:[#allocation2 + $0x31] sm:$0xff] }
 0x4f9   : > { %v4726_v40 = vld [vmem:[#allocation2 + $0x30] sm:$0xff]  ;;  %3456 = vst.msk [vmem:[#allocation3 + $0x290] sm:$0xff] %vm2786_vm13, %v3388_v18  ;;  %v4231_v52 = vadd.f32 %v11061_v13, %v4230_v36  ;;  %4334 = vmatmul.mubr.f32.gmra.mxu1 %v3984_v51  ;;  %v8521_v51 = vpop.f32.mrf.mxu0 }
 0x4fa   : > { %5396 = vst.msk [vmem:[#allocation3 + $0x38] sm:$0xff] %vm333_vm0, %v5364_v29  ;;  %4758 = vst.msk [vmem:[#allocation3 + $0x60] sm:$0xff] %vm333_vm0, %v4726_v40  ;;  %v3129_v1 = vpop.permute.xlu0 %3128  ;;  %v4232_v33 = vpop.f32.mrf.mxu1  ;;  %v11191_v7 = vld [vmem:[#allocation2 + $0x31] sm:$0xff] }
 0x4fb   : > { %v4456_v26 = vadd.f32 %v4455_v11, %v4231_v52  ;;  %3199 = vst.msk [vmem:[#allocation3 + $0x270] sm:$0xff] %vm3172_vm4, %v3129_v1 }
 0x4fc   : > { %v2938_v43 = vpop.permute.xlu1 %2937  ;;  %5046 = vrot.lane.b32.xlu1 %v11139_v47, %s8766_s22  ;;  %5874 = vrot.lane.b32.xlu0 %v11191_v7, %s8767_s23  ;;  %v3988_v28 = vld [vmem:[#allocation3 + $0x278] sm:$0xff] }
 0x4fd   : > { %vm4598_vm9 = vcmp.ge.f32.partialorder %v4456_v26, 0.0  ;;  %v4630_v6 = vmul.f32 0.2, %v4456_v26  ;;  %3007 = vst.msk [vmem:[#allocation3 + $0x288] sm:$0xff] %vm2979_vm3, %v2938_v43  ;;  %4338 = vmatprep.mubr.f32.mxu1 %v3988_v28 }
 0x4fe   : > { %v3580_v55 = vpop.permute.xlu0 %3579 }
 0x4ff   : > { %v4662_v62 = vsel %vm4598_vm9, %v4456_v26, %v4630_v6  ;;  %3648 = vst.msk [vmem:[#allocation3 + $0x290] sm:$0xff] %vm2979_vm3, %v3580_v55  ;;  %v11200_v61 = vld [vmem:[#allocation2 + $0x32] sm:$0xff]  ;;  %v11205_v27 = vld [vmem:[#allocation2 + $0x3a] sm:$0xff] }
 0x500   : > { %4694 = vst.msk [vmem:[#allocation2 + $0x49] sm:$0xff] %vm333_vm0, %v4662_v62  ;;  %v3131_v17 = vpop.permute.xlu1 %3130  ;;  %5492 = vrot.lane.b32.xlu0 %v5427_v54, %s8765_s15  ;;  %5238 = vrot.lane.b32.xlu1 %v5618_v3, %s8767_s23  ;;  %v4235_v35 = vpop.f32.mrf.mxu1  ;;  %6034 = vst.msk [vmem:[#allocation3 + $0x10] sm:$0xff] %vm333_vm0, %v11200_v61  ;;  %v5365_v15 = vld [vmem:[#allocation2 + $0x39] sm:$0xff] }
 0x501   : > { %v4727_v60 = vld [vmem:[#allocation2 + $0x38] sm:$0xff]  ;;  %3200 = vst.msk [vmem:[#allocation3 + $0x288] sm:$0xff] %vm3172_vm4, %v3131_v17  ;;  %v4236_v21 = vadd.f32 %v11061_v13, %v4235_v35 }
 0x502   : > { %6035 = vst.msk [vmem:[#allocation3 + $0x28] sm:$0xff] %vm333_vm0, %v11205_v27  ;;  %5397 = vst.msk [vmem:[#allocation3 + $0x50] sm:$0xff] %vm333_vm0, %v5365_v15  ;;  %v3772_v24 = vpop.permute.xlu0 %3771  ;;  %v4237_v49 = vpop.f32.mrf.mxu1  ;;  %v3987_v39 = vld [vmem:[#allocation3 + $0x270] sm:$0xff]  ;;  %v5619_v12 = vld [vmem:[#allocation2 + $0x38] sm:$0xff] }
 0x503   : > { %4759 = vst.msk [vmem:[#allocation3 + $0x78] sm:$0xff] %vm333_vm0, %v4727_v60  ;;  %v4461_v38 = vadd.f32 %v11167_v9, %v4236_v21  ;;  %4339 = vmatmul.mubr.f32.gmra.mxu1 %v3987_v39  ;;  %v11221_v41 = vld [vmem:[#allocation2 + $0x39] sm:$0xff] }
 0x504   : > { %3840 = vst.msk [vmem:[#allocation3 + $0x290] sm:$0xff] %vm3172_vm4, %v3772_v24  ;;  %v3582_v19 = vpop.permute.xlu1 %3581  ;;  %5684 = vrot.lane.b32.xlu0 %v5619_v12, %s8766_s22  ;;  %4856 = vrot.lane.b32.xlu1 %v11146_v4, %s8765_s15 }
 0x505   : > { %vm4599_vm10 = vcmp.ge.f32.partialorder %v4461_v38, 0.0  ;;  %v4631_v58 = vmul.f32 0.2, %v4461_v38 }
 0x506   : > { %v3390_v10 = vpop.permute.xlu0 %3389 }
 0x507   : > { %v4663_v14 = vsel %vm4599_vm10, %v4461_v38, %v4631_v58  ;;  %3457 = vst.msk [vmem:[#allocation3 + $0x2a8] sm:$0xff] %vm2786_vm13, %v3390_v10  ;;  %v5366_v50 = vld [vmem:[#allocation2 + $0x49] sm:$0xff] }
 0x508   : > { %4695 = vst.msk [vmem:[#allocation2 + $0x51] sm:$0xff] %vm333_vm0, %v4663_v14  ;;  %v3774_v23 = vpop.permute.xlu1 %3773  ;;  %5876 = vrot.lane.b32.xlu0 %v11221_v41, %s8767_s23  ;;  %5048 = vrot.lane.b32.xlu1 %v5427_v54, %s8766_s22  ;;  %v4240_v56 = vpop.f32.mrf.mxu1  ;;  %5398 = vst.msk [vmem:[#allocation3 + $0x68] sm:$0xff] %vm333_vm0, %v5366_v50  ;;  %v4728_v47 = vld [vmem:[#allocation2 + $0x48] sm:$0xff]  ;;  %v3990_v59 = vld [vmem:[#allocation3 + $0x288] sm:$0xff] }
 0x509   : > { %3649 = vst.msk [vmem:[#allocation3 + $0x2a8] sm:$0xff] %vm2979_vm3, %v3582_v19  ;;  %v4241_v45 = vadd.f32 %v11061_v13, %v4240_v56  ;;  %v5620_v32 = vld [vmem:[#allocation2 + $0x48] sm:$0xff] }
 0x50a   : > { %3841 = vst.msk [vmem:[#allocation3 + $0x2a8] sm:$0xff] %vm3172_vm4, %v3774_v23  ;;  %v2940_v37 = vpop.permute.xlu0 %2939  ;;  %v4242_v53 = vpop.f32.mrf.mxu1  ;;  %v11255_v18 = vld [vmem:[#allocation2 + $0x49] sm:$0xff] }
 0x50b   : > { %v3991_v4 = vld [vmem:[#allocation3 + $0x290] sm:$0xff]  ;;  %4760 = vst.msk [vmem:[#allocation3 + $0x90] sm:$0xff] %vm333_vm0, %v4728_v47  ;;  %v4466_v48 = vadd.f32 %v4465_v57, %v4241_v45 }
 0x50c   : > { %3008 = vst.msk [vmem:[#allocation3 + $0x2a0] sm:$0xff] %vm2979_vm3, %v2940_v37  ;;  %4343 = vmatprep.mubr.f32.mxu1 %v3991_v4  ;;  %v3392_v2 = vpop.permute.xlu1 %3391  ;;  %5494 = vrot.lane.b32.xlu0 %v11200_v61, %s8765_s15 }
 0x50d   : > { %5240 = vrot.lane.b32.xlu1 %v5619_v12, %s8767_s23  ;;  %vm4600_vm11 = vcmp.ge.f32.partialorder %v4466_v48, 0.0  ;;  %v4632_v30 = vmul.f32 0.2, %v4466_v48  ;;  %3458 = vst.msk [vmem:[#allocation3 + $0x2c0] sm:$0xff] %vm2786_vm13, %v3392_v2  ;;  %4344 = vmatmul.mubr.f32.gmra.mxu1 %v3990_v59 }
 0x50e   : > { %v3133_v63 = vpop.permute.xlu0 %3132 }
 0x50f   : > { %v4664_v44 = vsel %vm4600_vm11, %v4466_v48, %v4632_v30  ;;  %3201 = vst.msk [vmem:[#allocation3 + $0x2a0] sm:$0xff] %vm3172_vm4, %v3133_v63  ;;  %v11238_v20 = vld [vmem:[#allocation2 + $0x4a] sm:$0xff]  ;;  %v11244_v0 = vld [vmem:[#allocation2 + $0x52] sm:$0xff] }
 0x510   : > { %4696 = vst.msk [vmem:[#allocation2 + $0x61] sm:$0xff] %vm333_vm0, %v4664_v44  ;;  %v2942_v25 = vpop.permute.xlu1 %2941  ;;  %v4245_v16 = vpop.f32.mrf.mxu1  ;;  %5686 = vrot.lane.b32.xlu0 %v5620_v32, %s8766_s22  ;;  %6036 = vst.msk [vmem:[#allocation3 + $0x40] sm:$0xff] %vm333_vm0, %v11238_v20  ;;  %v5367_v8 = vld [vmem:[#allocation2 + $0x51] sm:$0xff] }
 0x511   : > { %4858 = vrot.lane.b32.xlu1 %v11191_v7, %s8765_s15  ;;  %v3994_v9 = vld [vmem:[#allocation3 + $0x2a8] sm:$0xff]  ;;  %3009 = vst.msk [vmem:[#allocation3 + $0x2b8] sm:$0xff] %vm2979_vm3, %v2942_v25  ;;  %v4246_v31 = vadd.f32 %v11061_v13, %v4245_v16  ;;  %v4729_v5 = vld [vmem:[#allocation2 + $0x50] sm:$0xff]  ;;  %v4475_v7 = vpop.f32.mrf.mxu0 }
 0x512   : > { %4348 = vmatprep.mubr.f32.mxu1 %v3994_v9  ;;  %6037 = vst.msk [vmem:[#allocation3 + $0x58] sm:$0xff] %vm333_vm0, %v11244_v0  ;;  %5399 = vst.msk [vmem:[#allocation3 + $0x80] sm:$0xff] %vm333_vm0, %v5367_v8  ;;  %v3584_v22 = vpop.permute.xlu0 %3583  ;;  %v4247_v3 = vpop.f32.mrf.mxu1  ;;  %v5621_v62 = vld [vmem:[#allocation2 + $0x50] sm:$0xff] }
 0x513   : > { %4761 = vst.msk [vmem:[#allocation3 + $0xa8] sm:$0xff] %vm333_vm0, %v4729_v5  ;;  %v4471_v34 = vadd.f32 %v8518_v46, %v4246_v31  ;;  %v11277_v21 = vld [vmem:[#allocation2 + $0x51] sm:$0xff]  ;;  %v8524_v56 = vpop.f32.mrf.mxu0 }
 0x514   : > { %3650 = vst.msk [vmem:[#allocation3 + $0x2c0] sm:$0xff] %vm2979_vm3, %v3584_v22  ;;  %v3135_v36 = vpop.permute.xlu1 %3134  ;;  %5878 = vrot.lane.b32.xlu0 %v11255_v18, %s8767_s23 }
 0x515   : > { %5050 = vrot.lane.b32.xlu1 %v11200_v61, %s8766_s22  ;;  %vm4601_vm12 = vcmp.ge.f32.partialorder %v4471_v34, 0.0  ;;  %v4633_v29 = vmul.f32 0.2, %v4471_v34  ;;  %3202 = vst.msk [vmem:[#allocation3 + $0x2b8] sm:$0xff] %vm3172_vm4, %v3135_v36  ;;  %v4485_v48 = vpop.f32.mrf.mxu0 }
 0x516   : > { %v3776_v40 = vpop.permute.xlu0 %3775  ;;  %v3993_v11 = vld [vmem:[#allocation3 + $0x2a0] sm:$0xff] }
 0x517   : > { %v4665_v52 = vsel %vm4601_vm12, %v4471_v34, %v4633_v29  ;;  %3842 = vst.msk [vmem:[#allocation3 + $0x2c0] sm:$0xff] %vm3172_vm4, %v3776_v40  ;;  %4349 = vmatmul.mubr.f32.gmra.mxu1 %v3993_v11  ;;  %v5368_v42 = vld [vmem:[#allocation2 + $0x61] sm:$0xff] }
 0x518   : > { %4697 = vst.msk [vmem:[#allocation2 + $0x69] sm:$0xff] %vm333_vm0, %v4665_v52  ;;  %v3586_v1 = vpop.permute.xlu1 %3585  ;;  %v4250_v33 = vpop.f32.mrf.mxu1  ;;  %5496 = vrot.lane.b32.xlu0 %v11205_v27, %s8765_s15  ;;  %v4730_v26 = vld [vmem:[#allocation2 + $0x60] sm:$0xff]  ;;  %5400 = vst.msk [vmem:[#allocation3 + $0x98] sm:$0xff] %vm333_vm0, %v5368_v42  ;;  %v6071_v42 = vld [vmem:[#allocation3 + $0x28] sm:$0xff] }
 0x519   : > { %5242 = vrot.lane.b32.xlu1 %v5620_v32, %s8767_s23  ;;  %v4251_v43 = vadd.f32 %v11061_v13, %v4250_v33  ;;  %4762 = vst.msk [vmem:[#allocation3 + $0xc0] sm:$0xff] %vm333_vm0, %v4730_v26  ;;  %v5622_v45 = vld [vmem:[#allocation2 + $0x60] sm:$0xff] }
 0x51a   : > { %v3394_v28 = vpop.permute.xlu0 %3393  ;;  %v4252_v6 = vpop.f32.mrf.mxu1  ;;  %v11311_v32 = vld [vmem:[#allocation2 + $0x61] sm:$0xff] }
 0x51b   : > { %v4476_v55 = vadd.f32 %v4475_v7, %v4251_v43  ;;  %3459 = vst.msk [vmem:[#allocation3 + $0x2d8] sm:$0xff] %vm2786_vm13, %v3394_v28  ;;  %v6068_v11 = vld [vmem:[#allocation3 + $0x10] sm:$0xff]  ;;  %v6074_v43 = vld [vmem:[#allocation3 + $0x40] sm:$0xff] }
 0x51c   : > { %3651 = vst.msk [vmem:[#allocation3 + $0x2d8] sm:$0xff] %vm2979_vm3, %v3586_v1  ;;  %v3778_v54 = vpop.permute.xlu1 %3777  ;;  %5688 = vrot.lane.b32.xlu0 %v5621_v62, %s8766_s22  ;;  %v3996_v60 = vld [vmem:[#allocation3 + $0x2b8] sm:$0xff]  ;;  %v8527_v1 = vpop.f32.mrf.mxu0 }
 0x51d   : > { %4860 = vrot.lane.b32.xlu1 %v11221_v41, %s8765_s15  ;;  %vm4602_vm14 = vcmp.ge.f32.partialorder %v4476_v55, 0.0  ;;  %v4634_v61 = vmul.f32 0.2, %v4476_v55  ;;  %3843 = vst.msk [vmem:[#allocation3 + $0x2d8] sm:$0xff] %vm3172_vm4, %v3778_v54 }
 0x51e   : > { %v2944_v17 = vpop.permute.xlu0 %2943  ;;  %v3997_v35 = vld [vmem:[#allocation3 + $0x2c0] sm:$0xff] }
 0x51f   : > { %v4666_v15 = vsel %vm4602_vm14, %v4476_v55, %v4634_v61  ;;  %3010 = vst.msk [vmem:[#allocation3 + $0x2d0] sm:$0xff] %vm2979_vm3, %v2944_v17  ;;  %4353 = vmatprep.mubr.f32.mxu1 %v3997_v35  ;;  %v11279_v24 = vld [vmem:[#allocation2 + $0x62] sm:$0xff]  ;;  %v11286_v38 = vld [vmem:[#allocation2 + $0x6a] sm:$0xff] }
 0x520   : > { %4698 = vst.msk [vmem:[#allocation2 + $0x79] sm:$0xff] %vm333_vm0, %v4666_v15  ;;  %v3396_v49 = vpop.permute.xlu1 %3395  ;;  %v4255_v39 = vpop.f32.mrf.mxu1  ;;  %4354 = vmatmul.mubr.f32.gmra.mxu1 %v3996_v60  ;;  %5880 = vrot.lane.b32.xlu0 %v11277_v21, %s8767_s23  ;;  %6038 = vst.msk [vmem:[#allocation3 + $0x70] sm:$0xff] %vm333_vm0, %v11279_v24  ;;  %v5369_v12 = vld [vmem:[#allocation2 + $0x69] sm:$0xff] }
 0x521   : > { %v4731_v19 = vld [vmem:[#allocation2 + $0x68] sm:$0xff]  ;;  %3460 = vst.msk [vmem:[#allocation3 + $0x2f0] sm:$0xff] %vm2786_vm13, %v3396_v49  ;;  %v4256_v46 = vadd.f32 %v11061_v13, %v4255_v39  ;;  %5052 = vrot.lane.b32.xlu1 %v11205_v27, %s8766_s22 }
 0x522   : > { %6039 = vst.msk [vmem:[#allocation3 + $0x88] sm:$0xff] %vm333_vm0, %v11286_v38  ;;  %5401 = vst.msk [vmem:[#allocation3 + $0xb0] sm:$0xff] %vm333_vm0, %v5369_v12  ;;  %v3137_v58 = vpop.permute.xlu0 %3136  ;;  %v4257_v10 = vpop.f32.mrf.mxu1  ;;  %v5623_v40 = vld [vmem:[#allocation2 + $0x68] sm:$0xff] }
 0x523   : > { %4763 = vst.msk [vmem:[#allocation3 + $0xd8] sm:$0xff] %vm333_vm0, %v4731_v19  ;;  %v4481_v14 = vadd.f32 %v8521_v51, %v4256_v46  ;;  %v11338_v26 = vld [vmem:[#allocation2 + $0x69] sm:$0xff] }
 0x524   : > { %3203 = vst.msk [vmem:[#allocation3 + $0x2d0] sm:$0xff] %vm3172_vm4, %v3137_v58  ;;  %v2946_v41 = vpop.permute.xlu1 %2945  ;;  %5498 = vrot.lane.b32.xlu0 %v11238_v20, %s8765_s15  ;;  %v4000_v23 = vld [vmem:[#allocation3 + $0x2d8] sm:$0xff] }
 0x525   : > { %vm4603_vm15 = vcmp.ge.f32.partialorder %v4481_v14, 0.0  ;;  %v4635_v27 = vmul.f32 0.2, %v4481_v14  ;;  %3011 = vst.msk [vmem:[#allocation3 + $0x2e8] sm:$0xff] %vm2979_vm3, %v2946_v41  ;;  %5244 = vrot.lane.b32.xlu1 %v5621_v62, %s8767_s23  ;;  %4358 = vmatprep.mubr.f32.mxu1 %v4000_v23  ;;  %v4495_v62 = vpop.f32.mrf.mxu0  ;;  %v6077_v17 = vld [vmem:[#allocation3 + $0x58] sm:$0xff] }
 0x526   : > { %v3588_v50 = vpop.permute.xlu0 %3587 }
 0x527   : > { %v4667_v57 = vsel %vm4603_vm15, %v4481_v14, %v4635_v27  ;;  %3652 = vst.msk [vmem:[#allocation3 + $0x2f0] sm:$0xff] %vm2979_vm3, %v3588_v50  ;;  %v5370_v53 = vld [vmem:[#allocation2 + $0x79] sm:$0xff] }
 0x528   : > { %4699 = vst.msk [vmem:[#allocation2 + $0x81] sm:$0xff] %vm333_vm0, %v4667_v57  ;;  %v3139_v47 = vpop.permute.xlu1 %3138  ;;  %v4260_v37 = vpop.f32.mrf.mxu1  ;;  %5690 = vrot.lane.b32.xlu0 %v5622_v45, %s8766_s22  ;;  %v4732_v4 = vld [vmem:[#allocation2 + $0x78] sm:$0xff]  ;;  %5402 = vst.msk [vmem:[#allocation3 + $0xc8] sm:$0xff] %vm333_vm0, %v5370_v53  ;;  %v6080_v35 = vld [vmem:[#allocation3 + $0x70] sm:$0xff] }
 0x529   : > { %3204 = vst.msk [vmem:[#allocation3 + $0x2e8] sm:$0xff] %vm3172_vm4, %v3139_v47  ;;  %v4261_v2 = vadd.f32 %v11061_v13, %v4260_v37  ;;  %4862 = vrot.lane.b32.xlu1 %v11255_v18, %s8765_s15  ;;  %v8530_v53 = vpop.f32.mrf.mxu0 }
 0x52a   : > { %4764 = vst.msk [vmem:[#allocation3 + $0xf0] sm:$0xff] %vm333_vm0, %v4732_v4  ;;  %v3780_v59 = vpop.permute.xlu0 %3779  ;;  %v4262_v30 = vpop.f32.mrf.mxu1 }
 0x52b   : > { %v3999_v63 = vld [vmem:[#allocation3 + $0x2d0] sm:$0xff]  ;;  %v4486_v44 = vadd.f32 %v4485_v48, %v4261_v2  ;;  %3844 = vst.msk [vmem:[#allocation3 + $0x2f0] sm:$0xff] %vm3172_vm4, %v3780_v59  ;;  %v4505_v2 = vpop.f32.mrf.mxu0 }
 0x52c   : > { %4359 = vmatmul.mubr.f32.gmra.mxu1 %v3999_v63  ;;  %5882 = vrot.lane.b32.xlu0 %v11311_v32, %s8767_s23  ;;  %v4851_v25 = vpop.permute.xlu1 %4850 }
 0x52d   : > { %vm4604_vm1 = vcmp.ge.f32.partialorder %v4486_v44, 0.0  ;;  %v4636_v16 = vmul.f32 0.2, %v4486_v44  ;;  %5054 = vrot.lane.b32.xlu1 %v11238_v20, %s8766_s22  ;;  %4946 = vst.msk [vmem:[#allocation3] sm:$0xff] %vm2786_vm13, %v4851_v25 }
 0x52f   : > { %v4668_v9 = vsel %vm4604_vm1, %v4486_v44, %v4636_v16  ;;  %v11318_v8 = vld [vmem:[#allocation2 + $0x7a] sm:$0xff]  ;;  %v11320_v31 = vld [vmem:[#allocation2 + $0x82] sm:$0xff] }
 0x530   : > { %4700 = vst.msk [vmem:[#allocation2 + $0x91] sm:$0xff] %vm333_vm0, %v4668_v9  ;;  %v4265_v5 = vpop.f32.mrf.mxu1  ;;  %5500 = vrot.lane.b32.xlu0 %v11244_v0, %s8765_s15  ;;  %6040 = vst.msk [vmem:[#allocation3 + $0xa0] sm:$0xff] %vm333_vm0, %v11318_v8  ;;  %v5043_v20 = vpop.permute.xlu1 %5042  ;;  %v5371_v22 = vld [vmem:[#allocation2 + $0x81] sm:$0xff]  ;;  %v4002_v29 = vld [vmem:[#allocation3 + $0x2e8] sm:$0xff] }
 0x531   : > { %6041 = vst.msk [vmem:[#allocation3 + $0xb8] sm:$0xff] %vm333_vm0, %v11320_v31  ;;  %v4266_v3 = vadd.f32 %v11061_v13, %v4265_v5  ;;  %5246 = vrot.lane.b32.xlu1 %v5622_v45, %s8767_s23  ;;  %5403 = vst.msk [vmem:[#allocation3 + $0xe0] sm:$0xff] %vm333_vm0, %v5371_v22  ;;  %v4733_v34 = vld [vmem:[#allocation2 + $0x80] sm:$0xff] }
 0x532   : > { %5138 = vst.msk [vmem:[#allocation3] sm:$0xff] %vm2979_vm3, %v5043_v20  ;;  %v4267_v18 = vpop.f32.mrf.mxu1  ;;  %v4003_v36 = vld [vmem:[#allocation3 + $0x2f0] sm:$0xff] }
 0x533   : > { %4765 = vst.msk [vmem:[#allocation3 + $0x108] sm:$0xff] %vm333_vm0, %v4733_v34  ;;  %v4491_v51 = vadd.f32 %v8524_v56, %v4266_v3  ;;  %4363 = vmatprep.mubr.f32.mxu1 %v4003_v36  ;;  %v5816_v56 = vld [vmem:[#allocation2 + $0x79] sm:$0xff]  ;;  %v11391_v63 = vld [vmem:[#allocation2 + $0x81] sm:$0xff] }
 0x534   : > { %4364 = vmatmul.mubr.f32.gmra.mxu1 %v4002_v29  ;;  %5692 = vrot.lane.b32.xlu0 %v5623_v40, %s8766_s22  ;;  %v5625_v4 = vld [vmem:[#allocation2 + $0x80] sm:$0xff] }
 0x535   : > { %vm4605_vm2 = vcmp.ge.f32.partialorder %v4491_v51, 0.0  ;;  %v4637_v52 = vmul.f32 0.2, %v4491_v51  ;;  %4864 = vrot.lane.b32.xlu1 %v11277_v21, %s8765_s15  ;;  %8563 = vmatprep.mubr.msk.f32.mxu1 %vm333_vm0, %v6068_v11  ;;  %v6083_v21 = vld [vmem:[#allocation3 + $0x88] sm:$0xff] }
 0x537   : > { %v4669_v33 = vsel %vm4605_vm2, %v4491_v51, %v4637_v52  ;;  %v5372_v28 = vld [vmem:[#allocation2 + $0x91] sm:$0xff] }
 0x538   : > { %4701 = vst.msk [vmem:[#allocation2 + $0x99] sm:$0xff] %vm333_vm0, %v4669_v33  ;;  %v4270_v7 = vpop.f32.mrf.mxu1  ;;  %8564 = vmatmul.mubr.msk.f32.vlgmr.msra.gmra.mxu1 %vm333_vm0, %v6071_v42  ;;  %5884 = vrot.lane.b32.xlu0 %v11338_v26, %s8767_s23  ;;  %v4734_v6 = vld [vmem:[#allocation2 + $0x90] sm:$0xff]  ;;  %5404 = vst.msk [vmem:[#allocation3 + $0xf8] sm:$0xff] %vm333_vm0, %v5372_v28  ;;  %v6089_v23 = vld [vmem:[#allocation3 + $0xb8] sm:$0xff] }
 0x539   : > { %v4271_v55 = vadd.f32 %v11061_v13, %v4270_v7  ;;  %5056 = vrot.lane.b32.xlu1 %v11244_v0, %s8766_s22  ;;  %8566 = vmatprep.mubr.msk.f32.mxu1 %vm333_vm0, %v6074_v43  ;;  %4766 = vst.msk [vmem:[#allocation3 + $0x120] sm:$0xff] %vm333_vm0, %v4734_v6  ;;  %v5624_v0 = vld [vmem:[#allocation2 + $0x78] sm:$0xff]  ;;  %v6086_v19 = vld [vmem:[#allocation3 + $0xa0] sm:$0xff] }
 0x53a   : > { %v4272_v54 = vpop.f32.mrf.mxu1  ;;  %v11422_v52 = vld [vmem:[#allocation2 + $0x91] sm:$0xff] }
 0x53b   : > { %v4496_v61 = vadd.f32 %v4495_v62, %v4271_v55 }
 0x53c   : > { %8567 = vmatmul.mubr.msk.f32.gmra.mxu1 %vm333_vm0, %v6077_v17  ;;  %5502 = vrot.lane.b32.xlu0 %v11279_v24, %s8765_s15 }
 0x53d   : > { %vm4606_vm5 = vcmp.ge.f32.partialorder %v4496_v61, 0.0  ;;  %v4638_v15 = vmul.f32 0.2, %v4496_v61  ;;  %5248 = vrot.lane.b32.xlu1 %v5623_v40, %s8767_s23  ;;  %8569 = vmatprep.mubr.msk.f32.mxu1 %vm333_vm0, %v6080_v35 }
 0x53f   : > { %v4670_v60 = vsel %vm4606_vm5, %v4496_v61, %v4638_v15  ;;  %v11355_v49 = vld [vmem:[#allocation2 + $0x92] sm:$0xff]  ;;  %v11357_v39 = vld [vmem:[#allocation2 + $0x9a] sm:$0xff] }
 0x540   : > { %4702 = vst.msk [vmem:[#allocation2 + $0xa9] sm:$0xff] %vm333_vm0, %v4670_v60  ;;  %v4275_v12 = vpop.f32.mrf.mxu1  ;;  %8570 = vmatmul.mubr.msk.f32.gmra.mxu1 %vm333_vm0, %v6083_v21  ;;  %5694 = vrot.lane.b32.xlu0 %v5624_v0, %s8766_s22  ;;  %6042 = vst.msk [vmem:[#allocation3 + $0xd0] sm:$0xff] %vm333_vm0, %v11355_v49  ;;  %v5373_v46 = vld [vmem:[#allocation2 + $0x99] sm:$0xff] }
 0x541   : > { %6043 = vst.msk [vmem:[#allocation3 + $0xe8] sm:$0xff] %vm333_vm0, %v11357_v39  ;;  %v4735_v58 = vld [vmem:[#allocation2 + $0x98] sm:$0xff]  ;;  %v4276_v10 = vadd.f32 %v11061_v13, %v4275_v12  ;;  %4866 = vrot.lane.b32.xlu1 %v11311_v32, %s8765_s15  ;;  %8572 = vmatprep.mubr.msk.f32.mxu1 %vm333_vm0, %v6086_v19  ;;  %5405 = vst.msk [vmem:[#allocation3 + $0x110] sm:$0xff] %vm333_vm0, %v5373_v46 }
 0x542   : > { %4767 = vst.msk [vmem:[#allocation3 + $0x138] sm:$0xff] %vm333_vm0, %v4735_v58  ;;  %v4277_v14 = vpop.f32.mrf.mxu1  ;;  %v5627_v62 = vld [vmem:[#allocation2 + $0x98] sm:$0xff] }
 0x543   : > { %v4501_v41 = vadd.f32 %v8527_v1, %v4276_v10  ;;  %v8533_v1 = vpop.f32.mrf.mxu0  ;;  %v11462_v21 = vld [vmem:[#allocation2 + $0x99] sm:$0xff] }
 0x544   : > { %8573 = vmatmul.mubr.msk.f32.gmra.mxu1 %vm333_vm0, %v6089_v23  ;;  %5886 = vrot.lane.b32.xlu0 %v5816_v56, %s8767_s23 }
 0x545   : > { %vm4607_vm6 = vcmp.ge.f32.partialorder %v4501_v41, 0.0  ;;  %v4639_v27 = vmul.f32 0.2, %v4501_v41  ;;  %5058 = vrot.lane.b32.xlu1 %v11279_v24, %s8766_s22  ;;  %v4515_v43 = vpop.f32.mrf.mxu0 }
 0x547   : > { %v4671_v50 = vsel %vm4607_vm6, %v4501_v41, %v4639_v27  ;;  %v6092_v57 = vld [vmem:[#allocation3 + $0xd0] sm:$0xff]  ;;  %v11380_v47 = vld [vmem:[#allocation2 + $0xa9] sm:$0xff] }
 0x548   : > { %v6095_v45 = vld [vmem:[#allocation3 + $0xe8] sm:$0xff]  ;;  %4703 = vst.msk [vmem:[#allocation2 + $0xb1] sm:$0xff] %vm333_vm0, %v4671_v50  ;;  %8575 = vmatprep.mubr.msk.f32.mxu1 %vm333_vm0, %v6092_v57  ;;  %5504 = vrot.lane.b32.xlu0 %v11286_v38, %s8765_s15  ;;  %v4736_v37 = vld [vmem:[#allocation2 + $0xa8] sm:$0xff]  ;;  %5406 = vst.msk [vmem:[#allocation3 + $0x128] sm:$0xff] %vm333_vm0, %v11380_v47 }
 0x549   : > { %5250 = vrot.lane.b32.xlu1 %v5624_v0, %s8767_s23  ;;  %8576 = vmatmul.mubr.msk.f32.gmra.mxu1 %vm333_vm0, %v6095_v45  ;;  %4768 = vst.msk [vmem:[#allocation3 + $0x150] sm:$0xff] %vm333_vm0, %v4736_v37  ;;  %v5628_v37 = vld [vmem:[#allocation2 + $0xa8] sm:$0xff] }
 0x54b   : > { %v4280_v24 = vpop.f32.mrf.mxu1 }
 0x54c   : > { %v4281_v48 = vadd.f32 %v11061_v13, %v4280_v24  ;;  %5696 = vrot.lane.b32.xlu0 %v5625_v4, %s8766_s22 }
 0x54d   : > { %4868 = vrot.lane.b32.xlu1 %v11338_v26, %s8765_s15  ;;  %v4282_v59 = vpop.f32.mrf.mxu1  ;;  %v11436_v26 = vld [vmem:[%s13180_s4] ss:$0 sm:$0xff] }
 0x54e   : > { %v4506_v30 = vadd.f32 %v4505_v2, %v4281_v48 }
 0x54f   : > { %v11393_v44 = vld [vmem:[#allocation2 + $0xaa] sm:$0xff]  ;;  %v11395_v32 = vld [vmem:[#allocation2 + $0xb2] sm:$0xff] }
 0x550   : > { %vm4608_vm7 = vcmp.ge.f32.partialorder %v4506_v30, 0.0  ;;  %v4640_v25 = vmul.f32 0.2, %v4506_v30  ;;  %5888 = vrot.lane.b32.xlu0 %v11391_v63, %s8767_s23  ;;  %6044 = vst.msk [vmem:[#allocation3 + $0x100] sm:$0xff] %vm333_vm0, %v11393_v44  ;;  %6045 = vst.msk [vmem:[#allocation3 + $0x118] sm:$0xff] %vm333_vm0, %v11395_v32  ;;  %v11403_v16 = vld [vmem:[#allocation2 + $0xb1] sm:$0xff] }
 0x551   : > { %v4737_v9 = vld [vmem:[#allocation2 + $0xb0] sm:$0xff]  ;;  %5060 = vrot.lane.b32.xlu1 %v11286_v38, %s8766_s22  ;;  %5407 = vst.msk [vmem:[#allocation3 + $0x140] sm:$0xff] %vm333_vm0, %v11403_v16 }
 0x552   : > { %4769 = vst.msk [vmem:[#allocation3 + $0x168] sm:$0xff] %vm333_vm0, %v4737_v9  ;;  %v4672_v5 = vsel %vm4608_vm7, %v4506_v30, %v4640_v25  ;;  %v5626_v38 = vld [vmem:[#allocation2 + $0x90] sm:$0xff] }
 0x553   : > { %4704 = vst.msk [vmem:[#allocation2 + $0xc1] sm:$0xff] %vm333_vm0, %v4672_v5 }
 0x554   : > { %v4285_v20 = vpop.f32.mrf.mxu1  ;;  %5506 = vrot.lane.b32.xlu0 %v11318_v8, %s8765_s15 }
 0x555   : > { %v4286_v22 = vadd.f32 %v11061_v13, %v4285_v20  ;;  %5252 = vrot.lane.b32.xlu1 %v5625_v4, %s8767_s23 }
 0x556   : > { %v4287_v3 = vpop.f32.mrf.mxu1 }
 0x557   : > { %v4511_v34 = vadd.f32 %v8530_v53, %v4286_v22  ;;  %v6098_v18 = vld [vmem:[#allocation3 + $0x100] sm:$0xff]  ;;  %v6101_v36 = vld [vmem:[#allocation3 + $0x118] sm:$0xff]  ;;  %v8536_v53 = vpop.f32.mrf.mxu0 }
 0x558   : > { %8578 = vmatprep.mubr.msk.f32.mxu1 %vm333_vm0, %v6098_v18  ;;  %5698 = vrot.lane.b32.xlu0 %v5626_v38, %s8766_s22 }
 0x559   : > { %vm4609_vm8 = vcmp.ge.f32.partialorder %v4511_v34, 0.0  ;;  %v4641_v51 = vmul.f32 0.2, %v4511_v34  ;;  %4870 = vrot.lane.b32.xlu1 %v5816_v56, %s8765_s15  ;;  %8579 = vmatmul.mubr.msk.f32.gmra.mxu1 %vm333_vm0, %v6101_v36  ;;  %v4525_v59 = vpop.f32.mrf.mxu0 }
 0x55a   : > { %v5235_v29 = vpop.permute.xlu1 %5234  ;;  %v11419_v40 = vld [vmem:[#allocation2 + $0xc1] sm:$0xff] }
 0x55b   : > { %v4738_v13 = vld [vmem:[#allocation2 + $0xc0] sm:$0xff]  ;;  %v4673_v11 = vsel %vm4609_vm8, %v4511_v34, %v4641_v51  ;;  %5330 = vst.msk [vmem:[#allocation3] sm:$0xff] %vm3172_vm4, %v5235_v29  ;;  %v5629_v29 = vld [vmem:[#allocation2 + $0xb0] sm:$0xff] }
 0x55c   : > { %5408 = vst.msk [vmem:[#allocation3 + $0x158] sm:$0xff] %vm333_vm0, %v11419_v40  ;;  %4770 = vst.msk [vmem:[#allocation3 + $0x180] sm:$0xff] %vm333_vm0, %v4738_v13  ;;  %5890 = vrot.lane.b32.xlu0 %v11422_v52, %s8767_s23 }
 0x55d   : > { %4705 = vst.msk [vmem:[#allocation2 + $0xc9] sm:$0xff] %vm333_vm0, %v4673_v11  ;;  %5062 = vrot.lane.b32.xlu1 %v11318_v8, %s8766_s22 }
 0x55e   : > { %v4853_v33 = vpop.permute.xlu1 %4852 }
 0x55f   : > { %4947 = vst.msk [vmem:[#allocation3 + $0x18] sm:$0xff] %vm2786_vm13, %v4853_v33  ;;  %v4290_v42 = vpop.f32.mrf.mxu1 }
 0x560   : > { %v4291_v7 = vadd.f32 %v11436_v26, %v4290_v42  ;;  %5508 = vrot.lane.b32.xlu0 %v11320_v31, %s8765_s15 }
 0x561   : > { %5254 = vrot.lane.b32.xlu1 %v5626_v38, %s8767_s23  ;;  %v4292_v28 = vpop.f32.mrf.mxu1 }
 0x562   : > { %v4516_v6 = vadd.f32 %v4515_v43, %v4291_v7  ;;  %v5045_v8 = vpop.permute.xlu1 %5044  ;;  %v5491_v55 = vpop.permute.xlu0 %5490  ;;  %v6066_v20 = vld [vmem:[#allocation3] sm:$0xff] }
 0x563   : > { %5139 = vst.msk [vmem:[#allocation3 + $0x18] sm:$0xff] %vm2979_vm3, %v5045_v8 }
 0x564   : > { %5586 = vst.msk [vmem:[#allocation3 + $0x8] sm:$0xff] %vm2786_vm13, %v5491_v55  ;;  %v11444_v54 = vld [vmem:[#allocation2 + $0xc2] sm:$0xff]  ;;  %v11446_v61 = vld [vmem:[#allocation2 + $0xca] sm:$0xff]  ;;  %vm4610_vm9 = vcmp.ge.f32.partialorder %v4516_v6, 0.0  ;;  %v4642_v17 = vmul.f32 0.2, %v4516_v6  ;;  %5700 = vrot.lane.b32.xlu0 %v5627_v62, %s8766_s22 }
 0x565   : > { %6046 = vst.msk [vmem:[#allocation3 + $0x130] sm:$0xff] %vm333_vm0, %v11444_v54  ;;  %6047 = vst.msk [vmem:[#allocation3 + $0x148] sm:$0xff] %vm333_vm0, %v11446_v61  ;;  %v11453_v35 = vld [vmem:[#allocation2 + $0xc9] sm:$0xff]  ;;  %4872 = vrot.lane.b32.xlu1 %v11391_v63, %s8765_s15 }
 0x566   : > { %v4739_v15 = vld [vmem:[#allocation2 + $0xc8] sm:$0xff]  ;;  %5409 = vst.msk [vmem:[#allocation3 + $0x170] sm:$0xff] %vm333_vm0, %v11453_v35  ;;  %v4674_v0 = vsel %vm4610_vm9, %v4516_v6, %v4642_v17  ;;  %v5237_v60 = vpop.permute.xlu1 %5236 }
 0x567   : > { %4771 = vst.msk [vmem:[#allocation3 + $0x198] sm:$0xff] %vm333_vm0, %v4739_v15  ;;  %4706 = vst.msk [vmem:[#allocation2 + $0xd9] sm:$0xff] %vm333_vm0, %v4674_v0 }
 0x568   : > { %5331 = vst.msk [vmem:[#allocation3 + $0x18] sm:$0xff] %vm3172_vm4, %v5237_v60  ;;  %v4295_v12 = vpop.f32.mrf.mxu1  ;;  %5892 = vrot.lane.b32.xlu0 %v11462_v21, %s8767_s23 }
 0x569   : > { %v4296_v19 = vadd.f32 %v11436_v26, %v4295_v12  ;;  %5064 = vrot.lane.b32.xlu1 %v11320_v31, %s8766_s22 }
 0x56a   : > { %v4855_v46 = vpop.permute.xlu1 %4854  ;;  %v5683_v58 = vpop.permute.xlu0 %5682 }
 0x56b   : > { %v4521_v10 = vadd.f32 %v8533_v1, %v4296_v19  ;;  %4948 = vst.msk [vmem:[#allocation3 + $0x30] sm:$0xff] %vm2786_vm13, %v4855_v46  ;;  %v4297_v14 = vpop.f32.mrf.mxu1  ;;  %v5630_v19 = vld [vmem:[#allocation2 + $0xc0] sm:$0xff] }
 0x56c   : > { %5778 = vst.msk [vmem:[#allocation3 + $0x8] sm:$0xff] %vm2979_vm3, %v5683_v58  ;;  %v6104_v41 = vld [vmem:[#allocation3 + $0x130] sm:$0xff]  ;;  %v6107_v23 = vld [vmem:[#allocation3 + $0x148] sm:$0xff]  ;;  %5510 = vrot.lane.b32.xlu0 %v11355_v49, %s8765_s15 }
 0x56d   : > { %8581 = vmatprep.mubr.msk.f32.mxu1 %vm333_vm0, %v6104_v41  ;;  %vm4611_vm10 = vcmp.ge.f32.partialorder %v4521_v10, 0.0  ;;  %v4643_v56 = vmul.f32 0.2, %v4521_v10  ;;  %5256 = vrot.lane.b32.xlu1 %v5627_v62, %s8767_s23 }
 0x56e   : > { %8582 = vmatmul.mubr.msk.f32.gmra.mxu1 %vm333_vm0, %v6107_v23  ;;  %v5047_v31 = vpop.permute.xlu1 %5046  ;;  %v5875_v27 = vpop.permute.xlu0 %5874  ;;  %v11476_v50 = vld [vmem:[#allocation2 + $0xd8] sm:$0xff] }
 0x56f   : > { %v11478_v57 = vld [vmem:[#allocation2 + $0xd9] sm:$0xff]  ;;  %v4675_v45 = vsel %vm4611_vm10, %v4521_v10, %v4643_v56  ;;  %5140 = vst.msk [vmem:[#allocation3 + $0x30] sm:$0xff] %vm2979_vm3, %v5047_v31  ;;  %v6069_v0 = vld [vmem:[#allocation3 + $0x18] sm:$0xff] }
 0x570   : > { %5970 = vst.msk [vmem:[#allocation3 + $0x8] sm:$0xff] %vm3172_vm4, %v5875_v27  ;;  %5702 = vrot.lane.b32.xlu0 %v5628_v37, %s8766_s22 }
 0x571   : > { %5410 = vst.msk [vmem:[#allocation3 + $0x188] sm:$0xff] %vm333_vm0, %v11478_v57  ;;  %4772 = vst.msk [vmem:[#allocation3 + $0x1b0] sm:$0xff] %vm333_vm0, %v11476_v50  ;;  %4874 = vrot.lane.b32.xlu1 %v11422_v52, %s8765_s15 }
 0x572   : > { %4707 = vst.msk [vmem:[#allocation2 + $0xe1] sm:$0xff] %vm333_vm0, %v4675_v45  ;;  %v5493_v24 = vpop.permute.xlu0 %5492  ;;  %v5239_v4 = vpop.permute.xlu1 %5238 }
 0x573   : > { %5587 = vst.msk [vmem:[#allocation3 + $0x20] sm:$0xff] %vm2786_vm13, %v5493_v24  ;;  %v4300_v48 = vpop.f32.mrf.mxu1 }
 0x574   : > { %5332 = vst.msk [vmem:[#allocation3 + $0x30] sm:$0xff] %vm3172_vm4, %v5239_v4  ;;  %v4301_v2 = vadd.f32 %v11436_v26, %v4300_v48  ;;  %5894 = vrot.lane.b32.xlu0 %v11380_v47, %s8767_s23 }
 0x575   : > { %5066 = vrot.lane.b32.xlu1 %v11355_v49, %s8766_s22  ;;  %v4302_v30 = vpop.f32.mrf.mxu1 }
 0x576   : > { %v4526_v63 = vadd.f32 %v4525_v59, %v4301_v2  ;;  %v5685_v25 = vpop.permute.xlu0 %5684  ;;  %v4857_v9 = vpop.permute.xlu1 %4856 }
 0x577   : > { %v6067_v5 = vld [vmem:[#allocation3 + $0x8] sm:$0xff]  ;;  %5779 = vst.msk [vmem:[#allocation3 + $0x20] sm:$0xff] %vm2979_vm3, %v5685_v25 }
 0x578   : > { %4949 = vst.msk [vmem:[#allocation3 + $0x48] sm:$0xff] %vm2786_vm13, %v4857_v9  ;;  %6365 = vmatprep.mubr.f32.mxu0 %v6067_v5  ;;  %vm4612_vm11 = vcmp.ge.f32.partialorder %v4526_v63, 0.0  ;;  %v4644_v18 = vmul.f32 0.2, %v4526_v63  ;;  %5512 = vrot.lane.b32.xlu0 %v11357_v39, %s8765_s15  ;;  %v5631_v5 = vld [vmem:[#allocation2 + $0xc8] sm:$0xff] }
 0x579   : > { %v11499_v22 = vld [vmem:[#allocation2 + $0xda] sm:$0xff]  ;;  %v11501_v3 = vld [vmem:[#allocation2 + $0xe2] sm:$0xff]  ;;  %6366 = vmatmul.mubr.f32.vlgmr.msra.gmra.mxu0 %v6066_v20  ;;  %5258 = vrot.lane.b32.xlu1 %v5628_v37, %s8767_s23 }
 0x57a   : > { %v11503_v34 = vld [vmem:[#allocation2 + $0xe0] sm:$0xff]  ;;  %6048 = vst.msk [vmem:[#allocation3 + $0x160] sm:$0xff] %vm333_vm0, %v11499_v22  ;;  %6049 = vst.msk [vmem:[#allocation3 + $0x178] sm:$0xff] %vm333_vm0, %v11501_v3  ;;  %v4676_v38 = vsel %vm4612_vm11, %v4526_v63, %v4644_v18  ;;  %v5877_v36 = vpop.permute.xlu0 %5876  ;;  %v5049_v51 = vpop.permute.xlu1 %5048 }
 0x57b   : > { %v11511_v49 = vld [vmem:[#allocation2 + $0xe1] sm:$0xff]  ;;  %4773 = vst.msk [vmem:[#allocation3 + $0x1c8] sm:$0xff] %vm333_vm0, %v11503_v34  ;;  %4708 = vst.msk [vmem:[#allocation2 + $0xf1] sm:$0xff] %vm333_vm0, %v4676_v38 }
 0x57c   : > { %5411 = vst.msk [vmem:[#allocation3 + $0x1a0] sm:$0xff] %vm333_vm0, %v11511_v49  ;;  %v4305_v13 = vpop.f32.mrf.mxu1  ;;  %5704 = vrot.lane.b32.xlu0 %v5629_v29, %s8766_s22  ;;  %v6072_v48 = vld [vmem:[#allocation3 + $0x30] sm:$0xff] }
 0x57d   : > { %5971 = vst.msk [vmem:[#allocation3 + $0x20] sm:$0xff] %vm3172_vm4, %v5877_v36  ;;  %v4306_v11 = vadd.f32 %v11436_v26, %v4305_v13  ;;  %4876 = vrot.lane.b32.xlu1 %v11462_v21, %s8765_s15 }
 0x57e   : > { %5141 = vst.msk [vmem:[#allocation3 + $0x48] sm:$0xff] %vm2979_vm3, %v5049_v51  ;;  %v5495_v52 = vpop.permute.xlu0 %5494  ;;  %v4307_v42 = vpop.f32.mrf.mxu1 }
 0x57f   : > { %v5241_v1 = vpop.permute.xlu1 %5240  ;;  %v4531_v33 = vadd.f32 %v8536_v53, %v4306_v11  ;;  %5588 = vst.msk [vmem:[#allocation3 + $0x38] sm:$0xff] %vm2786_vm13, %v5495_v52 }
 0x580   : > { %5333 = vst.msk [vmem:[#allocation3 + $0x48] sm:$0xff] %vm3172_vm4, %v5241_v1  ;;  %5896 = vrot.lane.b32.xlu0 %v11403_v16, %s8767_s23 }
 0x581   : > { %v6110_v7 = vld [vmem:[#allocation3 + $0x160] sm:$0xff]  ;;  %v6113_v43 = vld [vmem:[#allocation3 + $0x178] sm:$0xff]  ;;  %vm4613_vm12 = vcmp.ge.f32.partialorder %v4531_v33, 0.0  ;;  %v4645_v28 = vmul.f32 0.2, %v4531_v33  ;;  %5068 = vrot.lane.b32.xlu1 %v11357_v39, %s8766_s22  ;;  %v8539_v39 = vpop.f32.mrf.mxu0 }
 0x582   : > { %8584 = vmatprep.mubr.msk.f32.mxu1 %vm333_vm0, %v6110_v7  ;;  %v5687_v8 = vpop.permute.xlu0 %5686  ;;  %v11533_v62 = vld [vmem:[#allocation2 + $0xf0] sm:$0xff] }
 0x583   : > { %8585 = vmatmul.mubr.msk.f32.gmra.mxu1 %vm333_vm0, %v6113_v43  ;;  %v4859_v6 = vpop.permute.xlu1 %4858  ;;  %v11535_v17 = vld [vmem:[#allocation2 + $0xf1] sm:$0xff]  ;;  %v4677_v15 = vsel %vm4613_vm12, %v4531_v33, %v4645_v28  ;;  %5780 = vst.msk [vmem:[#allocation3 + $0x38] sm:$0xff] %vm2979_vm3, %v5687_v8  ;;  %v4535_v58 = vpop.f32.mrf.mxu0 }
 0x584   : > { %v6070_v55 = vld [vmem:[#allocation3 + $0x20] sm:$0xff]  ;;  %4950 = vst.msk [vmem:[#allocation3 + $0x60] sm:$0xff] %vm2786_vm13, %v4859_v6  ;;  %5514 = vrot.lane.b32.xlu0 %v11393_v44, %s8765_s15 }
 0x585   : > { %6370 = vmatprep.mubr.f32.mxu0 %v6070_v55  ;;  %5412 = vst.msk [vmem:[#allocation3 + $0x1b8] sm:$0xff] %vm333_vm0, %v11535_v17  ;;  %4774 = vst.msk [vmem:[#allocation3 + $0x1e0] sm:$0xff] %vm333_vm0, %v11533_v62  ;;  %5260 = vrot.lane.b32.xlu1 %v5629_v29, %s8767_s23 }
 0x586   : > { %4709 = vst.msk [vmem:[#allocation2 + $0xf9] sm:$0xff] %vm333_vm0, %v4677_v15  ;;  %6371 = vmatmul.mubr.f32.gmra.mxu0 %v6069_v0  ;;  %v5879_v21 = vpop.permute.xlu0 %5878 }
 0x587   : > { %v5051_v60 = vpop.permute.xlu1 %5050  ;;  %5972 = vst.msk [vmem:[#allocation3 + $0x38] sm:$0xff] %vm3172_vm4, %v5879_v21  ;;  %v4310_v12 = vpop.f32.mrf.mxu1  ;;  %v6075_v42 = vld [vmem:[#allocation3 + $0x48] sm:$0xff] }
 0x588   : > { %5142 = vst.msk [vmem:[#allocation3 + $0x60] sm:$0xff] %vm2979_vm3, %v5051_v60  ;;  %v4311_v46 = vadd.f32 %v11436_v26, %v4310_v12  ;;  %5706 = vrot.lane.b32.xlu0 %v5630_v19, %s8766_s22 }
 0x589   : > { %4878 = vrot.lane.b32.xlu1 %v11380_v47, %s8765_s15  ;;  %v4312_v10 = vpop.f32.mrf.mxu1 }
 0x58a   : > { %v4536_v14 = vadd.f32 %v4535_v58, %v4311_v46  ;;  %v5497_v41 = vpop.permute.xlu0 %5496 }
 0x58b   : > { %v5243_v23 = vpop.permute.xlu1 %5242  ;;  %5589 = vst.msk [vmem:[#allocation3 + $0x50] sm:$0xff] %vm2786_vm13, %v5497_v41 }
 0x58c   : > { %5334 = vst.msk [vmem:[#allocation3 + $0x60] sm:$0xff] %vm3172_vm4, %v5243_v23  ;;  %vm4614_vm14 = vcmp.ge.f32.partialorder %v4536_v14, 0.0  ;;  %v4646_v45 = vmul.f32 0.2, %v4536_v14  ;;  %5898 = vrot.lane.b32.xlu0 %v11419_v40, %s8767_s23 }
 0x58d   : > { %v11555_v56 = vld [vmem:[#allocation2 + $0xf2] sm:$0xff]  ;;  %v11557_v31 = vld [vmem:[#allocation2 + $0xfa] sm:$0xff]  ;;  %5070 = vrot.lane.b32.xlu1 %v11393_v44, %s8766_s22 }
 0x58e   : > { %v11559_v27 = vld [vmem:[#allocation2 + $0xf8] sm:$0xff]  ;;  %6050 = vst.msk [vmem:[#allocation3 + $0x190] sm:$0xff] %vm333_vm0, %v11555_v56  ;;  %6051 = vst.msk [vmem:[#allocation3 + $0x1a8] sm:$0xff] %vm333_vm0, %v11557_v31  ;;  %v4678_v37 = vsel %vm4614_vm14, %v4536_v14, %v4646_v45  ;;  %v5689_v53 = vpop.permute.xlu0 %5688  ;;  %v6073_v4 = vld [vmem:[#allocation3 + $0x38] sm:$0xff] }
 0x58f   : > { %v11567_v47 = vld [vmem:[#allocation2 + $0xf9] sm:$0xff]  ;;  %4775 = vst.msk [vmem:[#allocation3 + $0x1f8] sm:$0xff] %vm333_vm0, %v11559_v27  ;;  %v4861_v24 = vpop.permute.xlu1 %4860  ;;  %4710 = vst.msk [vmem:[#allocation2 + $0x109] sm:$0xff] %vm333_vm0, %v4678_v37  ;;  %6375 = vmatprep.mubr.f32.mxu0 %v6073_v4 }
 0x590   : > { %5413 = vst.msk [vmem:[#allocation3 + $0x1d0] sm:$0xff] %vm333_vm0, %v11567_v47  ;;  %v4315_v2 = vpop.f32.mrf.mxu1  ;;  %6376 = vmatmul.mubr.f32.gmra.mxu0 %v6072_v48  ;;  %5516 = vrot.lane.b32.xlu0 %v11395_v32, %s8765_s15 }
 0x591   : > { %5781 = vst.msk [vmem:[#allocation3 + $0x50] sm:$0xff] %vm2979_vm3, %v5689_v53  ;;  %v4316_v44 = vadd.f32 %v11436_v26, %v4315_v2  ;;  %5262 = vrot.lane.b32.xlu1 %v5630_v19, %s8767_s23 }
 0x592   : > { %4951 = vst.msk [vmem:[#allocation3 + $0x78] sm:$0xff] %vm2786_vm13, %v4861_v24  ;;  %v4317_v59 = vpop.f32.mrf.mxu1  ;;  %v5881_v30 = vpop.permute.xlu0 %5880 }
 0x593   : > { %v4541_v63 = vadd.f32 %v8539_v39, %v4316_v44  ;;  %5973 = vst.msk [vmem:[#allocation3 + $0x50] sm:$0xff] %vm3172_vm4, %v5881_v30  ;;  %v5053_v25 = vpop.permute.xlu1 %5052  ;;  %v6078_v53 = vld [vmem:[#allocation3 + $0x60] sm:$0xff] }
 0x594   : > { %5143 = vst.msk [vmem:[#allocation3 + $0x78] sm:$0xff] %vm2979_vm3, %v5053_v25  ;;  %5708 = vrot.lane.b32.xlu0 %v5631_v5, %s8766_s22 }
 0x595   : > { %v6116_v9 = vld [vmem:[#allocation3 + $0x190] sm:$0xff]  ;;  %v6119_v20 = vld [vmem:[#allocation3 + $0x1a8] sm:$0xff]  ;;  %vm4615_vm15 = vcmp.ge.f32.partialorder %v4541_v63, 0.0  ;;  %v4647_v18 = vmul.f32 0.2, %v4541_v63  ;;  %4880 = vrot.lane.b32.xlu1 %v11403_v16, %s8765_s15  ;;  %v8542_v16 = vpop.f32.mrf.mxu0 }
 0x596   : > { %8587 = vmatprep.mubr.msk.f32.mxu1 %vm333_vm0, %v6116_v9  ;;  %v5499_v38 = vpop.permute.xlu0 %5498  ;;  %v11589_v36 = vld [vmem:[#allocation2 + $0x108] sm:$0xff] }
 0x597   : > { %8588 = vmatmul.mubr.msk.f32.gmra.mxu1 %vm333_vm0, %v6119_v20  ;;  %v11591_v51 = vld [vmem:[#allocation2 + $0x109] sm:$0xff]  ;;  %v4679_v29 = vsel %vm4615_vm15, %v4541_v63, %v4647_v18  ;;  %5590 = vst.msk [vmem:[#allocation3 + $0x68] sm:$0xff] %vm2786_vm13, %v5499_v38  ;;  %v5245_v13 = vpop.permute.xlu1 %5244  ;;  %v4545_v43 = vpop.f32.mrf.mxu0 }
 0x598   : > { %5414 = vst.msk [vmem:[#allocation3 + $0x1e8] sm:$0xff] %vm333_vm0, %v11591_v51  ;;  %4776 = vst.msk [vmem:[#allocation3 + $0x210] sm:$0xff] %vm333_vm0, %v11589_v36  ;;  %5900 = vrot.lane.b32.xlu0 %v11453_v35, %s8767_s23 }
 0x599   : > { %4711 = vst.msk [vmem:[#allocation2 + $0x111] sm:$0xff] %vm333_vm0, %v4679_v29  ;;  %5072 = vrot.lane.b32.xlu1 %v11395_v32, %s8766_s22 }
 0x59a   : > { %5335 = vst.msk [vmem:[#allocation3 + $0x78] sm:$0xff] %vm3172_vm4, %v5245_v13  ;;  %v5691_v11 = vpop.permute.xlu0 %5690  ;;  %v6076_v52 = vld [vmem:[#allocation3 + $0x50] sm:$0xff] }
 0x59b   : > { %5782 = vst.msk [vmem:[#allocation3 + $0x68] sm:$0xff] %vm2979_vm3, %v5691_v11  ;;  %v4863_v1 = vpop.permute.xlu1 %4862  ;;  %v4320_v33 = vpop.f32.mrf.mxu1  ;;  %6380 = vmatprep.mubr.f32.mxu0 %v6076_v52 }
 0x59c   : > { %4952 = vst.msk [vmem:[#allocation3 + $0x90] sm:$0xff] %vm2786_vm13, %v4863_v1  ;;  %v4321_v7 = vadd.f32 %v11436_v26, %v4320_v33  ;;  %6381 = vmatmul.mubr.f32.gmra.mxu0 %v6075_v42  ;;  %5518 = vrot.lane.b32.xlu0 %v11444_v54, %s8765_s15 }
 0x59d   : > { %5264 = vrot.lane.b32.xlu1 %v5631_v5, %s8767_s23  ;;  %v4322_v32 = vpop.f32.mrf.mxu1 }
 0x59e   : > { %v4546_v28 = vadd.f32 %v4545_v43, %v4321_v7  ;;  %v5883_v6 = vpop.permute.xlu0 %5882 }
 0x59f   : > { %5974 = vst.msk [vmem:[#allocation3 + $0x68] sm:$0xff] %vm3172_vm4, %v5883_v6  ;;  %v5055_v8 = vpop.permute.xlu1 %5054 }
 0x5a0   : > { %v11611_v55 = vld [vmem:[#allocation2 + $0x10a] sm:$0xff]  ;;  %v11613_v15 = vld [vmem:[#allocation2 + $0x112] sm:$0xff]  ;;  %vm4616_vm1 = vcmp.ge.f32.partialorder %v4546_v28, 0.0  ;;  %v4648_v0 = vmul.f32 0.2, %v4546_v28  ;;  %5144 = vst.msk [vmem:[#allocation3 + $0x90] sm:$0xff] %vm2979_vm3, %v5055_v8  ;;  %5710 = vrot.lane.b32.xlu0 %v11476_v50, %s8766_s22 }
 0x5a1   : > { %6052 = vst.msk [vmem:[#allocation3 + $0x1c0] sm:$0xff] %vm333_vm0, %v11611_v55  ;;  %6053 = vst.msk [vmem:[#allocation3 + $0x1d8] sm:$0xff] %vm333_vm0, %v11613_v15  ;;  %v11622_v39 = vld [vmem:[#allocation2 + $0x110] sm:$0xff]  ;;  %4882 = vrot.lane.b32.xlu1 %v11419_v40, %s8765_s15  ;;  %v6081_v38 = vld [vmem:[#allocation3 + $0x78] sm:$0xff] }
 0x5a2   : > { %v11624_v60 = vld [vmem:[#allocation2 + $0x111] sm:$0xff]  ;;  %4777 = vst.msk [vmem:[#allocation3 + $0x228] sm:$0xff] %vm333_vm0, %v11622_v39  ;;  %v4680_v21 = vsel %vm4616_vm1, %v4546_v28, %v4648_v0  ;;  %v5501_v12 = vpop.permute.xlu0 %5500 }
 0x5a3   : > { %5415 = vst.msk [vmem:[#allocation3 + $0x200] sm:$0xff] %vm333_vm0, %v11624_v60  ;;  %4712 = vst.msk [vmem:[#allocation2 + $0x121] sm:$0xff] %vm333_vm0, %v4680_v21  ;;  %v5247_v19 = vpop.permute.xlu1 %5246 }
 0x5a4   : > { %5591 = vst.msk [vmem:[#allocation3 + $0x80] sm:$0xff] %vm2786_vm13, %v5501_v12  ;;  %v4325_v46 = vpop.f32.mrf.mxu1  ;;  %5902 = vrot.lane.b32.xlu0 %v11478_v57, %s8767_s23 }
 0x5a5   : > { %5336 = vst.msk [vmem:[#allocation3 + $0x90] sm:$0xff] %vm3172_vm4, %v5247_v19  ;;  %v4326_v40 = vadd.f32 %v11436_v26, %v4325_v46  ;;  %5074 = vrot.lane.b32.xlu1 %v11444_v54, %s8766_s22 }
 0x5a6   : > { %v4327_v58 = vpop.f32.mrf.mxu1  ;;  %v5693_v10 = vpop.permute.xlu0 %5692  ;;  %v6079_v14 = vld [vmem:[#allocation3 + $0x68] sm:$0xff] }
 0x5a7   : > { %v4551_v41 = vadd.f32 %v8542_v16, %v4326_v40  ;;  %5783 = vst.msk [vmem:[#allocation3 + $0x80] sm:$0xff] %vm2979_vm3, %v5693_v10  ;;  %v4865_v23 = vpop.permute.xlu1 %4864  ;;  %6385 = vmatprep.mubr.f32.mxu0 %v6079_v14 }
 0x5a8   : > { %v6122_v45 = vld [vmem:[#allocation3 + $0x1c0] sm:$0xff]  ;;  %v6125_v37 = vld [vmem:[#allocation3 + $0x1d8] sm:$0xff]  ;;  %4953 = vst.msk [vmem:[#allocation3 + $0xa8] sm:$0xff] %vm2786_vm13, %v4865_v23  ;;  %5520 = vrot.lane.b32.xlu0 %v11446_v61, %s8765_s15  ;;  %6386 = vmatmul.mubr.f32.gmra.mxu0 %v6078_v53 }
 0x5a9   : > { %8590 = vmatprep.mubr.msk.f32.mxu1 %vm333_vm0, %v6122_v45  ;;  %vm4617_vm2 = vcmp.ge.f32.partialorder %v4551_v41, 0.0  ;;  %v4649_v54 = vmul.f32 0.2, %v4551_v41  ;;  %5266 = vrot.lane.b32.xlu1 %v11476_v50, %s8767_s23  ;;  %v8545_v50 = vpop.f32.mrf.mxu0 }
 0x5aa   : > { %8591 = vmatmul.mubr.msk.f32.gmra.mxu1 %vm333_vm0, %v6125_v37  ;;  %v5885_v24 = vpop.permute.xlu0 %5884  ;;  %v11648_v4 = vld [vmem:[#allocation2 + $0x120] sm:$0xff] }
 0x5ab   : > { %v11650_v48 = vld [vmem:[#allocation2 + $0x121] sm:$0xff]  ;;  %v4681_v2 = vsel %vm4617_vm2, %v4551_v41, %v4649_v54  ;;  %5975 = vst.msk [vmem:[#allocation3 + $0x80] sm:$0xff] %vm3172_vm4, %v5885_v24  ;;  %v5057_v44 = vpop.permute.xlu1 %5056  ;;  %v4555_v9 = vpop.f32.mrf.mxu0 }
 0x5ac   : > { %5416 = vst.msk [vmem:[#allocation3 + $0x218] sm:$0xff] %vm333_vm0, %v11650_v48  ;;  %4778 = vst.msk [vmem:[#allocation3 + $0x240] sm:$0xff] %vm333_vm0, %v11648_v4  ;;  %5712 = vrot.lane.b32.xlu0 %v11503_v34, %s8766_s22  ;;  %v6084_v58 = vld [vmem:[#allocation3 + $0x90] sm:$0xff] }
 0x5ad   : > { %4713 = vst.msk [vmem:[#allocation2 + $0x129] sm:$0xff] %vm333_vm0, %v4681_v2  ;;  %4884 = vrot.lane.b32.xlu1 %v11453_v35, %s8765_s15  ;;  %v8548_v10 = vpop.f32.mrf.mxu0 }
 0x5ae   : > { %5145 = vst.msk [vmem:[#allocation3 + $0xa8] sm:$0xff] %vm2979_vm3, %v5057_v44  ;;  %v5503_v59 = vpop.permute.xlu0 %5502 }
 0x5af   : > { %5592 = vst.msk [vmem:[#allocation3 + $0x98] sm:$0xff] %vm2786_vm13, %v5503_v59  ;;  %v5249_v30 = vpop.permute.xlu1 %5248  ;;  %v4330_v63 = vpop.f32.mrf.mxu1 }
 0x5b0   : > { %5337 = vst.msk [vmem:[#allocation3 + $0xa8] sm:$0xff] %vm3172_vm4, %v5249_v30  ;;  %v4331_v25 = vadd.f32 %v11436_v26, %v4330_v63  ;;  %5904 = vrot.lane.b32.xlu0 %v11511_v49, %s8767_s23  ;;  %v4565_v37 = vpop.f32.mrf.mxu0 }
 0x5b1   : > { %5076 = vrot.lane.b32.xlu1 %v11446_v61, %s8766_s22  ;;  %v4332_v5 = vpop.f32.mrf.mxu1 }
 0x5b2   : > { %v4556_v20 = vadd.f32 %v4555_v9, %v4331_v25  ;;  %v5695_v18 = vpop.permute.xlu0 %5694  ;;  %v6082_v35 = vld [vmem:[#allocation3 + $0x80] sm:$0xff] }
 0x5b3   : > { %5784 = vst.msk [vmem:[#allocation3 + $0x98] sm:$0xff] %vm2979_vm3, %v5695_v18  ;;  %v4867_v29 = vpop.permute.xlu1 %4866  ;;  %6390 = vmatprep.mubr.f32.mxu0 %v6082_v35 }
 0x5b4   : > { %v11671_v13 = vld [vmem:[#allocation2 + $0x122] sm:$0xff]  ;;  %v11673_v16 = vld [vmem:[#allocation2 + $0x12a] sm:$0xff]  ;;  %vm4618_vm5 = vcmp.ge.f32.partialorder %v4556_v20, 0.0  ;;  %v4650_v52 = vmul.f32 0.2, %v4556_v20  ;;  %4954 = vst.msk [vmem:[#allocation3 + $0xc0] sm:$0xff] %vm2786_vm13, %v4867_v29  ;;  %5522 = vrot.lane.b32.xlu0 %v11499_v22, %s8765_s15  ;;  %6391 = vmatmul.mubr.f32.gmra.mxu0 %v6081_v38 }
 0x5b5   : > { %v11675_v11 = vld [vmem:[#allocation2 + $0x128] sm:$0xff]  ;;  %6054 = vst.msk [vmem:[#allocation3 + $0x1f0] sm:$0xff] %vm333_vm0, %v11671_v13  ;;  %6055 = vst.msk [vmem:[#allocation3 + $0x208] sm:$0xff] %vm333_vm0, %v11673_v16  ;;  %5268 = vrot.lane.b32.xlu1 %v11503_v34, %s8767_s23 }
 0x5b6   : > { %v11684_v61 = vld [vmem:[#allocation2 + $0x129] sm:$0xff]  ;;  %4779 = vst.msk [vmem:[#allocation3 + $0x258] sm:$0xff] %vm333_vm0, %v11675_v11  ;;  %v4682_v1 = vsel %vm4618_vm5, %v4556_v20, %v4650_v52  ;;  %v5887_v33 = vpop.permute.xlu0 %5886 }
 0x5b7   : > { %5417 = vst.msk [vmem:[#allocation3 + $0x230] sm:$0xff] %vm333_vm0, %v11684_v61  ;;  %4714 = vst.msk [vmem:[#allocation2 + $0x139] sm:$0xff] %vm333_vm0, %v4682_v1  ;;  %v5059_v42 = vpop.permute.xlu1 %5058  ;;  %v6087_v9 = vld [vmem:[#allocation3 + $0xa8] sm:$0xff] }
 0x5b8   : > { %5976 = vst.msk [vmem:[#allocation3 + $0x98] sm:$0xff] %vm3172_vm4, %v5887_v33  ;;  %5714 = vrot.lane.b32.xlu0 %v11533_v62, %s8766_s22 }
 0x5b9   : > { %5146 = vst.msk [vmem:[#allocation3 + $0xc0] sm:$0xff] %vm2979_vm3, %v5059_v42  ;;  %v4335_v7 = vpop.f32.mrf.mxu1  ;;  %4886 = vrot.lane.b32.xlu1 %v11478_v57, %s8765_s15 }
 0x5ba   : > { %v4336_v34 = vadd.f32 %v11436_v26, %v4335_v7  ;;  %v5505_v43 = vpop.permute.xlu0 %5504 }
 0x5bb   : > { %v4337_v32 = vpop.f32.mrf.mxu1  ;;  %5593 = vst.msk [vmem:[#allocation3 + $0xb0] sm:$0xff] %vm2786_vm13, %v5505_v43  ;;  %v5251_v28 = vpop.permute.xlu1 %5250 }
 0x5bc   : > { %v6128_v6 = vld [vmem:[#allocation3 + $0x1f0] sm:$0xff]  ;;  %v6131_v8 = vld [vmem:[#allocation3 + $0x208] sm:$0xff]  ;;  %v4561_v0 = vadd.f32 %v8545_v50, %v4336_v34  ;;  %5338 = vst.msk [vmem:[#allocation3 + $0xc0] sm:$0xff] %vm3172_vm4, %v5251_v28  ;;  %5906 = vrot.lane.b32.xlu0 %v11535_v17, %s8767_s23 }
 0x5bd   : > { %8593 = vmatprep.mubr.msk.f32.mxu1 %vm333_vm0, %v6128_v6  ;;  %5078 = vrot.lane.b32.xlu1 %v11499_v22, %s8766_s22 }
 0x5be   : > { %8594 = vmatmul.mubr.msk.f32.gmra.mxu1 %vm333_vm0, %v6131_v8  ;;  %vm4619_vm6 = vcmp.ge.f32.partialorder %v4561_v0, 0.0  ;;  %v4651_v57 = vmul.f32 0.2, %v4561_v0  ;;  %v5697_v21 = vpop.permute.xlu0 %5696  ;;  %v11708_v19 = vld [vmem:[#allocation2 + $0x138] sm:$0xff] }
 0x5bf   : > { %v6085_v12 = vld [vmem:[#allocation3 + $0x98] sm:$0xff]  ;;  %v11710_v46 = vld [vmem:[#allocation2 + $0x139] sm:$0xff]  ;;  %5785 = vst.msk [vmem:[#allocation3 + $0xb0] sm:$0xff] %vm2979_vm3, %v5697_v21  ;;  %v4869_v40 = vpop.permute.xlu1 %4868 }
 0x5c0   : > { %6395 = vmatprep.mubr.f32.mxu0 %v6085_v12  ;;  %5418 = vst.msk [vmem:[#allocation3 + $0x248] sm:$0xff] %vm333_vm0, %v11710_v46  ;;  %4780 = vst.msk [vmem:[#allocation3 + $0x270] sm:$0xff] %vm333_vm0, %v11708_v19  ;;  %v4683_v22 = vsel %vm4619_vm6, %v4561_v0, %v4651_v57  ;;  %5524 = vrot.lane.b32.xlu0 %v11501_v3, %s8765_s15 }
 0x5c1   : > { %4955 = vst.msk [vmem:[#allocation3 + $0xd8] sm:$0xff] %vm2786_vm13, %v4869_v40  ;;  %6396 = vmatmul.mubr.f32.gmra.mxu0 %v6084_v58  ;;  %5270 = vrot.lane.b32.xlu1 %v11533_v62, %s8767_s23 }
 0x5c2   : > { %4715 = vst.msk [vmem:[#allocation2 + $0x141] sm:$0xff] %vm333_vm0, %v4683_v22  ;;  %v5889_v14 = vpop.permute.xlu0 %5888 }
 0x5c3   : > { %5977 = vst.msk [vmem:[#allocation3 + $0xb0] sm:$0xff] %vm3172_vm4, %v5889_v14  ;;  %v5061_v41 = vpop.permute.xlu1 %5060  ;;  %v4340_v23 = vpop.f32.mrf.mxu1  ;;  %v6090_v0 = vld [vmem:[#allocation3 + $0xc0] sm:$0xff] }
 0x5c4   : > { %5147 = vst.msk [vmem:[#allocation3 + $0xd8] sm:$0xff] %vm2979_vm3, %v5061_v41  ;;  %v4341_v45 = vadd.f32 %v11436_v26, %v4340_v23  ;;  %5716 = vrot.lane.b32.xlu0 %v11559_v27, %s8766_s22 }
 0x5c5   : > { %4888 = vrot.lane.b32.xlu1 %v11511_v49, %s8765_s15  ;;  %v4342_v53 = vpop.f32.mrf.mxu1 }
 0x5c6   : > { %v4566_v54 = vadd.f32 %v4565_v37, %v4341_v45  ;;  %v5507_v24 = vpop.permute.xlu0 %5506 }
 0x5c7   : > { %5594 = vst.msk [vmem:[#allocation3 + $0xc8] sm:$0xff] %vm2786_vm13, %v5507_v24  ;;  %v5253_v62 = vpop.permute.xlu1 %5252 }
 0x5c8   : > { %vm4620_vm7 = vcmp.ge.f32.partialorder %v4566_v54, 0.0  ;;  %v4652_v2 = vmul.f32 0.2, %v4566_v54  ;;  %5339 = vst.msk [vmem:[#allocation3 + $0xd8] sm:$0xff] %vm3172_vm4, %v5253_v62  ;;  %5908 = vrot.lane.b32.xlu0 %v11567_v47, %s8767_s23 }
 0x5c9   : > { %v11734_v44 = vld [vmem:[#allocation2 + $0x13a] sm:$0xff]  ;;  %v11736_v50 = vld [vmem:[#allocation2 + $0x142] sm:$0xff]  ;;  %5080 = vrot.lane.b32.xlu1 %v11501_v3, %s8766_s22 }
 0x5ca   : > { %v11738_v59 = vld [vmem:[#allocation2 + $0x140] sm:$0xff]  ;;  %6056 = vst.msk [vmem:[#allocation3 + $0x220] sm:$0xff] %vm333_vm0, %v11734_v44  ;;  %6057 = vst.msk [vmem:[#allocation3 + $0x238] sm:$0xff] %vm333_vm0, %v11736_v50  ;;  %v4684_v30 = vsel %vm4620_vm7, %v4566_v54, %v4652_v2  ;;  %v5699_v63 = vpop.permute.xlu0 %5698 }
 0x5cb   : > { %v11746_v49 = vld [vmem:[#allocation2 + $0x141] sm:$0xff]  ;;  %4781 = vst.msk [vmem:[#allocation3 + $0x288] sm:$0xff] %vm333_vm0, %v11738_v59  ;;  %4716 = vst.msk [vmem:[#allocation2 + $0x151] sm:$0xff] %vm333_vm0, %v4684_v30  ;;  %v4871_v3 = vpop.permute.xlu1 %4870 }
 0x5cc   : > { %v6088_v25 = vld [vmem:[#allocation3 + $0xb0] sm:$0xff]  ;;  %5419 = vst.msk [vmem:[#allocation3 + $0x260] sm:$0xff] %vm333_vm0, %v11746_v49  ;;  %5526 = vrot.lane.b32.xlu0 %v11555_v56, %s8765_s15 }
 0x5cd   : > { %5786 = vst.msk [vmem:[#allocation3 + $0xc8] sm:$0xff] %vm2979_vm3, %v5699_v63  ;;  %6400 = vmatprep.mubr.f32.mxu0 %v6088_v25  ;;  %v4345_v5 = vpop.f32.mrf.mxu1  ;;  %5272 = vrot.lane.b32.xlu1 %v11559_v27, %s8767_s23 }
 0x5ce   : > { %4956 = vst.msk [vmem:[#allocation3 + $0xf0] sm:$0xff] %vm2786_vm13, %v4871_v3  ;;  %6401 = vmatmul.mubr.f32.gmra.mxu0 %v6087_v9  ;;  %v4346_v20 = vadd.f32 %v11436_v26, %v4345_v5  ;;  %v5891_v18 = vpop.permute.xlu0 %5890 }
 0x5cf   : > { %v4347_v35 = vpop.f32.mrf.mxu1  ;;  %5978 = vst.msk [vmem:[#allocation3 + $0xc8] sm:$0xff] %vm3172_vm4, %v5891_v18  ;;  %v5063_v38 = vpop.permute.xlu1 %5062  ;;  %v6093_v63 = vld [vmem:[#allocation3 + $0xd8] sm:$0xff] }
 0x5d0   : > { %v4571_v29 = vadd.f32 %v8548_v10, %v4346_v20  ;;  %5148 = vst.msk [vmem:[#allocation3 + $0xf0] sm:$0xff] %vm2979_vm3, %v5063_v38  ;;  %5718 = vrot.lane.b32.xlu0 %v11589_v36, %s8766_s22 }
 0x5d1   : > { %v6134_v52 = vld [vmem:[#allocation3 + $0x220] sm:$0xff]  ;;  %v6137_v1 = vld [vmem:[#allocation3 + $0x238] sm:$0xff]  ;;  %4890 = vrot.lane.b32.xlu1 %v11535_v17, %s8765_s15  ;;  %v8551_v17 = vpop.f32.mrf.mxu0 }
 0x5d2   : > { %8596 = vmatprep.mubr.msk.f32.mxu1 %vm333_vm0, %v6134_v52  ;;  %vm4621_vm8 = vcmp.ge.f32.partialorder %v4571_v29, 0.0  ;;  %v4653_v27 = vmul.f32 0.2, %v4571_v29  ;;  %v5509_v33 = vpop.permute.xlu0 %5508  ;;  %v11768_v42 = vld [vmem:[#allocation2 + $0x151] sm:$0xff] }
 0x5d3   : > { %8597 = vmatmul.mubr.msk.f32.gmra.mxu1 %vm333_vm0, %v6137_v1  ;;  %5595 = vst.msk [vmem:[#allocation3 + $0xe0] sm:$0xff] %vm2786_vm13, %v5509_v33  ;;  %v5255_v7 = vpop.permute.xlu1 %5254  ;;  %v4750_v34 = vld [vmem:[#allocation2 + $0x150] sm:$0xff]  ;;  %v4575_v21 = vpop.f32.mrf.mxu0 }
 0x5d4   : > { %5420 = vst.msk [vmem:[#allocation3 + $0x278] sm:$0xff] %vm333_vm0, %v11768_v42  ;;  %v4685_v43 = vsel %vm4621_vm8, %v4571_v29, %v4653_v27  ;;  %5910 = vrot.lane.b32.xlu0 %v11591_v51, %s8767_s23  ;;  %4782 = vst.msk [vmem:[#allocation3 + $0x2a0] sm:$0xff] %vm333_vm0, %v4750_v34 }
 0x5d5   : > { %5340 = vst.msk [vmem:[#allocation3 + $0xf0] sm:$0xff] %vm3172_vm4, %v5255_v7  ;;  %5082 = vrot.lane.b32.xlu1 %v11555_v56, %s8766_s22  ;;  %v8554_v5 = vpop.f32.mrf.mxu0 }
 0x5d6   : > { %4717 = vst.msk [vmem:[#allocation2 + $0x159] sm:$0xff] %vm333_vm0, %v4685_v43  ;;  %v5701_v32 = vpop.permute.xlu0 %5700  ;;  %v6091_v28 = vld [vmem:[#allocation3 + $0xc8] sm:$0xff] }
 0x5d7   : > { %5787 = vst.msk [vmem:[#allocation3 + $0xe0] sm:$0xff] %vm2979_vm3, %v5701_v32  ;;  %v4873_v6 = vpop.permute.xlu1 %4872  ;;  %v4350_v8 = vpop.f32.mrf.mxu1  ;;  %6405 = vmatprep.mubr.f32.mxu0 %v6091_v28 }
 0x5d8   : > { %4957 = vst.msk [vmem:[#allocation3 + $0x108] sm:$0xff] %vm2786_vm13, %v4873_v6  ;;  %v4351_v57 = vadd.f32 %v11436_v26, %v4350_v8  ;;  %5528 = vrot.lane.b32.xlu0 %v11557_v31, %s8765_s15  ;;  %6406 = vmatmul.mubr.f32.gmra.mxu0 %v6090_v0  ;;  %v4585_v29 = vpop.f32.mrf.mxu0 }
 0x5d9   : > { %5274 = vrot.lane.b32.xlu1 %v11589_v36, %s8767_s23  ;;  %v4352_v56 = vpop.f32.mrf.mxu1 }
 0x5da   : > { %v4576_v12 = vadd.f32 %v4575_v21, %v4351_v57  ;;  %v5893_v40 = vpop.permute.xlu0 %5892 }
 0x5db   : > { %5979 = vst.msk [vmem:[#allocation3 + $0xe0] sm:$0xff] %vm3172_vm4, %v5893_v40  ;;  %v5065_v58 = vpop.permute.xlu1 %5064 }
 0x5dc   : > { %vm4622_vm9 = vcmp.ge.f32.partialorder %v4576_v12, 0.0  ;;  %v4654_v22 = vmul.f32 0.2, %v4576_v12  ;;  %5149 = vst.msk [vmem:[#allocation3 + $0x108] sm:$0xff] %vm2979_vm3, %v5065_v58  ;;  %5720 = vrot.lane.b32.xlu0 %v11622_v39, %s8766_s22  ;;  %v6096_v43 = vld [vmem:[#allocation3 + $0xf0] sm:$0xff] }
 0x5dd   : > { %v11791_v10 = vld [vmem:[#allocation2 + $0x152] sm:$0xff]  ;;  %v11793_v14 = vld [vmem:[#allocation2 + $0x15a] sm:$0xff]  ;;  %4892 = vrot.lane.b32.xlu1 %v11567_v47, %s8765_s15 }
 0x5de   : > { %6058 = vst.msk [vmem:[#allocation3 + $0x250] sm:$0xff] %vm333_vm0, %v11791_v10  ;;  %6059 = vst.msk [vmem:[#allocation3 + $0x268] sm:$0xff] %vm333_vm0, %v11793_v14  ;;  %v11801_v36 = vld [vmem:[#allocation2 + $0x159] sm:$0xff]  ;;  %v4686_v23 = vsel %vm4622_vm9, %v4576_v12, %v4654_v22  ;;  %v5511_v45 = vpop.permute.xlu0 %5510 }
 0x5df   : > { %v4751_v41 = vld [vmem:[#allocation2 + $0x158] sm:$0xff]  ;;  %5421 = vst.msk [vmem:[#allocation3 + $0x290] sm:$0xff] %vm333_vm0, %v11801_v36  ;;  %4718 = vst.msk [vmem:[#allocation2 + $0x169] sm:$0xff] %vm333_vm0, %v4686_v23  ;;  %v5257_v47 = vpop.permute.xlu1 %5256 }
 0x5e0   : > { %4783 = vst.msk [vmem:[#allocation3 + $0x2b8] sm:$0xff] %vm333_vm0, %v4751_v41  ;;  %v4355_v37 = vpop.f32.mrf.mxu1  ;;  %5912 = vrot.lane.b32.xlu0 %v11624_v60, %s8767_s23 }
 0x5e1   : > { %5596 = vst.msk [vmem:[#allocation3 + $0xf8] sm:$0xff] %vm2786_vm13, %v5511_v45  ;;  %v4356_v53 = vadd.f32 %v11436_v26, %v4355_v37  ;;  %5084 = vrot.lane.b32.xlu1 %v11557_v31, %s8766_s22 }
 0x5e2   : > { %5341 = vst.msk [vmem:[#allocation3 + $0x108] sm:$0xff] %vm3172_vm4, %v5257_v47  ;;  %v4357_v54 = vpop.f32.mrf.mxu1  ;;  %v5703_v24 = vpop.permute.xlu0 %5702  ;;  %v6094_v62 = vld [vmem:[#allocation3 + $0xe0] sm:$0xff] }
 0x5e3   : > { %v4581_v2 = vadd.f32 %v8551_v17, %v4356_v53  ;;  %5788 = vst.msk [vmem:[#allocation3 + $0xf8] sm:$0xff] %vm2979_vm3, %v5703_v24  ;;  %v4875_v30 = vpop.permute.xlu1 %4874  ;;  %6410 = vmatprep.mubr.f32.mxu0 %v6094_v62 }
 0x5e4   : > { %4958 = vst.msk [vmem:[#allocation3 + $0x120] sm:$0xff] %vm2786_vm13, %v4875_v30  ;;  %5530 = vrot.lane.b32.xlu0 %v11611_v55, %s8765_s15  ;;  %6411 = vmatmul.mubr.f32.gmra.mxu0 %v6093_v63 }
 0x5e5   : > { %v6140_v25 = vld [vmem:[#allocation3 + $0x250] sm:$0xff]  ;;  %v6143_v3 = vld [vmem:[#allocation3 + $0x268] sm:$0xff]  ;;  %vm4623_vm10 = vcmp.ge.f32.partialorder %v4581_v2, 0.0  ;;  %v4655_v9 = vmul.f32 0.2, %v4581_v2  ;;  %5276 = vrot.lane.b32.xlu1 %v11622_v39, %s8767_s23 }
 0x5e6   : > { %8599 = vmatprep.mubr.msk.f32.mxu1 %vm333_vm0, %v6140_v25  ;;  %v5895_v31 = vpop.permute.xlu0 %5894  ;;  %v11822_v20 = vld [vmem:[#allocation2 + $0x168] sm:$0xff] }
 0x5e7   : > { %8600 = vmatmul.mubr.msk.f32.gmra.mxu1 %vm333_vm0, %v6143_v3  ;;  %v11824_v18 = vld [vmem:[#allocation2 + $0x169] sm:$0xff]  ;;  %v4687_v35 = vsel %vm4623_vm10, %v4581_v2, %v4655_v9  ;;  %5980 = vst.msk [vmem:[#allocation3 + $0xf8] sm:$0xff] %vm3172_vm4, %v5895_v31  ;;  %v5067_v38 = vpop.permute.xlu1 %5066 }
 0x5e8   : > { %5422 = vst.msk [vmem:[#allocation3 + $0x2a8] sm:$0xff] %vm333_vm0, %v11824_v18  ;;  %4784 = vst.msk [vmem:[#allocation3 + $0x2d0] sm:$0xff] %vm333_vm0, %v11822_v20  ;;  %5722 = vrot.lane.b32.xlu0 %v11648_v4, %s8766_s22 }
 0x5e9   : > { %4719 = vst.msk [vmem:[#allocation2 + $0x171] sm:$0xff] %vm333_vm0, %v4687_v35  ;;  %4894 = vrot.lane.b32.xlu1 %v11591_v51, %s8765_s15  ;;  %v6099_v24 = vld [vmem:[#allocation3 + $0x108] sm:$0xff] }
 0x5ea   : > { %5150 = vst.msk [vmem:[#allocation3 + $0x120] sm:$0xff] %vm2979_vm3, %v5067_v38  ;;  %v5513_v39 = vpop.permute.xlu0 %5512 }
 0x5eb   : > { %5597 = vst.msk [vmem:[#allocation3 + $0x110] sm:$0xff] %vm2786_vm13, %v5513_v39  ;;  %v5259_v52 = vpop.permute.xlu1 %5258 }
 0x5ec   : > { %v4360_v1 = vpop.f32.mrf.mxu1  ;;  %5342 = vst.msk [vmem:[#allocation3 + $0x120] sm:$0xff] %vm3172_vm4, %v5259_v52  ;;  %5914 = vrot.lane.b32.xlu0 %v11650_v48, %s8767_s23 }
 0x5ed   : > { %v4361_v27 = vadd.f32 %v11436_v26, %v4360_v1  ;;  %5086 = vrot.lane.b32.xlu1 %v11611_v55, %s8766_s22 }
 0x5ee   : > { %v4362_v33 = vpop.f32.mrf.mxu1  ;;  %v5705_v34 = vpop.permute.xlu0 %5704  ;;  %v6097_v51 = vld [vmem:[#allocation3 + $0xf8] sm:$0xff] }
 0x5ef   : > { %v4586_v7 = vadd.f32 %v4585_v29, %v4361_v27  ;;  %5789 = vst.msk [vmem:[#allocation3 + $0x110] sm:$0xff] %vm2979_vm3, %v5705_v34  ;;  %v4877_v17 = vpop.permute.xlu1 %4876  ;;  %6415 = vmatprep.mubr.f32.mxu0 %v6097_v51  ;;  %v5642_v33 = vld [vmem:[#allocation2 + $0x150] sm:$0xff] }
 0x5f0   : > { %v11845_v32 = vld [vmem:[#allocation2 + $0x16a] sm:$0xff]  ;;  %v11847_v28 = vld [vmem:[#allocation2 + $0x172] sm:$0xff]  ;;  %4959 = vst.msk [vmem:[#allocation3 + $0x138] sm:$0xff] %vm2786_vm13, %v4877_v17  ;;  %5532 = vrot.lane.b32.xlu0 %v11613_v15, %s8765_s15  ;;  %6416 = vmatmul.mubr.f32.gmra.mxu0 %v6096_v43 }
 0x5f1   : > { %v11849_v26 = vld [vmem:[#allocation2 + $0x170] sm:$0xff]  ;;  %vm4624_vm11 = vcmp.ge.f32.partialorder %v4586_v7, 0.0  ;;  %v4656_v6 = vmul.f32 0.2, %v4586_v7  ;;  %6060 = vst.msk [vmem:[#allocation3 + $0x280] sm:$0xff] %vm333_vm0, %v11845_v32  ;;  %6061 = vst.msk [vmem:[#allocation3 + $0x298] sm:$0xff] %vm333_vm0, %v11847_v28  ;;  %5278 = vrot.lane.b32.xlu1 %v11648_v4, %s8767_s23 }
 0x5f2   : > { %v11858_v55 = vld [vmem:[#allocation2 + $0x171] sm:$0xff]  ;;  %4785 = vst.msk [vmem:[#allocation3 + $0x2e8] sm:$0xff] %vm333_vm0, %v11849_v26  ;;  %v5897_v0 = vpop.permute.xlu0 %5896  ;;  %v8677_v4 = vld [vmem:[%s13180_s4] ss:$0 sm:$0xff] }
 0x5f3   : > { %5423 = vst.msk [vmem:[#allocation3 + $0x2c0] sm:$0xff] %vm333_vm0, %v11858_v55  ;;  %v4688_v8 = vsel %vm4624_vm11, %v4586_v7, %v4656_v6  ;;  %v5069_v57 = vpop.permute.xlu1 %5068  ;;  %v6102_v31 = vld [vmem:[#allocation3 + $0x120] sm:$0xff] }
 0x5f4   : > { %4720 = vst.msk [vmem:[#allocation2 + $0x181] sm:$0xff] %vm333_vm0, %v4688_v8  ;;  %v4365_v21 = vpop.f32.mrf.mxu1  ;;  %5724 = vrot.lane.b32.xlu0 %v11675_v11, %s8766_s22 }
 0x5f5   : > { %5981 = vst.msk [vmem:[#allocation3 + $0x110] sm:$0xff] %vm3172_vm4, %v5897_v0  ;;  %v4366_v56 = vadd.f32 %v8677_v4, %v4365_v21  ;;  %4896 = vrot.lane.b32.xlu1 %v11624_v60, %s8765_s15 }
 0x5f6   : > { %5151 = vst.msk [vmem:[#allocation3 + $0x138] sm:$0xff] %vm2979_vm3, %v5069_v57  ;;  %v4367_v12 = vpop.f32.mrf.mxu1  ;;  %v5515_v40 = vpop.permute.xlu0 %5514 }
 0x5f7   : > { %v4591_v58 = vadd.f32 %v8554_v5, %v4366_v56  ;;  %5598 = vst.msk [vmem:[#allocation3 + $0x128] sm:$0xff] %vm2786_vm13, %v5515_v40  ;;  %v5261_v22 = vpop.permute.xlu1 %5260 }
 0x5f8   : > { %v6146_v41 = vld [vmem:[#allocation3 + $0x280] sm:$0xff]  ;;  %v6149_v23 = vld [vmem:[#allocation3 + $0x298] sm:$0xff]  ;;  %5343 = vst.msk [vmem:[#allocation3 + $0x138] sm:$0xff] %vm3172_vm4, %v5261_v22  ;;  %5916 = vrot.lane.b32.xlu0 %v11684_v61, %s8767_s23 }
 0x5f9   : > { %8602 = vmatprep.mubr.msk.f32.mxu1 %vm333_vm0, %v6146_v41  ;;  %vm4625_vm12 = vcmp.ge.f32.partialorder %v4591_v58, 0.0  ;;  %v4657_v45 = vmul.f32 0.2, %v4591_v58  ;;  %5088 = vrot.lane.b32.xlu1 %v11613_v15, %s8766_s22 }
 0x5fa   : > { %8603 = vmatmul.mubr.msk.f32.gmra.mxu1 %vm333_vm0, %v6149_v23  ;;  %v5707_v60 = vpop.permute.xlu0 %5706  ;;  %v11992_v23 = vld [vmem:[%s13182_s6] ss:$0 sm:$0xff] }
 0x5fb   : > { %v11884_v37 = vld [vmem:[#allocation2 + $0x181] sm:$0xff]  ;;  %v4689_v53 = vsel %vm4625_vm12, %v4591_v58, %v4657_v45  ;;  %5790 = vst.msk [vmem:[#allocation3 + $0x128] sm:$0xff] %vm2979_vm3, %v5707_v60  ;;  %v4879_v54 = vpop.permute.xlu1 %4878  ;;  %v8565_v58 = vpop.f32.mrf.mxu1 }
 0x5fc   : > { %v6100_v47 = vld [vmem:[#allocation3 + $0x110] sm:$0xff]  ;;  %5424 = vst.msk [vmem:[#allocation3 + $0x2d8] sm:$0xff] %vm333_vm0, %v11884_v37  ;;  %4721 = vst.msk [vmem:[#allocation2 + $0x189] sm:$0xff] %vm333_vm0, %v4689_v53  ;;  %5534 = vrot.lane.b32.xlu0 %v11671_v13, %s8765_s15 }
 0x5fd   : > { %6420 = vmatprep.mubr.f32.mxu0 %v6100_v47  ;;  %4960 = vst.msk [vmem:[#allocation3 + $0x150] sm:$0xff] %vm2786_vm13, %v4879_v54  ;;  %5280 = vrot.lane.b32.xlu1 %v11675_v11, %s8767_s23 }
 0x5fe   : > { %6421 = vmatmul.mubr.f32.gmra.mxu0 %v6099_v24  ;;  %v5899_v15 = vpop.permute.xlu0 %5898 }
 0x5ff   : > { %5982 = vst.msk [vmem:[#allocation3 + $0x128] sm:$0xff] %vm3172_vm4, %v5899_v15  ;;  %v5071_v62 = vpop.permute.xlu1 %5070 }
 0x600   : > { %5152 = vst.msk [vmem:[#allocation3 + $0x150] sm:$0xff] %vm2979_vm3, %v5071_v62  ;;  %5726 = vrot.lane.b32.xlu0 %v11708_v19, %s8766_s22 }
 0x601   : > { %4898 = vrot.lane.b32.xlu1 %v11650_v48, %s8765_s15 }
 0x602   : > { %v5517_v2 = vpop.permute.xlu0 %5516 }
 0x603   : > { %5599 = vst.msk [vmem:[#allocation3 + $0x140] sm:$0xff] %vm2786_vm13, %v5517_v2  ;;  %v5263_v30 = vpop.permute.xlu1 %5262  ;;  %v11902_v63 = vld [vmem:[#allocation2 + $0x182] sm:$0xff]  ;;  %v11904_v25 = vld [vmem:[#allocation2 + $0x18a] sm:$0xff] }
 0x604   : > { %5344 = vst.msk [vmem:[#allocation3 + $0x150] sm:$0xff] %vm3172_vm4, %v5263_v30  ;;  %5918 = vrot.lane.b32.xlu0 %v11710_v46, %s8767_s23  ;;  %v11913_v48 = vld [vmem:[#allocation2 + $0x189] sm:$0xff] }
 0x605   : > { %6062 = vst.msk [vmem:[#allocation3 + $0x2b0] sm:$0xff] %vm333_vm0, %v11902_v63  ;;  %6063 = vst.msk [vmem:[#allocation3 + $0x2c8] sm:$0xff] %vm333_vm0, %v11904_v25  ;;  %5090 = vrot.lane.b32.xlu1 %v11671_v13, %s8766_s22 }
 0x606   : > { %5425 = vst.msk [vmem:[#allocation3 + $0x2f0] sm:$0xff] %vm333_vm0, %v11913_v48  ;;  %v5709_v11 = vpop.permute.xlu0 %5708  ;;  %v6103_v3 = vld [vmem:[#allocation3 + $0x128] sm:$0xff] }
 0x607   : > { %5791 = vst.msk [vmem:[#allocation3 + $0x140] sm:$0xff] %vm2979_vm3, %v5709_v11  ;;  %v4881_v9 = vpop.permute.xlu1 %4880  ;;  %6425 = vmatprep.mubr.f32.mxu0 %v6103_v3 }
 0x608   : > { %4961 = vst.msk [vmem:[#allocation3 + $0x168] sm:$0xff] %vm2786_vm13, %v4881_v9  ;;  %5536 = vrot.lane.b32.xlu0 %v11673_v16, %s8765_s15  ;;  %6426 = vmatmul.mubr.f32.gmra.mxu0 %v6102_v31 }
 0x609   : > { %5282 = vrot.lane.b32.xlu1 %v11708_v19, %s8767_s23 }
 0x60a   : > { %v5901_v13 = vpop.permute.xlu0 %5900 }
 0x60b   : > { %5983 = vst.msk [vmem:[#allocation3 + $0x140] sm:$0xff] %vm3172_vm4, %v5901_v13  ;;  %v5073_v5 = vpop.permute.xlu1 %5072  ;;  %v6108_v17 = vld [vmem:[#allocation3 + $0x150] sm:$0xff] }
 0x60c   : > { %v6152_v35 = vld [vmem:[#allocation3 + $0x2b0] sm:$0xff]  ;;  %v6155_v38 = vld [vmem:[#allocation3 + $0x2c8] sm:$0xff]  ;;  %5153 = vst.msk [vmem:[#allocation3 + $0x168] sm:$0xff] %vm2979_vm3, %v5073_v5  ;;  %5728 = vrot.lane.b32.xlu0 %v11738_v59, %s8766_s22 }
 0x60d   : > { %8605 = vmatprep.mubr.msk.f32.mxu1 %vm333_vm0, %v6152_v35  ;;  %4900 = vrot.lane.b32.xlu1 %v11684_v61, %s8765_s15  ;;  %v6105_v61 = vld [vmem:[#allocation3 + $0x138] sm:$0xff] }
 0x60e   : > { %8606 = vmatmul.mubr.msk.f32.gmra.mxu1 %vm333_vm0, %v6155_v38  ;;  %v5519_v39 = vpop.permute.xlu0 %5518 }
 0x60f   : > { %5600 = vst.msk [vmem:[#allocation3 + $0x158] sm:$0xff] %vm2786_vm13, %v5519_v39  ;;  %v5265_v19 = vpop.permute.xlu1 %5264  ;;  %v5646_v39 = vld [vmem:[#allocation2 + $0x180] sm:$0xff] }
 0x610   : > { %5345 = vst.msk [vmem:[#allocation3 + $0x168] sm:$0xff] %vm3172_vm4, %v5265_v19  ;;  %5920 = vrot.lane.b32.xlu0 %v11746_v49, %s8767_s23 }
 0x611   : > { %5092 = vrot.lane.b32.xlu1 %v11673_v16, %s8766_s22 }
 0x612   : > { %v5711_v29 = vpop.permute.xlu0 %5710  ;;  %v6106_v52 = vld [vmem:[#allocation3 + $0x140] sm:$0xff] }
 0x613   : > { %5792 = vst.msk [vmem:[#allocation3 + $0x158] sm:$0xff] %vm2979_vm3, %v5711_v29  ;;  %v4883_v1 = vpop.permute.xlu1 %4882  ;;  %6430 = vmatprep.mubr.f32.mxu0 %v6106_v52 }
 0x614   : > { %4962 = vst.msk [vmem:[#allocation3 + $0x180] sm:$0xff] %vm2786_vm13, %v4883_v1  ;;  %5538 = vrot.lane.b32.xlu0 %v11734_v44, %s8765_s15  ;;  %6431 = vmatmul.mubr.f32.gmra.mxu0 %v6105_v61 }
 0x615   : > { %5284 = vrot.lane.b32.xlu1 %v11738_v59, %s8767_s23 }
 0x616   : > { %v5903_v27 = vpop.permute.xlu0 %5902 }
 0x617   : > { %5984 = vst.msk [vmem:[#allocation3 + $0x158] sm:$0xff] %vm3172_vm4, %v5903_v27  ;;  %v5075_v16 = vpop.permute.xlu1 %5074  ;;  %v6111_v56 = vld [vmem:[#allocation3 + $0x168] sm:$0xff] }
 0x618   : > { %5154 = vst.msk [vmem:[#allocation3 + $0x180] sm:$0xff] %vm2979_vm3, %v5075_v16  ;;  %5730 = vrot.lane.b32.xlu0 %v5642_v33, %s8766_s22 }
 0x619   : > { %4902 = vrot.lane.b32.xlu1 %v11710_v46, %s8765_s15 }
 0x61a   : > { %v5521_v7 = vpop.permute.xlu0 %5520 }
 0x61b   : > { %5601 = vst.msk [vmem:[#allocation3 + $0x170] sm:$0xff] %vm2786_vm13, %v5521_v7  ;;  %v5267_v34 = vpop.permute.xlu1 %5266 }
 0x61c   : > { %5346 = vst.msk [vmem:[#allocation3 + $0x180] sm:$0xff] %vm3172_vm4, %v5267_v34  ;;  %5922 = vrot.lane.b32.xlu0 %v11768_v42, %s8767_s23 }
 0x61d   : > { %5094 = vrot.lane.b32.xlu1 %v11734_v44, %s8766_s22  ;;  %v5643_v44 = vld [vmem:[#allocation2 + $0x158] sm:$0xff] }
 0x61e   : > { %v5713_v59 = vpop.permute.xlu0 %5712  ;;  %v6109_v51 = vld [vmem:[#allocation3 + $0x158] sm:$0xff] }
 0x61f   : > { %5793 = vst.msk [vmem:[#allocation3 + $0x170] sm:$0xff] %vm2979_vm3, %v5713_v59  ;;  %v4885_v43 = vpop.permute.xlu1 %4884  ;;  %6435 = vmatprep.mubr.f32.mxu0 %v6109_v51 }
 0x620   : > { %4963 = vst.msk [vmem:[#allocation3 + $0x198] sm:$0xff] %vm2786_vm13, %v4885_v43  ;;  %5540 = vrot.lane.b32.xlu0 %v11736_v50, %s8765_s15  ;;  %6436 = vmatmul.mubr.f32.gmra.mxu0 %v6108_v17  ;;  %v5647_v43 = vld [vmem:[#allocation2 + $0x188] sm:$0xff] }
 0x621   : > { %5286 = vrot.lane.b32.xlu1 %v5642_v33, %s8767_s23 }
 0x622   : > { %v5905_v46 = vpop.permute.xlu0 %5904 }
 0x623   : > { %5985 = vst.msk [vmem:[#allocation3 + $0x170] sm:$0xff] %vm3172_vm4, %v5905_v46  ;;  %v5077_v6 = vpop.permute.xlu1 %5076  ;;  %v6114_v45 = vld [vmem:[#allocation3 + $0x180] sm:$0xff] }
 0x624   : > { %5155 = vst.msk [vmem:[#allocation3 + $0x198] sm:$0xff] %vm2979_vm3, %v5077_v6  ;;  %5732 = vrot.lane.b32.xlu0 %v5643_v44, %s8766_s22 }
 0x625   : > { %4904 = vrot.lane.b32.xlu1 %v11746_v49, %s8765_s15 }
 0x626   : > { %v5523_v8 = vpop.permute.xlu0 %5522 }
 0x627   : > { %5602 = vst.msk [vmem:[#allocation3 + $0x188] sm:$0xff] %vm2786_vm13, %v5523_v8  ;;  %v5269_v0 = vpop.permute.xlu1 %5268 }
 0x628   : > { %5347 = vst.msk [vmem:[#allocation3 + $0x198] sm:$0xff] %vm3172_vm4, %v5269_v0  ;;  %5924 = vrot.lane.b32.xlu0 %v11801_v36, %s8767_s23 }
 0x629   : > { %5096 = vrot.lane.b32.xlu1 %v11736_v50, %s8766_s22 }
 0x62a   : > { %v5715_v57 = vpop.permute.xlu0 %5714  ;;  %v6112_v21 = vld [vmem:[#allocation3 + $0x170] sm:$0xff] }
 0x62b   : > { %5794 = vst.msk [vmem:[#allocation3 + $0x188] sm:$0xff] %vm2979_vm3, %v5715_v57  ;;  %v4887_v4 = vpop.permute.xlu1 %4886  ;;  %6440 = vmatprep.mubr.f32.mxu0 %v6112_v21  ;;  %v6881_v21 = vld [vmem:[#allocation2 + $0x8] sm:$0xff] }
 0x62c   : > { %4964 = vst.msk [vmem:[#allocation3 + $0x1b0] sm:$0xff] %vm2786_vm13, %v4887_v4  ;;  %5542 = vrot.lane.b32.xlu0 %v11791_v10, %s8765_s15  ;;  %6441 = vmatmul.mubr.f32.gmra.mxu0 %v6111_v56  ;;  %v6982_v4 = vld [vmem:[#allocation2 + $0x9] sm:$0xff] }
 0x62d   : > { %5288 = vrot.lane.b32.xlu1 %v5643_v44, %s8767_s23 }
 0x62e   : > { %v5907_v49 = vpop.permute.xlu0 %5906 }
 0x62f   : > { %5986 = vst.msk [vmem:[#allocation3 + $0x188] sm:$0xff] %vm3172_vm4, %v5907_v49  ;;  %v5079_v12 = vpop.permute.xlu1 %5078  ;;  %v6117_v9 = vld [vmem:[#allocation3 + $0x198] sm:$0xff]  ;;  %v12060_v49 = vld [vmem:[%s13183_s7] ss:$0 sm:$0xff] }
 0x630   : > { %5156 = vst.msk [vmem:[#allocation3 + $0x1b0] sm:$0xff] %vm2979_vm3, %v5079_v12  ;;  %5734 = vrot.lane.b32.xlu0 %v11822_v20, %s8766_s22  ;;  %v12065_v12 = vld [vmem:[%s13183_s7 + $0x1] ss:$0 sm:$0xff] }
 0x631   : > { %4906 = vrot.lane.b32.xlu1 %v11768_v42, %s8765_s15 }
 0x632   : > { %v5525_v50 = vpop.permute.xlu0 %5524 }
 0x633   : > { %5603 = vst.msk [vmem:[#allocation3 + $0x1a0] sm:$0xff] %vm2786_vm13, %v5525_v50  ;;  %v5271_v40 = vpop.permute.xlu1 %5270 }
 0x634   : > { %5348 = vst.msk [vmem:[#allocation3 + $0x1b0] sm:$0xff] %vm3172_vm4, %v5271_v40  ;;  %5926 = vrot.lane.b32.xlu0 %v11824_v18, %s8767_s23 }
 0x635   : > { %5098 = vrot.lane.b32.xlu1 %v11791_v10, %s8766_s22  ;;  %v6592_v10 = vpop.f32.mrf.mxu1 }
 0x636   : > { %v5717_v22 = vpop.permute.xlu0 %5716  ;;  %v6115_v41 = vld [vmem:[#allocation3 + $0x188] sm:$0xff] }
 0x637   : > { %5795 = vst.msk [vmem:[#allocation3 + $0x1a0] sm:$0xff] %vm2979_vm3, %v5717_v22  ;;  %v4889_v42 = vpop.permute.xlu1 %4888  ;;  %6445 = vmatprep.mubr.f32.mxu0 %v6115_v41  ;;  %v8568_v1 = vpop.f32.mrf.mxu1 }
 0x638   : > { %4965 = vst.msk [vmem:[#allocation3 + $0x1c8] sm:$0xff] %vm2786_vm13, %v4889_v42  ;;  %5544 = vrot.lane.b32.xlu0 %v11793_v14, %s8765_s15  ;;  %6446 = vmatmul.mubr.f32.gmra.mxu0 %v6114_v45  ;;  %v7083_v42 = vld [vmem:[#allocation2 + $0xa] sm:$0xff] }
 0x639   : > { %v6367_v60 = vpop.f32.mrf.mxu0  ;;  %5290 = vrot.lane.b32.xlu1 %v11822_v20, %s8767_s23  ;;  %v6602_v7 = vpop.f32.mrf.mxu1 }
 0x63a   : > { %v6368_v47 = vadd.f32 %v11992_v23, %v6367_v60  ;;  %v5909_v54 = vpop.permute.xlu0 %5908 }
 0x63b   : > { %v6369_v53 = vpop.f32.mrf.mxu0  ;;  %5987 = vst.msk [vmem:[#allocation3 + $0x1a0] sm:$0xff] %vm3172_vm4, %v5909_v54  ;;  %v5081_v15 = vpop.permute.xlu1 %5080  ;;  %v6120_v16 = vld [vmem:[#allocation3 + $0x1b0] sm:$0xff] }
 0x63c   : > { %v6593_v24 = vadd.f32 %v6592_v10, %v6368_v47  ;;  %5157 = vst.msk [vmem:[#allocation3 + $0x1c8] sm:$0xff] %vm2979_vm3, %v5081_v15  ;;  %5736 = vrot.lane.b32.xlu0 %v11849_v26, %s8766_s22  ;;  %v6158_v10 = vld [vmem:[#allocation3 + $0x2e0] sm:$0xff]  ;;  %v5840_v53 = vld [vmem:[#allocation2 + $0x199] sm:$0xff]  ;;  %v12079_v54 = vld [vmem:[%s13183_s7 + $0x2] ss:$0 sm:$0xff] }
 0x63d   : > { %4908 = vrot.lane.b32.xlu1 %v11801_v36, %s8765_s15  ;;  %8608 = vmatprep.mubr.msk.f32.mxu1 %vm333_vm0, %v6158_v10 }
 0x63e   : > { %vm6751_vm14 = vcmp.ge.f32.partialorder %v6593_v24, 0.0  ;;  %v6783_v62 = vmul.f32 0.2, %v6593_v24  ;;  %v5527_v2 = vpop.permute.xlu0 %5526 }
 0x63f   : > { %5604 = vst.msk [vmem:[#allocation3 + $0x1b8] sm:$0xff] %vm2786_vm13, %v5527_v2  ;;  %v5273_v20 = vpop.permute.xlu1 %5272 }
 0x640   : > { %v6815_v30 = vsel %vm6751_vm14, %v6593_v24, %v6783_v62  ;;  %5349 = vst.msk [vmem:[#allocation3 + $0x1c8] sm:$0xff] %vm3172_vm4, %v5273_v20  ;;  %5928 = vrot.lane.b32.xlu0 %v11858_v55, %s8767_s23  ;;  %v6161_v20 = vld [vmem:[#allocation3 + $0x2f8] sm:$0xff] }
 0x641   : > { %6847 = vst.msk [vmem:[#allocation2 + $0x19] sm:$0xff] %vm333_vm0, %v6815_v30  ;;  %5100 = vrot.lane.b32.xlu1 %v11793_v14, %s8766_s22  ;;  %v7119_v30 = vmul.f32 %v12079_v54, %v7083_v42  ;;  %8609 = vmatmul.mubr.msk.f32.gmra.mxu1 %vm333_vm0, %v6161_v20  ;;  %v12157_v20 = vld [vmem:[%s13183_s7 + $0x7] ss:$0 sm:$0xff] }
 0x642   : > { %v5719_v11 = vpop.permute.xlu0 %5718  ;;  %v6118_v3 = vld [vmem:[#allocation3 + $0x1a0] sm:$0xff] }
 0x643   : > { %5796 = vst.msk [vmem:[#allocation3 + $0x1b8] sm:$0xff] %vm2979_vm3, %v5719_v11  ;;  %v4891_v36 = vpop.permute.xlu1 %4890  ;;  %6450 = vmatprep.mubr.f32.mxu0 %v6118_v3 }
 0x644   : > { %4966 = vst.msk [vmem:[#allocation3 + $0x1e0] sm:$0xff] %vm2786_vm13, %v4891_v36  ;;  %5546 = vrot.lane.b32.xlu0 %v11845_v32, %s8765_s15  ;;  %6451 = vmatmul.mubr.f32.gmra.mxu0 %v6117_v9 }
 0x645   : > { %5292 = vrot.lane.b32.xlu1 %v11849_v26, %s8767_s23 }
 0x646   : > { %v6372_v31 = vpop.f32.mrf.mxu0  ;;  %v5911_v5 = vpop.permute.xlu0 %5910 }
 0x647   : > { %v6373_v13 = vadd.f32 %v11992_v23, %v6372_v31  ;;  %5988 = vst.msk [vmem:[#allocation3 + $0x1b8] sm:$0xff] %vm3172_vm4, %v5911_v5  ;;  %v5083_v38 = vpop.permute.xlu1 %5082  ;;  %v6123_v57 = vld [vmem:[#allocation3 + $0x1c8] sm:$0xff]  ;;  %v12097_v31 = vld [vmem:[%s13183_s7 + $0x3] ss:$0 sm:$0xff] }
 0x648   : > { %v6374_v14 = vpop.f32.mrf.mxu0  ;;  %5158 = vst.msk [vmem:[#allocation3 + $0x1e0] sm:$0xff] %vm2979_vm3, %v5083_v38  ;;  %5738 = vrot.lane.b32.xlu0 %v5646_v39, %s8766_s22 }
 0x649   : > { %v6598_v35 = vadd.f32 %v8565_v58, %v6373_v13  ;;  %4910 = vrot.lane.b32.xlu1 %v11824_v18, %s8765_s15  ;;  %v7018_v58 = vmul.f32 %v12065_v12, %v6982_v4  ;;  %v12099_v13 = vpop.f32.mrf.mxu1  ;;  %v12137_v4 = vld [vmem:[%s13183_s7 + $0x6] ss:$0 sm:$0xff] }
 0x64a   : > { %v5529_v29 = vpop.permute.xlu0 %5528 }
 0x64b   : > { %vm6752_vm15 = vcmp.ge.f32.partialorder %v6598_v35, 0.0  ;;  %v6784_v19 = vmul.f32 0.2, %v6598_v35  ;;  %5605 = vst.msk [vmem:[#allocation3 + $0x1d0] sm:$0xff] %vm2786_vm13, %v5529_v29  ;;  %v5275_v26 = vpop.permute.xlu1 %5274 }
 0x64c   : > { %5350 = vst.msk [vmem:[#allocation3 + $0x1e0] sm:$0xff] %vm3172_vm4, %v5275_v26  ;;  %5930 = vrot.lane.b32.xlu0 %v11884_v37, %s8767_s23 }
 0x64d   : > { %v6816_v52 = vsel %vm6752_vm15, %v6598_v35, %v6784_v19  ;;  %5102 = vrot.lane.b32.xlu1 %v11845_v32, %s8766_s22 }
 0x64e   : > { %6848 = vst.msk [vmem:[#allocation2 + $0x21] sm:$0xff] %vm333_vm0, %v6816_v52  ;;  %v5721_v61 = vpop.permute.xlu0 %5720  ;;  %v6121_v27 = vld [vmem:[#allocation3 + $0x1b8] sm:$0xff]  ;;  %v5649_v52 = vld [vmem:[#allocation2 + $0x1a0] sm:$0xff] }
 0x64f   : > { %5797 = vst.msk [vmem:[#allocation3 + $0x1d0] sm:$0xff] %vm2979_vm3, %v5721_v61  ;;  %v4893_v18 = vpop.permute.xlu1 %4892  ;;  %6455 = vmatprep.mubr.f32.mxu0 %v6121_v27 }
 0x650   : > { %4967 = vst.msk [vmem:[#allocation3 + $0x1f8] sm:$0xff] %vm2786_vm13, %v4893_v18  ;;  %v6377_v33 = vpop.f32.mrf.mxu0  ;;  %5548 = vrot.lane.b32.xlu0 %v11847_v28, %s8765_s15  ;;  %6456 = vmatmul.mubr.f32.gmra.mxu0 %v6120_v16  ;;  %v6880_v16 = vld [vmem:[#allocation2] sm:$0xff] }
 0x651   : > { %v6378_v37 = vadd.f32 %v11992_v23, %v6377_v33  ;;  %5294 = vrot.lane.b32.xlu1 %v5646_v39, %s8767_s23  ;;  %v6981_v33 = vld [vmem:[#allocation2 + $0x1] sm:$0xff] }
 0x652   : > { %v6379_v32 = vpop.f32.mrf.mxu0  ;;  %v5913_v34 = vpop.permute.xlu0 %5912 }
 0x653   : > { %v6603_v59 = vadd.f32 %v6602_v7, %v6378_v37  ;;  %5989 = vst.msk [vmem:[#allocation3 + $0x1d0] sm:$0xff] %vm3172_vm4, %v5913_v34  ;;  %v5085_v51 = vpop.permute.xlu1 %5084  ;;  %v6126_v19 = vld [vmem:[#allocation3 + $0x1e0] sm:$0xff] }
 0x654   : > { %5159 = vst.msk [vmem:[#allocation3 + $0x1f8] sm:$0xff] %vm2979_vm3, %v5085_v51  ;;  %5740 = vrot.lane.b32.xlu0 %v5647_v43, %s8766_s22 }
 0x655   : > { %vm6753_vm1 = vcmp.ge.f32.partialorder %v6603_v59, 0.0  ;;  %v6785_v17 = vmul.f32 0.2, %v6603_v59  ;;  %4912 = vrot.lane.b32.xlu1 %v11858_v55, %s8765_s15  ;;  %v12088_v36 = vld [vmem:[#allocation2 + $0x20] sm:$0xff] }
 0x656   : > { %v5531_v46 = vpop.permute.xlu0 %5530  ;;  %v7220_v38 = vmul.f32 %v12097_v31, %v12088_v36  ;;  %v12107_v26 = vld [vmem:[#allocation2 + $0x21] sm:$0xff] }
 0x657   : > { %v6817_v6 = vsel %vm6753_vm1, %v6603_v59, %v6785_v17  ;;  %5606 = vst.msk [vmem:[#allocation3 + $0x1e8] sm:$0xff] %vm2786_vm13, %v5531_v46  ;;  %v5277_v44 = vpop.permute.xlu1 %5276  ;;  %v12123_v59 = vld [vmem:[%s13183_s7 + $0x5] ss:$0 sm:$0xff] }
 0x658   : > { %6849 = vst.msk [vmem:[#allocation2 + $0x31] sm:$0xff] %vm333_vm0, %v6817_v6  ;;  %5932 = vrot.lane.b32.xlu0 %v11913_v48, %s8767_s23  ;;  %v12127_v17 = vld [vmem:[#allocation2 + $0x22] sm:$0xff]  ;;  %v6916_v6 = vmul.f32 %v12060_v49, %v6880_v16 }
 0x659   : > { %5351 = vst.msk [vmem:[#allocation3 + $0x1f8] sm:$0xff] %vm3172_vm4, %v5277_v44  ;;  %5104 = vrot.lane.b32.xlu1 %v11847_v28, %s8766_s22  ;;  %v5648_v28 = vld [vmem:[#allocation2 + $0x198] sm:$0xff]  ;;  %v7017_v44 = vmul.f32 %v12065_v12, %v6981_v33 }
 0x65a   : > { %v5723_v8 = vpop.permute.xlu0 %5722  ;;  %v6124_v0 = vld [vmem:[#allocation3 + $0x1d0] sm:$0xff] }
 0x65b   : > { %5798 = vst.msk [vmem:[#allocation3 + $0x1e8] sm:$0xff] %vm2979_vm3, %v5723_v8  ;;  %v4895_v55 = vpop.permute.xlu1 %4894  ;;  %6460 = vmatprep.mubr.f32.mxu0 %v6124_v0 }
 0x65c   : > { %4968 = vst.msk [vmem:[#allocation3 + $0x210] sm:$0xff] %vm2786_vm13, %v4895_v55  ;;  %v6382_v56 = vpop.f32.mrf.mxu0  ;;  %5550 = vrot.lane.b32.xlu0 %v11902_v63, %s8765_s15  ;;  %6461 = vmatmul.mubr.f32.gmra.mxu0 %v6123_v57  ;;  %v6917_v63 = vmul.f32 %v12060_v49, %v6881_v21  ;;  %v7082_v57 = vld [vmem:[#allocation2 + $0x2] sm:$0xff] }
 0x65d   : > { %v6383_v48 = vadd.f32 %v11992_v23, %v6382_v56  ;;  %5296 = vrot.lane.b32.xlu1 %v5647_v43, %s8767_s23  ;;  %v5841_v43 = vld [vmem:[#allocation2 + $0x1a1] sm:$0xff] }
 0x65e   : > { %v6384_v50 = vpop.f32.mrf.mxu0  ;;  %v5915_v40 = vpop.permute.xlu0 %5914  ;;  %v7050_v2 = vadd.f32 %v7018_v58, %v6917_v63  ;;  %v7118_v63 = vmul.f32 %v12079_v54, %v7082_v57 }
 0x65f   : > { %v6608_v22 = vadd.f32 %v8568_v1, %v6383_v48  ;;  %5990 = vst.msk [vmem:[#allocation3 + $0x1e8] sm:$0xff] %vm3172_vm4, %v5915_v40  ;;  %v5087_v41 = vpop.permute.xlu1 %5086  ;;  %v12070_v45 = vld [vmem:[#allocation2 + $0x30] sm:$0xff]  ;;  %v6612_v1 = vpop.f32.mrf.mxu1  ;;  %v7049_v40 = vadd.f32 %v7017_v44, %v6916_v6 }
 0x660   : > { %v12072_v60 = vld [vmem:[#allocation2 + $0x31] sm:$0xff]  ;;  %5160 = vst.msk [vmem:[#allocation3 + $0x210] sm:$0xff] %vm2979_vm3, %v5087_v41  ;;  %5742 = vrot.lane.b32.xlu0 %v5648_v28, %s8766_s22  ;;  %v6920_v24 = vmul.f32 %v12060_v49, %v12070_v45  ;;  %v7151_v35 = vadd.f32 %v7119_v30, %v7050_v2  ;;  %v7422_v28 = vmul.f32 %v12123_v59, %v12127_v17  ;;  %v7284_v2 = vld [vmem:[#allocation2 + $0x19] sm:$0xff] }
 0x661   : > { %vm6754_vm2 = vcmp.ge.f32.partialorder %v6608_v22, 0.0  ;;  %v6786_v47 = vmul.f32 0.2, %v6608_v22  ;;  %v7021_v15 = vmul.f32 %v12065_v12, %v12072_v60  ;;  %v7221_v57 = vmul.f32 %v12097_v31, %v12070_v45 }
 0x662   : > { %v5533_v62 = vpop.permute.xlu0 %5532  ;;  %v7252_v18 = vadd.f32 %v7220_v38, %v7151_v35  ;;  %v7385_v35 = vld [vmem:[#allocation2 + $0x1a] sm:$0xff]  ;;  %v6919_v38 = vmul.f32 %v12060_v49, %v12088_v36 }
 0x663   : > { %v6818_v11 = vsel %vm6754_vm2, %v6608_v22, %v6786_v47  ;;  %5607 = vst.msk [vmem:[#allocation3 + $0x200] sm:$0xff] %vm2786_vm13, %v5533_v62  ;;  %v5279_v3 = vpop.permute.xlu1 %5278  ;;  %v7053_v9 = vadd.f32 %v7021_v15, %v6920_v24  ;;  %v6129_v47 = vld [vmem:[#allocation3 + $0x1f8] sm:$0xff]  ;;  %v7183_v24 = vld [vmem:[#allocation2 + $0x18] sm:$0xff]  ;;  %v7120_v16 = vmul.f32 %v12079_v54, %v7385_v35 }
 0x664   : > { %6850 = vst.msk [vmem:[#allocation2 + $0x39] sm:$0xff] %vm333_vm0, %v6818_v11  ;;  %5934 = vrot.lane.b32.xlu0 %v5840_v53, %s8767_s23  ;;  %v7150_v11 = vadd.f32 %v7118_v63, %v7049_v40  ;;  %v12199_v40 = vpop.f32.mrf.mxu1  ;;  %v7421_v63 = vmul.f32 %v12123_v59, %v7385_v35 }
 0x665   : > { %5352 = vst.msk [vmem:[#allocation3 + $0x210] sm:$0xff] %vm3172_vm4, %v5279_v3 }
 0x666   : > { %v5725_v14 = vpop.permute.xlu0 %5724  ;;  %v6127_v5 = vld [vmem:[#allocation3 + $0x1e8] sm:$0xff] }
 0x667   : > { %5799 = vst.msk [vmem:[#allocation3 + $0x200] sm:$0xff] %vm2979_vm3, %v5725_v14  ;;  %v4897_v39 = vpop.permute.xlu1 %4896  ;;  %6465 = vmatprep.mubr.f32.mxu0 %v6127_v5  ;;  %v7219_v5 = vmul.f32 %v12097_v31, %v7183_v24 }
 0x668   : > { %4969 = vst.msk [vmem:[#allocation3 + $0x228] sm:$0xff] %vm2786_vm13, %v4897_v39  ;;  %5552 = vrot.lane.b32.xlu0 %v11904_v25, %s8765_s15  ;;  %6466 = vmatmul.mubr.f32.gmra.mxu0 %v6126_v19  ;;  %v6387_v29 = vpop.f32.mrf.mxu0  ;;  %v12114_v25 = vld [vmem:[%s13183_s7 + $0x4] ss:$0 sm:$0xff]  ;;  %v7020_v39 = vmul.f32 %v12065_v12, %v12107_v26  ;;  %s13121_s15 = scalar_lea.hbm %s13185_s9, %s8331_s30 }
 0x669   : > { %v6388_v61 = vadd.f32 %v11992_v23, %v6387_v29  ;;  %v7321_v34 = vmul.f32 %v12114_v25, %v12107_v26 }
 0x66a   : > { %v5917_v27 = vpop.permute.xlu0 %5916  ;;  %v6389_v7 = vpop.f32.mrf.mxu0 }
 0x66b   : > { %5991 = vst.msk [vmem:[#allocation3 + $0x200] sm:$0xff] %vm3172_vm4, %v5917_v27  ;;  %v5089_v37 = vpop.permute.xlu1 %5088  ;;  %v6613_v32 = vadd.f32 %v6612_v1, %v6388_v61  ;;  %v12125_v51 = vld [vmem:[#allocation2 + $0x32] sm:$0xff]  ;;  %v7353_v55 = vadd.f32 %v7321_v34, %v7252_v18  ;;  %v12173_v1 = vld [vmem:[#allocation2 + $0x3a] sm:$0xff]  ;;  %v6918_v61 = vmul.f32 %v12060_v49, %v7183_v24  ;;  %v7019_v27 = vmul.f32 %v12065_v12, %v7284_v2 }
 0x66c   : > { %5161 = vst.msk [vmem:[#allocation3 + $0x228] sm:$0xff] %vm2979_vm3, %v5089_v37  ;;  %5744 = vrot.lane.b32.xlu0 %v5649_v52, %s8766_s22  ;;  %v12129_v46 = vld [vmem:[#allocation2 + $0x38] sm:$0xff]  ;;  %v7122_v56 = vmul.f32 %v12079_v54, %v12125_v51  ;;  %v12171_v52 = vld [vmem:[%s13183_s7 + $0x8] ss:$0 sm:$0xff]  ;;  %v7320_v18 = vmul.f32 %v12114_v25, %v7284_v2  ;;  %v7052_v34 = vadd.f32 %v7020_v39, %v6919_v38  ;;  %s8695_s22 = scalar_lea.vmem %s13127_s17, 256 }
 0x66d   : > { %vm6755_vm5 = vcmp.ge.f32.partialorder %v6613_v32, 0.0  ;;  %v6787_v8 = vmul.f32 0.2, %v6613_v32  ;;  %v7523_v50 = vmul.f32 %v12137_v4, %v12129_v46  ;;  %v7454_v42 = vadd.f32 %v7422_v28, %v7353_v55  ;;  %v12150_v53 = vld [vmem:[#allocation2 + $0x39] sm:$0xff]  ;;  %p8696_p11 = scmp.ne.s32.totalorder %s13127_s17, %s8695_s22 }
 0x66e   : > { %v5535_v0 = vpop.permute.xlu0 %5534  ;;  %v7154_v58 = vadd.f32 %v7122_v56, %v7053_v9  ;;  %v7624_v14 = vmul.f32 %v12157_v20, %v12150_v53  ;;  %v7725_v37 = vmul.f32 %v12171_v52, %v12173_v1  ;;  %v6885_v6 = vld [vmem:[#allocation2 + $0x38] sm:$0xff]  ;;  %v7051_v55 = vadd.f32 %v7019_v27, %v6918_v61 }
 0x66f   : > { %5608 = vst.msk [vmem:[#allocation3 + $0x218] sm:$0xff] %vm2786_vm13, %v5535_v0  ;;  %v5281_v21 = vpop.permute.xlu1 %5280  ;;  %v6819_v48 = vsel %vm6755_vm5, %v6613_v32, %v6787_v8  ;;  %v7555_v62 = vadd.f32 %v7523_v50, %v7454_v42  ;;  %v7251_v32 = vadd.f32 %v7219_v5, %v7150_v11  ;;  %v6986_v44 = vld [vmem:[#allocation2 + $0x39] sm:$0xff]  ;;  %v7322_v38 = vmul.f32 %v12114_v25, %v12072_v60  ;;  %p8697_p12 = pnand %p8696_p11, %p8862_p5 }
 0x670   : > { %5353 = vst.msk [vmem:[#allocation3 + $0x228] sm:$0xff] %vm3172_vm4, %v5281_v21  ;;  %5936 = vrot.lane.b32.xlu0 %v5841_v43, %s8767_s23  ;;  %v7121_v21 = vmul.f32 %v12079_v54, %v12127_v17  ;;  %v7022_v17 = vmul.f32 %v12065_v12, %v6986_v44  ;;  %v7423_v61 = vmul.f32 %v12123_v59, %v12125_v51  ;;  %s8699_s23 = sshll.u32 %s8769_s25, 4  ;;  %s8700_s23 = int_to_ptr.vmem [resolvable:$false] %s8699_s23 }
 0x671   : > { %6851 = vst.msk [vmem:[#allocation2 + $0x49] sm:$0xff] %vm333_vm0, %v6819_v48  ;;  %v7656_v36 = vadd.f32 %v7624_v14, %v7555_v62  ;;  %v7222_v48 = vmul.f32 %v12097_v31, %v12129_v46  ;;  %v7522_v62 = vmul.f32 %v12137_v4, %v12070_v45  ;;  %v6622_v14 = vpop.f32.mrf.mxu1  ;;  %v7323_v27 = vmul.f32 %v12114_v25, %v12150_v53  ;;  %p8698_p13 = pneg %p8697_p12  ;;  %s8701_s26 = scalar_lea.vmem %s8700_s23, 512 }
 0x672   : > { %v5727_v22 = vpop.permute.xlu0 %5726  ;;  %v6130_v41 = vld [vmem:[#allocation3 + $0x200] sm:$0xff]  ;;  %p8702_p0 = scmp.lt.s32.totalorder %s13127_s17, %s8700_s23  ;;  %p8703_p1 = scmp.lt.s32.totalorder %s8701_s26, %s8695_s22 }
 0x673   : > { %5800 = vst.msk [vmem:[#allocation3 + $0x218] sm:$0xff] %vm2979_vm3, %v5727_v22  ;;  %v4899_v10 = vpop.permute.xlu1 %4898  ;;  %6470 = vmatprep.mubr.f32.mxu0 %v6130_v41  ;;  %v7757_v56 = vadd.f32 %v7725_v37, %v7656_v36  ;;  %v7152_v22 = vadd.f32 %v7120_v16, %v7051_v55  ;;  %v6921_v41 = vmul.f32 %v12060_v49, %v6885_v6 }
 0x674   : > { %4970 = vst.msk [vmem:[#allocation3 + $0x240] sm:$0xff] %vm2786_vm13, %v4899_v10  ;;  %v6392_v15 = vpop.f32.mrf.mxu0  ;;  %6471 = vmatmul.mubr.f32.gmra.mxu0 %v6129_v47  ;;  %v7153_v47 = vadd.f32 %v7121_v21, %v7052_v34  ;;  %v7424_v21 = vmul.f32 %v12123_v59, %v12173_v1  ;;  %p8704_p2 = por %p8703_p1, %p8702_p0 }
 0x675   : > { %v6393_v30 = vadd.f32 %v11992_v23, %v6392_v15  ;;  %v7352_v15 = vadd.f32 %v7320_v18, %v7251_v32  ;;  %v7253_v2 = vadd.f32 %v7221_v57, %v7152_v22  ;;  %v7054_v39 = vadd.f32 %v7022_v17, %v6921_v41 }
 0x676   : > { %v5919_v3 = vpop.permute.xlu0 %5918  ;;  %v6394_v9 = vpop.f32.mrf.mxu0  ;;  %p8705_p3 = pnand %p8704_p2, %p8698_p13 }
 0x677   : > { %v6618_v19 = vadd.f32 %v12099_v13, %v6393_v30  ;;  %5992 = vst.msk [vmem:[#allocation3 + $0x218] sm:$0xff] %vm3172_vm4, %v5919_v3  ;;  %v5091_v29 = vpop.permute.xlu1 %5090  ;;  %v7791_v30 = vsel %vm333_vm0, %v7757_v56, 0.0  ;;  %v7254_v3 = vadd.f32 %v7222_v48, %v7153_v47  ;;  %v7087_v9 = vld [vmem:[#allocation2 + $0x3a] sm:$0xff]  ;;  %v7453_v35 = vadd.f32 %v7421_v63, %v7352_v15 }
 0x678   : > { %5162 = vst.msk [vmem:[#allocation3 + $0x240] sm:$0xff] %vm2979_vm3, %v5091_v29  ;;  %v12178_v26 = vld [vmem:[#allocation2 + $0x48] sm:$0xff]  ;;  %v7623_v29 = vmul.f32 %v12157_v20, %v12072_v60  ;;  %v7354_v16 = vadd.f32 %v7322_v38, %v7253_v2  ;;  %v7123_v32 = vmul.f32 %v12079_v54, %v7087_v9  ;;  %v7724_v60 = vmul.f32 %v12171_v52, %v12125_v51  ;;  %v6135_v2 = vld [vmem:[#allocation3 + $0x228] sm:$0xff] }
 0x679   : > { %vm6756_vm6 = vcmp.ge.f32.partialorder %v6618_v19, 0.0  ;;  %v6788_v13 = vmul.f32 0.2, %v6618_v19  ;;  %v12182_v33 = vld [vmem:[#allocation2 + $0x49] sm:$0xff]  ;;  %v7223_v43 = vmul.f32 %v12097_v31, %v12178_v26  ;;  %v7554_v18 = vadd.f32 %v7522_v62, %v7453_v35 }
 0x67a   : > { %v5537_v7 = vpop.permute.xlu0 %5536  ;;  %v7324_v50 = vmul.f32 %v12114_v25, %v12182_v33  ;;  %v7524_v34 = vmul.f32 %v12137_v4, %v12178_v26  ;;  %v7455_v57 = vadd.f32 %v7423_v61, %v7354_v16 }
 0x67b   : > { %v6820_v8 = vsel %vm6756_vm6, %v6618_v19, %v6788_v13  ;;  %5609 = vst.msk [vmem:[#allocation3 + $0x230] sm:$0xff] %vm2786_vm13, %v5537_v7  ;;  %v5283_v0 = vpop.permute.xlu1 %5282  ;;  %v7255_v28 = vadd.f32 %v7223_v43, %v7154_v58  ;;  %v6132_v58 = vld [vmem:[#allocation3 + $0x210] sm:$0xff]  ;;  %v7355_v43 = vadd.f32 %v7323_v27, %v7254_v3  ;;  %v7655_v22 = vadd.f32 %v7623_v29, %v7554_v18 }
 0x67c   : > { %6852 = vst.msk [vmem:[#allocation2 + $0x51] sm:$0xff] %vm333_vm0, %v6820_v8  ;;  %v7155_v8 = vadd.f32 %v7123_v32, %v7054_v39  ;;  %v7556_v41 = vadd.f32 %v7524_v34, %v7455_v57 }
 0x67d   : > { %5354 = vst.msk [vmem:[#allocation3 + $0x240] sm:$0xff] %vm3172_vm4, %v5283_v0  ;;  %v7356_v24 = vadd.f32 %v7324_v50, %v7255_v28  ;;  %v7456_v17 = vadd.f32 %v7424_v21, %v7355_v43 }
 0x67e   : > { %v5729_v42 = vpop.permute.xlu0 %5728  ;;  %v6133_v10 = vld [vmem:[#allocation3 + $0x218] sm:$0xff] }
 0x67f   : > { %5801 = vst.msk [vmem:[#allocation3 + $0x230] sm:$0xff] %vm2979_vm3, %v5729_v42  ;;  %v4901_v46 = vpop.permute.xlu1 %4900  ;;  %6475 = vmatprep.mubr.f32.mxu0 %v6133_v10 }
 0x680   : > { %4971 = vst.msk [vmem:[#allocation3 + $0x258] sm:$0xff] %vm2786_vm13, %v4901_v46  ;;  %6476 = vmatmul.mubr.f32.gmra.mxu0 %v6132_v58  ;;  %v7625_v46 = vmul.f32 %v12157_v20, %v12182_v33 }
 0x681   : > { %v6397_v11 = vpop.f32.mrf.mxu0  ;;  %7792 = vadd.xlane.f32.xlu1 %v7791_v30 }
 0x682   : > { %v6398_v5 = vadd.f32 %v11992_v23, %v6397_v11  ;;  %v5921_v19 = vpop.permute.xlu0 %5920  ;;  %v7657_v3 = vadd.f32 %v7625_v46, %v7556_v41 }
 0x683   : > { %v6399_v45 = vpop.f32.mrf.mxu0  ;;  %5993 = vst.msk [vmem:[#allocation3 + $0x230] sm:$0xff] %vm3172_vm4, %v5921_v19  ;;  %v5093_v13 = vpop.permute.xlu1 %5092  ;;  %v7690_v7 = vld [vmem:[#allocation2 + $0x4a] sm:$0xff]  ;;  %v7691_v51 = vld [vmem:[#allocation2 + $0x52] sm:$0xff] }
 0x684   : > { %v6623_v36 = vadd.f32 %v6622_v14, %v6398_v5  ;;  %v7489_v37 = vld [vmem:[#allocation2 + $0x50] sm:$0xff]  ;;  %5163 = vst.msk [vmem:[#allocation3 + $0x258] sm:$0xff] %vm2979_vm3, %v5093_v13  ;;  %v7425_v6 = vmul.f32 %v12123_v59, %v7690_v7  ;;  %v7426_v42 = vmul.f32 %v12123_v59, %v7691_v51  ;;  %v7726_v58 = vmul.f32 %v12171_v52, %v7690_v7 }
 0x685   : > { %v7590_v53 = vld [vmem:[#allocation2 + $0x51] sm:$0xff]  ;;  %v7224_v0 = vmul.f32 %v12097_v31, %v7489_v37  ;;  %v7525_v56 = vmul.f32 %v12137_v4, %v7489_v37  ;;  %v7727_v29 = vmul.f32 %v12171_v52, %v7691_v51 }
 0x686   : > { %vm6757_vm7 = vcmp.ge.f32.partialorder %v6623_v36, 0.0  ;;  %v6789_v44 = vmul.f32 0.2, %v6623_v36  ;;  %v5539_v55 = vpop.permute.xlu0 %5538  ;;  %v12230_v48 = vadd.f32 %v7425_v6, %v7356_v24  ;;  %v7325_v63 = vmul.f32 %v12114_v25, %v7590_v53  ;;  %v6138_v34 = vld [vmem:[#allocation3 + $0x240] sm:$0xff] }
 0x687   : > { %5610 = vst.msk [vmem:[#allocation3 + $0x248] sm:$0xff] %vm2786_vm13, %v5539_v55  ;;  %v5285_v28 = vpop.permute.xlu1 %5284  ;;  %v7256_v50 = vadd.f32 %v7224_v0, %v7155_v8  ;;  %v7756_v24 = vadd.f32 %v7724_v60, %v7655_v22  ;;  %v7557_v15 = vadd.f32 %v7525_v56, %v7456_v17  ;;  %v7626_v9 = vmul.f32 %v12157_v20, %v7590_v53 }
 0x688   : > { %v6821_v26 = vsel %vm6757_vm7, %v6623_v36, %v6789_v44  ;;  %5355 = vst.msk [vmem:[#allocation3 + $0x258] sm:$0xff] %vm3172_vm4, %v5285_v28  ;;  %v7758_v38 = vadd.f32 %v7726_v58, %v7657_v3 }
 0x689   : > { %6853 = vst.msk [vmem:[#allocation2 + $0x61] sm:$0xff] %vm333_vm0, %v6821_v26  ;;  %v7357_v1 = vadd.f32 %v7325_v63, %v7256_v50  ;;  %v7788_v35 = vsel %vm333_vm0, %v7756_v24, 0.0  ;;  %v7658_v39 = vadd.f32 %v7626_v9, %v7557_v15 }
 0x68a   : > { %v5731_v10 = vpop.permute.xlu0 %5730  ;;  %v6136_v47 = vld [vmem:[#allocation3 + $0x230] sm:$0xff]  ;;  %v7794_v36 = vsel %vm333_vm0, %v7758_v38, 0.0 }
 0x68b   : > { %5802 = vst.msk [vmem:[#allocation3 + $0x248] sm:$0xff] %vm2979_vm3, %v5731_v10  ;;  %v4903_v62 = vpop.permute.xlu1 %4902  ;;  %6480 = vmatprep.mubr.f32.mxu0 %v6136_v47  ;;  %v12241_v30 = vadd.f32 %v7426_v42, %v7357_v1  ;;  %v7759_v13 = vadd.f32 %v7727_v29, %v7658_v39 }
 0x68c   : > { %4972 = vst.msk [vmem:[#allocation3 + $0x270] sm:$0xff] %vm2786_vm13, %v4903_v62  ;;  %6481 = vmatmul.mubr.f32.gmra.mxu0 %v6135_v2 }
 0x68d   : > { %v7797_v37 = vsel %vm333_vm0, %v7759_v13, 0.0 }
 0x68e   : > { %v6402_v11 = vpop.f32.mrf.mxu0  ;;  %v5923_v33 = vpop.permute.xlu0 %5922 }
 0x68f   : > { %v6403_v14 = vadd.f32 %v11992_v23, %v6402_v11  ;;  %5994 = vst.msk [vmem:[#allocation3 + $0x248] sm:$0xff] %vm3172_vm4, %v5923_v33  ;;  %v5095_v45 = vpop.permute.xlu1 %5094  ;;  %7789 = vadd.xlane.f32.xlu0 %v7788_v35  ;;  %v6141_v63 = vld [vmem:[#allocation3 + $0x258] sm:$0xff] }
 0x690   : > { %v6404_v5 = vpop.f32.mrf.mxu0  ;;  %5164 = vst.msk [vmem:[#allocation3 + $0x270] sm:$0xff] %vm2979_vm3, %v5095_v45 }
 0x691   : > { %v6628_v19 = vadd.f32 %v12199_v40, %v6403_v14  ;;  %v8577_v40 = vpop.f32.mrf.mxu1 }
 0x692   : > { %v5541_v27 = vpop.permute.xlu0 %5540 }
 0x693   : > { %vm6758_vm8 = vcmp.ge.f32.partialorder %v6628_v19, 0.0  ;;  %v6790_v61 = vmul.f32 0.2, %v6628_v19  ;;  %5611 = vst.msk [vmem:[#allocation3 + $0x260] sm:$0xff] %vm2786_vm13, %v5541_v27  ;;  %v5287_v16 = vpop.permute.xlu1 %5286  ;;  %7795 = vadd.xlane.f32.xlu0 %v7794_v36  ;;  %v6632_v53 = vpop.f32.mrf.mxu1 }
 0x694   : > { %5356 = vst.msk [vmem:[#allocation3 + $0x270] sm:$0xff] %vm3172_vm4, %v5287_v16 }
 0x695   : > { %v6822_v18 = vsel %vm6758_vm8, %v6628_v19, %v6790_v61  ;;  %v8580_v15 = vpop.f32.mrf.mxu1 }
 0x696   : > { %6854 = vst.msk [vmem:[#allocation2 + $0x69] sm:$0xff] %vm333_vm0, %v6822_v18  ;;  %v5733_v7 = vpop.permute.xlu0 %5732  ;;  %v6139_v32 = vld [vmem:[#allocation3 + $0x248] sm:$0xff] }
 0x697   : > { %5803 = vst.msk [vmem:[#allocation3 + $0x260] sm:$0xff] %vm2979_vm3, %v5733_v7  ;;  %v4905_v60 = vpop.permute.xlu1 %4904  ;;  %7798 = vadd.xlane.f32.xlu0 %v7797_v37  ;;  %6485 = vmatprep.mubr.f32.mxu0 %v6139_v32  ;;  %v6642_v14 = vpop.f32.mrf.mxu1 }
 0x698   : > { %4973 = vst.msk [vmem:[#allocation3 + $0x288] sm:$0xff] %vm2786_vm13, %v4905_v60  ;;  %v6407_v43 = vpop.f32.mrf.mxu0  ;;  %6486 = vmatmul.mubr.f32.gmra.mxu0 %v6138_v34 }
 0x699   : > { %v6408_v6 = vadd.f32 %v11992_v23, %v6407_v43 }
 0x69a   : > { %v5925_v44 = vpop.permute.xlu0 %5924  ;;  %v6409_v8 = vpop.f32.mrf.mxu0 }
 0x69b   : > { %v6633_v0 = vadd.f32 %v6632_v53, %v6408_v6  ;;  %5995 = vst.msk [vmem:[#allocation3 + $0x260] sm:$0xff] %vm3172_vm4, %v5925_v44  ;;  %v5097_v55 = vpop.permute.xlu1 %5096  ;;  %v6144_v3 = vld [vmem:[#allocation3 + $0x270] sm:$0xff]  ;;  %v8583_v44 = vpop.f32.mrf.mxu1 }
 0x69c   : > { %5165 = vst.msk [vmem:[#allocation3 + $0x288] sm:$0xff] %vm2979_vm3, %v5097_v55 }
 0x69d   : > { %vm6759_vm9 = vcmp.ge.f32.partialorder %v6633_v0, 0.0  ;;  %v6791_v57 = vmul.f32 0.2, %v6633_v0 }
 0x69e   : > { %v5543_v21 = vpop.permute.xlu0 %5542 }
 0x69f   : > { %v6823_v56 = vsel %vm6759_vm9, %v6633_v0, %v6791_v57  ;;  %5612 = vst.msk [vmem:[#allocation3 + $0x278] sm:$0xff] %vm2786_vm13, %v5543_v21  ;;  %v5289_v51 = vpop.permute.xlu1 %5288 }
 0x6a0   : > { %6855 = vst.msk [vmem:[#allocation2 + $0x79] sm:$0xff] %vm333_vm0, %v6823_v56  ;;  %v6652_v56 = vpop.f32.mrf.mxu1 }
 0x6a1   : > { %5357 = vst.msk [vmem:[#allocation3 + $0x288] sm:$0xff] %vm3172_vm4, %v5289_v51 }
 0x6a2   : > { %v5735_v26 = vpop.permute.xlu0 %5734  ;;  %v6142_v28 = vld [vmem:[#allocation3 + $0x260] sm:$0xff] }
 0x6a3   : > { %5804 = vst.msk [vmem:[#allocation3 + $0x278] sm:$0xff] %vm2979_vm3, %v5735_v26  ;;  %v4907_v50 = vpop.permute.xlu1 %4906  ;;  %6490 = vmatprep.mubr.f32.mxu0 %v6142_v28 }
 0x6a4   : > { %4974 = vst.msk [vmem:[#allocation3 + $0x2a0] sm:$0xff] %vm2786_vm13, %v4907_v50  ;;  %v6412_v22 = vpop.f32.mrf.mxu0  ;;  %6491 = vmatmul.mubr.f32.gmra.mxu0 %v6141_v63 }
 0x6a5   : > { %v6413_v41 = vadd.f32 %v11992_v23, %v6412_v22 }
 0x6a6   : > { %v5927_v17 = vpop.permute.xlu0 %5926  ;;  %v6414_v10 = vpop.f32.mrf.mxu0 }
 0x6a7   : > { %v6638_v1 = vadd.f32 %v8577_v40, %v6413_v41  ;;  %5996 = vst.msk [vmem:[#allocation3 + $0x278] sm:$0xff] %vm3172_vm4, %v5927_v17  ;;  %v5099_v42 = vpop.permute.xlu1 %5098 }
 0x6a8   : > { %5166 = vst.msk [vmem:[#allocation3 + $0x2a0] sm:$0xff] %vm2979_vm3, %v5099_v42  ;;  %v6147_v18 = vld [vmem:[#allocation3 + $0x288] sm:$0xff] }
 0x6a9   : > { %vm6760_vm10 = vcmp.ge.f32.partialorder %v6638_v1, 0.0  ;;  %v6792_v47 = vmul.f32 0.2, %v6638_v1 }
 0x6aa   : > { %v5545_v24 = vpop.permute.xlu0 %5544 }
 0x6ab   : > { %v6824_v46 = vsel %vm6760_vm10, %v6638_v1, %v6792_v47  ;;  %5613 = vst.msk [vmem:[#allocation3 + $0x290] sm:$0xff] %vm2786_vm13, %v5545_v24  ;;  %v5291_v58 = vpop.permute.xlu1 %5290 }
 0x6ac   : > { %6856 = vst.msk [vmem:[#allocation2 + $0x81] sm:$0xff] %vm333_vm0, %v6824_v46 }
 0x6ad   : > { %5358 = vst.msk [vmem:[#allocation3 + $0x2a0] sm:$0xff] %vm3172_vm4, %v5291_v58 }
 0x6ae   : > { %v5737_v62 = vpop.permute.xlu0 %5736  ;;  %v6145_v2 = vld [vmem:[#allocation3 + $0x278] sm:$0xff] }
 0x6af   : > { %5805 = vst.msk [vmem:[#allocation3 + $0x290] sm:$0xff] %vm2979_vm3, %v5737_v62  ;;  %v4909_v11 = vpop.permute.xlu1 %4908  ;;  %6495 = vmatprep.mubr.f32.mxu0 %v6145_v2 }
 0x6b0   : > { %4975 = vst.msk [vmem:[#allocation3 + $0x2b8] sm:$0xff] %vm2786_vm13, %v4909_v11  ;;  %v6417_v9 = vpop.f32.mrf.mxu0  ;;  %6496 = vmatmul.mubr.f32.gmra.mxu0 %v6144_v3 }
 0x6b1   : > { %v6418_v33 = vadd.f32 %v11992_v23, %v6417_v9  ;;  %v8586_v9 = vpop.f32.mrf.mxu1 }
 0x6b2   : > { %v5929_v5 = vpop.permute.xlu0 %5928  ;;  %v6419_v35 = vpop.f32.mrf.mxu0 }
 0x6b3   : > { %v6643_v38 = vadd.f32 %v6642_v14, %v6418_v33  ;;  %5997 = vst.msk [vmem:[#allocation3 + $0x290] sm:$0xff] %vm3172_vm4, %v5929_v5  ;;  %v5101_v39 = vpop.permute.xlu1 %5100  ;;  %v6662_v35 = vpop.f32.mrf.mxu1 }
 0x6b4   : > { %5167 = vst.msk [vmem:[#allocation3 + $0x2b8] sm:$0xff] %vm2979_vm3, %v5101_v39  ;;  %v6150_v57 = vld [vmem:[#allocation3 + $0x2a0] sm:$0xff] }
 0x6b5   : > { %vm6761_vm11 = vcmp.ge.f32.partialorder %v6643_v38, 0.0  ;;  %v6793_v19 = vmul.f32 0.2, %v6643_v38 }
 0x6b6   : > { %v5547_v45 = vpop.permute.xlu0 %5546 }
 0x6b7   : > { %v6825_v29 = vsel %vm6761_vm11, %v6643_v38, %v6793_v19  ;;  %5614 = vst.msk [vmem:[#allocation3 + $0x2a8] sm:$0xff] %vm2786_vm13, %v5547_v45  ;;  %v5293_v61 = vpop.permute.xlu1 %5292  ;;  %v12305_v38 = vld [vmem:[%s13182_s6] ss:$0 sm:$0xff] }
 0x6b8   : > { %6857 = vst.msk [vmem:[#allocation2 + $0x91] sm:$0xff] %vm333_vm0, %v6825_v29 }
 0x6b9   : > { %5359 = vst.msk [vmem:[#allocation3 + $0x2b8] sm:$0xff] %vm3172_vm4, %v5293_v61 }
 0x6ba   : > { %v5739_v27 = vpop.permute.xlu0 %5738  ;;  %v6148_v36 = vld [vmem:[#allocation3 + $0x290] sm:$0xff] }
 0x6bb   : > { %5806 = vst.msk [vmem:[#allocation3 + $0x2a8] sm:$0xff] %vm2979_vm3, %v5739_v27  ;;  %v4911_v13 = vpop.permute.xlu1 %4910  ;;  %6500 = vmatprep.mubr.f32.mxu0 %v6148_v36 }
 0x6bc   : > { %4976 = vst.msk [vmem:[#allocation3 + $0x2d0] sm:$0xff] %vm2786_vm13, %v4911_v13  ;;  %6501 = vmatmul.mubr.f32.gmra.mxu0 %v6147_v18 }
 0x6be   : > { %v6422_v16 = vpop.f32.mrf.mxu0  ;;  %v5931_v7 = vpop.permute.xlu0 %5930 }
 0x6bf   : > { %v6423_v40 = vadd.f32 %v11992_v23, %v6422_v16  ;;  %5998 = vst.msk [vmem:[#allocation3 + $0x2a8] sm:$0xff] %vm3172_vm4, %v5931_v7  ;;  %v5103_v60 = vpop.permute.xlu1 %5102 }
 0x6c0   : > { %v6424_v37 = vpop.f32.mrf.mxu0  ;;  %5168 = vst.msk [vmem:[#allocation3 + $0x2d0] sm:$0xff] %vm2979_vm3, %v5103_v60  ;;  %v6153_v47 = vld [vmem:[#allocation3 + $0x2b8] sm:$0xff]  ;;  %v8589_v60 = vpop.f32.mrf.mxu1 }
 0x6c1   : > { %v6648_v32 = vadd.f32 %v8580_v15, %v6423_v40 }
 0x6c2   : > { %v5549_v43 = vpop.permute.xlu0 %5548 }
 0x6c3   : > { %vm6762_vm12 = vcmp.ge.f32.partialorder %v6648_v32, 0.0  ;;  %v6794_v34 = vmul.f32 0.2, %v6648_v32  ;;  %5615 = vst.msk [vmem:[#allocation3 + $0x2c0] sm:$0xff] %vm2786_vm13, %v5549_v43  ;;  %v5295_v6 = vpop.permute.xlu1 %5294 }
 0x6c4   : > { %5360 = vst.msk [vmem:[#allocation3 + $0x2d0] sm:$0xff] %vm3172_vm4, %v5295_v6 }
 0x6c5   : > { %v6826_v53 = vsel %vm6762_vm12, %v6648_v32, %v6794_v34 }
 0x6c6   : > { %6858 = vst.msk [vmem:[#allocation2 + $0x99] sm:$0xff] %vm333_vm0, %v6826_v53  ;;  %v5741_v8 = vpop.permute.xlu0 %5740  ;;  %v6151_v0 = vld [vmem:[#allocation3 + $0x2a8] sm:$0xff]  ;;  %v6672_v53 = vpop.f32.mrf.mxu1 }
 0x6c7   : > { %5807 = vst.msk [vmem:[#allocation3 + $0x2c0] sm:$0xff] %vm2979_vm3, %v5741_v8  ;;  %v4913_v55 = vpop.permute.xlu1 %4912  ;;  %6505 = vmatprep.mubr.f32.mxu0 %v6151_v0 }
 0x6c8   : > { %4977 = vst.msk [vmem:[#allocation3 + $0x2e8] sm:$0xff] %vm2786_vm13, %v4913_v55  ;;  %v6427_v21 = vpop.f32.mrf.mxu0  ;;  %6506 = vmatmul.mubr.f32.gmra.mxu0 %v6150_v57 }
 0x6c9   : > { %v6428_v51 = vadd.f32 %v11992_v23, %v6427_v21 }
 0x6ca   : > { %v5933_v26 = vpop.permute.xlu0 %5932  ;;  %v6429_v28 = vpop.f32.mrf.mxu0 }
 0x6cb   : > { %v6653_v50 = vadd.f32 %v6652_v56, %v6428_v51  ;;  %5999 = vst.msk [vmem:[#allocation3 + $0x2c0] sm:$0xff] %vm3172_vm4, %v5933_v26  ;;  %v5105_v63 = vpop.permute.xlu1 %5104  ;;  %v8592_v28 = vpop.f32.mrf.mxu1 }
 0x6cc   : > { %5169 = vst.msk [vmem:[#allocation3 + $0x2e8] sm:$0xff] %vm2979_vm3, %v5105_v63 }
 0x6cd   : > { %vm6763_vm14 = vcmp.ge.f32.partialorder %v6653_v50, 0.0  ;;  %v6795_v22 = vmul.f32 0.2, %v6653_v50 }
 0x6ce   : > { %v5551_v41 = vpop.permute.xlu0 %5550 }
 0x6cf   : > { %v6827_v17 = vsel %vm6763_vm14, %v6653_v50, %v6795_v22  ;;  %5616 = vst.msk [vmem:[#allocation3 + $0x2d8] sm:$0xff] %vm2786_vm13, %v5551_v41  ;;  %v5297_v1 = vpop.permute.xlu1 %5296  ;;  %v6682_v22 = vpop.f32.mrf.mxu1 }
 0x6d0   : > { %6859 = vst.msk [vmem:[#allocation2 + $0xa9] sm:$0xff] %vm333_vm0, %v6827_v17 }
 0x6d1   : > { %5361 = vst.msk [vmem:[#allocation3 + $0x2e8] sm:$0xff] %vm3172_vm4, %v5297_v1 }
 0x6d2   : > { %v5743_v42 = vpop.permute.xlu0 %5742  ;;  %v6154_v10 = vld [vmem:[#allocation3 + $0x2c0] sm:$0xff] }
 0x6d3   : > { %5808 = vst.msk [vmem:[#allocation3 + $0x2d8] sm:$0xff] %vm2979_vm3, %v5743_v42  ;;  %6510 = vmatprep.mubr.f32.mxu0 %v6154_v10 }
 0x6d4   : > { %v6432_v24 = vpop.f32.mrf.mxu0  ;;  %6511 = vmatmul.mubr.f32.gmra.mxu0 %v6153_v47 }
 0x6d5   : > { %v6433_v46 = vadd.f32 %v11992_v23, %v6432_v24  ;;  %v6156_v23 = vld [vmem:[#allocation3 + $0x2d0] sm:$0xff] }
 0x6d6   : > { %v5935_v58 = vpop.permute.xlu0 %5934  ;;  %v6434_v15 = vpop.f32.mrf.mxu0 }
 0x6d7   : > { %v6658_v62 = vadd.f32 %v8583_v44, %v6433_v46  ;;  %6000 = vst.msk [vmem:[#allocation3 + $0x2d8] sm:$0xff] %vm3172_vm4, %v5935_v58 }
 0x6d8   : > { %v6159_v13 = vld [vmem:[#allocation3 + $0x2e8] sm:$0xff] }
 0x6d9   : > { %vm6764_vm15 = vcmp.ge.f32.partialorder %v6658_v62, 0.0  ;;  %v6796_v2 = vmul.f32 0.2, %v6658_v62 }
 0x6da   : > { %v5553_v11 = vpop.permute.xlu0 %5552 }
 0x6db   : > { %v6828_v3 = vsel %vm6764_vm15, %v6658_v62, %v6796_v2  ;;  %5617 = vst.msk [vmem:[#allocation3 + $0x2f0] sm:$0xff] %vm2786_vm13, %v5553_v11 }
 0x6dc   : > { %6860 = vst.msk [vmem:[#allocation2 + $0xb1] sm:$0xff] %vm333_vm0, %v6828_v3 }
 0x6de   : > { %v5745_v14 = vpop.permute.xlu0 %5744  ;;  %v6157_v33 = vld [vmem:[#allocation3 + $0x2d8] sm:$0xff] }
 0x6df   : > { %5809 = vst.msk [vmem:[#allocation3 + $0x2f0] sm:$0xff] %vm2979_vm3, %v5745_v14  ;;  %6515 = vmatprep.mubr.f32.mxu0 %v6157_v33 }
 0x6e0   : > { %v6437_v5 = vpop.f32.mrf.mxu0  ;;  %6516 = vmatmul.mubr.f32.gmra.mxu0 %v6156_v23 }
 0x6e1   : > { %v6438_v39 = vadd.f32 %v12305_v38, %v6437_v5 }
 0x6e2   : > { %v5937_v19 = vpop.permute.xlu0 %5936  ;;  %v6439_v45 = vpop.f32.mrf.mxu0 }
 0x6e3   : > { %v6663_v29 = vadd.f32 %v6662_v35, %v6438_v39  ;;  %6001 = vst.msk [vmem:[#allocation3 + $0x2f0] sm:$0xff] %vm3172_vm4, %v5937_v19 }
 0x6e5   : > { %vm6765_vm13 = vcmp.ge.f32.partialorder %v6663_v29, 0.0  ;;  %v6797_v61 = vmul.f32 0.2, %v6663_v29 }
 0x6e7   : > { %v6829_v27 = vsel %vm6765_vm13, %v6663_v29, %v6797_v61 }
 0x6e8   : > { %6861 = vst.msk [vmem:[#allocation2 + $0xc1] sm:$0xff] %vm333_vm0, %v6829_v27 }
 0x6ea   : > { %v6160_v36 = vld [vmem:[#allocation3 + $0x2f0] sm:$0xff] }
 0x6eb   : > { %6520 = vmatprep.mubr.f32.mxu0 %v6160_v36 }
 0x6ec   : > { %v6442_v18 = vpop.f32.mrf.mxu0  ;;  %6521 = vmatmul.mubr.f32.gmra.mxu0 %v6159_v13 }
 0x6ed   : > { %v6443_v16 = vadd.f32 %v12305_v38, %v6442_v18 }
 0x6ee   : > { %v6444_v40 = vpop.f32.mrf.mxu0 }
 0x6ef   : > { %v6668_v7 = vadd.f32 %v8586_v9, %v6443_v16  ;;  %v6896_v42 = vld [vmem:[#allocation2 + $0xc0] sm:$0xff] }
 0x6f0   : > { %v6997_v10 = vld [vmem:[#allocation2 + $0xc1] sm:$0xff]  ;;  %v6932_v15 = vmul.f32 %v12060_v49, %v6896_v42 }
 0x6f1   : > { %vm6766_vm3 = vcmp.ge.f32.partialorder %v6668_v7, 0.0  ;;  %v6798_v37 = vmul.f32 0.2, %v6668_v7  ;;  %v7033_v62 = vmul.f32 %v12065_v12, %v6997_v10 }
 0x6f3   : > { %v6830_v32 = vsel %vm6766_vm3, %v6668_v7, %v6798_v37  ;;  %v7065_v33 = vadd.f32 %v7033_v62, %v6932_v15 }
 0x6f4   : > { %6862 = vst.msk [vmem:[#allocation2 + $0xc9] sm:$0xff] %vm333_vm0, %v6830_v32 }
 0x6f8   : > { %v6447_v34 = vpop.f32.mrf.mxu0 }
 0x6f9   : > { %v6448_v43 = vadd.f32 %v12305_v38, %v6447_v34 }
 0x6fa   : > { %v6449_v6 = vpop.f32.mrf.mxu0 }
 0x6fb   : > { %v6673_v44 = vadd.f32 %v6672_v53, %v6448_v43  ;;  %v7098_v24 = vld [vmem:[#allocation2 + $0xc2] sm:$0xff]  ;;  %v7099_v35 = vld [vmem:[#allocation2 + $0xca] sm:$0xff]  ;;  %v8595_v53 = vpop.f32.mrf.mxu1 }
 0x6fc   : > { %v6897_v46 = vld [vmem:[#allocation2 + $0xc8] sm:$0xff]  ;;  %v7134_v11 = vmul.f32 %v12079_v54, %v7098_v24  ;;  %v7135_v18 = vmul.f32 %v12079_v54, %v7099_v35 }
 0x6fd   : > { %vm6767_vm4 = vcmp.ge.f32.partialorder %v6673_v44, 0.0  ;;  %v6799_v8 = vmul.f32 0.2, %v6673_v44  ;;  %v6998_v58 = vld [vmem:[#allocation2 + $0xc9] sm:$0xff]  ;;  %v6933_v3 = vmul.f32 %v12060_v49, %v6897_v46 }
 0x6fe   : > { %v7034_v9 = vmul.f32 %v12065_v12, %v6998_v58  ;;  %v7166_v45 = vadd.f32 %v7134_v11, %v7065_v33 }
 0x6ff   : > { %v6831_v0 = vsel %vm6767_vm4, %v6673_v44, %v6799_v8 }
 0x700   : > { %6863 = vst.msk [vmem:[#allocation2 + $0xd9] sm:$0xff] %vm333_vm0, %v6831_v0  ;;  %v7066_v29 = vadd.f32 %v7034_v9, %v6933_v3  ;;  %v12358_v3 = vld [vmem:[%s13183_s7] ss:$0 sm:$0xff] }
 0x702   : > { %v7167_v37 = vadd.f32 %v7135_v18, %v7066_v29 }
 0x704   : > { %v6452_v55 = vpop.f32.mrf.mxu0 }
 0x705   : > { %v6453_v57 = vadd.f32 %v12305_v38, %v6452_v55 }
 0x706   : > { %v6454_v21 = vpop.f32.mrf.mxu0 }
 0x707   : > { %v6678_v56 = vadd.f32 %v8589_v60, %v6453_v57  ;;  %v7199_v2 = vld [vmem:[#allocation2 + $0xd8] sm:$0xff] }
 0x708   : > { %v7235_v23 = vmul.f32 %v12097_v31, %v7199_v2  ;;  %v7300_v27 = vld [vmem:[#allocation2 + $0xd9] sm:$0xff]  ;;  %v6934_v9 = vmul.f32 %v12358_v3, %v7199_v2  ;;  %v12374_v2 = vld [vmem:[%s13183_s7 + $0x2] ss:$0 sm:$0xff] }
 0x709   : > { %vm6768_vm1 = vcmp.ge.f32.partialorder %v6678_v56, 0.0  ;;  %v6800_v51 = vmul.f32 0.2, %v6678_v56  ;;  %v7336_v40 = vmul.f32 %v12114_v25, %v7300_v27 }
 0x70a   : > { %v7267_v13 = vadd.f32 %v7235_v23, %v7166_v45 }
 0x70b   : > { %v6832_v26 = vsel %vm6768_vm1, %v6678_v56, %v6800_v51  ;;  %v6692_v51 = vpop.f32.mrf.mxu1  ;;  %vm8106_vm1 = vcmask 1041409  }
 0x70c   : > { %6864 = vst.msk [vmem:[#allocation2 + $0xe1] sm:$0xff] %vm333_vm0, %v6832_v26  ;;  %v7368_v34 = vadd.f32 %v7336_v40, %v7267_v13 }
 0x710   : > { %v6457_v50 = vpop.f32.mrf.mxu0 }
 0x711   : > { %v6458_v63 = vadd.f32 %v12305_v38, %v6457_v50 }
 0x712   : > { %v6459_v41 = vpop.f32.mrf.mxu0 }
 0x713   : > { %v6683_v17 = vadd.f32 %v6682_v22, %v6458_v63  ;;  %v7200_v39 = vld [vmem:[#allocation2 + $0xe0] sm:$0xff] }
 0x714   : > { %v7401_v36 = vld [vmem:[#allocation2 + $0xda] sm:$0xff]  ;;  %v7236_v49 = vmul.f32 %v12097_v31, %v7200_v39  ;;  %v7402_v0 = vld [vmem:[#allocation2 + $0xe2] sm:$0xff]  ;;  %v6935_v29 = vmul.f32 %v12358_v3, %v7200_v39 }
 0x715   : > { %vm6769_vm2 = vcmp.ge.f32.partialorder %v6683_v17, 0.0  ;;  %v6801_v1 = vmul.f32 0.2, %v6683_v17  ;;  %v7437_v7 = vmul.f32 %v12123_v59, %v7401_v36  ;;  %v7301_v60 = vld [vmem:[#allocation2 + $0xe1] sm:$0xff]  ;;  %v7438_v50 = vmul.f32 %v12123_v59, %v7402_v0 }
 0x716   : > { %v7268_v54 = vadd.f32 %v7236_v49, %v7167_v37  ;;  %v7337_v44 = vmul.f32 %v12114_v25, %v7301_v60  ;;  %v7136_v45 = vmul.f32 %v12374_v2, %v7401_v36  ;;  %v7137_v36 = vmul.f32 %v12374_v2, %v7402_v0  ;;  %v12387_v39 = vld [vmem:[%s13183_s7 + $0x3] ss:$0 sm:$0xff] }
 0x717   : > { %v6833_v47 = vsel %vm6769_vm2, %v6683_v17, %v6801_v1  ;;  %v7469_v6 = vadd.f32 %v7437_v7, %v7368_v34  ;;  %vm8108_vm2 = vcmask 1042434  }
 0x718   : > { %6865 = vst.msk [vmem:[#allocation2 + $0xf1] sm:$0xff] %vm333_vm0, %v6833_v47  ;;  %v7369_v21 = vadd.f32 %v7337_v44, %v7268_v54  ;;  %v12397_v44 = vld [vmem:[#allocation2 + $0x60] sm:$0xff] }
 0x71a   : > { %v7470_v10 = vadd.f32 %v7438_v50, %v7369_v21  ;;  %v6886_v50 = vld [vmem:[#allocation2 + $0x48] sm:$0xff] }
 0x71c   : > { %v6462_v14 = vpop.f32.mrf.mxu0 }
 0x71d   : > { %v6463_v5 = vadd.f32 %v12305_v38, %v6462_v14 }
 0x71e   : > { %v6464_v19 = vpop.f32.mrf.mxu0 }
 0x71f   : > { %v6688_v61 = vadd.f32 %v8592_v28, %v6463_v5  ;;  %v12327_v16 = vld [vmem:[#allocation2 + $0xf0] sm:$0xff]  ;;  %v12368_v5 = vld [vmem:[%s13183_s7 + $0x1] ss:$0 sm:$0xff] }
 0x720   : > { %v7538_v43 = vmul.f32 %v12137_v4, %v12327_v16  ;;  %v12335_v8 = vld [vmem:[#allocation2 + $0xf1] sm:$0xff]  ;;  %v7035_v35 = vmul.f32 %v12368_v5, %v7300_v27  ;;  %v7237_v27 = vmul.f32 %v12097_v31, %v12327_v16 }
 0x721   : > { %vm6770_vm5 = vcmp.ge.f32.partialorder %v6688_v61, 0.0  ;;  %v6802_v12 = vmul.f32 0.2, %v6688_v61  ;;  %v7639_v28 = vmul.f32 %v12157_v20, %v12335_v8  ;;  %v7338_v54 = vmul.f32 %v12114_v25, %v12335_v8 }
 0x722   : > { %v7570_v57 = vadd.f32 %v7538_v43, %v7469_v6  ;;  %v7067_v49 = vadd.f32 %v7035_v35, %v6934_v9 }
 0x723   : > { %v6834_v32 = vsel %vm6770_vm5, %v6688_v61, %v6802_v12  ;;  %v7036_v61 = vmul.f32 %v12368_v5, %v7301_v60  ;;  %vm8110_vm5 = vcmask 1043459  }
 0x724   : > { %6866 = vst.msk [vmem:[#allocation2 + $0xf9] sm:$0xff] %vm333_vm0, %v6834_v32  ;;  %v7671_v1 = vadd.f32 %v7639_v28, %v7570_v57  ;;  %v7168_v7 = vadd.f32 %v7136_v45, %v7067_v49 }
 0x725   : > { %v7068_v37 = vadd.f32 %v7036_v61, %v6935_v29  ;;  %v6988_v29 = vld [vmem:[#allocation2 + $0x51] sm:$0xff] }
 0x726   : > { %v7269_v34 = vadd.f32 %v7237_v27, %v7168_v7 }
 0x727   : > { %v7169_v6 = vadd.f32 %v7137_v36, %v7068_v37 }
 0x728   : > { %v6467_v55 = vpop.f32.mrf.mxu0 }
 0x729   : > { %v6468_v56 = vadd.f32 %v12305_v38, %v6467_v55  ;;  %v7370_v55 = vadd.f32 %v7338_v54, %v7269_v34  ;;  %v12450_v34 = vld [vmem:[%s13183_s7 + $0x6] ss:$0 sm:$0xff] }
 0x72a   : > { %v6469_v26 = vpop.f32.mrf.mxu0 }
 0x72b   : > { %v6693_v63 = vadd.f32 %v6692_v51, %v6468_v56  ;;  %v12341_v22 = vld [vmem:[#allocation2 + $0xf2] sm:$0xff]  ;;  %v12351_v46 = vld [vmem:[#allocation2 + $0xfa] sm:$0xff]  ;;  %v12402_v56 = vld [vmem:[#allocation2 + $0x68] sm:$0xff]  ;;  %v7526_v51 = vmul.f32 %v12137_v4, %v12397_v44  ;;  %v12406_v26 = vpop.f32.mrf.mxu1 }
 0x72c   : > { %v12343_v41 = vld [vmem:[#allocation2 + $0xf8] sm:$0xff]  ;;  %v7740_v42 = vmul.f32 %v12171_v52, %v12341_v22  ;;  %v7741_v23 = vmul.f32 %v12171_v52, %v12351_v46 }
 0x72d   : > { %v12345_v17 = vld [vmem:[#allocation2 + $0xf9] sm:$0xff]  ;;  %v7539_v47 = vmul.f32 %v12137_v4, %v12343_v41  ;;  %vm6771_vm6 = vcmp.ge.f32.partialorder %v6693_v63, 0.0  ;;  %v6803_v24 = vmul.f32 0.2, %v6693_v63  ;;  %v7238_v60 = vmul.f32 %v12387_v39, %v12343_v41 }
 0x72e   : > { %v7772_v58 = vadd.f32 %v7740_v42, %v7671_v1  ;;  %v7640_v62 = vmul.f32 %v12157_v20, %v12345_v17  ;;  %v7527_v1 = vmul.f32 %v12137_v4, %v12402_v56  ;;  %v6987_v42 = vld [vmem:[#allocation2 + $0x49] sm:$0xff]  ;;  %v7558_v9 = vadd.f32 %v7526_v51, %v12230_v48 }
 0x72f   : > { %v7571_v15 = vadd.f32 %v7539_v47, %v7470_v10  ;;  %v6835_v11 = vsel %vm6771_vm6, %v6693_v63, %v6803_v24  ;;  %v7270_v21 = vadd.f32 %v7238_v60, %v7169_v6  ;;  %v6887_v10 = vld [vmem:[#allocation2 + $0x50] sm:$0xff]  ;;  %v7023_v45 = vmul.f32 %v12368_v5, %v6987_v42 }
 0x730   : > { %6867 = vst.msk [vmem:[#allocation2 + $0x109] sm:$0xff] %vm333_vm0, %v6835_v11  ;;  %v7836_v14 = vsel %vm333_vm0, %v7772_v58, 0.0  ;;  %v6923_v48 = vmul.f32 %v12358_v3, %v6887_v10  ;;  %v7088_v10 = vld [vmem:[#allocation2 + $0x4a] sm:$0xff]  ;;  %vm8112_vm6 = vcmask 1044484  }
 0x731   : > { %v7672_v33 = vadd.f32 %v7640_v62, %v7571_v15  ;;  %7837 = vadd.xlane.f32.xlu1 %v7836_v14  ;;  %v12414_v15 = vld [vmem:[#allocation2 + $0x61] sm:$0xff]  ;;  %v6702_v14 = vpop.f32.mrf.mxu1 }
 0x732   : > { %v12416_v62 = vld [vmem:[#allocation2 + $0x62] sm:$0xff]  ;;  %v7627_v27 = vmul.f32 %v12157_v20, %v12414_v15 }
 0x733   : > { %v7773_v19 = vadd.f32 %v7741_v23, %v7672_v33  ;;  %v12426_v23 = vld [vmem:[%s13183_s7 + $0x5] ss:$0 sm:$0xff] }
 0x734   : > { %v6472_v13 = vpop.f32.mrf.mxu0  ;;  %v7440_v35 = vmul.f32 %v12426_v23, %v12351_v46  ;;  %v7659_v54 = vadd.f32 %v7627_v27, %v7558_v9  ;;  %v6937_v9 = vmul.f32 %v12358_v3, %v12343_v41 }
 0x735   : > { %v7839_v18 = vsel %vm333_vm0, %v7773_v19, 0.0  ;;  %v6473_v12 = vadd.f32 %v12305_v38, %v6472_v13  ;;  %v12430_v19 = vld [vmem:[#allocation2 + $0x69] sm:$0xff] }
 0x736   : > { %7840 = vadd.xlane.f32.xlu0 %v7839_v18  ;;  %v6474_v40 = vpop.f32.mrf.mxu0 }
 0x737   : > { %v6698_v32 = vadd.f32 %v8595_v53, %v6473_v12  ;;  %v12391_v43 = vld [vmem:[#allocation2 + $0x108] sm:$0xff]  ;;  %v7439_v53 = vmul.f32 %v12123_v59, %v12341_v22  ;;  %v7339_v59 = vmul.f32 %v12114_v25, %v12345_v17  ;;  %v6922_v25 = vmul.f32 %v12358_v3, %v6886_v50 }
 0x738   : > { %v7540_v57 = vmul.f32 %v12137_v4, %v12391_v43  ;;  %v12410_v63 = vld [vmem:[#allocation2 + $0x109] sm:$0xff]  ;;  %v7728_v12 = vmul.f32 %v12171_v52, %v12416_v62  ;;  %v7559_v40 = vadd.f32 %v7527_v1, %v12241_v30  ;;  %v7628_v30 = vmul.f32 %v12157_v20, %v12430_v19 }
 0x739   : > { %vm6772_vm7 = vcmp.ge.f32.partialorder %v6698_v32, 0.0  ;;  %v6804_v31 = vmul.f32 0.2, %v6698_v32  ;;  %v7471_v28 = vadd.f32 %v7439_v53, %v7370_v55  ;;  %v7371_v58 = vadd.f32 %v7339_v59, %v7270_v21  ;;  %v12460_v55 = vld [vmem:[#allocation2 + $0x6a] sm:$0xff] }
 0x73a   : > { %v7641_v4 = vmul.f32 %v12157_v20, %v12410_v63  ;;  %v7760_v51 = vadd.f32 %v7728_v12, %v7659_v54  ;;  %v6936_v59 = vmul.f32 %v12358_v3, %v12327_v16  ;;  %v7138_v16 = vmul.f32 %v12374_v2, %v12341_v22 }
 0x73b   : > { %v6836_v0 = vsel %vm6772_vm7, %v6698_v32, %v6804_v31  ;;  %v7572_v24 = vadd.f32 %v7540_v57, %v7471_v28  ;;  %v7472_v32 = vadd.f32 %v7440_v35, %v7371_v58  ;;  %v7024_v57 = vmul.f32 %v12368_v5, %v6988_v29 }
 0x73c   : > { %6868 = vst.msk [vmem:[#allocation2 + $0x111] sm:$0xff] %vm333_vm0, %v6836_v0  ;;  %v7660_v28 = vadd.f32 %v7628_v30, %v7559_v40  ;;  %v7055_v58 = vadd.f32 %v7023_v45, %v6922_v25  ;;  %v7239_v22 = vmul.f32 %v12387_v39, %v12391_v43  ;;  %vm8114_vm7 = vcmask 1045509  }
 0x73d   : > { %v7673_v7 = vadd.f32 %v7641_v4, %v7572_v24  ;;  %v7729_v24 = vmul.f32 %v12171_v52, %v12460_v55  ;;  %v7056_v4 = vadd.f32 %v7024_v57, %v6923_v48  ;;  %v7226_v48 = vmul.f32 %v12387_v39, %v12402_v56 }
 0x73f   : > { %v7761_v25 = vadd.f32 %v7729_v24, %v7660_v28 }
 0x740   : > { %v6477_v47 = vpop.f32.mrf.mxu0 }
 0x741   : > { %v6478_v11 = vadd.f32 %v12305_v38, %v6477_v47  ;;  %v7089_v47 = vld [vmem:[#allocation2 + $0x52] sm:$0xff] }
 0x742   : > { %v6479_v33 = vpop.f32.mrf.mxu0  ;;  %v7125_v35 = vmul.f32 %v12374_v2, %v7089_v47  ;;  %v12518_v47 = vld [vmem:[#allocation2 + $0x80] sm:$0xff] }
 0x743   : > { %v6703_v61 = vadd.f32 %v6702_v14, %v6478_v11  ;;  %v12434_v13 = vld [vmem:[#allocation2 + $0x10a] sm:$0xff]  ;;  %v12454_v31 = vld [vmem:[#allocation2 + $0x112] sm:$0xff]  ;;  %v7038_v14 = vmul.f32 %v12368_v5, %v12345_v17  ;;  %v7800_v33 = vsel %vm333_vm0, %v7760_v51, 0.0  ;;  %v7225_v17 = vmul.f32 %v12387_v39, %v12397_v44 }
 0x744   : > { %v12436_v18 = vld [vmem:[#allocation2 + $0x110] sm:$0xff]  ;;  %v7742_v37 = vmul.f32 %v12171_v52, %v12434_v13  ;;  %v7743_v42 = vmul.f32 %v12171_v52, %v12454_v31  ;;  %v12507_v51 = vld [vmem:[#allocation2 + $0x78] sm:$0xff] }
 0x745   : > { %v12438_v49 = vld [vmem:[#allocation2 + $0x111] sm:$0xff]  ;;  %v7541_v36 = vmul.f32 %v12450_v34, %v12436_v18  ;;  %vm6773_vm8 = vcmp.ge.f32.partialorder %v6703_v61, 0.0  ;;  %v6805_v60 = vmul.f32 0.2, %v6703_v61  ;;  %v7070_v12 = vadd.f32 %v7038_v14, %v6937_v9 }
 0x746   : > { %v7774_v53 = vadd.f32 %v7742_v37, %v7673_v7  ;;  %v7642_v0 = vmul.f32 %v12157_v20, %v12438_v49  ;;  %v7037_v20 = vmul.f32 %v12368_v5, %v12335_v8  ;;  %v7124_v8 = vmul.f32 %v12374_v2, %v7088_v10 }
 0x747   : > { %v7573_v6 = vadd.f32 %v7541_v36, %v7472_v32  ;;  %v6837_v21 = vsel %vm6773_vm8, %v6703_v61, %v6805_v60  ;;  %v7157_v37 = vadd.f32 %v7125_v35, %v7056_v4  ;;  %v7803_v32 = vsel %vm333_vm0, %v7761_v25, 0.0 }
 0x748   : > { %6869 = vst.msk [vmem:[#allocation2 + $0x121] sm:$0xff] %vm333_vm0, %v6837_v21  ;;  %v7842_v50 = vsel %vm333_vm0, %v7774_v53, 0.0  ;;  %v7069_v45 = vadd.f32 %v7037_v20, %v6936_v59  ;;  %v7156_v7 = vadd.f32 %v7124_v8, %v7055_v58  ;;  %v7139_v60 = vmul.f32 %v12374_v2, %v12351_v46 }
 0x749   : > { %v7674_v1 = vadd.f32 %v7642_v0, %v7573_v6  ;;  %7843 = vadd.xlane.f32.xlu1 %v7842_v50  ;;  %v7240_v54 = vmul.f32 %v12387_v39, %v12436_v18  ;;  %v7258_v0 = vadd.f32 %v7226_v48, %v7157_v37  ;;  %v7441_v46 = vmul.f32 %v12426_v23, %v12434_v13 }
 0x74a   : > { %v7170_v27 = vadd.f32 %v7138_v16, %v7069_v45  ;;  %v7257_v6 = vadd.f32 %v7225_v17, %v7156_v7  ;;  %v7171_v21 = vadd.f32 %v7139_v60, %v7070_v12  ;;  %v7427_v50 = vmul.f32 %v12426_v23, %v12416_v62  ;;  %v12522_v16 = vpop.f32.mrf.mxu1  ;;  %v12542_v7 = vld [vmem:[%s13183_s7 + $0x7] ss:$0 sm:$0xff] }
 0x74b   : > { %v7775_v11 = vadd.f32 %v7743_v42, %v7674_v1  ;;  %v7528_v58 = vmul.f32 %v12450_v34, %v12507_v51  ;;  %v7428_v4 = vmul.f32 %v12426_v23, %v12460_v55  ;;  %v7529_v35 = vmul.f32 %v12450_v34, %v12518_v47 }
 0x74c   : > { %v6482_v29 = vpop.f32.mrf.mxu0  ;;  %v7271_v36 = vadd.f32 %v7239_v22, %v7170_v27  ;;  %v7272_v10 = vadd.f32 %v7240_v54, %v7171_v21  ;;  %v12532_v22 = vld [vmem:[#allocation2 + $0x79] sm:$0xff]  ;;  %v6924_v27 = vmul.f32 %v12358_v3, %v12397_v44  ;;  %v6712_v12 = vpop.f32.mrf.mxu1  ;;  %v7025_v60 = vmul.f32 %v12368_v5, %v12414_v15 }
 0x74d   : > { %v7845_v52 = vsel %vm333_vm0, %v7775_v11, 0.0  ;;  %v6483_v41 = vadd.f32 %v12305_v38, %v6482_v29  ;;  %7801 = vadd.xlane.f32.xlu1 %v7800_v33  ;;  %v8768_v29 = vmov 0   ;;  %v6925_v44 = vmul.f32 %v12358_v3, %v12402_v56 }
 0x74e   : > { %7846 = vadd.xlane.f32.xlu0 %v7845_v52  ;;  %v6484_v61 = vpop.f32.mrf.mxu0  ;;  %8663 = vset.pattern.permute.xlu1 %v8768_v29  ;;  %vm8116_vm8 = vcmask 1046534  }
 0x74f   : > { %v6708_v40 = vadd.f32 %v12406_v26, %v6483_v41  ;;  %v12496_v53 = vld [vmem:[#allocation2 + $0x120] sm:$0xff]  ;;  %8664 = vset.pattern.permute.xlu0 %v8768_v29  ;;  %v6938_v29 = vmul.f32 %v12358_v3, %v12391_v43  ;;  %v7140_v43 = vmul.f32 %v12374_v2, %v12434_v13 }
 0x750   : > { %v12501_v26 = vld [vmem:[%s13183_s7 + $0x4] ss:$0 sm:$0xff]  ;;  %v7542_v20 = vmul.f32 %v12450_v34, %v12496_v53  ;;  %v12534_v41 = vld [vmem:[#allocation2 + $0x7a] sm:$0xff] }
 0x751   : > { %vm6774_vm9 = vcmp.ge.f32.partialorder %v6708_v40, 0.0  ;;  %v6806_v30 = vmul.f32 0.2, %v6708_v40  ;;  %v7340_v57 = vmul.f32 %v12501_v26, %v12410_v63  ;;  %v7326_v59 = vmul.f32 %v12501_v26, %v12414_v15  ;;  %v12526_v33 = vld [vmem:[#allocation2 + $0x121] sm:$0xff] }
 0x752   : > { %7804 = vadd.xlane.f32.xlu0 %v7803_v32  ;;  %v7327_v1 = vmul.f32 %v12501_v26, %v12430_v19  ;;  %v7341_v14 = vmul.f32 %v12501_v26, %v12438_v49  ;;  %v7643_v37 = vmul.f32 %v12542_v7, %v12526_v33  ;;  %v7442_v32 = vmul.f32 %v12426_v23, %v12454_v31 }
 0x753   : > { %v6838_v28 = vsel %vm6774_vm9, %v6708_v40, %v6806_v30  ;;  %v7372_v42 = vadd.f32 %v7340_v57, %v7271_v36  ;;  %v7358_v24 = vadd.f32 %v7326_v59, %v7257_v6  ;;  %v12548_v36 = vld [vmem:[#allocation2 + $0x81] sm:$0xff]  ;;  %v7629_v57 = vmul.f32 %v12542_v7, %v12532_v22 }
 0x754   : > { %6870 = vst.msk [vmem:[#allocation2 + $0x129] sm:$0xff] %vm333_vm0, %v6838_v28  ;;  %v7359_v11 = vadd.f32 %v7327_v1, %v7258_v0  ;;  %v7373_v45 = vadd.f32 %v7341_v14, %v7272_v10  ;;  %v7630_v10 = vmul.f32 %v12542_v7, %v12548_v36  ;;  %v7026_v14 = vmul.f32 %v12368_v5, %v12430_v19 }
 0x755   : > { %v7473_v9 = vadd.f32 %v7441_v46, %v7372_v42  ;;  %v7459_v8 = vadd.f32 %v7427_v50, %v7358_v24  ;;  %v12565_v46 = vld [vmem:[%s13183_s7 + $0x8] ss:$0 sm:$0xff]  ;;  %vm8118_vm9 = vcmask 1047559  }
 0x756   : > { %v7460_v61 = vadd.f32 %v7428_v4, %v7359_v11  ;;  %v7730_v15 = vmul.f32 %v12565_v46, %v12534_v41  ;;  %v7474_v59 = vadd.f32 %v7442_v32, %v7373_v45  ;;  %v7058_v32 = vadd.f32 %v7026_v14, %v6925_v44 }
 0x757   : > { %v7574_v25 = vadd.f32 %v7542_v20, %v7473_v9  ;;  %v7560_v48 = vadd.f32 %v7528_v58, %v7459_v8  ;;  %v12579_v9 = vld [vmem:[#allocation2 + $0x82] sm:$0xff] }
 0x758   : > { %v6487_v52 = vpop.f32.mrf.mxu0  ;;  %v7561_v21 = vadd.f32 %v7529_v35, %v7460_v61  ;;  %v7731_v19 = vmul.f32 %v12565_v46, %v12579_v9 }
 0x759   : > { %v6488_v17 = vadd.f32 %v12305_v38, %v6487_v52  ;;  %v7675_v56 = vadd.f32 %v7643_v37, %v7574_v25  ;;  %v7661_v20 = vadd.f32 %v7629_v57, %v7560_v48  ;;  %v7057_v48 = vadd.f32 %v7025_v60, %v6924_v27 }
 0x75a   : > { %v6489_v40 = vpop.f32.mrf.mxu0  ;;  %v7662_v35 = vadd.f32 %v7630_v10, %v7561_v21 }
 0x75b   : > { %v6713_v54 = vadd.f32 %v6712_v12, %v6488_v17  ;;  %v12554_v30 = vld [vmem:[#allocation2 + $0x122] sm:$0xff]  ;;  %v12573_v42 = vld [vmem:[#allocation2 + $0x12a] sm:$0xff]  ;;  %v7762_v4 = vadd.f32 %v7730_v15, %v7661_v20  ;;  %v7039_v17 = vmul.f32 %v12368_v5, %v12410_v63  ;;  %v6939_v12 = vmul.f32 %v12358_v3, %v12436_v18 }
 0x75c   : > { %v12556_v6 = vld [vmem:[#allocation2 + $0x128] sm:$0xff]  ;;  %v7744_v28 = vmul.f32 %v12565_v46, %v12554_v30  ;;  %v7745_v45 = vmul.f32 %v12565_v46, %v12573_v42  ;;  %v7040_v40 = vmul.f32 %v12368_v5, %v12438_v49  ;;  %v7126_v63 = vmul.f32 %v12374_v2, %v12416_v62 }
 0x75d   : > { %v12558_v0 = vld [vmem:[#allocation2 + $0x129] sm:$0xff]  ;;  %v7543_v50 = vmul.f32 %v12450_v34, %v12556_v6  ;;  %vm6775_vm10 = vcmp.ge.f32.partialorder %v6713_v54, 0.0  ;;  %v6807_v1 = vmul.f32 0.2, %v6713_v54  ;;  %v7806_v37 = vsel %vm333_vm0, %v7762_v4, 0.0 }
 0x75e   : > { %v7776_v24 = vadd.f32 %v7744_v28, %v7675_v56  ;;  %v7644_v11 = vmul.f32 %v12542_v7, %v12558_v0  ;;  %v7763_v57 = vadd.f32 %v7731_v19, %v7662_v35  ;;  %v7071_v13 = vadd.f32 %v7039_v17, %v6938_v29  ;;  %v12624_v35 = vld [vmem:[#allocation2 + $0x90] sm:$0xff] }
 0x75f   : > { %v7575_v58 = vadd.f32 %v7543_v50, %v7474_v59  ;;  %v6839_v8 = vsel %vm6775_vm10, %v6713_v54, %v6807_v1  ;;  %v7127_v54 = vmul.f32 %v12374_v2, %v12460_v55  ;;  %v7241_v18 = vmul.f32 %v12387_v39, %v12496_v53 }
 0x760   : > { %6871 = vst.msk [vmem:[#allocation2 + $0x139] sm:$0xff] %vm333_vm0, %v6839_v8  ;;  %v7848_v52 = vsel %vm333_vm0, %v7776_v24, 0.0  ;;  %v7227_v49 = vmul.f32 %v12387_v39, %v12507_v51  ;;  %v7228_v62 = vmul.f32 %v12387_v39, %v12518_v47  ;;  %v7172_v55 = vadd.f32 %v7140_v43, %v7071_v13 }
 0x761   : > { %v7676_v25 = vadd.f32 %v7644_v11, %v7575_v58  ;;  %7849 = vadd.xlane.f32.xlu1 %v7848_v52  ;;  %v7072_v21 = vadd.f32 %v7040_v40, %v6939_v12  ;;  %v7158_v28 = vadd.f32 %v7126_v63, %v7057_v48  ;;  %v7159_v59 = vadd.f32 %v7127_v54, %v7058_v32  ;;  %v12635_v48 = vld [vmem:[#allocation2 + $0x98] sm:$0xff]  ;;  %v12639_v40 = vpop.f32.mrf.mxu1 }
 0x762   : > { %v7809_v50 = vsel %vm333_vm0, %v7763_v57, 0.0  ;;  %v7273_v1 = vadd.f32 %v7241_v18, %v7172_v55  ;;  %v7141_v20 = vmul.f32 %v12374_v2, %v12454_v31  ;;  %v7242_v10 = vmul.f32 %v12387_v39, %v12556_v6 }
 0x763   : > { %v7777_v61 = vadd.f32 %v7745_v45, %v7676_v25  ;;  %v7259_v11 = vadd.f32 %v7227_v49, %v7158_v28  ;;  %v7260_v14 = vadd.f32 %v7228_v62, %v7159_v59  ;;  %v7443_v8 = vmul.f32 %v12426_v23, %v12554_v30  ;;  %v12651_v49 = vld [vmem:[#allocation2 + $0x92] sm:$0xff] }
 0x764   : > { %v6492_v27 = vpop.f32.mrf.mxu0  ;;  %v7173_v4 = vadd.f32 %v7141_v20, %v7072_v21  ;;  %v7328_v29 = vmul.f32 %v12501_v26, %v12532_v22  ;;  %v7429_v52 = vmul.f32 %v12426_v23, %v12534_v41  ;;  %v7329_v25 = vmul.f32 %v12501_v26, %v12548_v36 }
 0x765   : > { %v7851_v60 = vsel %vm333_vm0, %v7777_v61, 0.0  ;;  %v6493_v15 = vadd.f32 %v12305_v38, %v6492_v27  ;;  %7807 = vadd.xlane.f32.xlu1 %v7806_v37  ;;  %v7530_v43 = vmul.f32 %v12450_v34, %v12624_v35  ;;  %v7343_v63 = vmul.f32 %v12501_v26, %v12558_v0 }
 0x766   : > { %7852 = vadd.xlane.f32.xlu0 %v7851_v60  ;;  %v6494_v44 = vpop.f32.mrf.mxu0  ;;  %v7274_v19 = vadd.f32 %v7242_v10, %v7173_v4  ;;  %v7360_v61 = vadd.f32 %v7328_v29, %v7259_v11  ;;  %v7361_v12 = vadd.f32 %v7329_v25, %v7260_v14  ;;  %v7430_v27 = vmul.f32 %v12426_v23, %v12579_v9 }
 0x767   : > { %v6718_v56 = vadd.f32 %v12522_v16, %v6493_v15  ;;  %v12618_v58 = vld [vmem:[#allocation2 + $0x138] sm:$0xff]  ;;  %v7342_v16 = vmul.f32 %v12501_v26, %v12526_v33  ;;  %v7531_v60 = vmul.f32 %v12450_v34, %v12635_v48  ;;  %v6926_v21 = vmul.f32 %v12358_v3, %v12507_v51 }
 0x768   : > { %v7544_v17 = vmul.f32 %v12450_v34, %v12618_v58  ;;  %v12643_v32 = vld [vmem:[#allocation2 + $0x139] sm:$0xff]  ;;  %v7461_v54 = vadd.f32 %v7429_v52, %v7360_v61  ;;  %v7375_v18 = vadd.f32 %v7343_v63, %v7274_v19  ;;  %v12649_v15 = vld [vmem:[#allocation2 + $0x91] sm:$0xff]  ;;  %v7462_v55 = vadd.f32 %v7430_v27, %v7361_v12 }
 0x769   : > { %vm6776_vm11 = vcmp.ge.f32.partialorder %v6718_v56, 0.0  ;;  %v6808_v24 = vmul.f32 0.2, %v6718_v56  ;;  %v7374_v45 = vadd.f32 %v7342_v16, %v7273_v1  ;;  %v7645_v59 = vmul.f32 %v12542_v7, %v12643_v32  ;;  %v12660_v1 = vld [vmem:[#allocation2 + $0x99] sm:$0xff] }
 0x76a   : > { %7810 = vadd.xlane.f32.xlu0 %v7809_v50  ;;  %v7562_v44 = vadd.f32 %v7530_v43, %v7461_v54  ;;  %v7444_v50 = vmul.f32 %v12426_v23, %v12573_v42  ;;  %v7027_v20 = vmul.f32 %v12368_v5, %v12532_v22  ;;  %v6927_v10 = vmul.f32 %v12358_v3, %v12518_v47  ;;  %v12686_v12 = vld [vmem:[#allocation2 + $0x9a] sm:$0xff] }
 0x76b   : > { %v6840_v31 = vsel %vm6776_vm11, %v6718_v56, %v6808_v24  ;;  %v7475_v37 = vadd.f32 %v7443_v8, %v7374_v45  ;;  %v6722_v56 = vpop.f32.mrf.mxu1  ;;  %v7631_v16 = vmul.f32 %v12542_v7, %v12649_v15  ;;  %v7732_v8 = vmul.f32 %v12565_v46, %v12651_v49 }
 0x76c   : > { %6872 = vst.msk [vmem:[#allocation2 + $0x141] sm:$0xff] %vm333_vm0, %v6840_v31  ;;  %v7563_v4 = vadd.f32 %v7531_v60, %v7462_v55  ;;  %v7476_v29 = vadd.f32 %v7444_v50, %v7375_v18  ;;  %v6940_v60 = vmul.f32 %v12358_v3, %v12496_v53  ;;  %v7142_v53 = vmul.f32 %v12374_v2, %v12554_v30 }
 0x76d   : > { %v7576_v13 = vadd.f32 %v7544_v17, %v7475_v37  ;;  %v7663_v45 = vadd.f32 %v7631_v16, %v7562_v44  ;;  %v7632_v17 = vmul.f32 %v12542_v7, %v12660_v1  ;;  %v7028_v37 = vmul.f32 %v12368_v5, %v12548_v36 }
 0x76e   : > { %v7733_v36 = vmul.f32 %v12565_v46, %v12686_v12  ;;  %v7059_v44 = vadd.f32 %v7027_v20, %v6926_v21  ;;  %vm8129_vm10 = vcmask 130048  }
 0x76f   : > { %v7677_v31 = vadd.f32 %v7645_v59, %v7576_v13  ;;  %v7764_v54 = vadd.f32 %v7732_v8, %v7663_v45  ;;  %v7664_v27 = vadd.f32 %v7632_v17, %v7563_v4  ;;  %v7060_v50 = vadd.f32 %v7028_v37, %v6927_v10 }
 0x770   : > { %v6497_v57 = vpop.f32.mrf.mxu0  ;;  %v7143_v45 = vmul.f32 %v12374_v2, %v12573_v42 }
 0x771   : > { %v6498_v62 = vadd.f32 %v12305_v38, %v6497_v57  ;;  %v7812_v59 = vsel %vm333_vm0, %v7764_v54, 0.0  ;;  %v7765_v16 = vadd.f32 %v7733_v36, %v7664_v27  ;;  %v12731_v27 = vld [vmem:[#allocation2 + $0xa8] sm:$0xff] }
 0x772   : > { %v6499_v28 = vpop.f32.mrf.mxu0 }
 0x773   : > { %v6723_v24 = vadd.f32 %v6722_v56, %v6498_v62  ;;  %v12666_v11 = vld [vmem:[#allocation2 + $0x13a] sm:$0xff]  ;;  %v12680_v25 = vld [vmem:[#allocation2 + $0x142] sm:$0xff]  ;;  %v7041_v62 = vmul.f32 %v12368_v5, %v12526_v33  ;;  %v6941_v56 = vmul.f32 %v12358_v3, %v12556_v6  ;;  %v7042_v28 = vmul.f32 %v12368_v5, %v12558_v0 }
 0x774   : > { %v12668_v51 = vld [vmem:[#allocation2 + $0x140] sm:$0xff]  ;;  %v7746_v22 = vmul.f32 %v12565_v46, %v12666_v11  ;;  %v7747_v18 = vmul.f32 %v12565_v46, %v12680_v25  ;;  %v7128_v33 = vmul.f32 %v12374_v2, %v12534_v41  ;;  %v7243_v6 = vmul.f32 %v12387_v39, %v12618_v58 }
 0x775   : > { %v12670_v14 = vld [vmem:[#allocation2 + $0x141] sm:$0xff]  ;;  %v7545_v47 = vmul.f32 %v12450_v34, %v12668_v51  ;;  %vm6777_vm12 = vcmp.ge.f32.partialorder %v6723_v24, 0.0  ;;  %v6809_v52 = vmul.f32 0.2, %v6723_v24  ;;  %v7073_v30 = vadd.f32 %v7041_v62, %v6940_v60 }
 0x776   : > { %v7778_v19 = vadd.f32 %v7746_v22, %v7677_v31  ;;  %v7646_v43 = vmul.f32 %v12542_v7, %v12670_v14  ;;  %v7229_v0 = vmul.f32 %v12387_v39, %v12624_v35  ;;  %v7230_v41 = vmul.f32 %v12387_v39, %v12635_v48 }
 0x777   : > { %v7577_v61 = vadd.f32 %v7545_v47, %v7476_v29  ;;  %v6841_v63 = vsel %vm6777_vm12, %v6723_v24, %v6809_v52  ;;  %v7129_v24 = vmul.f32 %v12374_v2, %v12579_v9  ;;  %v7174_v9 = vadd.f32 %v7142_v53, %v7073_v30 }
 0x778   : > { %6873 = vst.msk [vmem:[#allocation2 + $0x151] sm:$0xff] %vm333_vm0, %v6841_v63  ;;  %v7854_v57 = vsel %vm333_vm0, %v7778_v19, 0.0  ;;  %v7074_v4 = vadd.f32 %v7042_v28, %v6941_v56  ;;  %v7160_v22 = vadd.f32 %v7128_v33, %v7059_v44  ;;  %v7815_v47 = vsel %vm333_vm0, %v7765_v16, 0.0  ;;  %v12742_v44 = vld [vmem:[#allocation2 + $0xb0] sm:$0xff]  ;;  %v12746_v28 = vpop.f32.mrf.mxu1 }
 0x779   : > { %v7678_v13 = vadd.f32 %v7646_v43, %v7577_v61  ;;  %7855 = vadd.xlane.f32.xlu1 %v7854_v57  ;;  %v7161_v29 = vadd.f32 %v7129_v24, %v7060_v50  ;;  %v7275_v52 = vadd.f32 %v7243_v6, %v7174_v9  ;;  %v7244_v17 = vmul.f32 %v12387_v39, %v12668_v51 }
 0x77a   : > { %v7261_v43 = vadd.f32 %v7229_v0, %v7160_v22  ;;  %v7445_v63 = vmul.f32 %v12426_v23, %v12666_v11  ;;  %v7175_v54 = vadd.f32 %v7143_v45, %v7074_v4  ;;  %v7330_v60 = vmul.f32 %v12501_v26, %v12649_v15  ;;  %v12758_v0 = vld [vmem:[#allocation2 + $0xaa] sm:$0xff]  ;;  %v6732_v22 = vpop.f32.mrf.mxu1 }
 0x77b   : > { %v7779_v55 = vadd.f32 %v7747_v18, %v7678_v13  ;;  %v7262_v37 = vadd.f32 %v7230_v41, %v7161_v29  ;;  %v7431_v57 = vmul.f32 %v12426_v23, %v12651_v49  ;;  %v7331_v13 = vmul.f32 %v12501_v26, %v12660_v1  ;;  %v12769_v45 = vld [vmem:[#allocation2 + $0xb1] sm:$0xff] }
 0x77c   : > { %v6502_v21 = vpop.f32.mrf.mxu0  ;;  %v7276_v36 = vadd.f32 %v7244_v17, %v7175_v54  ;;  %v7532_v53 = vmul.f32 %v12450_v34, %v12731_v27  ;;  %v7345_v33 = vmul.f32 %v12501_v26, %v12670_v14  ;;  %v6928_v41 = vmul.f32 %v12358_v3, %v12624_v35 }
 0x77d   : > { %v7857_v20 = vsel %vm333_vm0, %v7779_v55, 0.0  ;;  %v6503_v8 = vadd.f32 %v12305_v38, %v6502_v21  ;;  %7813 = vadd.xlane.f32.xlu1 %v7812_v59  ;;  %v7362_v55 = vadd.f32 %v7330_v60, %v7261_v43  ;;  %v7363_v56 = vadd.f32 %v7331_v13, %v7262_v37 }
 0x77e   : > { %7858 = vadd.xlane.f32.xlu0 %v7857_v20  ;;  %v6504_v10 = vpop.f32.mrf.mxu0  ;;  %v7432_v21 = vmul.f32 %v12426_v23, %v12686_v12  ;;  %v7533_v20 = vmul.f32 %v12450_v34, %v12742_v44  ;;  %v7377_v6 = vadd.f32 %v7345_v33, %v7276_v36  ;;  %v6929_v35 = vmul.f32 %v12358_v3, %v12635_v48 }
 0x77f   : > { %v6728_v31 = vadd.f32 %v12639_v40, %v6503_v8  ;;  %v12725_v61 = vld [vmem:[#allocation2 + $0x150] sm:$0xff]  ;;  %v7344_v40 = vmul.f32 %v12501_v26, %v12643_v32  ;;  %v7463_v24 = vadd.f32 %v7431_v57, %v7362_v55 }
 0x780   : > { %v7546_v62 = vmul.f32 %v12450_v34, %v12725_v61  ;;  %v12750_v50 = vld [vmem:[#allocation2 + $0x151] sm:$0xff]  ;;  %v12756_v8 = vld [vmem:[#allocation2 + $0xa9] sm:$0xff]  ;;  %v7464_v4 = vadd.f32 %v7432_v21, %v7363_v56 }
 0x781   : > { %vm6778_vm14 = vcmp.ge.f32.partialorder %v6728_v31, 0.0  ;;  %v6810_v19 = vmul.f32 0.2, %v6728_v31  ;;  %v7376_v18 = vadd.f32 %v7344_v40, %v7275_v52  ;;  %v7564_v9 = vadd.f32 %v7532_v53, %v7463_v24  ;;  %v12795_v53 = vld [vmem:[#allocation2 + $0xb2] sm:$0xff] }
 0x782   : > { %7816 = vadd.xlane.f32.xlu0 %v7815_v47  ;;  %v7647_v47 = vmul.f32 %v12542_v7, %v12750_v50  ;;  %v7446_v52 = vmul.f32 %v12426_v23, %v12680_v25  ;;  %v7633_v37 = vmul.f32 %v12542_v7, %v12756_v8  ;;  %v7734_v40 = vmul.f32 %v12565_v46, %v12758_v0 }
 0x783   : > { %v6842_v42 = vsel %vm6778_vm14, %v6728_v31, %v6810_v19  ;;  %v7477_v59 = vadd.f32 %v7445_v63, %v7376_v18  ;;  %v7029_v31 = vmul.f32 %v12368_v5, %v12649_v15  ;;  %v7565_v63 = vadd.f32 %v7533_v20, %v7464_v4 }
 0x784   : > { %6874 = vst.msk [vmem:[#allocation2 + $0x159] sm:$0xff] %vm333_vm0, %v6842_v42  ;;  %v7478_v42 = vadd.f32 %v7446_v52, %v7377_v6  ;;  %v7665_v13 = vadd.f32 %v7633_v37, %v7564_v9  ;;  %v7634_v18 = vmul.f32 %v12542_v7, %v12769_v45  ;;  %v6942_v24 = vmul.f32 %v12358_v3, %v12618_v58 }
 0x785   : > { %v7578_v30 = vadd.f32 %v7546_v62, %v7477_v59  ;;  %v7735_v6 = vmul.f32 %v12565_v46, %v12795_v53  ;;  %v7130_v9 = vmul.f32 %v12374_v2, %v12651_v49  ;;  %v7231_v52 = vmul.f32 %v12387_v39, %v12731_v27 }
 0x786   : > { %v7766_v59 = vadd.f32 %v7734_v40, %v7665_v13  ;;  %v7666_v33 = vadd.f32 %v7634_v18, %v7565_v63  ;;  %v7232_v49 = vmul.f32 %v12387_v39, %v12742_v44  ;;  %v7145_v18 = vmul.f32 %v12374_v2, %v12680_v25 }
 0x787   : > { %v7679_v54 = vadd.f32 %v7647_v47, %v7578_v30  ;;  %v7043_v30 = vmul.f32 %v12368_v5, %v12643_v32  ;;  %v7044_v47 = vmul.f32 %v12368_v5, %v12670_v14  ;;  %v12828_v14 = vld [vmem:[%s13182_s6] ss:$0 sm:$0xff] }
 0x788   : > { %v6507_v16 = vpop.f32.mrf.mxu0  ;;  %v7818_v32 = vsel %vm333_vm0, %v7766_v59, 0.0  ;;  %v7433_v59 = vmul.f32 %v12426_v23, %v12758_v0 }
 0x789   : > { %v6508_v10 = vadd.f32 %v12305_v38, %v6507_v16  ;;  %v7030_v38 = vmul.f32 %v12368_v5, %v12660_v1 }
 0x78a   : > { %v6509_v29 = vpop.f32.mrf.mxu0 }
 0x78b   : > { %v6733_v17 = vadd.f32 %v6732_v22, %v6508_v10  ;;  %v12775_v19 = vld [vmem:[#allocation2 + $0x152] sm:$0xff]  ;;  %v12789_v57 = vld [vmem:[#allocation2 + $0x15a] sm:$0xff]  ;;  %v7061_v10 = vadd.f32 %v7029_v31, %v6928_v41  ;;  %v7062_v58 = vadd.f32 %v7030_v38, %v6929_v35  ;;  %v7144_v22 = vmul.f32 %v12374_v2, %v12666_v11 }
 0x78c   : > { %v12777_v15 = vld [vmem:[#allocation2 + $0x158] sm:$0xff]  ;;  %v7748_v48 = vmul.f32 %v12565_v46, %v12775_v19  ;;  %v7749_v16 = vmul.f32 %v12565_v46, %v12789_v57  ;;  %v6943_v29 = vmul.f32 %v12358_v3, %v12668_v51  ;;  %v7131_v41 = vmul.f32 %v12374_v2, %v12686_v12 }
 0x78d   : > { %v12779_v43 = vld [vmem:[#allocation2 + $0x159] sm:$0xff]  ;;  %v7547_v1 = vmul.f32 %v12450_v34, %v12777_v15  ;;  %vm6779_vm15 = vcmp.ge.f32.partialorder %v6733_v17, 0.0  ;;  %v6811_v60 = vmul.f32 0.2, %v6733_v17  ;;  %v7767_v35 = vadd.f32 %v7735_v6, %v7666_v33  ;;  %v12853_v6 = vld [vmem:[#allocation2 + $0xc8] sm:$0xff] }
 0x78e   : > { %v7780_v62 = vadd.f32 %v7748_v48, %v7679_v54  ;;  %v7648_v55 = vmul.f32 %v12542_v7, %v12779_v43  ;;  %v7075_v38 = vadd.f32 %v7043_v30, %v6942_v24  ;;  %v7245_v51 = vmul.f32 %v12387_v39, %v12725_v61 }
 0x78f   : > { %v7579_v36 = vadd.f32 %v7547_v1, %v7478_v42  ;;  %v6843_v56 = vsel %vm6779_vm15, %v6733_v17, %v6811_v60  ;;  %v7162_v12 = vadd.f32 %v7130_v9, %v7061_v10  ;;  %v7163_v37 = vadd.f32 %v7131_v41, %v7062_v58  ;;  %v12856_v10 = vpop.f32.mrf.mxu1 }
 0x790   : > { %6875 = vst.msk [vmem:[#allocation2 + $0x169] sm:$0xff] %vm333_vm0, %v6843_v56  ;;  %v7860_v21 = vsel %vm333_vm0, %v7780_v62, 0.0  ;;  %v7176_v63 = vadd.f32 %v7144_v22, %v7075_v38  ;;  %v7076_v54 = vadd.f32 %v7044_v47, %v6943_v29  ;;  %v7821_v60 = vsel %vm333_vm0, %v7767_v35, 0.0 }
 0x791   : > { %v7680_v20 = vadd.f32 %v7648_v55, %v7579_v36  ;;  %7861 = vadd.xlane.f32.xlu1 %v7860_v21  ;;  %v7263_v42 = vadd.f32 %v7231_v52, %v7162_v12  ;;  %v7264_v1 = vadd.f32 %v7232_v49, %v7163_v37  ;;  %v7246_v62 = vmul.f32 %v12387_v39, %v12777_v15  ;;  %v12837_v36 = vld [vmem:[#allocation2 + $0xc0] sm:$0xff] }
 0x792   : > { %v7277_v13 = vadd.f32 %v7245_v51, %v7176_v63  ;;  %v7346_v33 = vmul.f32 %v12501_v26, %v12750_v50  ;;  %v7447_v25 = vmul.f32 %v12426_v23, %v12775_v19  ;;  %v7177_v24 = vadd.f32 %v7145_v18, %v7076_v54  ;;  %v12866_v49 = vld [vmem:[#allocation2 + $0xc1] sm:$0xff] }
 0x793   : > { %v7781_v4 = vadd.f32 %v7749_v16, %v7680_v20  ;;  %v7333_v21 = vmul.f32 %v12501_v26, %v12769_v45  ;;  %v7534_v30 = vmul.f32 %v12450_v34, %v12837_v36  ;;  %v6930_v47 = vmul.f32 %v12358_v3, %v12731_v27 }
 0x794   : > { %v6512_v31 = vpop.f32.mrf.mxu0  ;;  %v7378_v9 = vadd.f32 %v7346_v33, %v7277_v13  ;;  %v7347_v41 = vmul.f32 %v12501_v26, %v12779_v43  ;;  %v7535_v35 = vmul.f32 %v12450_v34, %v12853_v6  ;;  %v7635_v54 = vmul.f32 %v12542_v7, %v12866_v49 }
 0x795   : > { %v7863_v11 = vsel %vm333_vm0, %v7781_v4, 0.0  ;;  %v6513_v17 = vadd.f32 %v12828_v14, %v6512_v31  ;;  %7819 = vadd.xlane.f32.xlu1 %v7818_v32  ;;  %v7278_v4 = vadd.f32 %v7246_v62, %v7177_v24  ;;  %v7365_v22 = vadd.f32 %v7333_v21, %v7264_v1  ;;  %v12868_v31 = vld [vmem:[#allocation2 + $0xc2] sm:$0xff] }
 0x796   : > { %7864 = vadd.xlane.f32.xlu0 %v7863_v11  ;;  %v6514_v40 = vpop.f32.mrf.mxu0  ;;  %v7031_v32 = vmul.f32 %v12368_v5, %v12756_v8  ;;  %v7479_v52 = vadd.f32 %v7447_v25, %v7378_v9  ;;  %v7434_v11 = vmul.f32 %v12426_v23, %v12795_v53  ;;  %v7448_v13 = vmul.f32 %v12426_v23, %v12789_v57 }
 0x797   : > { %v6738_v48 = vadd.f32 %v12746_v28, %v6513_v17  ;;  %v12839_v56 = vld [vmem:[#allocation2 + $0x168] sm:$0xff]  ;;  %v7332_v28 = vmul.f32 %v12501_v26, %v12756_v8  ;;  %v6742_v17 = vpop.f32.mrf.mxu1  ;;  %v7379_v12 = vadd.f32 %v7347_v41, %v7278_v4  ;;  %v7132_v62 = vmul.f32 %v12374_v2, %v12758_v0 }
 0x798   : > { %v7548_v58 = vmul.f32 %v12450_v34, %v12839_v56  ;;  %v12874_v38 = vld [vmem:[#allocation2 + $0x169] sm:$0xff]  ;;  %v7466_v37 = vadd.f32 %v7434_v11, %v7365_v22  ;;  %v6931_v21 = vmul.f32 %v12358_v3, %v12742_v44  ;;  %v7032_v4 = vmul.f32 %v12368_v5, %v12769_v45  ;;  %v12921_v5 = vld [vmem:[%s13183_s7 + $0x1] ss:$0 sm:$0xff] }
 0x799   : > { %vm6780_vm13 = vcmp.ge.f32.partialorder %v6738_v48, 0.0  ;;  %v6812_v55 = vmul.f32 0.2, %v6738_v48  ;;  %v7364_v16 = vadd.f32 %v7332_v28, %v7263_v42  ;;  %v12876_v40 = vld [vmem:[#allocation2 + $0xc9] sm:$0xff]  ;;  %v7063_v42 = vadd.f32 %v7031_v32, %v6930_v47 }
 0x79a   : > { %7822 = vadd.xlane.f32.xlu0 %v7821_v60  ;;  %v7580_v8 = vadd.f32 %v7548_v58, %v7479_v52  ;;  %v7649_v60 = vmul.f32 %v12542_v7, %v12874_v38  ;;  %v7567_v18 = vadd.f32 %v7535_v35, %v7466_v37  ;;  %v7636_v24 = vmul.f32 %v12542_v7, %v12876_v40  ;;  %v12909_v32 = vld [vmem:[#allocation2 + $0xca] sm:$0xff]  ;;  %v12914_v52 = vld [vmem:[%s13183_s7] ss:$0 sm:$0xff] }
 0x79b   : > { %v6844_v20 = vsel %vm6780_vm13, %v6738_v48, %v6812_v55  ;;  %v7465_v29 = vadd.f32 %v7433_v59, %v7364_v16  ;;  %v7736_v48 = vmul.f32 %v12565_v46, %v12868_v31  ;;  %v6944_v41 = vmul.f32 %v12914_v52, %v12725_v61 }
 0x79c   : > { %6876 = vst.msk [vmem:[#allocation2 + $0x171] sm:$0xff] %vm333_vm0, %v6844_v20  ;;  %v7681_v20 = vadd.f32 %v7649_v60, %v7580_v8  ;;  %v7668_v44 = vadd.f32 %v7636_v24, %v7567_v18  ;;  %v7045_v45 = vmul.f32 %v12921_v5, %v12750_v50  ;;  %v6945_v11 = vmul.f32 %v12914_v52, %v12777_v15 }
 0x79d   : > { %v7566_v27 = vadd.f32 %v7534_v30, %v7465_v29  ;;  %v7480_v30 = vadd.f32 %v7448_v13, %v7379_v12  ;;  %v7046_v61 = vmul.f32 %v12921_v5, %v12779_v43  ;;  %v7064_v15 = vadd.f32 %v7032_v4, %v6931_v21 }
 0x79e   : > { %v7737_v12 = vmul.f32 %v12565_v46, %v12909_v32  ;;  %v7164_v37 = vadd.f32 %v7132_v62, %v7063_v42  ;;  %v7247_v43 = vmul.f32 %v12387_v39, %v12839_v56  ;;  %v7435_v21 = vmul.f32 %v12426_v23, %v12868_v31 }
 0x79f   : > { %v7667_v25 = vadd.f32 %v7635_v54, %v7566_v27  ;;  %v7077_v54 = vadd.f32 %v7045_v45, %v6944_v41  ;;  %v7078_v18 = vadd.f32 %v7046_v61, %v6945_v11 }
 0x7a0   : > { %v6517_v51 = vpop.f32.mrf.mxu0  ;;  %v7769_v13 = vadd.f32 %v7737_v12, %v7668_v44  ;;  %v7335_v44 = vmul.f32 %v12501_v26, %v12876_v40  ;;  %v7702_v12 = vld [vmem:[#allocation2 + $0xda] sm:$0xff] }
 0x7a1   : > { %v6518_v63 = vadd.f32 %v12828_v14, %v6517_v51  ;;  %v7768_v58 = vadd.f32 %v7736_v48, %v7667_v25 }
 0x7a2   : > { %v6519_v1 = vpop.f32.mrf.mxu0 }
 0x7a3   : > { %v6743_v55 = vadd.f32 %v6742_v17, %v6518_v63  ;;  %v12889_v28 = vld [vmem:[#allocation2 + $0x16a] sm:$0xff]  ;;  %v12903_v9 = vld [vmem:[#allocation2 + $0x172] sm:$0xff]  ;;  %v12936_v17 = vld [vmem:[%s13183_s7 + $0x2] ss:$0 sm:$0xff]  ;;  %v7233_v63 = vmul.f32 %v12387_v39, %v12837_v36  ;;  %v7824_v36 = vsel %vm333_vm0, %v7768_v58, 0.0 }
 0x7a4   : > { %v12891_v59 = vld [vmem:[#allocation2 + $0x170] sm:$0xff]  ;;  %v7750_v16 = vmul.f32 %v12565_v46, %v12889_v28  ;;  %v7751_v51 = vmul.f32 %v12565_v46, %v12903_v9  ;;  %v7146_v50 = vmul.f32 %v12936_v17, %v12775_v19  ;;  %v7133_v48 = vmul.f32 %v12936_v17, %v12795_v53  ;;  %v12951_v19 = vld [vmem:[%s13183_s7 + $0x3] ss:$0 sm:$0xff] }
 0x7a5   : > { %v12893_v33 = vld [vmem:[#allocation2 + $0x171] sm:$0xff]  ;;  %v7549_v2 = vmul.f32 %v12450_v34, %v12891_v59  ;;  %vm6781_vm3 = vcmp.ge.f32.partialorder %v6743_v55, 0.0  ;;  %v6813_v0 = vmul.f32 0.2, %v6743_v55  ;;  %v7234_v1 = vmul.f32 %v12951_v19, %v12853_v6 }
 0x7a6   : > { %v7782_v22 = vadd.f32 %v7750_v16, %v7681_v20  ;;  %v7650_v3 = vmul.f32 %v12542_v7, %v12893_v33  ;;  %v7178_v53 = vadd.f32 %v7146_v50, %v7077_v54  ;;  %v7165_v62 = vadd.f32 %v7133_v48, %v7064_v15  ;;  %v7601_v50 = vld [vmem:[#allocation2 + $0xd9] sm:$0xff]  ;;  %v8694_v54 = vld [vmem:[%s13183_s7 + $0x6] ss:$0 sm:$0xff] }
 0x7a7   : > { %v7581_v29 = vadd.f32 %v7549_v2, %v7480_v30  ;;  %v6845_v47 = vsel %vm6781_vm3, %v6743_v55, %v6813_v0  ;;  %v7147_v25 = vmul.f32 %v12936_v17, %v12789_v57  ;;  %v7265_v24 = vadd.f32 %v7233_v63, %v7164_v37  ;;  %v7500_v30 = vld [vmem:[#allocation2 + $0xd8] sm:$0xff]  ;;  %v8693_v37 = vld [vmem:[%s13183_s7 + $0x5] ss:$0 sm:$0xff] }
 0x7a8   : > { %6877 = vst.msk [vmem:[#allocation2 + $0x181] sm:$0xff] %vm333_vm0, %v6845_v47  ;;  %v7866_v35 = vsel %vm333_vm0, %v7782_v22, 0.0  ;;  %v7334_v6 = vmul.f32 %v12501_v26, %v12866_v49  ;;  %v7279_v16 = vadd.f32 %v7247_v43, %v7178_v53  ;;  %v7266_v2 = vadd.f32 %v7234_v1, %v7165_v62 }
 0x7a9   : > { %v7682_v27 = vadd.f32 %v7650_v3, %v7581_v29  ;;  %7867 = vadd.xlane.f32.xlu1 %v7866_v35  ;;  %v7827_v0 = vsel %vm333_vm0, %v7769_v13, 0.0  ;;  %v7179_v4 = vadd.f32 %v7147_v25, %v7078_v18  ;;  %v6946_v57 = vmul.f32 %v12914_v52, %v12839_v56  ;;  %v7501_v35 = vld [vmem:[#allocation2 + $0xe0] sm:$0xff] }
 0x7aa   : > { %v7047_v49 = vmul.f32 %v12921_v5, %v12874_v38  ;;  %v7449_v22 = vmul.f32 %v12426_v23, %v12889_v28  ;;  %v7366_v29 = vadd.f32 %v7334_v6, %v7265_v24  ;;  %v7536_v3 = vmul.f32 %v12450_v34, %v7500_v30  ;;  %v7617_v25 = vld [vmem:[#allocation2 + $0x199] sm:$0xff] }
 0x7ab   : > { %v7783_v8 = vadd.f32 %v7751_v51, %v7682_v27  ;;  %v7148_v56 = vmul.f32 %v12936_v17, %v12889_v28  ;;  %v7367_v27 = vadd.f32 %v7335_v44, %v7266_v2  ;;  %v7349_v40 = vmul.f32 %v12501_v26, %v12893_v33 }
 0x7ac   : > { %v6522_v60 = vpop.f32.mrf.mxu0  ;;  %v7079_v23 = vadd.f32 %v7047_v49, %v6946_v57  ;;  %v6947_v28 = vmul.f32 %v12914_v52, %v12891_v59  ;;  %v7436_v63 = vmul.f32 %v8693_v37, %v12909_v32  ;;  %v7537_v43 = vmul.f32 %v8694_v54, %v7501_v35  ;;  %v7602_v52 = vld [vmem:[#allocation2 + $0xe1] sm:$0xff] }
 0x7ad   : > { %v7869_v42 = vsel %vm333_vm0, %v7783_v8, 0.0  ;;  %v6523_v39 = vadd.f32 %v12828_v14, %v6522_v60  ;;  %7825 = vadd.xlane.f32.xlu1 %v7824_v36  ;;  %v7248_v14 = vmul.f32 %v12951_v19, %v12891_v59  ;;  %v7450_v13 = vmul.f32 %v8693_v37, %v12903_v9  ;;  %v7718_v57 = vld [vmem:[#allocation2 + $0x19a] sm:$0xff] }
 0x7ae   : > { %7870 = vadd.xlane.f32.xlu0 %v7869_v42  ;;  %v6524_v55 = vpop.f32.mrf.mxu0  ;;  %v7180_v48 = vadd.f32 %v7148_v56, %v7079_v23  ;;  %v7516_v42 = vld [vmem:[#allocation2 + $0x198] sm:$0xff]  ;;  %v7738_v32 = vmul.f32 %v12565_v46, %v7702_v12  ;;  %v7638_v62 = vmul.f32 %v12542_v7, %v7602_v52  ;;  %v7149_v30 = vmul.f32 %v12936_v17, %v12903_v9  ;;  %v7703_v17 = vld [vmem:[#allocation2 + $0xe2] sm:$0xff] }
 0x7af   : > { %v6748_v20 = vadd.f32 %v12856_v10, %v6523_v39  ;;  %v7514_v58 = vld [vmem:[#allocation2 + $0x180] sm:$0xff]  ;;  %v7348_v10 = vmul.f32 %v12501_v26, %v12874_v38  ;;  %v7280_v11 = vadd.f32 %v7248_v14, %v7179_v4  ;;  %v7467_v38 = vadd.f32 %v7435_v21, %v7366_v29 }
 0x7b0   : > { %v7550_v45 = vmul.f32 %v12450_v34, %v7514_v58  ;;  %v7249_v51 = vmul.f32 %v12951_v19, %v7514_v58  ;;  %v7048_v34 = vmul.f32 %v12921_v5, %v12893_v33  ;;  %v7615_v15 = vld [vmem:[#allocation2 + $0x181] sm:$0xff]  ;;  %v7637_v33 = vmul.f32 %v12542_v7, %v7601_v50 }
 0x7b1   : > { %vm6782_vm4 = vcmp.ge.f32.partialorder %v6748_v20, 0.0  ;;  %v6814_v31 = vmul.f32 0.2, %v6748_v20  ;;  %v7380_v41 = vadd.f32 %v7348_v10, %v7279_v16  ;;  %v7568_v8 = vadd.f32 %v7536_v3, %v7467_v38 }
 0x7b2   : > { %7828 = vadd.xlane.f32.xlu0 %v7827_v0  ;;  %v7381_v59 = vadd.f32 %v7349_v40, %v7280_v11  ;;  %v7468_v5 = vadd.f32 %v7436_v63, %v7367_v27  ;;  %v7281_v60 = vadd.f32 %v7249_v51, %v7180_v48  ;;  %v7651_v36 = vmul.f32 %v12542_v7, %v7615_v15 }
 0x7b3   : > { %v6846_v47 = vsel %vm6782_vm4, %v6748_v20, %v6814_v31  ;;  %v7481_v61 = vadd.f32 %v7449_v22, %v7380_v41  ;;  %v7080_v18 = vadd.f32 %v7048_v34, %v6947_v28  ;;  %v7669_v39 = vadd.f32 %v7637_v33, %v7568_v8  ;;  %v7517_v41 = vld [vmem:[#allocation2 + $0x1a0] sm:$0xff] }
 0x7b4   : > { %6878 = vst.msk [vmem:[#allocation2 + $0x189] sm:$0xff] %vm333_vm0, %v6846_v47  ;;  %v7569_v53 = vadd.f32 %v7537_v43, %v7468_v5  ;;  %v7350_v55 = vmul.f32 %v12501_v26, %v7615_v15  ;;  %v7482_v21 = vadd.f32 %v7450_v13, %v7381_v59  ;;  %v7552_v14 = vmul.f32 %v8694_v54, %v7516_v42  ;;  %v7719_v8 = vld [vmem:[#allocation2 + $0x1a2] sm:$0xff]  ;;  %v7790_v42 = vpop.xlane.xlu0 %7789 }
 0x7b5   : > { %v7582_v1 = vadd.f32 %v7550_v45, %v7481_v61  ;;  %v7770_v31 = vadd.f32 %v7738_v32, %v7669_v39  ;;  %v7653_v10 = vmul.f32 %v12542_v7, %v7617_v25  ;;  %v7181_v22 = vadd.f32 %v7149_v30, %v7080_v18 }
 0x7b6   : > { %v7382_v58 = vadd.f32 %v7350_v55, %v7281_v60  ;;  %v7670_v9 = vadd.f32 %v7638_v62, %v7569_v53  ;;  %v7754_v45 = vmul.f32 %v12565_v46, %v7718_v57  ;;  %v7553_v50 = vmul.f32 %v8694_v54, %v7517_v41  ;;  %v8324_v60 = vld [vmem:[#allocation4] ss:$0 sm:$0xff] }
 0x7b7   : > { %v7683_v24 = vadd.f32 %v7651_v36, %v7582_v1  ;;  %v7739_v34 = vmul.f32 %v12565_v46, %v7703_v17  ;;  %v7830_v43 = vsel %vm333_vm0, %v7770_v31, 0.0  ;;  %v7793_v36 = vpop.xlane.xlu1 %7792 }
 0x7b8   : > { %v7796_v13 = vpop.xlane.xlu0 %7795 }
 0x7b9   : > { %v7771_v48 = vadd.f32 %v7739_v34, %v7670_v9 }
 0x7bb   : > { %v7716_v6 = vld [vmem:[#allocation2 + $0x182] sm:$0xff]  ;;  %v7717_v49 = vld [vmem:[#allocation2 + $0x18a] sm:$0xff]  ;;  %v7833_v52 = vsel %vm333_vm0, %v7771_v48, 0.0  ;;  %v7838_v32 = vpop.xlane.xlu1 %7837 }
 0x7bc   : > { %v7515_v20 = vld [vmem:[#allocation2 + $0x188] sm:$0xff]  ;;  %v7752_v2 = vmul.f32 %v12565_v46, %v7716_v6  ;;  %v7451_v4 = vmul.f32 %v8693_v37, %v7716_v6  ;;  %v7753_v23 = vmul.f32 %v12565_v46, %v7717_v49  ;;  %v7452_v40 = vmul.f32 %v8693_v37, %v7717_v49  ;;  %v7799_v39 = vpop.xlane.xlu0 %7798 }
 0x7bd   : > { %v7616_v16 = vld [vmem:[#allocation2 + $0x189] sm:$0xff]  ;;  %v7551_v0 = vmul.f32 %v8694_v54, %v7515_v20  ;;  %v7250_v29 = vmul.f32 %v12951_v19, %v7515_v20  ;;  %v7618_v19 = vld [vmem:[#allocation2 + $0x1a1] sm:$0xff]  ;;  %v7755_v37 = vmul.f32 %v12565_v46, %v7719_v8 }
 0x7be   : > { %v7784_v3 = vadd.f32 %v7752_v2, %v7683_v24  ;;  %v7652_v56 = vmul.f32 %v12542_v7, %v7616_v16  ;;  %v7483_v47 = vadd.f32 %v7451_v4, %v7382_v58  ;;  %v7351_v35 = vmul.f32 %v12501_v26, %v7616_v16 }
 0x7bf   : > { %v7583_v44 = vadd.f32 %v7551_v0, %v7482_v21  ;;  %v7282_v11 = vadd.f32 %v7250_v29, %v7181_v22  ;;  %v7654_v63 = vmul.f32 %v12542_v7, %v7618_v19  ;;  %v7958_v22 = vlaneseq }
 0x7c0   : > { %v7872_v38 = vsel %vm333_vm0, %v7784_v3, 0.0  ;;  %v7584_v51 = vadd.f32 %v7552_v14, %v7483_v47  ;;  %v7841_v46 = vpop.xlane.xlu0 %7840 }
 0x7c1   : > { %v7684_v27 = vadd.f32 %v7652_v56, %v7583_v44  ;;  %7873 = vadd.xlane.f32.xlu1 %v7872_v38  ;;  %v7383_v61 = vadd.f32 %v7351_v35, %v7282_v11  ;;  %v7959_v44 = vand.u32 127, %v7958_v22  ;;  %v7961_v41 = vshrl.u32 %v7958_v22, 7 }
 0x7c2   : > { %v7685_v15 = vadd.f32 %v7653_v10, %v7584_v51 }
 0x7c3   : > { %v7785_v28 = vadd.f32 %v7753_v23, %v7684_v27  ;;  %v7484_v12 = vadd.f32 %v7452_v40, %v7383_v61  ;;  %v7964_v9 = vadd.s32 4294967288, %v7959_v44 }
 0x7c4   : > { %v7786_v1 = vadd.f32 %v7754_v45, %v7685_v15  ;;  %v13021_v45 = vsub.s32 %v7959_v44, %v7961_v41 }
 0x7c5   : > { %v7875_v26 = vsel %vm333_vm0, %v7785_v28, 0.0  ;;  %7831 = vadd.xlane.f32.xlu1 %v7830_v43  ;;  %v7585_v59 = vadd.f32 %v7553_v50, %v7484_v12  ;;  %v13023_v11 = vsub.s32 %v7964_v9, %v7961_v41 }
 0x7c6   : > { %7876 = vadd.xlane.f32.xlu0 %v7875_v26  ;;  %v7878_v33 = vsel %vm333_vm0, %v7786_v1, 0.0 }
 0x7c7   : > { %v7686_v54 = vadd.f32 %v7654_v63, %v7585_v59 }
 0x7c9   : > { %7879 = vadd.xlane.f32.xlu1 %v7878_v33  ;;  %v7787_v5 = vadd.f32 %v7755_v37, %v7686_v54 }
 0x7ca   : > { %7834 = vadd.xlane.f32.xlu0 %v7833_v52 }
 0x7cb   : > { %v7881_v7 = vsel %vm333_vm0, %v7787_v5, 0.0  ;;  %vm7969_vm0 = vcmask 130112  }
 0x7ce   : > { %7882 = vadd.xlane.f32.xlu0 %v7881_v7 }
 0x7d2   : > { %v7844_v18 = vpop.xlane.xlu1 %7843 }
 0x7d6   : > { %v7802_v53 = vpop.xlane.xlu1 %7801 }
 0x7d7   : > { %v7847_v62 = vpop.xlane.xlu0 %7846 }
 0x7da   : > { %7891 = vperm.xlu1 %8663, %v8324_v60  }
 0x7db   : > { %v7805_v25 = vpop.xlane.xlu0 %7804 }
 0x7ea   : > { %v7850_v55 = vpop.xlane.xlu1 %7849 }
 0x7ee   : > { %v7808_v24 = vpop.xlane.xlu1 %7807 }
 0x7ef   : > { %v7853_v6 = vpop.xlane.xlu0 %7852 }
 0x7f3   : > { %v7811_v20 = vpop.xlane.xlu0 %7810 }
 0x802   : > { %v7856_v21 = vpop.xlane.xlu1 %7855 }
 0x806   : > { %v7814_v16 = vpop.xlane.xlu1 %7813 }
 0x807   : > { %v7859_v14 = vpop.xlane.xlu0 %7858 }
 0x80b   : > { %v7817_v2 = vpop.xlane.xlu0 %7816 }
 0x81a   : > { %v7862_v30 = vpop.xlane.xlu1 %7861 }
 0x81e   : > { %v7820_v0 = vpop.xlane.xlu1 %7819 }
 0x81f   : > { %v7865_v58 = vpop.xlane.xlu0 %7864 }
 0x823   : > { %v7823_v57 = vpop.xlane.xlu0 %7822 }
 0x832   : > { %v7868_v4 = vpop.xlane.xlu1 %7867 }
 0x836   : > { %v7826_v49 = vpop.xlane.xlu1 %7825 }
 0x837   : > { %v7871_v31 = vpop.xlane.xlu0 %7870 }
 0x83b   : > { %v7829_v3 = vpop.xlane.xlu0 %7828 }
 0x84a   : > { %v7874_v10 = vpop.xlane.xlu1 %7873 }
 0x84e   : > { %v7832_v29 = vpop.xlane.xlu1 %7831 }
 0x84f   : > { %v7877_v47 = vpop.xlane.xlu0 %7876 }
 0x852   : > { %v7880_v56 = vpop.xlane.xlu1 %7879 }
 0x853   : > { %v7835_v35 = vpop.xlane.xlu0 %7834 }
 0x856   : > { %v7892_v17 = vpop.permute.xlu1 %7891 }
 0x857   : > { %v7894_v38 = vadd.f32 %v7892_v17, %v7790_v42  ;;  %v7895_v27 = vadd.f32 %v7892_v17, %v7793_v36  ;;  %v7896_v23 = vadd.f32 %v7892_v17, %v7796_v13  ;;  %v7897_v51 = vadd.f32 %v7892_v17, %v7799_v39  ;;  %v7883_v7 = vpop.xlane.xlu0 %7882 }
 0x858   : > { %v7898_v19 = vadd.f32 %v7892_v17, %v7802_v53  ;;  %v7899_v61 = vadd.f32 %v7892_v17, %v7805_v25  ;;  %v7900_v40 = vadd.f32 %v7892_v17, %v7808_v24  ;;  %v7901_v50 = vadd.f32 %v7892_v17, %v7811_v20 }
 0x859   : > { %v13025_v28 = vadd.f32 %v7892_v17, %v7814_v16  ;;  %v13027_v34 = vadd.f32 %v7892_v17, %v7817_v2  ;;  %v13029_v15 = vadd.f32 %v7892_v17, %v7820_v0  ;;  %v13031_v8 = vadd.f32 %v7892_v17, %v7823_v57 }
 0x85a   : > { %v13033_v12 = vadd.f32 %v7892_v17, %v7826_v49  ;;  %v13035_v63 = vadd.f32 %v7892_v17, %v7829_v3  ;;  %v13037_v26 = vadd.f32 %v7892_v17, %v7832_v29  ;;  %v13039_v43 = vadd.f32 %v7892_v17, %v7835_v35 }
 0x85b   : > { %v7910_v48 = vadd.f32 %v7892_v17, %v7838_v32  ;;  %v7911_v1 = vadd.f32 %v7892_v17, %v7841_v46  ;;  %v7912_v59 = vadd.f32 %v7892_v17, %v7844_v18  ;;  %v7913_v37 = vadd.f32 %v7892_v17, %v7847_v62 }
 0x85c   : > { %v7914_v54 = vadd.f32 %v7892_v17, %v7850_v55  ;;  %v7915_v52 = vadd.f32 %v7892_v17, %v7853_v6  ;;  %v7916_v33 = vadd.f32 %v7892_v17, %v7856_v21  ;;  %v7917_v5 = vadd.f32 %v7892_v17, %v7859_v14 }
 0x85d   : > { %v7963_v60 = vrot.slane %v7894_v38, %v13021_v45  ;;  %v7968_v42 = vrot.slane %v7895_v27, %v13023_v11  ;;  %v7974_v36 = vrot.slane %v7896_v23, %v13021_v45  ;;  %v7978_v13 = vrot.slane %v7897_v51, %v13023_v11 }
 0x85e   : > { %v7983_v32 = vrot.slane %v7898_v19, %v13021_v45  ;;  %v7987_v18 = vrot.slane %v7899_v61, %v13023_v11  ;;  %v7992_v39 = vrot.slane %v7900_v40, %v13021_v45  ;;  %v7996_v46 = vrot.slane %v7901_v50, %v13023_v11 }
 0x85f   : > { %v7918_v53 = vadd.f32 %v7892_v17, %v7862_v30  ;;  %v7919_v62 = vadd.f32 %v7892_v17, %v7865_v58  ;;  %v7920_v55 = vadd.f32 %v7892_v17, %v7868_v4  ;;  %v7921_v25 = vadd.f32 %v7892_v17, %v7871_v31 }
 0x860   : > { %v7922_v24 = vadd.f32 %v7892_v17, %v7874_v10  ;;  %v7923_v6 = vadd.f32 %v7892_v17, %v7877_v47  ;;  %v13049_v21 = vadd.f32 %v7892_v17, %v7880_v56  ;;  %v13051_v20 = vadd.f32 %v7892_v17, %v7883_v7 }
 0x861   : > { %v7970_v16 = vsel %vm7969_vm0, %v7968_v42, %v7963_v60  ;;  %v7979_v14 = vsel %vm7969_vm0, %v7978_v13, %v7974_v36  ;;  %v8001_v30 = vrot.slane %v13025_v28, %v13021_v45  ;;  %v8005_v2 = vrot.slane %v13027_v34, %v13023_v11 }
 0x862   : > { %v7988_v0 = vsel %vm7969_vm0, %v7987_v18, %v7983_v32  ;;  %v7997_v58 = vsel %vm7969_vm0, %v7996_v46, %v7992_v39  ;;  %v8037_v4 = vrot.slane %v7910_v48, %v13021_v45  ;;  %v8041_v57 = vrot.slane %v7911_v1, %v13023_v11 }
 0x863   : > { %v8010_v49 = vrot.slane %v13029_v15, %v13021_v45  ;;  %v8046_v31 = vrot.slane %v7912_v59, %v13021_v45  ;;  %v8050_v10 = vrot.slane %v7913_v37, %v13023_v11  ;;  %v8055_v22 = vrot.slane %v7914_v54, %v13021_v45 }
 0x864   : > { %v8014_v29 = vrot.slane %v13031_v8, %v13023_v11  ;;  %v8019_v3 = vrot.slane %v13033_v12, %v13021_v45  ;;  %v8059_v44 = vrot.slane %v7915_v52, %v13023_v11  ;;  %v8064_v56 = vrot.slane %v7916_v33, %v13021_v45 }
 0x865   : > { %v8023_v47 = vrot.slane %v13035_v63, %v13023_v11  ;;  %v8042_v41 = vsel %vm7969_vm0, %v8041_v57, %v8037_v4  ;;  %v8051_v9 = vsel %vm7969_vm0, %v8050_v10, %v8046_v31  ;;  %v8068_v17 = vrot.slane %v7917_v5, %v13023_v11 }
 0x866   : > { %v8028_v35 = vrot.slane %v13037_v26, %v13021_v45  ;;  %v8060_v38 = vsel %vm7969_vm0, %v8059_v44, %v8055_v22  ;;  %v8073_v27 = vrot.slane %v7918_v53, %v13021_v45  ;;  %v8077_v23 = vrot.slane %v7919_v62, %v13023_v11 }
 0x867   : > { %v8032_v51 = vrot.slane %v13039_v43, %v13023_v11  ;;  %v8082_v19 = vrot.slane %v7920_v55, %v13021_v45  ;;  %v8086_v61 = vrot.slane %v7921_v25, %v13023_v11  ;;  %v8091_v40 = vrot.slane %v7922_v24, %v13021_v45 }
 0x868   : > { %v8069_v50 = vsel %vm7969_vm0, %v8068_v17, %v8064_v56  ;;  %v8095_v28 = vrot.slane %v7923_v6, %v13023_v11  ;;  %v8107_v34 = vsel %vm8106_vm1, %v7979_v14, %v7970_v16  ;;  %v8120_v15 = vsel %vm8106_vm1, %v8051_v9, %v8042_v41 }
 0x869   : > { %v8100_v8 = vrot.slane %v13049_v21, %v13021_v45  ;;  %v8104_v12 = vrot.slane %v13051_v20, %v13023_v11  ;;  %v8109_v63 = vsel %vm8108_vm2, %v7988_v0, %v8107_v34  ;;  %v8121_v26 = vsel %vm8108_vm2, %v8060_v38, %v8120_v15 }
 0x86a   : > { %v8006_v43 = vsel %vm7969_vm0, %v8005_v2, %v8001_v30  ;;  %v8078_v48 = vsel %vm7969_vm0, %v8077_v23, %v8073_v27  ;;  %v8111_v1 = vsel %vm8110_vm5, %v7997_v58, %v8109_v63  ;;  %v8122_v59 = vsel %vm8110_vm5, %v8069_v50, %v8121_v26 }
 0x86b   : > { %v8015_v45 = vsel %vm7969_vm0, %v8014_v29, %v8010_v49  ;;  %v8087_v37 = vsel %vm7969_vm0, %v8086_v61, %v8082_v19  ;;  %v8113_v11 = vsel %vm8112_vm6, %v8006_v43, %v8111_v1  ;;  %v8123_v54 = vsel %vm8112_vm6, %v8078_v48, %v8122_v59 }
 0x86c   : > { %v8024_v52 = vsel %vm7969_vm0, %v8023_v47, %v8019_v3  ;;  %v8096_v33 = vsel %vm7969_vm0, %v8095_v28, %v8091_v40  ;;  %v8115_v5 = vsel %vm8114_vm7, %v8015_v45, %v8113_v11  ;;  %v8124_v7 = vsel %vm8114_vm7, %v8087_v37, %v8123_v54 }
 0x86d   : > { %v8033_v60 = vsel %vm7969_vm0, %v8032_v51, %v8028_v35  ;;  %v8105_v42 = vsel %vm7969_vm0, %v8104_v12, %v8100_v8  ;;  %v8117_v36 = vsel %vm8116_vm8, %v8024_v52, %v8115_v5  ;;  %v8125_v13 = vsel %vm8116_vm8, %v8096_v33, %v8124_v7 }
 0x86e   : > { %v8119_v32 = vsel %vm8118_vm9, %v8033_v60, %v8117_v36  ;;  %v8126_v18 = vsel %vm8118_vm9, %v8105_v42, %v8125_v13 }
 0x86f   : > { %8130 = vst.msk [vmem:[%s327_s10] sm:$0xff] %vm8129_vm10, %v8119_v32  ;;  %8131 = vst.msk [vmem:[%s327_s10 + $0x8] sm:$0xff] %vm8129_vm10, %v8126_v18 }
 0x870   : > { %8708 = shalt.err (!%p8705_p3)
}
 0x871   : > { %s8709_s27 = scalar_lea.hbm %s13121_s15, 256  ;;  %s8713_s10 = scalar_lea.hbm %s13185_s9, 512 }
 0x872   : > { %p8710_p4 = scmp.ne.s32.totalorder %s13121_s15, %s8709_s27  ;;  %p8714_p9 = scmp.lt.s32.totalorder %s13121_s15, %s13185_s9 }
 0x873   : > { %p8715_p10 = scmp.lt.s32.totalorder %s8713_s10, %s8709_s27 }
 0x874   : > { %p8711_p7 = pnand %p8710_p4, %p8862_p5 }
 0x875   : > { %p8716_p11 = por %p8715_p10, %p8714_p9 }
 0x876   : > { %p8712_p8 = pneg %p8711_p7 }
 0x878   : > { %p8717_p12 = pnand %p8716_p11, %p8712_p8 }
 0x87a   : > { %8720 = shalt.err (!%p8717_p12)
}
 0x87b   : > { %s8770_s22 = smov 128  }
 0x87c   : > { %8611 = dma.vmem_to_hbm [thread:$0]  (%p8862_p5), %s13127_s17, 256, %s13121_s15, %s13135_s24, %s8770_s22, %s8770_s22, %s8759_s28  }
 0x87d PF: > { %p8617_p13 = scmp.ge.s32.totalorder %s8755_s14, 2  ;;  %s8161_s25 = sand.u32 1, %s8743_s11  }
 0x87e   : > { %s8162_s23 = scalar_lea.sflag [#allocation6], %s8161_s25 }
 0x87f   : > { %p8614_p0 = pnand %p8617_p13, %p8866_p6 }
 0x881   : > { %p8615_p1 = pneg %p8614_p0 }
 0x883   : > { %8738 = dma.done.wait (%p8615_p1), %s8162_s23, 256  }
 0x884   : > { %8740 = vsyncadd (%p8615_p1), %s8162_s23, 4294967040  ;;  %p21_p2 = scmp.ge.s32.totalorder %s8849_s16, 4   ;;  %s13296_s11 = smov %s8747_s12 }
 0x885   : > { %s13297_s12 = smov %s8751_s13  ;;  %s13298_s13 = smov %s8860_s19 }
 0x886   : > { %s13299_s14 = smov %s8849_s16  ;;  %23 = sbr.rel (!%p21_p2) target bundleno = 6 (0x6), region = 93 }
 0x88b   :  { %8167 = vsyncpa [#allocation6], 1 }
 0x88c   :  { %8169 = vsyncpa [#allocation6 + $0x1], 1 }

</bundles_post_ra>
